<compile_context>
chip_gen: v5e
topology: v5e:2x2
jax: 0.10.0
libtpu: 0.0.40
codegen_flags: <defaults>
</compile_context>

<pallas_src>
import functools
import math

import numpy as np

import jax
import jax.numpy as jnp
from jax.experimental import pallas as pl
from jax.experimental.pallas import tpu as pltpu


# ----------------------------------------------------------------------------
# Static host-side tables (lane layout n = (m*T + t)*F + f)
# ----------------------------------------------------------------------------

def _conv5x7_taps(m, t, f):
    """Lane-roll shifts + zero-padding masks for a (5,7) conv, padding (2,3)."""
    n = m * t * f
    idx = np.arange(n)
    ti = (idx // f) % t
    fi = idx % f
    shifts, masks = [], []
    for kh in range(5):
        for kw in range(7):
            dt, df = kh - 2, kw - 3
            shifts.append(int((-(dt * f + df)) % n))
            ok = ((ti + dt >= 0) & (ti + dt < t) &
                  (fi + df >= 0) & (fi + df < f))
            masks.append(ok.astype(np.float32))
    return tuple(shifts), np.stack(masks, axis=0)          # (35,), [35, N]


def _group_sum_mats(m, t, f):
    """0/1 matrices B[n', n] = 1 iff n', n share (m,f) [freq] / (m,t) [time]."""
    n = m * t * f
    idx = np.arange(n)
    mi = idx // (t * f)
    ti = (idx // f) % t
    fi = idx % f
    same_m = mi[:, None] == mi[None, :]
    bf = (same_m & (fi[:, None] == fi[None, :])).astype(np.float32)
    bt = (same_m & (ti[:, None] == ti[None, :])).astype(np.float32)
    return bf, bt                                            # [N, N], [N, N]


# ----------------------------------------------------------------------------
# Fully fused per-branch kernel (grid axis = branch {speech, noise})
# ----------------------------------------------------------------------------

def _ra_block_kernel(alphas_ref, x_ref,
                     wres_ref, sres_ref,
                     wqkv_ref, sqkv_ref, aqkv_ref,
                     wft_ref, sft_ref,
                     wc_ref, sc_ref,
                     mask_ref, bf_ref, bt_ref,
                     o_ref,
                     im_ref,
                     *, shifts, c, c2, scale):
    b = pl.program_id(0)                      # 0 = speech branch, 1 = noise

    def prelu(y, a):
        return jnp.where(y > 0, y, a * y)

    def conv5x7(x, w, s):
        # 5x7 conv, padding (2,3): write 35 masked lane-rolled rows into the
        # VMEM im2col scratch slab, then one MXU dot with K = 35*C.
        for tap, sh in enumerate(shifts):
            xx = x if sh == 0 else pltpu.roll(x, sh, axis=1)
            im_ref[tap * c:(tap + 1) * c, :] = xx * mask_ref[tap:tap + 1, :]
        return jnp.dot(w, im_ref[...], preferred_element_type=jnp.float32) + s

    # ---- 2x Residual: conv5x7+BN+PReLU -> conv5x7+BN -> (+x) -> PReLU ------
    x = x_ref[...]                                           # [C, N]
    for r in range(2):
        y = prelu(conv5x7(x, wres_ref[2 * r], sres_ref[2 * r]),
                  alphas_ref[b, 2 * r])
        y = conv5x7(y, wres_ref[2 * r + 1], sres_ref[2 * r + 1])
        x = prelu(y + x, alphas_ref[b, 2 * r + 1])
    x1 = x                                                   # [C, N]

    # ---- all six q/k/v 1x1 convs (+folded BN + PReLU) in one matmul --------
    qkv = jnp.dot(wqkv_ref[...], x1, preferred_element_type=jnp.float32)
    qkv = qkv + sqkv_ref[...]
    qkv = jnp.where(qkv > 0, qkv, aqkv_ref[...] * qkv)       # [6*C2, N]

    # ---- lane-dense C2 x C2 channel self-attention -------------------------
    # q,k,v: [C2, N].  bmat both sums q_i*k_j over the reduction axis of the
    # attention (t for freq, f for time) and broadcasts the score back to all
    # lanes of its group, so softmax / score@V are plain per-lane sublane ops.
    def channel_attention(q, k, v, bmat):
        prod = jnp.concatenate([q[i:i + 1, :] * k for i in range(c2)], axis=0)
        s = jnp.dot(prod, bmat, preferred_element_type=jnp.float32) * scale
        rows = []
        for i in range(c2):
            si = s[i * c2:(i + 1) * c2, :]                   # [C2, N]
            si = si - jnp.max(si, axis=0, keepdims=True)
            p = jnp.exp(si)
            p = p / jnp.sum(p, axis=0, keepdims=True)
            rows.append(jnp.sum(p * v, axis=0, keepdims=True))   # [1, N]
        return jnp.concatenate(rows, axis=0)                 # [C2, N]

    sa_f = channel_attention(qkv[0 * c2:1 * c2], qkv[1 * c2:2 * c2],
                             qkv[2 * c2:3 * c2], bf_ref[...])
    sa_t = channel_attention(qkv[3 * c2:4 * c2], qkv[4 * c2:5 * c2],
                             qkv[5 * c2:6 * c2], bt_ref[...])

    # ---- stacked out-projections, residual adds, final 3C->C conv ----------
    sa = jnp.concatenate([sa_f, sa_t], axis=0)               # [2*C2, N]
    y = jnp.dot(wft_ref[...], sa, preferred_element_type=jnp.float32)
    y = y + sft_ref[...]                                     # [2C, N]
    x2 = x1 + prelu(y[0:c, :], alphas_ref[b, 4])             # freq attention out
    x3 = x1 + prelu(y[c:2 * c, :], alphas_ref[b, 5])         # time attention out
    cat = jnp.concatenate([x1, x2, x3], axis=0)              # [3C, N]
    out = jnp.dot(wc_ref[...], cat, preferred_element_type=jnp.float32)
    o_ref[...] = prelu(out + sc_ref[...], alphas_ref[b, 6])


# ----------------------------------------------------------------------------
# Wrapper: one pallas_call for the whole RA_block (both branches)
# ----------------------------------------------------------------------------

def ra_block_forward(params, speech, noise):
    m, c, t, f = speech.shape
    n = m * t * f
    c2 = c // 2

    to_cn = lambda z: z.transpose(1, 0, 2, 3).reshape(c, n)
    x = jnp.stack([to_cn(speech), to_cn(noise)], axis=0)     # [2, C, N]

    shifts, mask_np = _conv5x7_taps(m, t, f)
    bf_np, bt_np = _group_sum_mats(m, t, f)
    mask = jnp.asarray(mask_np)
    bf = jnp.asarray(bf_np)
    bt = jnp.asarray(bt_np)

    kernel = functools.partial(_ra_block_kernel, shifts=shifts, c=c, c2=c2,
                               scale=1.0 / math.sqrt(c2 * f))

    def per_branch(*shape):                   # branch-indexed weight blocks
        nd = len(shape)
        return pl.BlockSpec((None,) + shape, lambda b: (b,) + (0,) * nd)

    def shared(*shape):                       # constant blocks (masks, bmats)
        nd = len(shape)
        return pl.BlockSpec(shape, lambda b: (0,) * nd)

    out = pl.pallas_call(
        kernel,
        out_shape=jax.ShapeDtypeStruct((2, c, n), jnp.float32),
        grid=(2,),
        in_specs=[
            pl.BlockSpec(memory_space=pltpu.MemorySpace.SMEM),   # prelu alphas
            per_branch(c, n),                                    # x
            per_branch(4, c, 35 * c),                            # w_res
            per_branch(4, c, 1),                                 # s_res
            per_branch(6 * c2, c),                               # w_qkv
            per_branch(6 * c2, 1),                               # s_qkv
            per_branch(6 * c2, 1),                               # a_qkv
            per_branch(2 * c, 2 * c2),                           # w_ft (blockdiag)
            per_branch(2 * c, 1),                                # s_ft
            per_branch(c, 3 * c),                                # w_c
            per_branch(c, 1),                                    # s_c
            shared(35, n),                                       # conv masks
            shared(n, n),                                        # freq group-sum
            shared(n, n),                                        # time group-sum
        ],
        out_specs=pl.BlockSpec((None, c, n), lambda b: (b, 0, 0)),
        scratch_shapes=[pltpu.VMEM((35 * c, n), jnp.float32)],   # im2col slab
        compiler_params=pltpu.CompilerParams(
            dimension_semantics=("parallel",)),
    )(params["alphas"], x, params["w_res"], params["s_res"],
      params["w_qkv"], params["s_qkv"], params["a_qkv"],
      params["w_ft"], params["s_ft"], params["w_c"], params["s_c"],
      mask, bf, bt)

    out = out.reshape(2, c, m, t, f).transpose(0, 2, 1, 3, 4)    # [2, M, C, T, F]
    return out[0], out[1]


# ----------------------------------------------------------------------------
# Deterministic parameter construction (eval-mode BN folded into conv w/shift)
# ----------------------------------------------------------------------------

class _ParamGen:
    def __init__(self, key):
        self.key = key

    def normal(self, shape, scale=0.1):
        self.key, sub = jax.random.split(self.key)
        return scale * jax.random.normal(sub, shape, jnp.float32)


def _bn_fold(pg, cout, bias):
    gamma = 1.0 + pg.normal((cout,), 0.1)
    beta = pg.normal((cout,), 0.1)
    mean = pg.normal((cout,), 0.1)
    var = 1.0 + jnp.abs(pg.normal((cout,), 0.05))
    scale = gamma / jnp.sqrt(var + 1e-5)
    shift = ((bias - mean) * scale + beta)[:, None]              # [Cout, 1]
    return scale, shift


def _make_conv5x7(pg, c):
    w = pg.normal((c, c, 5, 7), 0.15)                            # bias=False
    scale, shift = _bn_fold(pg, c, jnp.zeros((c,), jnp.float32))
    w = w * scale[:, None, None, None]
    w = w.transpose(0, 2, 3, 1).reshape(c, 35 * c)               # rows: (kh,kw,cin)
    return w, shift


def _make_conv1x1(pg, cin, cout, use_bias=True):
    w = pg.normal((cout, cin), 0.15)
    bias = pg.normal((cout,), 0.1) if use_bias else jnp.zeros((cout,), jnp.float32)
    scale, shift = _bn_fold(pg, cout, bias)
    return w * scale[:, None], shift


def _make_branch(pg, c):
    c2 = c // 2
    # residual pair weights: r1.a, r1.b, r2.a, r2.b
    wr, sr = zip(*[_make_conv5x7(pg, c) for _ in range(4)])
    # q/k/v 1x1 convs (bias=True): q,k,v (freq) then q,k,v (time)
    wq, sq = zip(*[_make_conv1x1(pg, c, c2, use_bias=True) for _ in range(6)])
    # attention out-projections (bias=True) and final 3C->C conv (bias=False)
    wf, sf = _make_conv1x1(pg, c2, c, use_bias=True)
    wt, st = _make_conv1x1(pg, c2, c, use_bias=True)
    wc, sc = _make_conv1x1(pg, 3 * c, c, use_bias=False)
    wft = jnp.zeros((2 * c, 2 * c2), jnp.float32)
    wft = wft.at[:c, :c2].set(wf).at[c:, c2:].set(wt)            # block-diagonal
    return {
        "w_res": jnp.stack(wr, 0), "s_res": jnp.stack(sr, 0),
        "w_qkv": jnp.concatenate(wq, 0), "s_qkv": jnp.concatenate(sq, 0),
        "a_qkv": jnp.full((6 * c2, 1), 0.25, jnp.float32),
        "w_ft": wft, "s_ft": jnp.concatenate([sf, st], 0),
        "w_c": wc, "s_c": sc,
        # PReLU alphas: r1.mid, r1.out, r2.mid, r2.out, freq-out, time-out, final, pad
        "alphas": jnp.full((8,), 0.25, jnp.float32),
    }


def init_ra_block(key, c):
    pg = _ParamGen(key)
    speech = _make_branch(pg, c)
    noise = _make_branch(pg, c)
    return {k: jnp.stack([speech[k], noise[k]], axis=0) for k in speech}


# ----------------------------------------------------------------------------
# Main
# ----------------------------------------------------------------------------

if __name__ == "__main__":
    M, C, T, F = 2, 8, 8, 16                 # [batch, channels, frames, freq]

    root = jax.random.PRNGKey(0)
    kp, ks, kn = jax.random.split(root, 3)

    params = init_ra_block(kp, C)
    speech = jax.random.normal(ks, (M, C, T, F), jnp.float32)
    noise = jax.random.normal(kn, (M, C, T, F), jnp.float32)

    fwd = jax.jit(ra_block_forward)
    s_out, n_out = fwd(params, speech, noise)
    jax.block_until_ready((s_out, n_out))

    assert s_out.shape == (M, C, T, F) and n_out.shape == (M, C, T, F)
    assert bool(jnp.all(jnp.isfinite(s_out))) and bool(jnp.all(jnp.isfinite(n_out)))
    print("KERNEL_OK")
</pallas_src>

<mosaic_0001>
module attributes {stable_mosaic.version = 11 : i64} {
  func.func @_ra_block_kernel(%arg0: i32, %arg1: memref<2x8xf32, #tpu.memory_space<smem>>, %arg2: memref<1x8x256xf32, #tpu.memory_space<vmem>>, %arg3: memref<1x4x8x280xf32, #tpu.memory_space<vmem>>, %arg4: memref<1x4x8x1xf32, #tpu.memory_space<vmem>>, %arg5: memref<1x24x8xf32, #tpu.memory_space<vmem>>, %arg6: memref<1x24x1xf32, #tpu.memory_space<vmem>>, %arg7: memref<1x24x1xf32, #tpu.memory_space<vmem>>, %arg8: memref<1x16x8xf32, #tpu.memory_space<vmem>>, %arg9: memref<1x16x1xf32, #tpu.memory_space<vmem>>, %arg10: memref<1x8x24xf32, #tpu.memory_space<vmem>>, %arg11: memref<1x8x1xf32, #tpu.memory_space<vmem>>, %arg12: memref<35x256xf32, #tpu.memory_space<vmem>>, %arg13: memref<256x256xf32, #tpu.memory_space<vmem>>, %arg14: memref<256x256xf32, #tpu.memory_space<vmem>>, %arg15: memref<1x8x256xf32, #tpu.memory_space<vmem>>, %arg16: memref<280x256xf32, #tpu.memory_space<vmem>>) attributes {dimension_semantics = [#tpu.dimension_semantics<parallel>], iteration_bounds = array<i64: 2>, scalar_prefetch = 0 : i64, scratch_operands = 1 : i64, tpu.core_type = #tpu.core_type<tc>, window_params = [{transform_indices = @transform_0, window_bounds = array<i64: 2, 8>}, {transform_indices = @transform_1, window_bounds = array<i64: 1, 8, 256>}, {transform_indices = @transform_2, window_bounds = array<i64: 1, 4, 8, 280>}, {transform_indices = @transform_3, window_bounds = array<i64: 1, 4, 8, 1>}, {transform_indices = @transform_4, window_bounds = array<i64: 1, 24, 8>}, {transform_indices = @transform_5, window_bounds = array<i64: 1, 24, 1>}, {transform_indices = @transform_6, window_bounds = array<i64: 1, 24, 1>}, {transform_indices = @transform_7, window_bounds = array<i64: 1, 16, 8>}, {transform_indices = @transform_8, window_bounds = array<i64: 1, 16, 1>}, {transform_indices = @transform_9, window_bounds = array<i64: 1, 8, 24>}, {transform_indices = @transform_10, window_bounds = array<i64: 1, 8, 1>}, {pipeline_mode = #tpu.pipeline_mode<synchronous>, transform_indices = @transform_11, window_bounds = array<i64: 35, 256>}, {pipeline_mode = #tpu.pipeline_mode<synchronous>, transform_indices = @transform_12, window_bounds = array<i64: 256, 256>}, {pipeline_mode = #tpu.pipeline_mode<synchronous>, transform_indices = @transform_13, window_bounds = array<i64: 256, 256>}, {transform_indices = @transform_14, window_bounds = array<i64: 1, 8, 256>}]} {
    %c0 = arith.constant 0 : index
    %c0_0 = arith.constant 0 : index
    %c0_1 = arith.constant 0 : index
    %0 = vector.load %arg2[%c0, %c0_0, %c0_1] : memref<1x8x256xf32, #tpu.memory_space<vmem>>, vector<1x8x256xf32>
    %1 = vector.shape_cast %0 : vector<1x8x256xf32> to vector<8x256xf32>
    %c0_2 = arith.constant 0 : index
    %c0_3 = arith.constant 0 : index
    %c0_4 = arith.constant 0 : index
    %c0_5 = arith.constant 0 : index
    %2 = vector.load %arg3[%c0_2, %c0_3, %c0_4, %c0_5] : memref<1x4x8x280xf32, #tpu.memory_space<vmem>>, vector<1x1x8x280xf32>
    %3 = vector.shape_cast %2 : vector<1x1x8x280xf32> to vector<8x280xf32>
    %c0_6 = arith.constant 0 : index
    %c0_7 = arith.constant 0 : index
    %c0_8 = arith.constant 0 : index
    %c0_9 = arith.constant 0 : index
    %4 = vector.load %arg4[%c0_6, %c0_7, %c0_8, %c0_9] : memref<1x4x8x1xf32, #tpu.memory_space<vmem>>, vector<1x1x8x1xf32>
    %5 = vector.shape_cast %4 : vector<1x1x8x1xf32> to vector<8x1xf32>
    %c35_i32 = arith.constant 35 : i32
    %6 = tpu.dynamic_rotate %1 by %c35_i32 dim 1 : vector<8x256xf32>, i32 -> vector<8x256xf32>
    %c0_10 = arith.constant 0 : index
    %c0_11 = arith.constant 0 : index
    %7 = vector.load %arg12[%c0_10, %c0_11] : memref<35x256xf32, #tpu.memory_space<vmem>>, vector<1x256xf32>
    %8 = vector.broadcast %7 : vector<1x256xf32> to vector<8x256xf32>
    %9 = arith.mulf %6, %8 : vector<8x256xf32>
    %c0_12 = arith.constant 0 : index
    %c0_13 = arith.constant 0 : index
    %10 = vector.load %arg16[%c0_12, %c0_13] : memref<280x256xf32, #tpu.memory_space<vmem>>, vector<8x256xf32>
    tpu.vector_store %arg16[%c0_12, %c0_13], %9 {strides = array<i32>} : memref<280x256xf32, #tpu.memory_space<vmem>>, vector<8x256xf32>,
    %c34_i32 = arith.constant 34 : i32
    %11 = tpu.dynamic_rotate %1 by %c34_i32 dim 1 : vector<8x256xf32>, i32 -> vector<8x256xf32>
    %c1 = arith.constant 1 : index
    %c0_14 = arith.constant 0 : index
    %12 = vector.load %arg12[%c1, %c0_14] : memref<35x256xf32, #tpu.memory_space<vmem>>, vector<1x256xf32>
    %13 = vector.broadcast %12 : vector<1x256xf32> to vector<8x256xf32>
    %14 = arith.mulf %11, %13 : vector<8x256xf32>
    %c8 = arith.constant 8 : index
    %c0_15 = arith.constant 0 : index
    %15 = vector.load %arg16[%c8, %c0_15] : memref<280x256xf32, #tpu.memory_space<vmem>>, vector<8x256xf32>
    tpu.vector_store %arg16[%c8, %c0_15], %14 {strides = array<i32>} : memref<280x256xf32, #tpu.memory_space<vmem>>, vector<8x256xf32>,
    %c33_i32 = arith.constant 33 : i32
    %16 = tpu.dynamic_rotate %1 by %c33_i32 dim 1 : vector<8x256xf32>, i32 -> vector<8x256xf32>
    %c2 = arith.constant 2 : index
    %c0_16 = arith.constant 0 : index
    %17 = vector.load %arg12[%c2, %c0_16] : memref<35x256xf32, #tpu.memory_space<vmem>>, vector<1x256xf32>
    %18 = vector.broadcast %17 : vector<1x256xf32> to vector<8x256xf32>
    %19 = arith.mulf %16, %18 : vector<8x256xf32>
    %c16 = arith.constant 16 : index
    %c0_17 = arith.constant 0 : index
    %20 = vector.load %arg16[%c16, %c0_17] : memref<280x256xf32, #tpu.memory_space<vmem>>, vector<8x256xf32>
    tpu.vector_store %arg16[%c16, %c0_17], %19 {strides = array<i32>} : memref<280x256xf32, #tpu.memory_space<vmem>>, vector<8x256xf32>,
    %c32_i32 = arith.constant 32 : i32
    %21 = tpu.dynamic_rotate %1 by %c32_i32 dim 1 : vector<8x256xf32>, i32 -> vector<8x256xf32>
    %c3 = arith.constant 3 : index
    %c0_18 = arith.constant 0 : index
    %22 = vector.load %arg12[%c3, %c0_18] : memref<35x256xf32, #tpu.memory_space<vmem>>, vector<1x256xf32>
    %23 = vector.broadcast %22 : vector<1x256xf32> to vector<8x256xf32>
    %24 = arith.mulf %21, %23 : vector<8x256xf32>
    %c24 = arith.constant 24 : index
    %c0_19 = arith.constant 0 : index
    %25 = vector.load %arg16[%c24, %c0_19] : memref<280x256xf32, #tpu.memory_space<vmem>>, vector<8x256xf32>
    tpu.vector_store %arg16[%c24, %c0_19], %24 {strides = array<i32>} : memref<280x256xf32, #tpu.memory_space<vmem>>, vector<8x256xf32>,
    %c31_i32 = arith.constant 31 : i32
    %26 = tpu.dynamic_rotate %1 by %c31_i32 dim 1 : vector<8x256xf32>, i32 -> vector<8x256xf32>
    %c4 = arith.constant 4 : index
    %c0_20 = arith.constant 0 : index
    %27 = vector.load %arg12[%c4, %c0_20] : memref<35x256xf32, #tpu.memory_space<vmem>>, vector<1x256xf32>
    %28 = vector.broadcast %27 : vector<1x256xf32> to vector<8x256xf32>
    %29 = arith.mulf %26, %28 : vector<8x256xf32>
    %c32 = arith.constant 32 : index
    %c0_21 = arith.constant 0 : index
    %30 = vector.load %arg16[%c32, %c0_21] : memref<280x256xf32, #tpu.memory_space<vmem>>, vector<8x256xf32>
    tpu.vector_store %arg16[%c32, %c0_21], %29 {strides = array<i32>} : memref<280x256xf32, #tpu.memory_space<vmem>>, vector<8x256xf32>,
    %c30_i32 = arith.constant 30 : i32
    %31 = tpu.dynamic_rotate %1 by %c30_i32 dim 1 : vector<8x256xf32>, i32 -> vector<8x256xf32>
    %c5 = arith.constant 5 : index
    %c0_22 = arith.constant 0 : index
    %32 = vector.load %arg12[%c5, %c0_22] : memref<35x256xf32, #tpu.memory_space<vmem>>, vector<1x256xf32>
    %33 = vector.broadcast %32 : vector<1x256xf32> to vector<8x256xf32>
    %34 = arith.mulf %31, %33 : vector<8x256xf32>
    %c40 = arith.constant 40 : index
    %c0_23 = arith.constant 0 : index
    %35 = vector.load %arg16[%c40, %c0_23] : memref<280x256xf32, #tpu.memory_space<vmem>>, vector<8x256xf32>
    tpu.vector_store %arg16[%c40, %c0_23], %34 {strides = array<i32>} : memref<280x256xf32, #tpu.memory_space<vmem>>, vector<8x256xf32>,
    %c29_i32 = arith.constant 29 : i32
    %36 = tpu.dynamic_rotate %1 by %c29_i32 dim 1 : vector<8x256xf32>, i32 -> vector<8x256xf32>
    %c6 = arith.constant 6 : index
    %c0_24 = arith.constant 0 : index
    %37 = vector.load %arg12[%c6, %c0_24] : memref<35x256xf32, #tpu.memory_space<vmem>>, vector<1x256xf32>
    %38 = vector.broadcast %37 : vector<1x256xf32> to vector<8x256xf32>
    %39 = arith.mulf %36, %38 : vector<8x256xf32>
    %c48 = arith.constant 48 : index
    %c0_25 = arith.constant 0 : index
    %40 = vector.load %arg16[%c48, %c0_25] : memref<280x256xf32, #tpu.memory_space<vmem>>, vector<8x256xf32>
    tpu.vector_store %arg16[%c48, %c0_25], %39 {strides = array<i32>} : memref<280x256xf32, #tpu.memory_space<vmem>>, vector<8x256xf32>,
    %c19_i32 = arith.constant 19 : i32
    %41 = tpu.dynamic_rotate %1 by %c19_i32 dim 1 : vector<8x256xf32>, i32 -> vector<8x256xf32>
    %c7 = arith.constant 7 : index
    %c0_26 = arith.constant 0 : index
    %42 = vector.load %arg12[%c7, %c0_26] : memref<35x256xf32, #tpu.memory_space<vmem>>, vector<1x256xf32>
    %43 = vector.broadcast %42 : vector<1x256xf32> to vector<8x256xf32>
    %44 = arith.mulf %41, %43 : vector<8x256xf32>
    %c56 = arith.constant 56 : index
    %c0_27 = arith.constant 0 : index
    %45 = vector.load %arg16[%c56, %c0_27] : memref<280x256xf32, #tpu.memory_space<vmem>>, vector<8x256xf32>
    tpu.vector_store %arg16[%c56, %c0_27], %44 {strides = array<i32>} : memref<280x256xf32, #tpu.memory_space<vmem>>, vector<8x256xf32>,
    %c18_i32 = arith.constant 18 : i32
    %46 = tpu.dynamic_rotate %1 by %c18_i32 dim 1 : vector<8x256xf32>, i32 -> vector<8x256xf32>
    %c8_28 = arith.constant 8 : index
    %c0_29 = arith.constant 0 : index
    %47 = vector.load %arg12[%c8_28, %c0_29] : memref<35x256xf32, #tpu.memory_space<vmem>>, vector<1x256xf32>
    %48 = vector.broadcast %47 : vector<1x256xf32> to vector<8x256xf32>
    %49 = arith.mulf %46, %48 : vector<8x256xf32>
    %c64 = arith.constant 64 : index
    %c0_30 = arith.constant 0 : index
    %50 = vector.load %arg16[%c64, %c0_30] : memref<280x256xf32, #tpu.memory_space<vmem>>, vector<8x256xf32>
    tpu.vector_store %arg16[%c64, %c0_30], %49 {strides = array<i32>} : memref<280x256xf32, #tpu.memory_space<vmem>>, vector<8x256xf32>,
    %c17_i32 = arith.constant 17 : i32
    %51 = tpu.dynamic_rotate %1 by %c17_i32 dim 1 : vector<8x256xf32>, i32 -> vector<8x256xf32>
    %c9 = arith.constant 9 : index
    %c0_31 = arith.constant 0 : index
    %52 = vector.load %arg12[%c9, %c0_31] : memref<35x256xf32, #tpu.memory_space<vmem>>, vector<1x256xf32>
    %53 = vector.broadcast %52 : vector<1x256xf32> to vector<8x256xf32>
    %54 = arith.mulf %51, %53 : vector<8x256xf32>
    %c72 = arith.constant 72 : index
    %c0_32 = arith.constant 0 : index
    %55 = vector.load %arg16[%c72, %c0_32] : memref<280x256xf32, #tpu.memory_space<vmem>>, vector<8x256xf32>
    tpu.vector_store %arg16[%c72, %c0_32], %54 {strides = array<i32>} : memref<280x256xf32, #tpu.memory_space<vmem>>, vector<8x256xf32>,
    %c16_i32 = arith.constant 16 : i32
    %56 = tpu.dynamic_rotate %1 by %c16_i32 dim 1 : vector<8x256xf32>, i32 -> vector<8x256xf32>
    %c10 = arith.constant 10 : index
    %c0_33 = arith.constant 0 : index
    %57 = vector.load %arg12[%c10, %c0_33] : memref<35x256xf32, #tpu.memory_space<vmem>>, vector<1x256xf32>
    %58 = vector.broadcast %57 : vector<1x256xf32> to vector<8x256xf32>
    %59 = arith.mulf %56, %58 : vector<8x256xf32>
    %c80 = arith.constant 80 : index
    %c0_34 = arith.constant 0 : index
    %60 = vector.load %arg16[%c80, %c0_34] : memref<280x256xf32, #tpu.memory_space<vmem>>, vector<8x256xf32>
    tpu.vector_store %arg16[%c80, %c0_34], %59 {strides = array<i32>} : memref<280x256xf32, #tpu.memory_space<vmem>>, vector<8x256xf32>,
    %c15_i32 = arith.constant 15 : i32
    %61 = tpu.dynamic_rotate %1 by %c15_i32 dim 1 : vector<8x256xf32>, i32 -> vector<8x256xf32>
    %c11 = arith.constant 11 : index
    %c0_35 = arith.constant 0 : index
    %62 = vector.load %arg12[%c11, %c0_35] : memref<35x256xf32, #tpu.memory_space<vmem>>, vector<1x256xf32>
    %63 = vector.broadcast %62 : vector<1x256xf32> to vector<8x256xf32>
    %64 = arith.mulf %61, %63 : vector<8x256xf32>
    %c88 = arith.constant 88 : index
    %c0_36 = arith.constant 0 : index
    %65 = vector.load %arg16[%c88, %c0_36] : memref<280x256xf32, #tpu.memory_space<vmem>>, vector<8x256xf32>
    tpu.vector_store %arg16[%c88, %c0_36], %64 {strides = array<i32>} : memref<280x256xf32, #tpu.memory_space<vmem>>, vector<8x256xf32>,
    %c14_i32 = arith.constant 14 : i32
    %66 = tpu.dynamic_rotate %1 by %c14_i32 dim 1 : vector<8x256xf32>, i32 -> vector<8x256xf32>
    %c12 = arith.constant 12 : index
    %c0_37 = arith.constant 0 : index
    %67 = vector.load %arg12[%c12, %c0_37] : memref<35x256xf32, #tpu.memory_space<vmem>>, vector<1x256xf32>
    %68 = vector.broadcast %67 : vector<1x256xf32> to vector<8x256xf32>
    %69 = arith.mulf %66, %68 : vector<8x256xf32>
    %c96 = arith.constant 96 : index
    %c0_38 = arith.constant 0 : index
    %70 = vector.load %arg16[%c96, %c0_38] : memref<280x256xf32, #tpu.memory_space<vmem>>, vector<8x256xf32>
    tpu.vector_store %arg16[%c96, %c0_38], %69 {strides = array<i32>} : memref<280x256xf32, #tpu.memory_space<vmem>>, vector<8x256xf32>,
    %c13_i32 = arith.constant 13 : i32
    %71 = tpu.dynamic_rotate %1 by %c13_i32 dim 1 : vector<8x256xf32>, i32 -> vector<8x256xf32>
    %c13 = arith.constant 13 : index
    %c0_39 = arith.constant 0 : index
    %72 = vector.load %arg12[%c13, %c0_39] : memref<35x256xf32, #tpu.memory_space<vmem>>, vector<1x256xf32>
    %73 = vector.broadcast %72 : vector<1x256xf32> to vector<8x256xf32>
    %74 = arith.mulf %71, %73 : vector<8x256xf32>
    %c104 = arith.constant 104 : index
    %c0_40 = arith.constant 0 : index
    %75 = vector.load %arg16[%c104, %c0_40] : memref<280x256xf32, #tpu.memory_space<vmem>>, vector<8x256xf32>
    tpu.vector_store %arg16[%c104, %c0_40], %74 {strides = array<i32>} : memref<280x256xf32, #tpu.memory_space<vmem>>, vector<8x256xf32>,
    %c3_i32 = arith.constant 3 : i32
    %76 = tpu.dynamic_rotate %1 by %c3_i32 dim 1 : vector<8x256xf32>, i32 -> vector<8x256xf32>
    %c14 = arith.constant 14 : index
    %c0_41 = arith.constant 0 : index
    %77 = vector.load %arg12[%c14, %c0_41] : memref<35x256xf32, #tpu.memory_space<vmem>>, vector<1x256xf32>
    %78 = vector.broadcast %77 : vector<1x256xf32> to vector<8x256xf32>
    %79 = arith.mulf %76, %78 : vector<8x256xf32>
    %c112 = arith.constant 112 : index
    %c0_42 = arith.constant 0 : index
    %80 = vector.load %arg16[%c112, %c0_42] : memref<280x256xf32, #tpu.memory_space<vmem>>, vector<8x256xf32>
    tpu.vector_store %arg16[%c112, %c0_42], %79 {strides = array<i32>} : memref<280x256xf32, #tpu.memory_space<vmem>>, vector<8x256xf32>,
    %c2_i32 = arith.constant 2 : i32
    %81 = tpu.dynamic_rotate %1 by %c2_i32 dim 1 : vector<8x256xf32>, i32 -> vector<8x256xf32>
    %c15 = arith.constant 15 : index
    %c0_43 = arith.constant 0 : index
    %82 = vector.load %arg12[%c15, %c0_43] : memref<35x256xf32, #tpu.memory_space<vmem>>, vector<1x256xf32>
    %83 = vector.broadcast %82 : vector<1x256xf32> to vector<8x256xf32>
    %84 = arith.mulf %81, %83 : vector<8x256xf32>
    %c120 = arith.constant 120 : index
    %c0_44 = arith.constant 0 : index
    %85 = vector.load %arg16[%c120, %c0_44] : memref<280x256xf32, #tpu.memory_space<vmem>>, vector<8x256xf32>
    tpu.vector_store %arg16[%c120, %c0_44], %84 {strides = array<i32>} : memref<280x256xf32, #tpu.memory_space<vmem>>, vector<8x256xf32>,
    %c1_i32 = arith.constant 1 : i32
    %86 = tpu.dynamic_rotate %1 by %c1_i32 dim 1 : vector<8x256xf32>, i32 -> vector<8x256xf32>
    %c16_45 = arith.constant 16 : index
    %c0_46 = arith.constant 0 : index
    %87 = vector.load %arg12[%c16_45, %c0_46] : memref<35x256xf32, #tpu.memory_space<vmem>>, vector<1x256xf32>
    %88 = vector.broadcast %87 : vector<1x256xf32> to vector<8x256xf32>
    %89 = arith.mulf %86, %88 : vector<8x256xf32>
    %c128 = arith.constant 128 : index
    %c0_47 = arith.constant 0 : index
    %90 = vector.load %arg16[%c128, %c0_47] : memref<280x256xf32, #tpu.memory_space<vmem>>, vector<8x256xf32>
    tpu.vector_store %arg16[%c128, %c0_47], %89 {strides = array<i32>} : memref<280x256xf32, #tpu.memory_space<vmem>>, vector<8x256xf32>,
    %c17 = arith.constant 17 : index
    %c0_48 = arith.constant 0 : index
    %91 = vector.load %arg12[%c17, %c0_48] : memref<35x256xf32, #tpu.memory_space<vmem>>, vector<1x256xf32>
    %92 = vector.broadcast %91 : vector<1x256xf32> to vector<8x256xf32>
    %93 = arith.mulf %1, %92 : vector<8x256xf32>
    %c136 = arith.constant 136 : index
    %c0_49 = arith.constant 0 : index
    %94 = vector.load %arg16[%c136, %c0_49] : memref<280x256xf32, #tpu.memory_space<vmem>>, vector<8x256xf32>
    tpu.vector_store %arg16[%c136, %c0_49], %93 {strides = array<i32>} : memref<280x256xf32, #tpu.memory_space<vmem>>, vector<8x256xf32>,
    %c255_i32 = arith.constant 255 : i32
    %95 = tpu.dynamic_rotate %1 by %c255_i32 dim 1 : vector<8x256xf32>, i32 -> vector<8x256xf32>
    %c18 = arith.constant 18 : index
    %c0_50 = arith.constant 0 : index
    %96 = vector.load %arg12[%c18, %c0_50] : memref<35x256xf32, #tpu.memory_space<vmem>>, vector<1x256xf32>
    %97 = vector.broadcast %96 : vector<1x256xf32> to vector<8x256xf32>
    %98 = arith.mulf %95, %97 : vector<8x256xf32>
    %c144 = arith.constant 144 : index
    %c0_51 = arith.constant 0 : index
    %99 = vector.load %arg16[%c144, %c0_51] : memref<280x256xf32, #tpu.memory_space<vmem>>, vector<8x256xf32>
    tpu.vector_store %arg16[%c144, %c0_51], %98 {strides = array<i32>} : memref<280x256xf32, #tpu.memory_space<vmem>>, vector<8x256xf32>,
    %c254_i32 = arith.constant 254 : i32
    %100 = tpu.dynamic_rotate %1 by %c254_i32 dim 1 : vector<8x256xf32>, i32 -> vector<8x256xf32>
    %c19 = arith.constant 19 : index
    %c0_52 = arith.constant 0 : index
    %101 = vector.load %arg12[%c19, %c0_52] : memref<35x256xf32, #tpu.memory_space<vmem>>, vector<1x256xf32>
    %102 = vector.broadcast %101 : vector<1x256xf32> to vector<8x256xf32>
    %103 = arith.mulf %100, %102 : vector<8x256xf32>
    %c152 = arith.constant 152 : index
    %c0_53 = arith.constant 0 : index
    %104 = vector.load %arg16[%c152, %c0_53] : memref<280x256xf32, #tpu.memory_space<vmem>>, vector<8x256xf32>
    tpu.vector_store %arg16[%c152, %c0_53], %103 {strides = array<i32>} : memref<280x256xf32, #tpu.memory_space<vmem>>, vector<8x256xf32>,
    %c253_i32 = arith.constant 253 : i32
    %105 = tpu.dynamic_rotate %1 by %c253_i32 dim 1 : vector<8x256xf32>, i32 -> vector<8x256xf32>
    %c20 = arith.constant 20 : index
    %c0_54 = arith.constant 0 : index
    %106 = vector.load %arg12[%c20, %c0_54] : memref<35x256xf32, #tpu.memory_space<vmem>>, vector<1x256xf32>
    %107 = vector.broadcast %106 : vector<1x256xf32> to vector<8x256xf32>
    %108 = arith.mulf %105, %107 : vector<8x256xf32>
    %c160 = arith.constant 160 : index
    %c0_55 = arith.constant 0 : index
    %109 = vector.load %arg16[%c160, %c0_55] : memref<280x256xf32, #tpu.memory_space<vmem>>, vector<8x256xf32>
    tpu.vector_store %arg16[%c160, %c0_55], %108 {strides = array<i32>} : memref<280x256xf32, #tpu.memory_space<vmem>>, vector<8x256xf32>,
    %c243_i32 = arith.constant 243 : i32
    %110 = tpu.dynamic_rotate %1 by %c243_i32 dim 1 : vector<8x256xf32>, i32 -> vector<8x256xf32>
    %c21 = arith.constant 21 : index
    %c0_56 = arith.constant 0 : index
    %111 = vector.load %arg12[%c21, %c0_56] : memref<35x256xf32, #tpu.memory_space<vmem>>, vector<1x256xf32>
    %112 = vector.broadcast %111 : vector<1x256xf32> to vector<8x256xf32>
    %113 = arith.mulf %110, %112 : vector<8x256xf32>
    %c168 = arith.constant 168 : index
    %c0_57 = arith.constant 0 : index
    %114 = vector.load %arg16[%c168, %c0_57] : memref<280x256xf32, #tpu.memory_space<vmem>>, vector<8x256xf32>
    tpu.vector_store %arg16[%c168, %c0_57], %113 {strides = array<i32>} : memref<280x256xf32, #tpu.memory_space<vmem>>, vector<8x256xf32>,
    %c242_i32 = arith.constant 242 : i32
    %115 = tpu.dynamic_rotate %1 by %c242_i32 dim 1 : vector<8x256xf32>, i32 -> vector<8x256xf32>
    %c22 = arith.constant 22 : index
    %c0_58 = arith.constant 0 : index
    %116 = vector.load %arg12[%c22, %c0_58] : memref<35x256xf32, #tpu.memory_space<vmem>>, vector<1x256xf32>
    %117 = vector.broadcast %116 : vector<1x256xf32> to vector<8x256xf32>
    %118 = arith.mulf %115, %117 : vector<8x256xf32>
    %c176 = arith.constant 176 : index
    %c0_59 = arith.constant 0 : index
    %119 = vector.load %arg16[%c176, %c0_59] : memref<280x256xf32, #tpu.memory_space<vmem>>, vector<8x256xf32>
    tpu.vector_store %arg16[%c176, %c0_59], %118 {strides = array<i32>} : memref<280x256xf32, #tpu.memory_space<vmem>>, vector<8x256xf32>,
    %c241_i32 = arith.constant 241 : i32
    %120 = tpu.dynamic_rotate %1 by %c241_i32 dim 1 : vector<8x256xf32>, i32 -> vector<8x256xf32>
    %c23 = arith.constant 23 : index
    %c0_60 = arith.constant 0 : index
    %121 = vector.load %arg12[%c23, %c0_60] : memref<35x256xf32, #tpu.memory_space<vmem>>, vector<1x256xf32>
    %122 = vector.broadcast %121 : vector<1x256xf32> to vector<8x256xf32>
    %123 = arith.mulf %120, %122 : vector<8x256xf32>
    %c184 = arith.constant 184 : index
    %c0_61 = arith.constant 0 : index
    %124 = vector.load %arg16[%c184, %c0_61] : memref<280x256xf32, #tpu.memory_space<vmem>>, vector<8x256xf32>
    tpu.vector_store %arg16[%c184, %c0_61], %123 {strides = array<i32>} : memref<280x256xf32, #tpu.memory_space<vmem>>, vector<8x256xf32>,
    %c240_i32 = arith.constant 240 : i32
    %125 = tpu.dynamic_rotate %1 by %c240_i32 dim 1 : vector<8x256xf32>, i32 -> vector<8x256xf32>
    %c24_62 = arith.constant 24 : index
    %c0_63 = arith.constant 0 : index
    %126 = vector.load %arg12[%c24_62, %c0_63] : memref<35x256xf32, #tpu.memory_space<vmem>>, vector<1x256xf32>
    %127 = vector.broadcast %126 : vector<1x256xf32> to vector<8x256xf32>
    %128 = arith.mulf %125, %127 : vector<8x256xf32>
    %c192 = arith.constant 192 : index
    %c0_64 = arith.constant 0 : index
    %129 = vector.load %arg16[%c192, %c0_64] : memref<280x256xf32, #tpu.memory_space<vmem>>, vector<8x256xf32>
    tpu.vector_store %arg16[%c192, %c0_64], %128 {strides = array<i32>} : memref<280x256xf32, #tpu.memory_space<vmem>>, vector<8x256xf32>,
    %c239_i32 = arith.constant 239 : i32
    %130 = tpu.dynamic_rotate %1 by %c239_i32 dim 1 : vector<8x256xf32>, i32 -> vector<8x256xf32>
    %c25 = arith.constant 25 : index
    %c0_65 = arith.constant 0 : index
    %131 = vector.load %arg12[%c25, %c0_65] : memref<35x256xf32, #tpu.memory_space<vmem>>, vector<1x256xf32>
    %132 = vector.broadcast %131 : vector<1x256xf32> to vector<8x256xf32>
    %133 = arith.mulf %130, %132 : vector<8x256xf32>
    %c200 = arith.constant 200 : index
    %c0_66 = arith.constant 0 : index
    %134 = vector.load %arg16[%c200, %c0_66] : memref<280x256xf32, #tpu.memory_space<vmem>>, vector<8x256xf32>
    tpu.vector_store %arg16[%c200, %c0_66], %133 {strides = array<i32>} : memref<280x256xf32, #tpu.memory_space<vmem>>, vector<8x256xf32>,
    %c238_i32 = arith.constant 238 : i32
    %135 = tpu.dynamic_rotate %1 by %c238_i32 dim 1 : vector<8x256xf32>, i32 -> vector<8x256xf32>
    %c26 = arith.constant 26 : index
    %c0_67 = arith.constant 0 : index
    %136 = vector.load %arg12[%c26, %c0_67] : memref<35x256xf32, #tpu.memory_space<vmem>>, vector<1x256xf32>
    %137 = vector.broadcast %136 : vector<1x256xf32> to vector<8x256xf32>
    %138 = arith.mulf %135, %137 : vector<8x256xf32>
    %c208 = arith.constant 208 : index
    %c0_68 = arith.constant 0 : index
    %139 = vector.load %arg16[%c208, %c0_68] : memref<280x256xf32, #tpu.memory_space<vmem>>, vector<8x256xf32>
    tpu.vector_store %arg16[%c208, %c0_68], %138 {strides = array<i32>} : memref<280x256xf32, #tpu.memory_space<vmem>>, vector<8x256xf32>,
    %c237_i32 = arith.constant 237 : i32
    %140 = tpu.dynamic_rotate %1 by %c237_i32 dim 1 : vector<8x256xf32>, i32 -> vector<8x256xf32>
    %c27 = arith.constant 27 : index
    %c0_69 = arith.constant 0 : index
    %141 = vector.load %arg12[%c27, %c0_69] : memref<35x256xf32, #tpu.memory_space<vmem>>, vector<1x256xf32>
    %142 = vector.broadcast %141 : vector<1x256xf32> to vector<8x256xf32>
    %143 = arith.mulf %140, %142 : vector<8x256xf32>
    %c216 = arith.constant 216 : index
    %c0_70 = arith.constant 0 : index
    %144 = vector.load %arg16[%c216, %c0_70] : memref<280x256xf32, #tpu.memory_space<vmem>>, vector<8x256xf32>
    tpu.vector_store %arg16[%c216, %c0_70], %143 {strides = array<i32>} : memref<280x256xf32, #tpu.memory_space<vmem>>, vector<8x256xf32>,
    %c227_i32 = arith.constant 227 : i32
    %145 = tpu.dynamic_rotate %1 by %c227_i32 dim 1 : vector<8x256xf32>, i32 -> vector<8x256xf32>
    %c28 = arith.constant 28 : index
    %c0_71 = arith.constant 0 : index
    %146 = vector.load %arg12[%c28, %c0_71] : memref<35x256xf32, #tpu.memory_space<vmem>>, vector<1x256xf32>
    %147 = vector.broadcast %146 : vector<1x256xf32> to vector<8x256xf32>
    %148 = arith.mulf %145, %147 : vector<8x256xf32>
    %c224 = arith.constant 224 : index
    %c0_72 = arith.constant 0 : index
    %149 = vector.load %arg16[%c224, %c0_72] : memref<280x256xf32, #tpu.memory_space<vmem>>, vector<8x256xf32>
    tpu.vector_store %arg16[%c224, %c0_72], %148 {strides = array<i32>} : memref<280x256xf32, #tpu.memory_space<vmem>>, vector<8x256xf32>,
    %c226_i32 = arith.constant 226 : i32
    %150 = tpu.dynamic_rotate %1 by %c226_i32 dim 1 : vector<8x256xf32>, i32 -> vector<8x256xf32>
    %c29 = arith.constant 29 : index
    %c0_73 = arith.constant 0 : index
    %151 = vector.load %arg12[%c29, %c0_73] : memref<35x256xf32, #tpu.memory_space<vmem>>, vector<1x256xf32>
    %152 = vector.broadcast %151 : vector<1x256xf32> to vector<8x256xf32>
    %153 = arith.mulf %150, %152 : vector<8x256xf32>
    %c232 = arith.constant 232 : index
    %c0_74 = arith.constant 0 : index
    %154 = vector.load %arg16[%c232, %c0_74] : memref<280x256xf32, #tpu.memory_space<vmem>>, vector<8x256xf32>
    tpu.vector_store %arg16[%c232, %c0_74], %153 {strides = array<i32>} : memref<280x256xf32, #tpu.memory_space<vmem>>, vector<8x256xf32>,
    %c225_i32 = arith.constant 225 : i32
    %155 = tpu.dynamic_rotate %1 by %c225_i32 dim 1 : vector<8x256xf32>, i32 -> vector<8x256xf32>
    %c30 = arith.constant 30 : index
    %c0_75 = arith.constant 0 : index
    %156 = vector.load %arg12[%c30, %c0_75] : memref<35x256xf32, #tpu.memory_space<vmem>>, vector<1x256xf32>
    %157 = vector.broadcast %156 : vector<1x256xf32> to vector<8x256xf32>
    %158 = arith.mulf %155, %157 : vector<8x256xf32>
    %c240 = arith.constant 240 : index
    %c0_76 = arith.constant 0 : index
    %159 = vector.load %arg16[%c240, %c0_76] : memref<280x256xf32, #tpu.memory_space<vmem>>, vector<8x256xf32>
    tpu.vector_store %arg16[%c240, %c0_76], %158 {strides = array<i32>} : memref<280x256xf32, #tpu.memory_space<vmem>>, vector<8x256xf32>,
    %c224_i32 = arith.constant 224 : i32
    %160 = tpu.dynamic_rotate %1 by %c224_i32 dim 1 : vector<8x256xf32>, i32 -> vector<8x256xf32>
    %c31 = arith.constant 31 : index
    %c0_77 = arith.constant 0 : index
    %161 = vector.load %arg12[%c31, %c0_77] : memref<35x256xf32, #tpu.memory_space<vmem>>, vector<1x256xf32>
    %162 = vector.broadcast %161 : vector<1x256xf32> to vector<8x256xf32>
    %163 = arith.mulf %160, %162 : vector<8x256xf32>
    %c248 = arith.constant 248 : index
    %c0_78 = arith.constant 0 : index
    %164 = vector.load %arg16[%c248, %c0_78] : memref<280x256xf32, #tpu.memory_space<vmem>>, vector<8x256xf32>
    tpu.vector_store %arg16[%c248, %c0_78], %163 {strides = array<i32>} : memref<280x256xf32, #tpu.memory_space<vmem>>, vector<8x256xf32>,
    %c223_i32 = arith.constant 223 : i32
    %165 = tpu.dynamic_rotate %1 by %c223_i32 dim 1 : vector<8x256xf32>, i32 -> vector<8x256xf32>
    %c32_79 = arith.constant 32 : index
    %c0_80 = arith.constant 0 : index
    %166 = vector.load %arg12[%c32_79, %c0_80] : memref<35x256xf32, #tpu.memory_space<vmem>>, vector<1x256xf32>
    %167 = vector.broadcast %166 : vector<1x256xf32> to vector<8x256xf32>
    %168 = arith.mulf %165, %167 : vector<8x256xf32>
    %c256 = arith.constant 256 : index
    %c0_81 = arith.constant 0 : index
    %169 = vector.load %arg16[%c256, %c0_81] : memref<280x256xf32, #tpu.memory_space<vmem>>, vector<8x256xf32>
    tpu.vector_store %arg16[%c256, %c0_81], %168 {strides = array<i32>} : memref<280x256xf32, #tpu.memory_space<vmem>>, vector<8x256xf32>,
    %c222_i32 = arith.constant 222 : i32
    %170 = tpu.dynamic_rotate %1 by %c222_i32 dim 1 : vector<8x256xf32>, i32 -> vector<8x256xf32>
    %c33 = arith.constant 33 : index
    %c0_82 = arith.constant 0 : index
    %171 = vector.load %arg12[%c33, %c0_82] : memref<35x256xf32, #tpu.memory_space<vmem>>, vector<1x256xf32>
    %172 = vector.broadcast %171 : vector<1x256xf32> to vector<8x256xf32>
    %173 = arith.mulf %170, %172 : vector<8x256xf32>
    %c264 = arith.constant 264 : index
    %c0_83 = arith.constant 0 : index
    %174 = vector.load %arg16[%c264, %c0_83] : memref<280x256xf32, #tpu.memory_space<vmem>>, vector<8x256xf32>
    tpu.vector_store %arg16[%c264, %c0_83], %173 {strides = array<i32>} : memref<280x256xf32, #tpu.memory_space<vmem>>, vector<8x256xf32>,
    %c221_i32 = arith.constant 221 : i32
    %175 = tpu.dynamic_rotate %1 by %c221_i32 dim 1 : vector<8x256xf32>, i32 -> vector<8x256xf32>
    %c34 = arith.constant 34 : index
    %c0_84 = arith.constant 0 : index
    %176 = vector.load %arg12[%c34, %c0_84] : memref<35x256xf32, #tpu.memory_space<vmem>>, vector<1x256xf32>
    %177 = vector.broadcast %176 : vector<1x256xf32> to vector<8x256xf32>
    %178 = arith.mulf %175, %177 : vector<8x256xf32>
    %c272 = arith.constant 272 : index
    %c0_85 = arith.constant 0 : index
    %179 = vector.load %arg16[%c272, %c0_85] : memref<280x256xf32, #tpu.memory_space<vmem>>, vector<8x256xf32>
    tpu.vector_store %arg16[%c272, %c0_85], %178 {strides = array<i32>} : memref<280x256xf32, #tpu.memory_space<vmem>>, vector<8x256xf32>,
    %c0_86 = arith.constant 0 : index
    %c0_87 = arith.constant 0 : index
    %180 = vector.load %arg16[%c0_86, %c0_87] : memref<280x256xf32, #tpu.memory_space<vmem>>, vector<280x256xf32>
    %cst = arith.constant dense<0.000000e+00> : vector<8x256xf32>
    %181 = tpu.matmul %3, %180, %cst {dimension_numbers = #tpu.dot_dimension_numbers<[1], [0], [0], [1], [0, 0, 1, 1], [], []>} : vector<8x280xf32>, vector<280x256xf32>, vector<8x256xf32> -> vector<8x256xf32>
    %182 = vector.broadcast %5 : vector<8x1xf32> to vector<8x256xf32>
    %183 = arith.addf %181, %182 : vector<8x256xf32>
    %184 = arith.index_cast %arg0 : i32 to index
    %c0_88 = arith.constant 0 : index
    %185 = memref.load %arg1[%184, %c0_88] : memref<2x8xf32, #tpu.memory_space<smem>>
    %cst_89 = arith.constant 0.000000e+00 : f32
    %186 = vector.broadcast %cst_89 : f32 to vector<8x256xf32>
    %187 = arith.cmpf ogt, %183, %186 : vector<8x256xf32>
    %188 = vector.broadcast %185 : f32 to vector<8x256xf32>
    %189 = arith.mulf %188, %183 : vector<8x256xf32>
    %190 = arith.select %187, %183, %189 : vector<8x256xi1>, vector<8x256xf32>
    %c0_90 = arith.constant 0 : index
    %c1_91 = arith.constant 1 : index
    %c0_92 = arith.constant 0 : index
    %c0_93 = arith.constant 0 : index
    %191 = vector.load %arg3[%c0_90, %c1_91, %c0_92, %c0_93] : memref<1x4x8x280xf32, #tpu.memory_space<vmem>>, vector<1x1x8x280xf32>
    %192 = vector.shape_cast %191 : vector<1x1x8x280xf32> to vector<8x280xf32>
    %c0_94 = arith.constant 0 : index
    %c1_95 = arith.constant 1 : index
    %c0_96 = arith.constant 0 : index
    %c0_97 = arith.constant 0 : index
    %193 = vector.load %arg4[%c0_94, %c1_95, %c0_96, %c0_97] : memref<1x4x8x1xf32, #tpu.memory_space<vmem>>, vector<1x1x8x1xf32>
    %194 = vector.shape_cast %193 : vector<1x1x8x1xf32> to vector<8x1xf32>
    %c35_i32_98 = arith.constant 35 : i32
    %195 = tpu.dynamic_rotate %190 by %c35_i32_98 dim 1 : vector<8x256xf32>, i32 -> vector<8x256xf32>
    %c0_99 = arith.constant 0 : index
    %c0_100 = arith.constant 0 : index
    %196 = vector.load %arg12[%c0_99, %c0_100] : memref<35x256xf32, #tpu.memory_space<vmem>>, vector<1x256xf32>
    %197 = vector.broadcast %196 : vector<1x256xf32> to vector<8x256xf32>
    %198 = arith.mulf %195, %197 : vector<8x256xf32>
    %c0_101 = arith.constant 0 : index
    %c0_102 = arith.constant 0 : index
    %199 = vector.load %arg16[%c0_101, %c0_102] : memref<280x256xf32, #tpu.memory_space<vmem>>, vector<8x256xf32>
    tpu.vector_store %arg16[%c0_101, %c0_102], %198 {strides = array<i32>} : memref<280x256xf32, #tpu.memory_space<vmem>>, vector<8x256xf32>,
    %c34_i32_103 = arith.constant 34 : i32
    %200 = tpu.dynamic_rotate %190 by %c34_i32_103 dim 1 : vector<8x256xf32>, i32 -> vector<8x256xf32>
    %c1_104 = arith.constant 1 : index
    %c0_105 = arith.constant 0 : index
    %201 = vector.load %arg12[%c1_104, %c0_105] : memref<35x256xf32, #tpu.memory_space<vmem>>, vector<1x256xf32>
    %202 = vector.broadcast %201 : vector<1x256xf32> to vector<8x256xf32>
    %203 = arith.mulf %200, %202 : vector<8x256xf32>
    %c8_106 = arith.constant 8 : index
    %c0_107 = arith.constant 0 : index
    %204 = vector.load %arg16[%c8_106, %c0_107] : memref<280x256xf32, #tpu.memory_space<vmem>>, vector<8x256xf32>
    tpu.vector_store %arg16[%c8_106, %c0_107], %203 {strides = array<i32>} : memref<280x256xf32, #tpu.memory_space<vmem>>, vector<8x256xf32>,
    %c33_i32_108 = arith.constant 33 : i32
    %205 = tpu.dynamic_rotate %190 by %c33_i32_108 dim 1 : vector<8x256xf32>, i32 -> vector<8x256xf32>
    %c2_109 = arith.constant 2 : index
    %c0_110 = arith.constant 0 : index
    %206 = vector.load %arg12[%c2_109, %c0_110] : memref<35x256xf32, #tpu.memory_space<vmem>>, vector<1x256xf32>
    %207 = vector.broadcast %206 : vector<1x256xf32> to vector<8x256xf32>
    %208 = arith.mulf %205, %207 : vector<8x256xf32>
    %c16_111 = arith.constant 16 : index
    %c0_112 = arith.constant 0 : index
    %209 = vector.load %arg16[%c16_111, %c0_112] : memref<280x256xf32, #tpu.memory_space<vmem>>, vector<8x256xf32>
    tpu.vector_store %arg16[%c16_111, %c0_112], %208 {strides = array<i32>} : memref<280x256xf32, #tpu.memory_space<vmem>>, vector<8x256xf32>,
    %c32_i32_113 = arith.constant 32 : i32
    %210 = tpu.dynamic_rotate %190 by %c32_i32_113 dim 1 : vector<8x256xf32>, i32 -> vector<8x256xf32>
    %c3_114 = arith.constant 3 : index
    %c0_115 = arith.constant 0 : index
    %211 = vector.load %arg12[%c3_114, %c0_115] : memref<35x256xf32, #tpu.memory_space<vmem>>, vector<1x256xf32>
    %212 = vector.broadcast %211 : vector<1x256xf32> to vector<8x256xf32>
    %213 = arith.mulf %210, %212 : vector<8x256xf32>
    %c24_116 = arith.constant 24 : index
    %c0_117 = arith.constant 0 : index
    %214 = vector.load %arg16[%c24_116, %c0_117] : memref<280x256xf32, #tpu.memory_space<vmem>>, vector<8x256xf32>
    tpu.vector_store %arg16[%c24_116, %c0_117], %213 {strides = array<i32>} : memref<280x256xf32, #tpu.memory_space<vmem>>, vector<8x256xf32>,
    %c31_i32_118 = arith.constant 31 : i32
    %215 = tpu.dynamic_rotate %190 by %c31_i32_118 dim 1 : vector<8x256xf32>, i32 -> vector<8x256xf32>
    %c4_119 = arith.constant 4 : index
    %c0_120 = arith.constant 0 : index
    %216 = vector.load %arg12[%c4_119, %c0_120] : memref<35x256xf32, #tpu.memory_space<vmem>>, vector<1x256xf32>
    %217 = vector.broadcast %216 : vector<1x256xf32> to vector<8x256xf32>
    %218 = arith.mulf %215, %217 : vector<8x256xf32>
    %c32_121 = arith.constant 32 : index
    %c0_122 = arith.constant 0 : index
    %219 = vector.load %arg16[%c32_121, %c0_122] : memref<280x256xf32, #tpu.memory_space<vmem>>, vector<8x256xf32>
    tpu.vector_store %arg16[%c32_121, %c0_122], %218 {strides = array<i32>} : memref<280x256xf32, #tpu.memory_space<vmem>>, vector<8x256xf32>,
    %c30_i32_123 = arith.constant 30 : i32
    %220 = tpu.dynamic_rotate %190 by %c30_i32_123 dim 1 : vector<8x256xf32>, i32 -> vector<8x256xf32>
    %c5_124 = arith.constant 5 : index
    %c0_125 = arith.constant 0 : index
    %221 = vector.load %arg12[%c5_124, %c0_125] : memref<35x256xf32, #tpu.memory_space<vmem>>, vector<1x256xf32>
    %222 = vector.broadcast %221 : vector<1x256xf32> to vector<8x256xf32>
    %223 = arith.mulf %220, %222 : vector<8x256xf32>
    %c40_126 = arith.constant 40 : index
    %c0_127 = arith.constant 0 : index
    %224 = vector.load %arg16[%c40_126, %c0_127] : memref<280x256xf32, #tpu.memory_space<vmem>>, vector<8x256xf32>
    tpu.vector_store %arg16[%c40_126, %c0_127], %223 {strides = array<i32>} : memref<280x256xf32, #tpu.memory_space<vmem>>, vector<8x256xf32>,
    %c29_i32_128 = arith.constant 29 : i32
    %225 = tpu.dynamic_rotate %190 by %c29_i32_128 dim 1 : vector<8x256xf32>, i32 -> vector<8x256xf32>
    %c6_129 = arith.constant 6 : index
    %c0_130 = arith.constant 0 : index
    %226 = vector.load %arg12[%c6_129, %c0_130] : memref<35x256xf32, #tpu.memory_space<vmem>>, vector<1x256xf32>
    %227 = vector.broadcast %226 : vector<1x256xf32> to vector<8x256xf32>
    %228 = arith.mulf %225, %227 : vector<8x256xf32>
    %c48_131 = arith.constant 48 : index
    %c0_132 = arith.constant 0 : index
    %229 = vector.load %arg16[%c48_131, %c0_132] : memref<280x256xf32, #tpu.memory_space<vmem>>, vector<8x256xf32>
    tpu.vector_store %arg16[%c48_131, %c0_132], %228 {strides = array<i32>} : memref<280x256xf32, #tpu.memory_space<vmem>>, vector<8x256xf32>,
    %c19_i32_133 = arith.constant 19 : i32
    %230 = tpu.dynamic_rotate %190 by %c19_i32_133 dim 1 : vector<8x256xf32>, i32 -> vector<8x256xf32>
    %c7_134 = arith.constant 7 : index
    %c0_135 = arith.constant 0 : index
    %231 = vector.load %arg12[%c7_134, %c0_135] : memref<35x256xf32, #tpu.memory_space<vmem>>, vector<1x256xf32>
    %232 = vector.broadcast %231 : vector<1x256xf32> to vector<8x256xf32>
    %233 = arith.mulf %230, %232 : vector<8x256xf32>
    %c56_136 = arith.constant 56 : index
    %c0_137 = arith.constant 0 : index
    %234 = vector.load %arg16[%c56_136, %c0_137] : memref<280x256xf32, #tpu.memory_space<vmem>>, vector<8x256xf32>
    tpu.vector_store %arg16[%c56_136, %c0_137], %233 {strides = array<i32>} : memref<280x256xf32, #tpu.memory_space<vmem>>, vector<8x256xf32>,
    %c18_i32_138 = arith.constant 18 : i32
    %235 = tpu.dynamic_rotate %190 by %c18_i32_138 dim 1 : vector<8x256xf32>, i32 -> vector<8x256xf32>
    %c8_139 = arith.constant 8 : index
    %c0_140 = arith.constant 0 : index
    %236 = vector.load %arg12[%c8_139, %c0_140] : memref<35x256xf32, #tpu.memory_space<vmem>>, vector<1x256xf32>
    %237 = vector.broadcast %236 : vector<1x256xf32> to vector<8x256xf32>
    %238 = arith.mulf %235, %237 : vector<8x256xf32>
    %c64_141 = arith.constant 64 : index
    %c0_142 = arith.constant 0 : index
    %239 = vector.load %arg16[%c64_141, %c0_142] : memref<280x256xf32, #tpu.memory_space<vmem>>, vector<8x256xf32>
    tpu.vector_store %arg16[%c64_141, %c0_142], %238 {strides = array<i32>} : memref<280x256xf32, #tpu.memory_space<vmem>>, vector<8x256xf32>,
    %c17_i32_143 = arith.constant 17 : i32
    %240 = tpu.dynamic_rotate %190 by %c17_i32_143 dim 1 : vector<8x256xf32>, i32 -> vector<8x256xf32>
    %c9_144 = arith.constant 9 : index
    %c0_145 = arith.constant 0 : index
    %241 = vector.load %arg12[%c9_144, %c0_145] : memref<35x256xf32, #tpu.memory_space<vmem>>, vector<1x256xf32>
    %242 = vector.broadcast %241 : vector<1x256xf32> to vector<8x256xf32>
    %243 = arith.mulf %240, %242 : vector<8x256xf32>
    %c72_146 = arith.constant 72 : index
    %c0_147 = arith.constant 0 : index
    %244 = vector.load %arg16[%c72_146, %c0_147] : memref<280x256xf32, #tpu.memory_space<vmem>>, vector<8x256xf32>
    tpu.vector_store %arg16[%c72_146, %c0_147], %243 {strides = array<i32>} : memref<280x256xf32, #tpu.memory_space<vmem>>, vector<8x256xf32>,
    %c16_i32_148 = arith.constant 16 : i32
    %245 = tpu.dynamic_rotate %190 by %c16_i32_148 dim 1 : vector<8x256xf32>, i32 -> vector<8x256xf32>
    %c10_149 = arith.constant 10 : index
    %c0_150 = arith.constant 0 : index
    %246 = vector.load %arg12[%c10_149, %c0_150] : memref<35x256xf32, #tpu.memory_space<vmem>>, vector<1x256xf32>
    %247 = vector.broadcast %246 : vector<1x256xf32> to vector<8x256xf32>
    %248 = arith.mulf %245, %247 : vector<8x256xf32>
    %c80_151 = arith.constant 80 : index
    %c0_152 = arith.constant 0 : index
    %249 = vector.load %arg16[%c80_151, %c0_152] : memref<280x256xf32, #tpu.memory_space<vmem>>, vector<8x256xf32>
    tpu.vector_store %arg16[%c80_151, %c0_152], %248 {strides = array<i32>} : memref<280x256xf32, #tpu.memory_space<vmem>>, vector<8x256xf32>,
    %c15_i32_153 = arith.constant 15 : i32
    %250 = tpu.dynamic_rotate %190 by %c15_i32_153 dim 1 : vector<8x256xf32>, i32 -> vector<8x256xf32>
    %c11_154 = arith.constant 11 : index
    %c0_155 = arith.constant 0 : index
    %251 = vector.load %arg12[%c11_154, %c0_155] : memref<35x256xf32, #tpu.memory_space<vmem>>, vector<1x256xf32>
    %252 = vector.broadcast %251 : vector<1x256xf32> to vector<8x256xf32>
    %253 = arith.mulf %250, %252 : vector<8x256xf32>
    %c88_156 = arith.constant 88 : index
    %c0_157 = arith.constant 0 : index
    %254 = vector.load %arg16[%c88_156, %c0_157] : memref<280x256xf32, #tpu.memory_space<vmem>>, vector<8x256xf32>
    tpu.vector_store %arg16[%c88_156, %c0_157], %253 {strides = array<i32>} : memref<280x256xf32, #tpu.memory_space<vmem>>, vector<8x256xf32>,
    %c14_i32_158 = arith.constant 14 : i32
    %255 = tpu.dynamic_rotate %190 by %c14_i32_158 dim 1 : vector<8x256xf32>, i32 -> vector<8x256xf32>
    %c12_159 = arith.constant 12 : index
    %c0_160 = arith.constant 0 : index
    %256 = vector.load %arg12[%c12_159, %c0_160] : memref<35x256xf32, #tpu.memory_space<vmem>>, vector<1x256xf32>
    %257 = vector.broadcast %256 : vector<1x256xf32> to vector<8x256xf32>
    %258 = arith.mulf %255, %257 : vector<8x256xf32>
    %c96_161 = arith.constant 96 : index
    %c0_162 = arith.constant 0 : index
    %259 = vector.load %arg16[%c96_161, %c0_162] : memref<280x256xf32, #tpu.memory_space<vmem>>, vector<8x256xf32>
    tpu.vector_store %arg16[%c96_161, %c0_162], %258 {strides = array<i32>} : memref<280x256xf32, #tpu.memory_space<vmem>>, vector<8x256xf32>,
    %c13_i32_163 = arith.constant 13 : i32
    %260 = tpu.dynamic_rotate %190 by %c13_i32_163 dim 1 : vector<8x256xf32>, i32 -> vector<8x256xf32>
    %c13_164 = arith.constant 13 : index
    %c0_165 = arith.constant 0 : index
    %261 = vector.load %arg12[%c13_164, %c0_165] : memref<35x256xf32, #tpu.memory_space<vmem>>, vector<1x256xf32>
    %262 = vector.broadcast %261 : vector<1x256xf32> to vector<8x256xf32>
    %263 = arith.mulf %260, %262 : vector<8x256xf32>
    %c104_166 = arith.constant 104 : index
    %c0_167 = arith.constant 0 : index
    %264 = vector.load %arg16[%c104_166, %c0_167] : memref<280x256xf32, #tpu.memory_space<vmem>>, vector<8x256xf32>
    tpu.vector_store %arg16[%c104_166, %c0_167], %263 {strides = array<i32>} : memref<280x256xf32, #tpu.memory_space<vmem>>, vector<8x256xf32>,
    %c3_i32_168 = arith.constant 3 : i32
    %265 = tpu.dynamic_rotate %190 by %c3_i32_168 dim 1 : vector<8x256xf32>, i32 -> vector<8x256xf32>
    %c14_169 = arith.constant 14 : index
    %c0_170 = arith.constant 0 : index
    %266 = vector.load %arg12[%c14_169, %c0_170] : memref<35x256xf32, #tpu.memory_space<vmem>>, vector<1x256xf32>
    %267 = vector.broadcast %266 : vector<1x256xf32> to vector<8x256xf32>
    %268 = arith.mulf %265, %267 : vector<8x256xf32>
    %c112_171 = arith.constant 112 : index
    %c0_172 = arith.constant 0 : index
    %269 = vector.load %arg16[%c112_171, %c0_172] : memref<280x256xf32, #tpu.memory_space<vmem>>, vector<8x256xf32>
    tpu.vector_store %arg16[%c112_171, %c0_172], %268 {strides = array<i32>} : memref<280x256xf32, #tpu.memory_space<vmem>>, vector<8x256xf32>,
    %c2_i32_173 = arith.constant 2 : i32
    %270 = tpu.dynamic_rotate %190 by %c2_i32_173 dim 1 : vector<8x256xf32>, i32 -> vector<8x256xf32>
    %c15_174 = arith.constant 15 : index
    %c0_175 = arith.constant 0 : index
    %271 = vector.load %arg12[%c15_174, %c0_175] : memref<35x256xf32, #tpu.memory_space<vmem>>, vector<1x256xf32>
    %272 = vector.broadcast %271 : vector<1x256xf32> to vector<8x256xf32>
    %273 = arith.mulf %270, %272 : vector<8x256xf32>
    %c120_176 = arith.constant 120 : index
    %c0_177 = arith.constant 0 : index
    %274 = vector.load %arg16[%c120_176, %c0_177] : memref<280x256xf32, #tpu.memory_space<vmem>>, vector<8x256xf32>
    tpu.vector_store %arg16[%c120_176, %c0_177], %273 {strides = array<i32>} : memref<280x256xf32, #tpu.memory_space<vmem>>, vector<8x256xf32>,
    %c1_i32_178 = arith.constant 1 : i32
    %275 = tpu.dynamic_rotate %190 by %c1_i32_178 dim 1 : vector<8x256xf32>, i32 -> vector<8x256xf32>
    %c16_179 = arith.constant 16 : index
    %c0_180 = arith.constant 0 : index
    %276 = vector.load %arg12[%c16_179, %c0_180] : memref<35x256xf32, #tpu.memory_space<vmem>>, vector<1x256xf32>
    %277 = vector.broadcast %276 : vector<1x256xf32> to vector<8x256xf32>
    %278 = arith.mulf %275, %277 : vector<8x256xf32>
    %c128_181 = arith.constant 128 : index
    %c0_182 = arith.constant 0 : index
    %279 = vector.load %arg16[%c128_181, %c0_182] : memref<280x256xf32, #tpu.memory_space<vmem>>, vector<8x256xf32>
    tpu.vector_store %arg16[%c128_181, %c0_182], %278 {strides = array<i32>} : memref<280x256xf32, #tpu.memory_space<vmem>>, vector<8x256xf32>,
    %c17_183 = arith.constant 17 : index
    %c0_184 = arith.constant 0 : index
    %280 = vector.load %arg12[%c17_183, %c0_184] : memref<35x256xf32, #tpu.memory_space<vmem>>, vector<1x256xf32>
    %281 = vector.broadcast %280 : vector<1x256xf32> to vector<8x256xf32>
    %282 = arith.mulf %190, %281 : vector<8x256xf32>
    %c136_185 = arith.constant 136 : index
    %c0_186 = arith.constant 0 : index
    %283 = vector.load %arg16[%c136_185, %c0_186] : memref<280x256xf32, #tpu.memory_space<vmem>>, vector<8x256xf32>
    tpu.vector_store %arg16[%c136_185, %c0_186], %282 {strides = array<i32>} : memref<280x256xf32, #tpu.memory_space<vmem>>, vector<8x256xf32>,
    %c255_i32_187 = arith.constant 255 : i32
    %284 = tpu.dynamic_rotate %190 by %c255_i32_187 dim 1 : vector<8x256xf32>, i32 -> vector<8x256xf32>
    %c18_188 = arith.constant 18 : index
    %c0_189 = arith.constant 0 : index
    %285 = vector.load %arg12[%c18_188, %c0_189] : memref<35x256xf32, #tpu.memory_space<vmem>>, vector<1x256xf32>
    %286 = vector.broadcast %285 : vector<1x256xf32> to vector<8x256xf32>
    %287 = arith.mulf %284, %286 : vector<8x256xf32>
    %c144_190 = arith.constant 144 : index
    %c0_191 = arith.constant 0 : index
    %288 = vector.load %arg16[%c144_190, %c0_191] : memref<280x256xf32, #tpu.memory_space<vmem>>, vector<8x256xf32>
    tpu.vector_store %arg16[%c144_190, %c0_191], %287 {strides = array<i32>} : memref<280x256xf32, #tpu.memory_space<vmem>>, vector<8x256xf32>,
    %c254_i32_192 = arith.constant 254 : i32
    %289 = tpu.dynamic_rotate %190 by %c254_i32_192 dim 1 : vector<8x256xf32>, i32 -> vector<8x256xf32>
    %c19_193 = arith.constant 19 : index
    %c0_194 = arith.constant 0 : index
    %290 = vector.load %arg12[%c19_193, %c0_194] : memref<35x256xf32, #tpu.memory_space<vmem>>, vector<1x256xf32>
    %291 = vector.broadcast %290 : vector<1x256xf32> to vector<8x256xf32>
    %292 = arith.mulf %289, %291 : vector<8x256xf32>
    %c152_195 = arith.constant 152 : index
    %c0_196 = arith.constant 0 : index
    %293 = vector.load %arg16[%c152_195, %c0_196] : memref<280x256xf32, #tpu.memory_space<vmem>>, vector<8x256xf32>
    tpu.vector_store %arg16[%c152_195, %c0_196], %292 {strides = array<i32>} : memref<280x256xf32, #tpu.memory_space<vmem>>, vector<8x256xf32>,
    %c253_i32_197 = arith.constant 253 : i32
    %294 = tpu.dynamic_rotate %190 by %c253_i32_197 dim 1 : vector<8x256xf32>, i32 -> vector<8x256xf32>
    %c20_198 = arith.constant 20 : index
    %c0_199 = arith.constant 0 : index
    %295 = vector.load %arg12[%c20_198, %c0_199] : memref<35x256xf32, #tpu.memory_space<vmem>>, vector<1x256xf32>
    %296 = vector.broadcast %295 : vector<1x256xf32> to vector<8x256xf32>
    %297 = arith.mulf %294, %296 : vector<8x256xf32>
    %c160_200 = arith.constant 160 : index
    %c0_201 = arith.constant 0 : index
    %298 = vector.load %arg16[%c160_200, %c0_201] : memref<280x256xf32, #tpu.memory_space<vmem>>, vector<8x256xf32>
    tpu.vector_store %arg16[%c160_200, %c0_201], %297 {strides = array<i32>} : memref<280x256xf32, #tpu.memory_space<vmem>>, vector<8x256xf32>,
    %c243_i32_202 = arith.constant 243 : i32
    %299 = tpu.dynamic_rotate %190 by %c243_i32_202 dim 1 : vector<8x256xf32>, i32 -> vector<8x256xf32>
    %c21_203 = arith.constant 21 : index
    %c0_204 = arith.constant 0 : index
    %300 = vector.load %arg12[%c21_203, %c0_204] : memref<35x256xf32, #tpu.memory_space<vmem>>, vector<1x256xf32>
    %301 = vector.broadcast %300 : vector<1x256xf32> to vector<8x256xf32>
    %302 = arith.mulf %299, %301 : vector<8x256xf32>
    %c168_205 = arith.constant 168 : index
    %c0_206 = arith.constant 0 : index
    %303 = vector.load %arg16[%c168_205, %c0_206] : memref<280x256xf32, #tpu.memory_space<vmem>>, vector<8x256xf32>
    tpu.vector_store %arg16[%c168_205, %c0_206], %302 {strides = array<i32>} : memref<280x256xf32, #tpu.memory_space<vmem>>, vector<8x256xf32>,
    %c242_i32_207 = arith.constant 242 : i32
    %304 = tpu.dynamic_rotate %190 by %c242_i32_207 dim 1 : vector<8x256xf32>, i32 -> vector<8x256xf32>
    %c22_208 = arith.constant 22 : index
    %c0_209 = arith.constant 0 : index
    %305 = vector.load %arg12[%c22_208, %c0_209] : memref<35x256xf32, #tpu.memory_space<vmem>>, vector<1x256xf32>
    %306 = vector.broadcast %305 : vector<1x256xf32> to vector<8x256xf32>
    %307 = arith.mulf %304, %306 : vector<8x256xf32>
    %c176_210 = arith.constant 176 : index
    %c0_211 = arith.constant 0 : index
    %308 = vector.load %arg16[%c176_210, %c0_211] : memref<280x256xf32, #tpu.memory_space<vmem>>, vector<8x256xf32>
    tpu.vector_store %arg16[%c176_210, %c0_211], %307 {strides = array<i32>} : memref<280x256xf32, #tpu.memory_space<vmem>>, vector<8x256xf32>,
    %c241_i32_212 = arith.constant 241 : i32
    %309 = tpu.dynamic_rotate %190 by %c241_i32_212 dim 1 : vector<8x256xf32>, i32 -> vector<8x256xf32>
    %c23_213 = arith.constant 23 : index
    %c0_214 = arith.constant 0 : index
    %310 = vector.load %arg12[%c23_213, %c0_214] : memref<35x256xf32, #tpu.memory_space<vmem>>, vector<1x256xf32>
    %311 = vector.broadcast %310 : vector<1x256xf32> to vector<8x256xf32>
    %312 = arith.mulf %309, %311 : vector<8x256xf32>
    %c184_215 = arith.constant 184 : index
    %c0_216 = arith.constant 0 : index
    %313 = vector.load %arg16[%c184_215, %c0_216] : memref<280x256xf32, #tpu.memory_space<vmem>>, vector<8x256xf32>
    tpu.vector_store %arg16[%c184_215, %c0_216], %312 {strides = array<i32>} : memref<280x256xf32, #tpu.memory_space<vmem>>, vector<8x256xf32>,
    %c240_i32_217 = arith.constant 240 : i32
    %314 = tpu.dynamic_rotate %190 by %c240_i32_217 dim 1 : vector<8x256xf32>, i32 -> vector<8x256xf32>
    %c24_218 = arith.constant 24 : index
    %c0_219 = arith.constant 0 : index
    %315 = vector.load %arg12[%c24_218, %c0_219] : memref<35x256xf32, #tpu.memory_space<vmem>>, vector<1x256xf32>
    %316 = vector.broadcast %315 : vector<1x256xf32> to vector<8x256xf32>
    %317 = arith.mulf %314, %316 : vector<8x256xf32>
    %c192_220 = arith.constant 192 : index
    %c0_221 = arith.constant 0 : index
    %318 = vector.load %arg16[%c192_220, %c0_221] : memref<280x256xf32, #tpu.memory_space<vmem>>, vector<8x256xf32>
    tpu.vector_store %arg16[%c192_220, %c0_221], %317 {strides = array<i32>} : memref<280x256xf32, #tpu.memory_space<vmem>>, vector<8x256xf32>,
    %c239_i32_222 = arith.constant 239 : i32
    %319 = tpu.dynamic_rotate %190 by %c239_i32_222 dim 1 : vector<8x256xf32>, i32 -> vector<8x256xf32>
    %c25_223 = arith.constant 25 : index
    %c0_224 = arith.constant 0 : index
    %320 = vector.load %arg12[%c25_223, %c0_224] : memref<35x256xf32, #tpu.memory_space<vmem>>, vector<1x256xf32>
    %321 = vector.broadcast %320 : vector<1x256xf32> to vector<8x256xf32>
    %322 = arith.mulf %319, %321 : vector<8x256xf32>
    %c200_225 = arith.constant 200 : index
    %c0_226 = arith.constant 0 : index
    %323 = vector.load %arg16[%c200_225, %c0_226] : memref<280x256xf32, #tpu.memory_space<vmem>>, vector<8x256xf32>
    tpu.vector_store %arg16[%c200_225, %c0_226], %322 {strides = array<i32>} : memref<280x256xf32, #tpu.memory_space<vmem>>, vector<8x256xf32>,
    %c238_i32_227 = arith.constant 238 : i32
    %324 = tpu.dynamic_rotate %190 by %c238_i32_227 dim 1 : vector<8x256xf32>, i32 -> vector<8x256xf32>
    %c26_228 = arith.constant 26 : index
    %c0_229 = arith.constant 0 : index
    %325 = vector.load %arg12[%c26_228, %c0_229] : memref<35x256xf32, #tpu.memory_space<vmem>>, vector<1x256xf32>
    %326 = vector.broadcast %325 : vector<1x256xf32> to vector<8x256xf32>
    %327 = arith.mulf %324, %326 : vector<8x256xf32>
    %c208_230 = arith.constant 208 : index
    %c0_231 = arith.constant 0 : index
    %328 = vector.load %arg16[%c208_230, %c0_231] : memref<280x256xf32, #tpu.memory_space<vmem>>, vector<8x256xf32>
    tpu.vector_store %arg16[%c208_230, %c0_231], %327 {strides = array<i32>} : memref<280x256xf32, #tpu.memory_space<vmem>>, vector<8x256xf32>,
    %c237_i32_232 = arith.constant 237 : i32
    %329 = tpu.dynamic_rotate %190 by %c237_i32_232 dim 1 : vector<8x256xf32>, i32 -> vector<8x256xf32>
    %c27_233 = arith.constant 27 : index
    %c0_234 = arith.constant 0 : index
    %330 = vector.load %arg12[%c27_233, %c0_234] : memref<35x256xf32, #tpu.memory_space<vmem>>, vector<1x256xf32>
    %331 = vector.broadcast %330 : vector<1x256xf32> to vector<8x256xf32>
    %332 = arith.mulf %329, %331 : vector<8x256xf32>
    %c216_235 = arith.constant 216 : index
    %c0_236 = arith.constant 0 : index
    %333 = vector.load %arg16[%c216_235, %c0_236] : memref<280x256xf32, #tpu.memory_space<vmem>>, vector<8x256xf32>
    tpu.vector_store %arg16[%c216_235, %c0_236], %332 {strides = array<i32>} : memref<280x256xf32, #tpu.memory_space<vmem>>, vector<8x256xf32>,
    %c227_i32_237 = arith.constant 227 : i32
    %334 = tpu.dynamic_rotate %190 by %c227_i32_237 dim 1 : vector<8x256xf32>, i32 -> vector<8x256xf32>
    %c28_238 = arith.constant 28 : index
    %c0_239 = arith.constant 0 : index
    %335 = vector.load %arg12[%c28_238, %c0_239] : memref<35x256xf32, #tpu.memory_space<vmem>>, vector<1x256xf32>
    %336 = vector.broadcast %335 : vector<1x256xf32> to vector<8x256xf32>
    %337 = arith.mulf %334, %336 : vector<8x256xf32>
    %c224_240 = arith.constant 224 : index
    %c0_241 = arith.constant 0 : index
    %338 = vector.load %arg16[%c224_240, %c0_241] : memref<280x256xf32, #tpu.memory_space<vmem>>, vector<8x256xf32>
    tpu.vector_store %arg16[%c224_240, %c0_241], %337 {strides = array<i32>} : memref<280x256xf32, #tpu.memory_space<vmem>>, vector<8x256xf32>,
    %c226_i32_242 = arith.constant 226 : i32
    %339 = tpu.dynamic_rotate %190 by %c226_i32_242 dim 1 : vector<8x256xf32>, i32 -> vector<8x256xf32>
    %c29_243 = arith.constant 29 : index
    %c0_244 = arith.constant 0 : index
    %340 = vector.load %arg12[%c29_243, %c0_244] : memref<35x256xf32, #tpu.memory_space<vmem>>, vector<1x256xf32>
    %341 = vector.broadcast %340 : vector<1x256xf32> to vector<8x256xf32>
    %342 = arith.mulf %339, %341 : vector<8x256xf32>
    %c232_245 = arith.constant 232 : index
    %c0_246 = arith.constant 0 : index
    %343 = vector.load %arg16[%c232_245, %c0_246] : memref<280x256xf32, #tpu.memory_space<vmem>>, vector<8x256xf32>
    tpu.vector_store %arg16[%c232_245, %c0_246], %342 {strides = array<i32>} : memref<280x256xf32, #tpu.memory_space<vmem>>, vector<8x256xf32>,
    %c225_i32_247 = arith.constant 225 : i32
    %344 = tpu.dynamic_rotate %190 by %c225_i32_247 dim 1 : vector<8x256xf32>, i32 -> vector<8x256xf32>
    %c30_248 = arith.constant 30 : index
    %c0_249 = arith.constant 0 : index
    %345 = vector.load %arg12[%c30_248, %c0_249] : memref<35x256xf32, #tpu.memory_space<vmem>>, vector<1x256xf32>
    %346 = vector.broadcast %345 : vector<1x256xf32> to vector<8x256xf32>
    %347 = arith.mulf %344, %346 : vector<8x256xf32>
    %c240_250 = arith.constant 240 : index
    %c0_251 = arith.constant 0 : index
    %348 = vector.load %arg16[%c240_250, %c0_251] : memref<280x256xf32, #tpu.memory_space<vmem>>, vector<8x256xf32>
    tpu.vector_store %arg16[%c240_250, %c0_251], %347 {strides = array<i32>} : memref<280x256xf32, #tpu.memory_space<vmem>>, vector<8x256xf32>,
    %c224_i32_252 = arith.constant 224 : i32
    %349 = tpu.dynamic_rotate %190 by %c224_i32_252 dim 1 : vector<8x256xf32>, i32 -> vector<8x256xf32>
    %c31_253 = arith.constant 31 : index
    %c0_254 = arith.constant 0 : index
    %350 = vector.load %arg12[%c31_253, %c0_254] : memref<35x256xf32, #tpu.memory_space<vmem>>, vector<1x256xf32>
    %351 = vector.broadcast %350 : vector<1x256xf32> to vector<8x256xf32>
    %352 = arith.mulf %349, %351 : vector<8x256xf32>
    %c248_255 = arith.constant 248 : index
    %c0_256 = arith.constant 0 : index
    %353 = vector.load %arg16[%c248_255, %c0_256] : memref<280x256xf32, #tpu.memory_space<vmem>>, vector<8x256xf32>
    tpu.vector_store %arg16[%c248_255, %c0_256], %352 {strides = array<i32>} : memref<280x256xf32, #tpu.memory_space<vmem>>, vector<8x256xf32>,
    %c223_i32_257 = arith.constant 223 : i32
    %354 = tpu.dynamic_rotate %190 by %c223_i32_257 dim 1 : vector<8x256xf32>, i32 -> vector<8x256xf32>
    %c32_258 = arith.constant 32 : index
    %c0_259 = arith.constant 0 : index
    %355 = vector.load %arg12[%c32_258, %c0_259] : memref<35x256xf32, #tpu.memory_space<vmem>>, vector<1x256xf32>
    %356 = vector.broadcast %355 : vector<1x256xf32> to vector<8x256xf32>
    %357 = arith.mulf %354, %356 : vector<8x256xf32>
    %c256_260 = arith.constant 256 : index
    %c0_261 = arith.constant 0 : index
    %358 = vector.load %arg16[%c256_260, %c0_261] : memref<280x256xf32, #tpu.memory_space<vmem>>, vector<8x256xf32>
    tpu.vector_store %arg16[%c256_260, %c0_261], %357 {strides = array<i32>} : memref<280x256xf32, #tpu.memory_space<vmem>>, vector<8x256xf32>,
    %c222_i32_262 = arith.constant 222 : i32
    %359 = tpu.dynamic_rotate %190 by %c222_i32_262 dim 1 : vector<8x256xf32>, i32 -> vector<8x256xf32>
    %c33_263 = arith.constant 33 : index
    %c0_264 = arith.constant 0 : index
    %360 = vector.load %arg12[%c33_263, %c0_264] : memref<35x256xf32, #tpu.memory_space<vmem>>, vector<1x256xf32>
    %361 = vector.broadcast %360 : vector<1x256xf32> to vector<8x256xf32>
    %362 = arith.mulf %359, %361 : vector<8x256xf32>
    %c264_265 = arith.constant 264 : index
    %c0_266 = arith.constant 0 : index
    %363 = vector.load %arg16[%c264_265, %c0_266] : memref<280x256xf32, #tpu.memory_space<vmem>>, vector<8x256xf32>
    tpu.vector_store %arg16[%c264_265, %c0_266], %362 {strides = array<i32>} : memref<280x256xf32, #tpu.memory_space<vmem>>, vector<8x256xf32>,
    %c221_i32_267 = arith.constant 221 : i32
    %364 = tpu.dynamic_rotate %190 by %c221_i32_267 dim 1 : vector<8x256xf32>, i32 -> vector<8x256xf32>
    %c34_268 = arith.constant 34 : index
    %c0_269 = arith.constant 0 : index
    %365 = vector.load %arg12[%c34_268, %c0_269] : memref<35x256xf32, #tpu.memory_space<vmem>>, vector<1x256xf32>
    %366 = vector.broadcast %365 : vector<1x256xf32> to vector<8x256xf32>
    %367 = arith.mulf %364, %366 : vector<8x256xf32>
    %c272_270 = arith.constant 272 : index
    %c0_271 = arith.constant 0 : index
    %368 = vector.load %arg16[%c272_270, %c0_271] : memref<280x256xf32, #tpu.memory_space<vmem>>, vector<8x256xf32>
    tpu.vector_store %arg16[%c272_270, %c0_271], %367 {strides = array<i32>} : memref<280x256xf32, #tpu.memory_space<vmem>>, vector<8x256xf32>,
    %c0_272 = arith.constant 0 : index
    %c0_273 = arith.constant 0 : index
    %369 = vector.load %arg16[%c0_272, %c0_273] : memref<280x256xf32, #tpu.memory_space<vmem>>, vector<280x256xf32>
    %cst_274 = arith.constant dense<0.000000e+00> : vector<8x256xf32>
    %370 = tpu.matmul %192, %369, %cst_274 {dimension_numbers = #tpu.dot_dimension_numbers<[1], [0], [0], [1], [0, 0, 1, 1], [], []>} : vector<8x280xf32>, vector<280x256xf32>, vector<8x256xf32> -> vector<8x256xf32>
    %371 = vector.broadcast %194 : vector<8x1xf32> to vector<8x256xf32>
    %372 = arith.addf %370, %371 : vector<8x256xf32>
    %373 = arith.addf %372, %1 : vector<8x256xf32>
    %374 = arith.index_cast %arg0 : i32 to index
    %c1_275 = arith.constant 1 : index
    %375 = memref.load %arg1[%374, %c1_275] : memref<2x8xf32, #tpu.memory_space<smem>>
    %cst_276 = arith.constant 0.000000e+00 : f32
    %376 = vector.broadcast %cst_276 : f32 to vector<8x256xf32>
    %377 = arith.cmpf ogt, %373, %376 : vector<8x256xf32>
    %378 = vector.broadcast %375 : f32 to vector<8x256xf32>
    %379 = arith.mulf %378, %373 : vector<8x256xf32>
    %380 = arith.select %377, %373, %379 : vector<8x256xi1>, vector<8x256xf32>
    %c0_277 = arith.constant 0 : index
    %c2_278 = arith.constant 2 : index
    %c0_279 = arith.constant 0 : index
    %c0_280 = arith.constant 0 : index
    %381 = vector.load %arg3[%c0_277, %c2_278, %c0_279, %c0_280] : memref<1x4x8x280xf32, #tpu.memory_space<vmem>>, vector<1x1x8x280xf32>
    %382 = vector.shape_cast %381 : vector<1x1x8x280xf32> to vector<8x280xf32>
    %c0_281 = arith.constant 0 : index
    %c2_282 = arith.constant 2 : index
    %c0_283 = arith.constant 0 : index
    %c0_284 = arith.constant 0 : index
    %383 = vector.load %arg4[%c0_281, %c2_282, %c0_283, %c0_284] : memref<1x4x8x1xf32, #tpu.memory_space<vmem>>, vector<1x1x8x1xf32>
    %384 = vector.shape_cast %383 : vector<1x1x8x1xf32> to vector<8x1xf32>
    %c35_i32_285 = arith.constant 35 : i32
    %385 = tpu.dynamic_rotate %380 by %c35_i32_285 dim 1 : vector<8x256xf32>, i32 -> vector<8x256xf32>
    %c0_286 = arith.constant 0 : index
    %c0_287 = arith.constant 0 : index
    %386 = vector.load %arg12[%c0_286, %c0_287] : memref<35x256xf32, #tpu.memory_space<vmem>>, vector<1x256xf32>
    %387 = vector.broadcast %386 : vector<1x256xf32> to vector<8x256xf32>
    %388 = arith.mulf %385, %387 : vector<8x256xf32>
    %c0_288 = arith.constant 0 : index
    %c0_289 = arith.constant 0 : index
    %389 = vector.load %arg16[%c0_288, %c0_289] : memref<280x256xf32, #tpu.memory_space<vmem>>, vector<8x256xf32>
    tpu.vector_store %arg16[%c0_288, %c0_289], %388 {strides = array<i32>} : memref<280x256xf32, #tpu.memory_space<vmem>>, vector<8x256xf32>,
    %c34_i32_290 = arith.constant 34 : i32
    %390 = tpu.dynamic_rotate %380 by %c34_i32_290 dim 1 : vector<8x256xf32>, i32 -> vector<8x256xf32>
    %c1_291 = arith.constant 1 : index
    %c0_292 = arith.constant 0 : index
    %391 = vector.load %arg12[%c1_291, %c0_292] : memref<35x256xf32, #tpu.memory_space<vmem>>, vector<1x256xf32>
    %392 = vector.broadcast %391 : vector<1x256xf32> to vector<8x256xf32>
    %393 = arith.mulf %390, %392 : vector<8x256xf32>
    %c8_293 = arith.constant 8 : index
    %c0_294 = arith.constant 0 : index
    %394 = vector.load %arg16[%c8_293, %c0_294] : memref<280x256xf32, #tpu.memory_space<vmem>>, vector<8x256xf32>
    tpu.vector_store %arg16[%c8_293, %c0_294], %393 {strides = array<i32>} : memref<280x256xf32, #tpu.memory_space<vmem>>, vector<8x256xf32>,
    %c33_i32_295 = arith.constant 33 : i32
    %395 = tpu.dynamic_rotate %380 by %c33_i32_295 dim 1 : vector<8x256xf32>, i32 -> vector<8x256xf32>
    %c2_296 = arith.constant 2 : index
    %c0_297 = arith.constant 0 : index
    %396 = vector.load %arg12[%c2_296, %c0_297] : memref<35x256xf32, #tpu.memory_space<vmem>>, vector<1x256xf32>
    %397 = vector.broadcast %396 : vector<1x256xf32> to vector<8x256xf32>
    %398 = arith.mulf %395, %397 : vector<8x256xf32>
    %c16_298 = arith.constant 16 : index
    %c0_299 = arith.constant 0 : index
    %399 = vector.load %arg16[%c16_298, %c0_299] : memref<280x256xf32, #tpu.memory_space<vmem>>, vector<8x256xf32>
    tpu.vector_store %arg16[%c16_298, %c0_299], %398 {strides = array<i32>} : memref<280x256xf32, #tpu.memory_space<vmem>>, vector<8x256xf32>,
    %c32_i32_300 = arith.constant 32 : i32
    %400 = tpu.dynamic_rotate %380 by %c32_i32_300 dim 1 : vector<8x256xf32>, i32 -> vector<8x256xf32>
    %c3_301 = arith.constant 3 : index
    %c0_302 = arith.constant 0 : index
    %401 = vector.load %arg12[%c3_301, %c0_302] : memref<35x256xf32, #tpu.memory_space<vmem>>, vector<1x256xf32>
    %402 = vector.broadcast %401 : vector<1x256xf32> to vector<8x256xf32>
    %403 = arith.mulf %400, %402 : vector<8x256xf32>
    %c24_303 = arith.constant 24 : index
    %c0_304 = arith.constant 0 : index
    %404 = vector.load %arg16[%c24_303, %c0_304] : memref<280x256xf32, #tpu.memory_space<vmem>>, vector<8x256xf32>
    tpu.vector_store %arg16[%c24_303, %c0_304], %403 {strides = array<i32>} : memref<280x256xf32, #tpu.memory_space<vmem>>, vector<8x256xf32>,
    %c31_i32_305 = arith.constant 31 : i32
    %405 = tpu.dynamic_rotate %380 by %c31_i32_305 dim 1 : vector<8x256xf32>, i32 -> vector<8x256xf32>
    %c4_306 = arith.constant 4 : index
    %c0_307 = arith.constant 0 : index
    %406 = vector.load %arg12[%c4_306, %c0_307] : memref<35x256xf32, #tpu.memory_space<vmem>>, vector<1x256xf32>
    %407 = vector.broadcast %406 : vector<1x256xf32> to vector<8x256xf32>
    %408 = arith.mulf %405, %407 : vector<8x256xf32>
    %c32_308 = arith.constant 32 : index
    %c0_309 = arith.constant 0 : index
    %409 = vector.load %arg16[%c32_308, %c0_309] : memref<280x256xf32, #tpu.memory_space<vmem>>, vector<8x256xf32>
    tpu.vector_store %arg16[%c32_308, %c0_309], %408 {strides = array<i32>} : memref<280x256xf32, #tpu.memory_space<vmem>>, vector<8x256xf32>,
    %c30_i32_310 = arith.constant 30 : i32
    %410 = tpu.dynamic_rotate %380 by %c30_i32_310 dim 1 : vector<8x256xf32>, i32 -> vector<8x256xf32>
    %c5_311 = arith.constant 5 : index
    %c0_312 = arith.constant 0 : index
    %411 = vector.load %arg12[%c5_311, %c0_312] : memref<35x256xf32, #tpu.memory_space<vmem>>, vector<1x256xf32>
    %412 = vector.broadcast %411 : vector<1x256xf32> to vector<8x256xf32>
    %413 = arith.mulf %410, %412 : vector<8x256xf32>
    %c40_313 = arith.constant 40 : index
    %c0_314 = arith.constant 0 : index
    %414 = vector.load %arg16[%c40_313, %c0_314] : memref<280x256xf32, #tpu.memory_space<vmem>>, vector<8x256xf32>
    tpu.vector_store %arg16[%c40_313, %c0_314], %413 {strides = array<i32>} : memref<280x256xf32, #tpu.memory_space<vmem>>, vector<8x256xf32>,
    %c29_i32_315 = arith.constant 29 : i32
    %415 = tpu.dynamic_rotate %380 by %c29_i32_315 dim 1 : vector<8x256xf32>, i32 -> vector<8x256xf32>
    %c6_316 = arith.constant 6 : index
    %c0_317 = arith.constant 0 : index
    %416 = vector.load %arg12[%c6_316, %c0_317] : memref<35x256xf32, #tpu.memory_space<vmem>>, vector<1x256xf32>
    %417 = vector.broadcast %416 : vector<1x256xf32> to vector<8x256xf32>
    %418 = arith.mulf %415, %417 : vector<8x256xf32>
    %c48_318 = arith.constant 48 : index
    %c0_319 = arith.constant 0 : index
    %419 = vector.load %arg16[%c48_318, %c0_319] : memref<280x256xf32, #tpu.memory_space<vmem>>, vector<8x256xf32>
    tpu.vector_store %arg16[%c48_318, %c0_319], %418 {strides = array<i32>} : memref<280x256xf32, #tpu.memory_space<vmem>>, vector<8x256xf32>,
    %c19_i32_320 = arith.constant 19 : i32
    %420 = tpu.dynamic_rotate %380 by %c19_i32_320 dim 1 : vector<8x256xf32>, i32 -> vector<8x256xf32>
    %c7_321 = arith.constant 7 : index
    %c0_322 = arith.constant 0 : index
    %421 = vector.load %arg12[%c7_321, %c0_322] : memref<35x256xf32, #tpu.memory_space<vmem>>, vector<1x256xf32>
    %422 = vector.broadcast %421 : vector<1x256xf32> to vector<8x256xf32>
    %423 = arith.mulf %420, %422 : vector<8x256xf32>
    %c56_323 = arith.constant 56 : index
    %c0_324 = arith.constant 0 : index
    %424 = vector.load %arg16[%c56_323, %c0_324] : memref<280x256xf32, #tpu.memory_space<vmem>>, vector<8x256xf32>
    tpu.vector_store %arg16[%c56_323, %c0_324], %423 {strides = array<i32>} : memref<280x256xf32, #tpu.memory_space<vmem>>, vector<8x256xf32>,
    %c18_i32_325 = arith.constant 18 : i32
    %425 = tpu.dynamic_rotate %380 by %c18_i32_325 dim 1 : vector<8x256xf32>, i32 -> vector<8x256xf32>
    %c8_326 = arith.constant 8 : index
    %c0_327 = arith.constant 0 : index
    %426 = vector.load %arg12[%c8_326, %c0_327] : memref<35x256xf32, #tpu.memory_space<vmem>>, vector<1x256xf32>
    %427 = vector.broadcast %426 : vector<1x256xf32> to vector<8x256xf32>
    %428 = arith.mulf %425, %427 : vector<8x256xf32>
    %c64_328 = arith.constant 64 : index
    %c0_329 = arith.constant 0 : index
    %429 = vector.load %arg16[%c64_328, %c0_329] : memref<280x256xf32, #tpu.memory_space<vmem>>, vector<8x256xf32>
    tpu.vector_store %arg16[%c64_328, %c0_329], %428 {strides = array<i32>} : memref<280x256xf32, #tpu.memory_space<vmem>>, vector<8x256xf32>,
    %c17_i32_330 = arith.constant 17 : i32
    %430 = tpu.dynamic_rotate %380 by %c17_i32_330 dim 1 : vector<8x256xf32>, i32 -> vector<8x256xf32>
    %c9_331 = arith.constant 9 : index
    %c0_332 = arith.constant 0 : index
    %431 = vector.load %arg12[%c9_331, %c0_332] : memref<35x256xf32, #tpu.memory_space<vmem>>, vector<1x256xf32>
    %432 = vector.broadcast %431 : vector<1x256xf32> to vector<8x256xf32>
    %433 = arith.mulf %430, %432 : vector<8x256xf32>
    %c72_333 = arith.constant 72 : index
    %c0_334 = arith.constant 0 : index
    %434 = vector.load %arg16[%c72_333, %c0_334] : memref<280x256xf32, #tpu.memory_space<vmem>>, vector<8x256xf32>
    tpu.vector_store %arg16[%c72_333, %c0_334], %433 {strides = array<i32>} : memref<280x256xf32, #tpu.memory_space<vmem>>, vector<8x256xf32>,
    %c16_i32_335 = arith.constant 16 : i32
    %435 = tpu.dynamic_rotate %380 by %c16_i32_335 dim 1 : vector<8x256xf32>, i32 -> vector<8x256xf32>
    %c10_336 = arith.constant 10 : index
    %c0_337 = arith.constant 0 : index
    %436 = vector.load %arg12[%c10_336, %c0_337] : memref<35x256xf32, #tpu.memory_space<vmem>>, vector<1x256xf32>
    %437 = vector.broadcast %436 : vector<1x256xf32> to vector<8x256xf32>
    %438 = arith.mulf %435, %437 : vector<8x256xf32>
    %c80_338 = arith.constant 80 : index
    %c0_339 = arith.constant 0 : index
    %439 = vector.load %arg16[%c80_338, %c0_339] : memref<280x256xf32, #tpu.memory_space<vmem>>, vector<8x256xf32>
    tpu.vector_store %arg16[%c80_338, %c0_339], %438 {strides = array<i32>} : memref<280x256xf32, #tpu.memory_space<vmem>>, vector<8x256xf32>,
    %c15_i32_340 = arith.constant 15 : i32
    %440 = tpu.dynamic_rotate %380 by %c15_i32_340 dim 1 : vector<8x256xf32>, i32 -> vector<8x256xf32>
    %c11_341 = arith.constant 11 : index
    %c0_342 = arith.constant 0 : index
    %441 = vector.load %arg12[%c11_341, %c0_342] : memref<35x256xf32, #tpu.memory_space<vmem>>, vector<1x256xf32>
    %442 = vector.broadcast %441 : vector<1x256xf32> to vector<8x256xf32>
    %443 = arith.mulf %440, %442 : vector<8x256xf32>
    %c88_343 = arith.constant 88 : index
    %c0_344 = arith.constant 0 : index
    %444 = vector.load %arg16[%c88_343, %c0_344] : memref<280x256xf32, #tpu.memory_space<vmem>>, vector<8x256xf32>
    tpu.vector_store %arg16[%c88_343, %c0_344], %443 {strides = array<i32>} : memref<280x256xf32, #tpu.memory_space<vmem>>, vector<8x256xf32>,
    %c14_i32_345 = arith.constant 14 : i32
    %445 = tpu.dynamic_rotate %380 by %c14_i32_345 dim 1 : vector<8x256xf32>, i32 -> vector<8x256xf32>
    %c12_346 = arith.constant 12 : index
    %c0_347 = arith.constant 0 : index
    %446 = vector.load %arg12[%c12_346, %c0_347] : memref<35x256xf32, #tpu.memory_space<vmem>>, vector<1x256xf32>
    %447 = vector.broadcast %446 : vector<1x256xf32> to vector<8x256xf32>
    %448 = arith.mulf %445, %447 : vector<8x256xf32>
    %c96_348 = arith.constant 96 : index
    %c0_349 = arith.constant 0 : index
    %449 = vector.load %arg16[%c96_348, %c0_349] : memref<280x256xf32, #tpu.memory_space<vmem>>, vector<8x256xf32>
    tpu.vector_store %arg16[%c96_348, %c0_349], %448 {strides = array<i32>} : memref<280x256xf32, #tpu.memory_space<vmem>>, vector<8x256xf32>,
    %c13_i32_350 = arith.constant 13 : i32
    %450 = tpu.dynamic_rotate %380 by %c13_i32_350 dim 1 : vector<8x256xf32>, i32 -> vector<8x256xf32>
    %c13_351 = arith.constant 13 : index
    %c0_352 = arith.constant 0 : index
    %451 = vector.load %arg12[%c13_351, %c0_352] : memref<35x256xf32, #tpu.memory_space<vmem>>, vector<1x256xf32>
    %452 = vector.broadcast %451 : vector<1x256xf32> to vector<8x256xf32>
    %453 = arith.mulf %450, %452 : vector<8x256xf32>
    %c104_353 = arith.constant 104 : index
    %c0_354 = arith.constant 0 : index
    %454 = vector.load %arg16[%c104_353, %c0_354] : memref<280x256xf32, #tpu.memory_space<vmem>>, vector<8x256xf32>
    tpu.vector_store %arg16[%c104_353, %c0_354], %453 {strides = array<i32>} : memref<280x256xf32, #tpu.memory_space<vmem>>, vector<8x256xf32>,
    %c3_i32_355 = arith.constant 3 : i32
    %455 = tpu.dynamic_rotate %380 by %c3_i32_355 dim 1 : vector<8x256xf32>, i32 -> vector<8x256xf32>
    %c14_356 = arith.constant 14 : index
    %c0_357 = arith.constant 0 : index
    %456 = vector.load %arg12[%c14_356, %c0_357] : memref<35x256xf32, #tpu.memory_space<vmem>>, vector<1x256xf32>
    %457 = vector.broadcast %456 : vector<1x256xf32> to vector<8x256xf32>
    %458 = arith.mulf %455, %457 : vector<8x256xf32>
    %c112_358 = arith.constant 112 : index
    %c0_359 = arith.constant 0 : index
    %459 = vector.load %arg16[%c112_358, %c0_359] : memref<280x256xf32, #tpu.memory_space<vmem>>, vector<8x256xf32>
    tpu.vector_store %arg16[%c112_358, %c0_359], %458 {strides = array<i32>} : memref<280x256xf32, #tpu.memory_space<vmem>>, vector<8x256xf32>,
    %c2_i32_360 = arith.constant 2 : i32
    %460 = tpu.dynamic_rotate %380 by %c2_i32_360 dim 1 : vector<8x256xf32>, i32 -> vector<8x256xf32>
    %c15_361 = arith.constant 15 : index
    %c0_362 = arith.constant 0 : index
    %461 = vector.load %arg12[%c15_361, %c0_362] : memref<35x256xf32, #tpu.memory_space<vmem>>, vector<1x256xf32>
    %462 = vector.broadcast %461 : vector<1x256xf32> to vector<8x256xf32>
    %463 = arith.mulf %460, %462 : vector<8x256xf32>
    %c120_363 = arith.constant 120 : index
    %c0_364 = arith.constant 0 : index
    %464 = vector.load %arg16[%c120_363, %c0_364] : memref<280x256xf32, #tpu.memory_space<vmem>>, vector<8x256xf32>
    tpu.vector_store %arg16[%c120_363, %c0_364], %463 {strides = array<i32>} : memref<280x256xf32, #tpu.memory_space<vmem>>, vector<8x256xf32>,
    %c1_i32_365 = arith.constant 1 : i32
    %465 = tpu.dynamic_rotate %380 by %c1_i32_365 dim 1 : vector<8x256xf32>, i32 -> vector<8x256xf32>
    %c16_366 = arith.constant 16 : index
    %c0_367 = arith.constant 0 : index
    %466 = vector.load %arg12[%c16_366, %c0_367] : memref<35x256xf32, #tpu.memory_space<vmem>>, vector<1x256xf32>
    %467 = vector.broadcast %466 : vector<1x256xf32> to vector<8x256xf32>
    %468 = arith.mulf %465, %467 : vector<8x256xf32>
    %c128_368 = arith.constant 128 : index
    %c0_369 = arith.constant 0 : index
    %469 = vector.load %arg16[%c128_368, %c0_369] : memref<280x256xf32, #tpu.memory_space<vmem>>, vector<8x256xf32>
    tpu.vector_store %arg16[%c128_368, %c0_369], %468 {strides = array<i32>} : memref<280x256xf32, #tpu.memory_space<vmem>>, vector<8x256xf32>,
    %c17_370 = arith.constant 17 : index
    %c0_371 = arith.constant 0 : index
    %470 = vector.load %arg12[%c17_370, %c0_371] : memref<35x256xf32, #tpu.memory_space<vmem>>, vector<1x256xf32>
    %471 = vector.broadcast %470 : vector<1x256xf32> to vector<8x256xf32>
    %472 = arith.mulf %380, %471 : vector<8x256xf32>
    %c136_372 = arith.constant 136 : index
    %c0_373 = arith.constant 0 : index
    %473 = vector.load %arg16[%c136_372, %c0_373] : memref<280x256xf32, #tpu.memory_space<vmem>>, vector<8x256xf32>
    tpu.vector_store %arg16[%c136_372, %c0_373], %472 {strides = array<i32>} : memref<280x256xf32, #tpu.memory_space<vmem>>, vector<8x256xf32>,
    %c255_i32_374 = arith.constant 255 : i32
    %474 = tpu.dynamic_rotate %380 by %c255_i32_374 dim 1 : vector<8x256xf32>, i32 -> vector<8x256xf32>
    %c18_375 = arith.constant 18 : index
    %c0_376 = arith.constant 0 : index
    %475 = vector.load %arg12[%c18_375, %c0_376] : memref<35x256xf32, #tpu.memory_space<vmem>>, vector<1x256xf32>
    %476 = vector.broadcast %475 : vector<1x256xf32> to vector<8x256xf32>
    %477 = arith.mulf %474, %476 : vector<8x256xf32>
    %c144_377 = arith.constant 144 : index
    %c0_378 = arith.constant 0 : index
    %478 = vector.load %arg16[%c144_377, %c0_378] : memref<280x256xf32, #tpu.memory_space<vmem>>, vector<8x256xf32>
    tpu.vector_store %arg16[%c144_377, %c0_378], %477 {strides = array<i32>} : memref<280x256xf32, #tpu.memory_space<vmem>>, vector<8x256xf32>,
    %c254_i32_379 = arith.constant 254 : i32
    %479 = tpu.dynamic_rotate %380 by %c254_i32_379 dim 1 : vector<8x256xf32>, i32 -> vector<8x256xf32>
    %c19_380 = arith.constant 19 : index
    %c0_381 = arith.constant 0 : index
    %480 = vector.load %arg12[%c19_380, %c0_381] : memref<35x256xf32, #tpu.memory_space<vmem>>, vector<1x256xf32>
    %481 = vector.broadcast %480 : vector<1x256xf32> to vector<8x256xf32>
    %482 = arith.mulf %479, %481 : vector<8x256xf32>
    %c152_382 = arith.constant 152 : index
    %c0_383 = arith.constant 0 : index
    %483 = vector.load %arg16[%c152_382, %c0_383] : memref<280x256xf32, #tpu.memory_space<vmem>>, vector<8x256xf32>
    tpu.vector_store %arg16[%c152_382, %c0_383], %482 {strides = array<i32>} : memref<280x256xf32, #tpu.memory_space<vmem>>, vector<8x256xf32>,
    %c253_i32_384 = arith.constant 253 : i32
    %484 = tpu.dynamic_rotate %380 by %c253_i32_384 dim 1 : vector<8x256xf32>, i32 -> vector<8x256xf32>
    %c20_385 = arith.constant 20 : index
    %c0_386 = arith.constant 0 : index
    %485 = vector.load %arg12[%c20_385, %c0_386] : memref<35x256xf32, #tpu.memory_space<vmem>>, vector<1x256xf32>
    %486 = vector.broadcast %485 : vector<1x256xf32> to vector<8x256xf32>
    %487 = arith.mulf %484, %486 : vector<8x256xf32>
    %c160_387 = arith.constant 160 : index
    %c0_388 = arith.constant 0 : index
    %488 = vector.load %arg16[%c160_387, %c0_388] : memref<280x256xf32, #tpu.memory_space<vmem>>, vector<8x256xf32>
    tpu.vector_store %arg16[%c160_387, %c0_388], %487 {strides = array<i32>} : memref<280x256xf32, #tpu.memory_space<vmem>>, vector<8x256xf32>,
    %c243_i32_389 = arith.constant 243 : i32
    %489 = tpu.dynamic_rotate %380 by %c243_i32_389 dim 1 : vector<8x256xf32>, i32 -> vector<8x256xf32>
    %c21_390 = arith.constant 21 : index
    %c0_391 = arith.constant 0 : index
    %490 = vector.load %arg12[%c21_390, %c0_391] : memref<35x256xf32, #tpu.memory_space<vmem>>, vector<1x256xf32>
    %491 = vector.broadcast %490 : vector<1x256xf32> to vector<8x256xf32>
    %492 = arith.mulf %489, %491 : vector<8x256xf32>
    %c168_392 = arith.constant 168 : index
    %c0_393 = arith.constant 0 : index
    %493 = vector.load %arg16[%c168_392, %c0_393] : memref<280x256xf32, #tpu.memory_space<vmem>>, vector<8x256xf32>
    tpu.vector_store %arg16[%c168_392, %c0_393], %492 {strides = array<i32>} : memref<280x256xf32, #tpu.memory_space<vmem>>, vector<8x256xf32>,
    %c242_i32_394 = arith.constant 242 : i32
    %494 = tpu.dynamic_rotate %380 by %c242_i32_394 dim 1 : vector<8x256xf32>, i32 -> vector<8x256xf32>
    %c22_395 = arith.constant 22 : index
    %c0_396 = arith.constant 0 : index
    %495 = vector.load %arg12[%c22_395, %c0_396] : memref<35x256xf32, #tpu.memory_space<vmem>>, vector<1x256xf32>
    %496 = vector.broadcast %495 : vector<1x256xf32> to vector<8x256xf32>
    %497 = arith.mulf %494, %496 : vector<8x256xf32>
    %c176_397 = arith.constant 176 : index
    %c0_398 = arith.constant 0 : index
    %498 = vector.load %arg16[%c176_397, %c0_398] : memref<280x256xf32, #tpu.memory_space<vmem>>, vector<8x256xf32>
    tpu.vector_store %arg16[%c176_397, %c0_398], %497 {strides = array<i32>} : memref<280x256xf32, #tpu.memory_space<vmem>>, vector<8x256xf32>,
    %c241_i32_399 = arith.constant 241 : i32
    %499 = tpu.dynamic_rotate %380 by %c241_i32_399 dim 1 : vector<8x256xf32>, i32 -> vector<8x256xf32>
    %c23_400 = arith.constant 23 : index
    %c0_401 = arith.constant 0 : index
    %500 = vector.load %arg12[%c23_400, %c0_401] : memref<35x256xf32, #tpu.memory_space<vmem>>, vector<1x256xf32>
    %501 = vector.broadcast %500 : vector<1x256xf32> to vector<8x256xf32>
    %502 = arith.mulf %499, %501 : vector<8x256xf32>
    %c184_402 = arith.constant 184 : index
    %c0_403 = arith.constant 0 : index
    %503 = vector.load %arg16[%c184_402, %c0_403] : memref<280x256xf32, #tpu.memory_space<vmem>>, vector<8x256xf32>
    tpu.vector_store %arg16[%c184_402, %c0_403], %502 {strides = array<i32>} : memref<280x256xf32, #tpu.memory_space<vmem>>, vector<8x256xf32>,
    %c240_i32_404 = arith.constant 240 : i32
    %504 = tpu.dynamic_rotate %380 by %c240_i32_404 dim 1 : vector<8x256xf32>, i32 -> vector<8x256xf32>
    %c24_405 = arith.constant 24 : index
    %c0_406 = arith.constant 0 : index
    %505 = vector.load %arg12[%c24_405, %c0_406] : memref<35x256xf32, #tpu.memory_space<vmem>>, vector<1x256xf32>
    %506 = vector.broadcast %505 : vector<1x256xf32> to vector<8x256xf32>
    %507 = arith.mulf %504, %506 : vector<8x256xf32>
    %c192_407 = arith.constant 192 : index
    %c0_408 = arith.constant 0 : index
    %508 = vector.load %arg16[%c192_407, %c0_408] : memref<280x256xf32, #tpu.memory_space<vmem>>, vector<8x256xf32>
    tpu.vector_store %arg16[%c192_407, %c0_408], %507 {strides = array<i32>} : memref<280x256xf32, #tpu.memory_space<vmem>>, vector<8x256xf32>,
    %c239_i32_409 = arith.constant 239 : i32
    %509 = tpu.dynamic_rotate %380 by %c239_i32_409 dim 1 : vector<8x256xf32>, i32 -> vector<8x256xf32>
    %c25_410 = arith.constant 25 : index
    %c0_411 = arith.constant 0 : index
    %510 = vector.load %arg12[%c25_410, %c0_411] : memref<35x256xf32, #tpu.memory_space<vmem>>, vector<1x256xf32>
    %511 = vector.broadcast %510 : vector<1x256xf32> to vector<8x256xf32>
    %512 = arith.mulf %509, %511 : vector<8x256xf32>
    %c200_412 = arith.constant 200 : index
    %c0_413 = arith.constant 0 : index
    %513 = vector.load %arg16[%c200_412, %c0_413] : memref<280x256xf32, #tpu.memory_space<vmem>>, vector<8x256xf32>
    tpu.vector_store %arg16[%c200_412, %c0_413], %512 {strides = array<i32>} : memref<280x256xf32, #tpu.memory_space<vmem>>, vector<8x256xf32>,
    %c238_i32_414 = arith.constant 238 : i32
    %514 = tpu.dynamic_rotate %380 by %c238_i32_414 dim 1 : vector<8x256xf32>, i32 -> vector<8x256xf32>
    %c26_415 = arith.constant 26 : index
    %c0_416 = arith.constant 0 : index
    %515 = vector.load %arg12[%c26_415, %c0_416] : memref<35x256xf32, #tpu.memory_space<vmem>>, vector<1x256xf32>
    %516 = vector.broadcast %515 : vector<1x256xf32> to vector<8x256xf32>
    %517 = arith.mulf %514, %516 : vector<8x256xf32>
    %c208_417 = arith.constant 208 : index
    %c0_418 = arith.constant 0 : index
    %518 = vector.load %arg16[%c208_417, %c0_418] : memref<280x256xf32, #tpu.memory_space<vmem>>, vector<8x256xf32>
    tpu.vector_store %arg16[%c208_417, %c0_418], %517 {strides = array<i32>} : memref<280x256xf32, #tpu.memory_space<vmem>>, vector<8x256xf32>,
    %c237_i32_419 = arith.constant 237 : i32
    %519 = tpu.dynamic_rotate %380 by %c237_i32_419 dim 1 : vector<8x256xf32>, i32 -> vector<8x256xf32>
    %c27_420 = arith.constant 27 : index
    %c0_421 = arith.constant 0 : index
    %520 = vector.load %arg12[%c27_420, %c0_421] : memref<35x256xf32, #tpu.memory_space<vmem>>, vector<1x256xf32>
    %521 = vector.broadcast %520 : vector<1x256xf32> to vector<8x256xf32>
    %522 = arith.mulf %519, %521 : vector<8x256xf32>
    %c216_422 = arith.constant 216 : index
    %c0_423 = arith.constant 0 : index
    %523 = vector.load %arg16[%c216_422, %c0_423] : memref<280x256xf32, #tpu.memory_space<vmem>>, vector<8x256xf32>
    tpu.vector_store %arg16[%c216_422, %c0_423], %522 {strides = array<i32>} : memref<280x256xf32, #tpu.memory_space<vmem>>, vector<8x256xf32>,
    %c227_i32_424 = arith.constant 227 : i32
    %524 = tpu.dynamic_rotate %380 by %c227_i32_424 dim 1 : vector<8x256xf32>, i32 -> vector<8x256xf32>
    %c28_425 = arith.constant 28 : index
    %c0_426 = arith.constant 0 : index
    %525 = vector.load %arg12[%c28_425, %c0_426] : memref<35x256xf32, #tpu.memory_space<vmem>>, vector<1x256xf32>
    %526 = vector.broadcast %525 : vector<1x256xf32> to vector<8x256xf32>
    %527 = arith.mulf %524, %526 : vector<8x256xf32>
    %c224_427 = arith.constant 224 : index
    %c0_428 = arith.constant 0 : index
    %528 = vector.load %arg16[%c224_427, %c0_428] : memref<280x256xf32, #tpu.memory_space<vmem>>, vector<8x256xf32>
    tpu.vector_store %arg16[%c224_427, %c0_428], %527 {strides = array<i32>} : memref<280x256xf32, #tpu.memory_space<vmem>>, vector<8x256xf32>,
    %c226_i32_429 = arith.constant 226 : i32
    %529 = tpu.dynamic_rotate %380 by %c226_i32_429 dim 1 : vector<8x256xf32>, i32 -> vector<8x256xf32>
    %c29_430 = arith.constant 29 : index
    %c0_431 = arith.constant 0 : index
    %530 = vector.load %arg12[%c29_430, %c0_431] : memref<35x256xf32, #tpu.memory_space<vmem>>, vector<1x256xf32>
    %531 = vector.broadcast %530 : vector<1x256xf32> to vector<8x256xf32>
    %532 = arith.mulf %529, %531 : vector<8x256xf32>
    %c232_432 = arith.constant 232 : index
    %c0_433 = arith.constant 0 : index
    %533 = vector.load %arg16[%c232_432, %c0_433] : memref<280x256xf32, #tpu.memory_space<vmem>>, vector<8x256xf32>
    tpu.vector_store %arg16[%c232_432, %c0_433], %532 {strides = array<i32>} : memref<280x256xf32, #tpu.memory_space<vmem>>, vector<8x256xf32>,
    %c225_i32_434 = arith.constant 225 : i32
    %534 = tpu.dynamic_rotate %380 by %c225_i32_434 dim 1 : vector<8x256xf32>, i32 -> vector<8x256xf32>
    %c30_435 = arith.constant 30 : index
    %c0_436 = arith.constant 0 : index
    %535 = vector.load %arg12[%c30_435, %c0_436] : memref<35x256xf32, #tpu.memory_space<vmem>>, vector<1x256xf32>
    %536 = vector.broadcast %535 : vector<1x256xf32> to vector<8x256xf32>
    %537 = arith.mulf %534, %536 : vector<8x256xf32>
    %c240_437 = arith.constant 240 : index
    %c0_438 = arith.constant 0 : index
    %538 = vector.load %arg16[%c240_437, %c0_438] : memref<280x256xf32, #tpu.memory_space<vmem>>, vector<8x256xf32>
    tpu.vector_store %arg16[%c240_437, %c0_438], %537 {strides = array<i32>} : memref<280x256xf32, #tpu.memory_space<vmem>>, vector<8x256xf32>,
    %c224_i32_439 = arith.constant 224 : i32
    %539 = tpu.dynamic_rotate %380 by %c224_i32_439 dim 1 : vector<8x256xf32>, i32 -> vector<8x256xf32>
    %c31_440 = arith.constant 31 : index
    %c0_441 = arith.constant 0 : index
    %540 = vector.load %arg12[%c31_440, %c0_441] : memref<35x256xf32, #tpu.memory_space<vmem>>, vector<1x256xf32>
    %541 = vector.broadcast %540 : vector<1x256xf32> to vector<8x256xf32>
    %542 = arith.mulf %539, %541 : vector<8x256xf32>
    %c248_442 = arith.constant 248 : index
    %c0_443 = arith.constant 0 : index
    %543 = vector.load %arg16[%c248_442, %c0_443] : memref<280x256xf32, #tpu.memory_space<vmem>>, vector<8x256xf32>
    tpu.vector_store %arg16[%c248_442, %c0_443], %542 {strides = array<i32>} : memref<280x256xf32, #tpu.memory_space<vmem>>, vector<8x256xf32>,
    %c223_i32_444 = arith.constant 223 : i32
    %544 = tpu.dynamic_rotate %380 by %c223_i32_444 dim 1 : vector<8x256xf32>, i32 -> vector<8x256xf32>
    %c32_445 = arith.constant 32 : index
    %c0_446 = arith.constant 0 : index
    %545 = vector.load %arg12[%c32_445, %c0_446] : memref<35x256xf32, #tpu.memory_space<vmem>>, vector<1x256xf32>
    %546 = vector.broadcast %545 : vector<1x256xf32> to vector<8x256xf32>
    %547 = arith.mulf %544, %546 : vector<8x256xf32>
    %c256_447 = arith.constant 256 : index
    %c0_448 = arith.constant 0 : index
    %548 = vector.load %arg16[%c256_447, %c0_448] : memref<280x256xf32, #tpu.memory_space<vmem>>, vector<8x256xf32>
    tpu.vector_store %arg16[%c256_447, %c0_448], %547 {strides = array<i32>} : memref<280x256xf32, #tpu.memory_space<vmem>>, vector<8x256xf32>,
    %c222_i32_449 = arith.constant 222 : i32
    %549 = tpu.dynamic_rotate %380 by %c222_i32_449 dim 1 : vector<8x256xf32>, i32 -> vector<8x256xf32>
    %c33_450 = arith.constant 33 : index
    %c0_451 = arith.constant 0 : index
    %550 = vector.load %arg12[%c33_450, %c0_451] : memref<35x256xf32, #tpu.memory_space<vmem>>, vector<1x256xf32>
    %551 = vector.broadcast %550 : vector<1x256xf32> to vector<8x256xf32>
    %552 = arith.mulf %549, %551 : vector<8x256xf32>
    %c264_452 = arith.constant 264 : index
    %c0_453 = arith.constant 0 : index
    %553 = vector.load %arg16[%c264_452, %c0_453] : memref<280x256xf32, #tpu.memory_space<vmem>>, vector<8x256xf32>
    tpu.vector_store %arg16[%c264_452, %c0_453], %552 {strides = array<i32>} : memref<280x256xf32, #tpu.memory_space<vmem>>, vector<8x256xf32>,
    %c221_i32_454 = arith.constant 221 : i32
    %554 = tpu.dynamic_rotate %380 by %c221_i32_454 dim 1 : vector<8x256xf32>, i32 -> vector<8x256xf32>
    %c34_455 = arith.constant 34 : index
    %c0_456 = arith.constant 0 : index
    %555 = vector.load %arg12[%c34_455, %c0_456] : memref<35x256xf32, #tpu.memory_space<vmem>>, vector<1x256xf32>
    %556 = vector.broadcast %555 : vector<1x256xf32> to vector<8x256xf32>
    %557 = arith.mulf %554, %556 : vector<8x256xf32>
    %c272_457 = arith.constant 272 : index
    %c0_458 = arith.constant 0 : index
    %558 = vector.load %arg16[%c272_457, %c0_458] : memref<280x256xf32, #tpu.memory_space<vmem>>, vector<8x256xf32>
    tpu.vector_store %arg16[%c272_457, %c0_458], %557 {strides = array<i32>} : memref<280x256xf32, #tpu.memory_space<vmem>>, vector<8x256xf32>,
    %c0_459 = arith.constant 0 : index
    %c0_460 = arith.constant 0 : index
    %559 = vector.load %arg16[%c0_459, %c0_460] : memref<280x256xf32, #tpu.memory_space<vmem>>, vector<280x256xf32>
    %cst_461 = arith.constant dense<0.000000e+00> : vector<8x256xf32>
    %560 = tpu.matmul %382, %559, %cst_461 {dimension_numbers = #tpu.dot_dimension_numbers<[1], [0], [0], [1], [0, 0, 1, 1], [], []>} : vector<8x280xf32>, vector<280x256xf32>, vector<8x256xf32> -> vector<8x256xf32>
    %561 = vector.broadcast %384 : vector<8x1xf32> to vector<8x256xf32>
    %562 = arith.addf %560, %561 : vector<8x256xf32>
    %563 = arith.index_cast %arg0 : i32 to index
    %c2_462 = arith.constant 2 : index
    %564 = memref.load %arg1[%563, %c2_462] : memref<2x8xf32, #tpu.memory_space<smem>>
    %cst_463 = arith.constant 0.000000e+00 : f32
    %565 = vector.broadcast %cst_463 : f32 to vector<8x256xf32>
    %566 = arith.cmpf ogt, %562, %565 : vector<8x256xf32>
    %567 = vector.broadcast %564 : f32 to vector<8x256xf32>
    %568 = arith.mulf %567, %562 : vector<8x256xf32>
    %569 = arith.select %566, %562, %568 : vector<8x256xi1>, vector<8x256xf32>
    %c0_464 = arith.constant 0 : index
    %c3_465 = arith.constant 3 : index
    %c0_466 = arith.constant 0 : index
    %c0_467 = arith.constant 0 : index
    %570 = vector.load %arg3[%c0_464, %c3_465, %c0_466, %c0_467] : memref<1x4x8x280xf32, #tpu.memory_space<vmem>>, vector<1x1x8x280xf32>
    %571 = vector.shape_cast %570 : vector<1x1x8x280xf32> to vector<8x280xf32>
    %c0_468 = arith.constant 0 : index
    %c3_469 = arith.constant 3 : index
    %c0_470 = arith.constant 0 : index
    %c0_471 = arith.constant 0 : index
    %572 = vector.load %arg4[%c0_468, %c3_469, %c0_470, %c0_471] : memref<1x4x8x1xf32, #tpu.memory_space<vmem>>, vector<1x1x8x1xf32>
    %573 = vector.shape_cast %572 : vector<1x1x8x1xf32> to vector<8x1xf32>
    %c35_i32_472 = arith.constant 35 : i32
    %574 = tpu.dynamic_rotate %569 by %c35_i32_472 dim 1 : vector<8x256xf32>, i32 -> vector<8x256xf32>
    %c0_473 = arith.constant 0 : index
    %c0_474 = arith.constant 0 : index
    %575 = vector.load %arg12[%c0_473, %c0_474] : memref<35x256xf32, #tpu.memory_space<vmem>>, vector<1x256xf32>
    %576 = vector.broadcast %575 : vector<1x256xf32> to vector<8x256xf32>
    %577 = arith.mulf %574, %576 : vector<8x256xf32>
    %c0_475 = arith.constant 0 : index
    %c0_476 = arith.constant 0 : index
    %578 = vector.load %arg16[%c0_475, %c0_476] : memref<280x256xf32, #tpu.memory_space<vmem>>, vector<8x256xf32>
    tpu.vector_store %arg16[%c0_475, %c0_476], %577 {strides = array<i32>} : memref<280x256xf32, #tpu.memory_space<vmem>>, vector<8x256xf32>,
    %c34_i32_477 = arith.constant 34 : i32
    %579 = tpu.dynamic_rotate %569 by %c34_i32_477 dim 1 : vector<8x256xf32>, i32 -> vector<8x256xf32>
    %c1_478 = arith.constant 1 : index
    %c0_479 = arith.constant 0 : index
    %580 = vector.load %arg12[%c1_478, %c0_479] : memref<35x256xf32, #tpu.memory_space<vmem>>, vector<1x256xf32>
    %581 = vector.broadcast %580 : vector<1x256xf32> to vector<8x256xf32>
    %582 = arith.mulf %579, %581 : vector<8x256xf32>
    %c8_480 = arith.constant 8 : index
    %c0_481 = arith.constant 0 : index
    %583 = vector.load %arg16[%c8_480, %c0_481] : memref<280x256xf32, #tpu.memory_space<vmem>>, vector<8x256xf32>
    tpu.vector_store %arg16[%c8_480, %c0_481], %582 {strides = array<i32>} : memref<280x256xf32, #tpu.memory_space<vmem>>, vector<8x256xf32>,
    %c33_i32_482 = arith.constant 33 : i32
    %584 = tpu.dynamic_rotate %569 by %c33_i32_482 dim 1 : vector<8x256xf32>, i32 -> vector<8x256xf32>
    %c2_483 = arith.constant 2 : index
    %c0_484 = arith.constant 0 : index
    %585 = vector.load %arg12[%c2_483, %c0_484] : memref<35x256xf32, #tpu.memory_space<vmem>>, vector<1x256xf32>
    %586 = vector.broadcast %585 : vector<1x256xf32> to vector<8x256xf32>
    %587 = arith.mulf %584, %586 : vector<8x256xf32>
    %c16_485 = arith.constant 16 : index
    %c0_486 = arith.constant 0 : index
    %588 = vector.load %arg16[%c16_485, %c0_486] : memref<280x256xf32, #tpu.memory_space<vmem>>, vector<8x256xf32>
    tpu.vector_store %arg16[%c16_485, %c0_486], %587 {strides = array<i32>} : memref<280x256xf32, #tpu.memory_space<vmem>>, vector<8x256xf32>,
    %c32_i32_487 = arith.constant 32 : i32
    %589 = tpu.dynamic_rotate %569 by %c32_i32_487 dim 1 : vector<8x256xf32>, i32 -> vector<8x256xf32>
    %c3_488 = arith.constant 3 : index
    %c0_489 = arith.constant 0 : index
    %590 = vector.load %arg12[%c3_488, %c0_489] : memref<35x256xf32, #tpu.memory_space<vmem>>, vector<1x256xf32>
    %591 = vector.broadcast %590 : vector<1x256xf32> to vector<8x256xf32>
    %592 = arith.mulf %589, %591 : vector<8x256xf32>
    %c24_490 = arith.constant 24 : index
    %c0_491 = arith.constant 0 : index
    %593 = vector.load %arg16[%c24_490, %c0_491] : memref<280x256xf32, #tpu.memory_space<vmem>>, vector<8x256xf32>
    tpu.vector_store %arg16[%c24_490, %c0_491], %592 {strides = array<i32>} : memref<280x256xf32, #tpu.memory_space<vmem>>, vector<8x256xf32>,
    %c31_i32_492 = arith.constant 31 : i32
    %594 = tpu.dynamic_rotate %569 by %c31_i32_492 dim 1 : vector<8x256xf32>, i32 -> vector<8x256xf32>
    %c4_493 = arith.constant 4 : index
    %c0_494 = arith.constant 0 : index
    %595 = vector.load %arg12[%c4_493, %c0_494] : memref<35x256xf32, #tpu.memory_space<vmem>>, vector<1x256xf32>
    %596 = vector.broadcast %595 : vector<1x256xf32> to vector<8x256xf32>
    %597 = arith.mulf %594, %596 : vector<8x256xf32>
    %c32_495 = arith.constant 32 : index
    %c0_496 = arith.constant 0 : index
    %598 = vector.load %arg16[%c32_495, %c0_496] : memref<280x256xf32, #tpu.memory_space<vmem>>, vector<8x256xf32>
    tpu.vector_store %arg16[%c32_495, %c0_496], %597 {strides = array<i32>} : memref<280x256xf32, #tpu.memory_space<vmem>>, vector<8x256xf32>,
    %c30_i32_497 = arith.constant 30 : i32
    %599 = tpu.dynamic_rotate %569 by %c30_i32_497 dim 1 : vector<8x256xf32>, i32 -> vector<8x256xf32>
    %c5_498 = arith.constant 5 : index
    %c0_499 = arith.constant 0 : index
    %600 = vector.load %arg12[%c5_498, %c0_499] : memref<35x256xf32, #tpu.memory_space<vmem>>, vector<1x256xf32>
    %601 = vector.broadcast %600 : vector<1x256xf32> to vector<8x256xf32>
    %602 = arith.mulf %599, %601 : vector<8x256xf32>
    %c40_500 = arith.constant 40 : index
    %c0_501 = arith.constant 0 : index
    %603 = vector.load %arg16[%c40_500, %c0_501] : memref<280x256xf32, #tpu.memory_space<vmem>>, vector<8x256xf32>
    tpu.vector_store %arg16[%c40_500, %c0_501], %602 {strides = array<i32>} : memref<280x256xf32, #tpu.memory_space<vmem>>, vector<8x256xf32>,
    %c29_i32_502 = arith.constant 29 : i32
    %604 = tpu.dynamic_rotate %569 by %c29_i32_502 dim 1 : vector<8x256xf32>, i32 -> vector<8x256xf32>
    %c6_503 = arith.constant 6 : index
    %c0_504 = arith.constant 0 : index
    %605 = vector.load %arg12[%c6_503, %c0_504] : memref<35x256xf32, #tpu.memory_space<vmem>>, vector<1x256xf32>
    %606 = vector.broadcast %605 : vector<1x256xf32> to vector<8x256xf32>
    %607 = arith.mulf %604, %606 : vector<8x256xf32>
    %c48_505 = arith.constant 48 : index
    %c0_506 = arith.constant 0 : index
    %608 = vector.load %arg16[%c48_505, %c0_506] : memref<280x256xf32, #tpu.memory_space<vmem>>, vector<8x256xf32>
    tpu.vector_store %arg16[%c48_505, %c0_506], %607 {strides = array<i32>} : memref<280x256xf32, #tpu.memory_space<vmem>>, vector<8x256xf32>,
    %c19_i32_507 = arith.constant 19 : i32
    %609 = tpu.dynamic_rotate %569 by %c19_i32_507 dim 1 : vector<8x256xf32>, i32 -> vector<8x256xf32>
    %c7_508 = arith.constant 7 : index
    %c0_509 = arith.constant 0 : index
    %610 = vector.load %arg12[%c7_508, %c0_509] : memref<35x256xf32, #tpu.memory_space<vmem>>, vector<1x256xf32>
    %611 = vector.broadcast %610 : vector<1x256xf32> to vector<8x256xf32>
    %612 = arith.mulf %609, %611 : vector<8x256xf32>
    %c56_510 = arith.constant 56 : index
    %c0_511 = arith.constant 0 : index
    %613 = vector.load %arg16[%c56_510, %c0_511] : memref<280x256xf32, #tpu.memory_space<vmem>>, vector<8x256xf32>
    tpu.vector_store %arg16[%c56_510, %c0_511], %612 {strides = array<i32>} : memref<280x256xf32, #tpu.memory_space<vmem>>, vector<8x256xf32>,
    %c18_i32_512 = arith.constant 18 : i32
    %614 = tpu.dynamic_rotate %569 by %c18_i32_512 dim 1 : vector<8x256xf32>, i32 -> vector<8x256xf32>
    %c8_513 = arith.constant 8 : index
    %c0_514 = arith.constant 0 : index
    %615 = vector.load %arg12[%c8_513, %c0_514] : memref<35x256xf32, #tpu.memory_space<vmem>>, vector<1x256xf32>
    %616 = vector.broadcast %615 : vector<1x256xf32> to vector<8x256xf32>
    %617 = arith.mulf %614, %616 : vector<8x256xf32>
    %c64_515 = arith.constant 64 : index
    %c0_516 = arith.constant 0 : index
    %618 = vector.load %arg16[%c64_515, %c0_516] : memref<280x256xf32, #tpu.memory_space<vmem>>, vector<8x256xf32>
    tpu.vector_store %arg16[%c64_515, %c0_516], %617 {strides = array<i32>} : memref<280x256xf32, #tpu.memory_space<vmem>>, vector<8x256xf32>,
    %c17_i32_517 = arith.constant 17 : i32
    %619 = tpu.dynamic_rotate %569 by %c17_i32_517 dim 1 : vector<8x256xf32>, i32 -> vector<8x256xf32>
    %c9_518 = arith.constant 9 : index
    %c0_519 = arith.constant 0 : index
    %620 = vector.load %arg12[%c9_518, %c0_519] : memref<35x256xf32, #tpu.memory_space<vmem>>, vector<1x256xf32>
    %621 = vector.broadcast %620 : vector<1x256xf32> to vector<8x256xf32>
    %622 = arith.mulf %619, %621 : vector<8x256xf32>
    %c72_520 = arith.constant 72 : index
    %c0_521 = arith.constant 0 : index
    %623 = vector.load %arg16[%c72_520, %c0_521] : memref<280x256xf32, #tpu.memory_space<vmem>>, vector<8x256xf32>
    tpu.vector_store %arg16[%c72_520, %c0_521], %622 {strides = array<i32>} : memref<280x256xf32, #tpu.memory_space<vmem>>, vector<8x256xf32>,
    %c16_i32_522 = arith.constant 16 : i32
    %624 = tpu.dynamic_rotate %569 by %c16_i32_522 dim 1 : vector<8x256xf32>, i32 -> vector<8x256xf32>
    %c10_523 = arith.constant 10 : index
    %c0_524 = arith.constant 0 : index
    %625 = vector.load %arg12[%c10_523, %c0_524] : memref<35x256xf32, #tpu.memory_space<vmem>>, vector<1x256xf32>
    %626 = vector.broadcast %625 : vector<1x256xf32> to vector<8x256xf32>
    %627 = arith.mulf %624, %626 : vector<8x256xf32>
    %c80_525 = arith.constant 80 : index
    %c0_526 = arith.constant 0 : index
    %628 = vector.load %arg16[%c80_525, %c0_526] : memref<280x256xf32, #tpu.memory_space<vmem>>, vector<8x256xf32>
    tpu.vector_store %arg16[%c80_525, %c0_526], %627 {strides = array<i32>} : memref<280x256xf32, #tpu.memory_space<vmem>>, vector<8x256xf32>,
    %c15_i32_527 = arith.constant 15 : i32
    %629 = tpu.dynamic_rotate %569 by %c15_i32_527 dim 1 : vector<8x256xf32>, i32 -> vector<8x256xf32>
    %c11_528 = arith.constant 11 : index
    %c0_529 = arith.constant 0 : index
    %630 = vector.load %arg12[%c11_528, %c0_529] : memref<35x256xf32, #tpu.memory_space<vmem>>, vector<1x256xf32>
    %631 = vector.broadcast %630 : vector<1x256xf32> to vector<8x256xf32>
    %632 = arith.mulf %629, %631 : vector<8x256xf32>
    %c88_530 = arith.constant 88 : index
    %c0_531 = arith.constant 0 : index
    %633 = vector.load %arg16[%c88_530, %c0_531] : memref<280x256xf32, #tpu.memory_space<vmem>>, vector<8x256xf32>
    tpu.vector_store %arg16[%c88_530, %c0_531], %632 {strides = array<i32>} : memref<280x256xf32, #tpu.memory_space<vmem>>, vector<8x256xf32>,
    %c14_i32_532 = arith.constant 14 : i32
    %634 = tpu.dynamic_rotate %569 by %c14_i32_532 dim 1 : vector<8x256xf32>, i32 -> vector<8x256xf32>
    %c12_533 = arith.constant 12 : index
    %c0_534 = arith.constant 0 : index
    %635 = vector.load %arg12[%c12_533, %c0_534] : memref<35x256xf32, #tpu.memory_space<vmem>>, vector<1x256xf32>
    %636 = vector.broadcast %635 : vector<1x256xf32> to vector<8x256xf32>
    %637 = arith.mulf %634, %636 : vector<8x256xf32>
    %c96_535 = arith.constant 96 : index
    %c0_536 = arith.constant 0 : index
    %638 = vector.load %arg16[%c96_535, %c0_536] : memref<280x256xf32, #tpu.memory_space<vmem>>, vector<8x256xf32>
    tpu.vector_store %arg16[%c96_535, %c0_536], %637 {strides = array<i32>} : memref<280x256xf32, #tpu.memory_space<vmem>>, vector<8x256xf32>,
    %c13_i32_537 = arith.constant 13 : i32
    %639 = tpu.dynamic_rotate %569 by %c13_i32_537 dim 1 : vector<8x256xf32>, i32 -> vector<8x256xf32>
    %c13_538 = arith.constant 13 : index
    %c0_539 = arith.constant 0 : index
    %640 = vector.load %arg12[%c13_538, %c0_539] : memref<35x256xf32, #tpu.memory_space<vmem>>, vector<1x256xf32>
    %641 = vector.broadcast %640 : vector<1x256xf32> to vector<8x256xf32>
    %642 = arith.mulf %639, %641 : vector<8x256xf32>
    %c104_540 = arith.constant 104 : index
    %c0_541 = arith.constant 0 : index
    %643 = vector.load %arg16[%c104_540, %c0_541] : memref<280x256xf32, #tpu.memory_space<vmem>>, vector<8x256xf32>
    tpu.vector_store %arg16[%c104_540, %c0_541], %642 {strides = array<i32>} : memref<280x256xf32, #tpu.memory_space<vmem>>, vector<8x256xf32>,
    %c3_i32_542 = arith.constant 3 : i32
    %644 = tpu.dynamic_rotate %569 by %c3_i32_542 dim 1 : vector<8x256xf32>, i32 -> vector<8x256xf32>
    %c14_543 = arith.constant 14 : index
    %c0_544 = arith.constant 0 : index
    %645 = vector.load %arg12[%c14_543, %c0_544] : memref<35x256xf32, #tpu.memory_space<vmem>>, vector<1x256xf32>
    %646 = vector.broadcast %645 : vector<1x256xf32> to vector<8x256xf32>
    %647 = arith.mulf %644, %646 : vector<8x256xf32>
    %c112_545 = arith.constant 112 : index
    %c0_546 = arith.constant 0 : index
    %648 = vector.load %arg16[%c112_545, %c0_546] : memref<280x256xf32, #tpu.memory_space<vmem>>, vector<8x256xf32>
    tpu.vector_store %arg16[%c112_545, %c0_546], %647 {strides = array<i32>} : memref<280x256xf32, #tpu.memory_space<vmem>>, vector<8x256xf32>,
    %c2_i32_547 = arith.constant 2 : i32
    %649 = tpu.dynamic_rotate %569 by %c2_i32_547 dim 1 : vector<8x256xf32>, i32 -> vector<8x256xf32>
    %c15_548 = arith.constant 15 : index
    %c0_549 = arith.constant 0 : index
    %650 = vector.load %arg12[%c15_548, %c0_549] : memref<35x256xf32, #tpu.memory_space<vmem>>, vector<1x256xf32>
    %651 = vector.broadcast %650 : vector<1x256xf32> to vector<8x256xf32>
    %652 = arith.mulf %649, %651 : vector<8x256xf32>
    %c120_550 = arith.constant 120 : index
    %c0_551 = arith.constant 0 : index
    %653 = vector.load %arg16[%c120_550, %c0_551] : memref<280x256xf32, #tpu.memory_space<vmem>>, vector<8x256xf32>
    tpu.vector_store %arg16[%c120_550, %c0_551], %652 {strides = array<i32>} : memref<280x256xf32, #tpu.memory_space<vmem>>, vector<8x256xf32>,
    %c1_i32_552 = arith.constant 1 : i32
    %654 = tpu.dynamic_rotate %569 by %c1_i32_552 dim 1 : vector<8x256xf32>, i32 -> vector<8x256xf32>
    %c16_553 = arith.constant 16 : index
    %c0_554 = arith.constant 0 : index
    %655 = vector.load %arg12[%c16_553, %c0_554] : memref<35x256xf32, #tpu.memory_space<vmem>>, vector<1x256xf32>
    %656 = vector.broadcast %655 : vector<1x256xf32> to vector<8x256xf32>
    %657 = arith.mulf %654, %656 : vector<8x256xf32>
    %c128_555 = arith.constant 128 : index
    %c0_556 = arith.constant 0 : index
    %658 = vector.load %arg16[%c128_555, %c0_556] : memref<280x256xf32, #tpu.memory_space<vmem>>, vector<8x256xf32>
    tpu.vector_store %arg16[%c128_555, %c0_556], %657 {strides = array<i32>} : memref<280x256xf32, #tpu.memory_space<vmem>>, vector<8x256xf32>,
    %c17_557 = arith.constant 17 : index
    %c0_558 = arith.constant 0 : index
    %659 = vector.load %arg12[%c17_557, %c0_558] : memref<35x256xf32, #tpu.memory_space<vmem>>, vector<1x256xf32>
    %660 = vector.broadcast %659 : vector<1x256xf32> to vector<8x256xf32>
    %661 = arith.mulf %569, %660 : vector<8x256xf32>
    %c136_559 = arith.constant 136 : index
    %c0_560 = arith.constant 0 : index
    %662 = vector.load %arg16[%c136_559, %c0_560] : memref<280x256xf32, #tpu.memory_space<vmem>>, vector<8x256xf32>
    tpu.vector_store %arg16[%c136_559, %c0_560], %661 {strides = array<i32>} : memref<280x256xf32, #tpu.memory_space<vmem>>, vector<8x256xf32>,
    %c255_i32_561 = arith.constant 255 : i32
    %663 = tpu.dynamic_rotate %569 by %c255_i32_561 dim 1 : vector<8x256xf32>, i32 -> vector<8x256xf32>
    %c18_562 = arith.constant 18 : index
    %c0_563 = arith.constant 0 : index
    %664 = vector.load %arg12[%c18_562, %c0_563] : memref<35x256xf32, #tpu.memory_space<vmem>>, vector<1x256xf32>
    %665 = vector.broadcast %664 : vector<1x256xf32> to vector<8x256xf32>
    %666 = arith.mulf %663, %665 : vector<8x256xf32>
    %c144_564 = arith.constant 144 : index
    %c0_565 = arith.constant 0 : index
    %667 = vector.load %arg16[%c144_564, %c0_565] : memref<280x256xf32, #tpu.memory_space<vmem>>, vector<8x256xf32>
    tpu.vector_store %arg16[%c144_564, %c0_565], %666 {strides = array<i32>} : memref<280x256xf32, #tpu.memory_space<vmem>>, vector<8x256xf32>,
    %c254_i32_566 = arith.constant 254 : i32
    %668 = tpu.dynamic_rotate %569 by %c254_i32_566 dim 1 : vector<8x256xf32>, i32 -> vector<8x256xf32>
    %c19_567 = arith.constant 19 : index
    %c0_568 = arith.constant 0 : index
    %669 = vector.load %arg12[%c19_567, %c0_568] : memref<35x256xf32, #tpu.memory_space<vmem>>, vector<1x256xf32>
    %670 = vector.broadcast %669 : vector<1x256xf32> to vector<8x256xf32>
    %671 = arith.mulf %668, %670 : vector<8x256xf32>
    %c152_569 = arith.constant 152 : index
    %c0_570 = arith.constant 0 : index
    %672 = vector.load %arg16[%c152_569, %c0_570] : memref<280x256xf32, #tpu.memory_space<vmem>>, vector<8x256xf32>
    tpu.vector_store %arg16[%c152_569, %c0_570], %671 {strides = array<i32>} : memref<280x256xf32, #tpu.memory_space<vmem>>, vector<8x256xf32>,
    %c253_i32_571 = arith.constant 253 : i32
    %673 = tpu.dynamic_rotate %569 by %c253_i32_571 dim 1 : vector<8x256xf32>, i32 -> vector<8x256xf32>
    %c20_572 = arith.constant 20 : index
    %c0_573 = arith.constant 0 : index
    %674 = vector.load %arg12[%c20_572, %c0_573] : memref<35x256xf32, #tpu.memory_space<vmem>>, vector<1x256xf32>
    %675 = vector.broadcast %674 : vector<1x256xf32> to vector<8x256xf32>
    %676 = arith.mulf %673, %675 : vector<8x256xf32>
    %c160_574 = arith.constant 160 : index
    %c0_575 = arith.constant 0 : index
    %677 = vector.load %arg16[%c160_574, %c0_575] : memref<280x256xf32, #tpu.memory_space<vmem>>, vector<8x256xf32>
    tpu.vector_store %arg16[%c160_574, %c0_575], %676 {strides = array<i32>} : memref<280x256xf32, #tpu.memory_space<vmem>>, vector<8x256xf32>,
    %c243_i32_576 = arith.constant 243 : i32
    %678 = tpu.dynamic_rotate %569 by %c243_i32_576 dim 1 : vector<8x256xf32>, i32 -> vector<8x256xf32>
    %c21_577 = arith.constant 21 : index
    %c0_578 = arith.constant 0 : index
    %679 = vector.load %arg12[%c21_577, %c0_578] : memref<35x256xf32, #tpu.memory_space<vmem>>, vector<1x256xf32>
    %680 = vector.broadcast %679 : vector<1x256xf32> to vector<8x256xf32>
    %681 = arith.mulf %678, %680 : vector<8x256xf32>
    %c168_579 = arith.constant 168 : index
    %c0_580 = arith.constant 0 : index
    %682 = vector.load %arg16[%c168_579, %c0_580] : memref<280x256xf32, #tpu.memory_space<vmem>>, vector<8x256xf32>
    tpu.vector_store %arg16[%c168_579, %c0_580], %681 {strides = array<i32>} : memref<280x256xf32, #tpu.memory_space<vmem>>, vector<8x256xf32>,
    %c242_i32_581 = arith.constant 242 : i32
    %683 = tpu.dynamic_rotate %569 by %c242_i32_581 dim 1 : vector<8x256xf32>, i32 -> vector<8x256xf32>
    %c22_582 = arith.constant 22 : index
    %c0_583 = arith.constant 0 : index
    %684 = vector.load %arg12[%c22_582, %c0_583] : memref<35x256xf32, #tpu.memory_space<vmem>>, vector<1x256xf32>
    %685 = vector.broadcast %684 : vector<1x256xf32> to vector<8x256xf32>
    %686 = arith.mulf %683, %685 : vector<8x256xf32>
    %c176_584 = arith.constant 176 : index
    %c0_585 = arith.constant 0 : index
    %687 = vector.load %arg16[%c176_584, %c0_585] : memref<280x256xf32, #tpu.memory_space<vmem>>, vector<8x256xf32>
    tpu.vector_store %arg16[%c176_584, %c0_585], %686 {strides = array<i32>} : memref<280x256xf32, #tpu.memory_space<vmem>>, vector<8x256xf32>,
    %c241_i32_586 = arith.constant 241 : i32
    %688 = tpu.dynamic_rotate %569 by %c241_i32_586 dim 1 : vector<8x256xf32>, i32 -> vector<8x256xf32>
    %c23_587 = arith.constant 23 : index
    %c0_588 = arith.constant 0 : index
    %689 = vector.load %arg12[%c23_587, %c0_588] : memref<35x256xf32, #tpu.memory_space<vmem>>, vector<1x256xf32>
    %690 = vector.broadcast %689 : vector<1x256xf32> to vector<8x256xf32>
    %691 = arith.mulf %688, %690 : vector<8x256xf32>
    %c184_589 = arith.constant 184 : index
    %c0_590 = arith.constant 0 : index
    %692 = vector.load %arg16[%c184_589, %c0_590] : memref<280x256xf32, #tpu.memory_space<vmem>>, vector<8x256xf32>
    tpu.vector_store %arg16[%c184_589, %c0_590], %691 {strides = array<i32>} : memref<280x256xf32, #tpu.memory_space<vmem>>, vector<8x256xf32>,
    %c240_i32_591 = arith.constant 240 : i32
    %693 = tpu.dynamic_rotate %569 by %c240_i32_591 dim 1 : vector<8x256xf32>, i32 -> vector<8x256xf32>
    %c24_592 = arith.constant 24 : index
    %c0_593 = arith.constant 0 : index
    %694 = vector.load %arg12[%c24_592, %c0_593] : memref<35x256xf32, #tpu.memory_space<vmem>>, vector<1x256xf32>
    %695 = vector.broadcast %694 : vector<1x256xf32> to vector<8x256xf32>
    %696 = arith.mulf %693, %695 : vector<8x256xf32>
    %c192_594 = arith.constant 192 : index
    %c0_595 = arith.constant 0 : index
    %697 = vector.load %arg16[%c192_594, %c0_595] : memref<280x256xf32, #tpu.memory_space<vmem>>, vector<8x256xf32>
    tpu.vector_store %arg16[%c192_594, %c0_595], %696 {strides = array<i32>} : memref<280x256xf32, #tpu.memory_space<vmem>>, vector<8x256xf32>,
    %c239_i32_596 = arith.constant 239 : i32
    %698 = tpu.dynamic_rotate %569 by %c239_i32_596 dim 1 : vector<8x256xf32>, i32 -> vector<8x256xf32>
    %c25_597 = arith.constant 25 : index
    %c0_598 = arith.constant 0 : index
    %699 = vector.load %arg12[%c25_597, %c0_598] : memref<35x256xf32, #tpu.memory_space<vmem>>, vector<1x256xf32>
    %700 = vector.broadcast %699 : vector<1x256xf32> to vector<8x256xf32>
    %701 = arith.mulf %698, %700 : vector<8x256xf32>
    %c200_599 = arith.constant 200 : index
    %c0_600 = arith.constant 0 : index
    %702 = vector.load %arg16[%c200_599, %c0_600] : memref<280x256xf32, #tpu.memory_space<vmem>>, vector<8x256xf32>
    tpu.vector_store %arg16[%c200_599, %c0_600], %701 {strides = array<i32>} : memref<280x256xf32, #tpu.memory_space<vmem>>, vector<8x256xf32>,
    %c238_i32_601 = arith.constant 238 : i32
    %703 = tpu.dynamic_rotate %569 by %c238_i32_601 dim 1 : vector<8x256xf32>, i32 -> vector<8x256xf32>
    %c26_602 = arith.constant 26 : index
    %c0_603 = arith.constant 0 : index
    %704 = vector.load %arg12[%c26_602, %c0_603] : memref<35x256xf32, #tpu.memory_space<vmem>>, vector<1x256xf32>
    %705 = vector.broadcast %704 : vector<1x256xf32> to vector<8x256xf32>
    %706 = arith.mulf %703, %705 : vector<8x256xf32>
    %c208_604 = arith.constant 208 : index
    %c0_605 = arith.constant 0 : index
    %707 = vector.load %arg16[%c208_604, %c0_605] : memref<280x256xf32, #tpu.memory_space<vmem>>, vector<8x256xf32>
    tpu.vector_store %arg16[%c208_604, %c0_605], %706 {strides = array<i32>} : memref<280x256xf32, #tpu.memory_space<vmem>>, vector<8x256xf32>,
    %c237_i32_606 = arith.constant 237 : i32
    %708 = tpu.dynamic_rotate %569 by %c237_i32_606 dim 1 : vector<8x256xf32>, i32 -> vector<8x256xf32>
    %c27_607 = arith.constant 27 : index
    %c0_608 = arith.constant 0 : index
    %709 = vector.load %arg12[%c27_607, %c0_608] : memref<35x256xf32, #tpu.memory_space<vmem>>, vector<1x256xf32>
    %710 = vector.broadcast %709 : vector<1x256xf32> to vector<8x256xf32>
    %711 = arith.mulf %708, %710 : vector<8x256xf32>
    %c216_609 = arith.constant 216 : index
    %c0_610 = arith.constant 0 : index
    %712 = vector.load %arg16[%c216_609, %c0_610] : memref<280x256xf32, #tpu.memory_space<vmem>>, vector<8x256xf32>
    tpu.vector_store %arg16[%c216_609, %c0_610], %711 {strides = array<i32>} : memref<280x256xf32, #tpu.memory_space<vmem>>, vector<8x256xf32>,
    %c227_i32_611 = arith.constant 227 : i32
    %713 = tpu.dynamic_rotate %569 by %c227_i32_611 dim 1 : vector<8x256xf32>, i32 -> vector<8x256xf32>
    %c28_612 = arith.constant 28 : index
    %c0_613 = arith.constant 0 : index
    %714 = vector.load %arg12[%c28_612, %c0_613] : memref<35x256xf32, #tpu.memory_space<vmem>>, vector<1x256xf32>
    %715 = vector.broadcast %714 : vector<1x256xf32> to vector<8x256xf32>
    %716 = arith.mulf %713, %715 : vector<8x256xf32>
    %c224_614 = arith.constant 224 : index
    %c0_615 = arith.constant 0 : index
    %717 = vector.load %arg16[%c224_614, %c0_615] : memref<280x256xf32, #tpu.memory_space<vmem>>, vector<8x256xf32>
    tpu.vector_store %arg16[%c224_614, %c0_615], %716 {strides = array<i32>} : memref<280x256xf32, #tpu.memory_space<vmem>>, vector<8x256xf32>,
    %c226_i32_616 = arith.constant 226 : i32
    %718 = tpu.dynamic_rotate %569 by %c226_i32_616 dim 1 : vector<8x256xf32>, i32 -> vector<8x256xf32>
    %c29_617 = arith.constant 29 : index
    %c0_618 = arith.constant 0 : index
    %719 = vector.load %arg12[%c29_617, %c0_618] : memref<35x256xf32, #tpu.memory_space<vmem>>, vector<1x256xf32>
    %720 = vector.broadcast %719 : vector<1x256xf32> to vector<8x256xf32>
    %721 = arith.mulf %718, %720 : vector<8x256xf32>
    %c232_619 = arith.constant 232 : index
    %c0_620 = arith.constant 0 : index
    %722 = vector.load %arg16[%c232_619, %c0_620] : memref<280x256xf32, #tpu.memory_space<vmem>>, vector<8x256xf32>
    tpu.vector_store %arg16[%c232_619, %c0_620], %721 {strides = array<i32>} : memref<280x256xf32, #tpu.memory_space<vmem>>, vector<8x256xf32>,
    %c225_i32_621 = arith.constant 225 : i32
    %723 = tpu.dynamic_rotate %569 by %c225_i32_621 dim 1 : vector<8x256xf32>, i32 -> vector<8x256xf32>
    %c30_622 = arith.constant 30 : index
    %c0_623 = arith.constant 0 : index
    %724 = vector.load %arg12[%c30_622, %c0_623] : memref<35x256xf32, #tpu.memory_space<vmem>>, vector<1x256xf32>
    %725 = vector.broadcast %724 : vector<1x256xf32> to vector<8x256xf32>
    %726 = arith.mulf %723, %725 : vector<8x256xf32>
    %c240_624 = arith.constant 240 : index
    %c0_625 = arith.constant 0 : index
    %727 = vector.load %arg16[%c240_624, %c0_625] : memref<280x256xf32, #tpu.memory_space<vmem>>, vector<8x256xf32>
    tpu.vector_store %arg16[%c240_624, %c0_625], %726 {strides = array<i32>} : memref<280x256xf32, #tpu.memory_space<vmem>>, vector<8x256xf32>,
    %c224_i32_626 = arith.constant 224 : i32
    %728 = tpu.dynamic_rotate %569 by %c224_i32_626 dim 1 : vector<8x256xf32>, i32 -> vector<8x256xf32>
    %c31_627 = arith.constant 31 : index
    %c0_628 = arith.constant 0 : index
    %729 = vector.load %arg12[%c31_627, %c0_628] : memref<35x256xf32, #tpu.memory_space<vmem>>, vector<1x256xf32>
    %730 = vector.broadcast %729 : vector<1x256xf32> to vector<8x256xf32>
    %731 = arith.mulf %728, %730 : vector<8x256xf32>
    %c248_629 = arith.constant 248 : index
    %c0_630 = arith.constant 0 : index
    %732 = vector.load %arg16[%c248_629, %c0_630] : memref<280x256xf32, #tpu.memory_space<vmem>>, vector<8x256xf32>
    tpu.vector_store %arg16[%c248_629, %c0_630], %731 {strides = array<i32>} : memref<280x256xf32, #tpu.memory_space<vmem>>, vector<8x256xf32>,
    %c223_i32_631 = arith.constant 223 : i32
    %733 = tpu.dynamic_rotate %569 by %c223_i32_631 dim 1 : vector<8x256xf32>, i32 -> vector<8x256xf32>
    %c32_632 = arith.constant 32 : index
    %c0_633 = arith.constant 0 : index
    %734 = vector.load %arg12[%c32_632, %c0_633] : memref<35x256xf32, #tpu.memory_space<vmem>>, vector<1x256xf32>
    %735 = vector.broadcast %734 : vector<1x256xf32> to vector<8x256xf32>
    %736 = arith.mulf %733, %735 : vector<8x256xf32>
    %c256_634 = arith.constant 256 : index
    %c0_635 = arith.constant 0 : index
    %737 = vector.load %arg16[%c256_634, %c0_635] : memref<280x256xf32, #tpu.memory_space<vmem>>, vector<8x256xf32>
    tpu.vector_store %arg16[%c256_634, %c0_635], %736 {strides = array<i32>} : memref<280x256xf32, #tpu.memory_space<vmem>>, vector<8x256xf32>,
    %c222_i32_636 = arith.constant 222 : i32
    %738 = tpu.dynamic_rotate %569 by %c222_i32_636 dim 1 : vector<8x256xf32>, i32 -> vector<8x256xf32>
    %c33_637 = arith.constant 33 : index
    %c0_638 = arith.constant 0 : index
    %739 = vector.load %arg12[%c33_637, %c0_638] : memref<35x256xf32, #tpu.memory_space<vmem>>, vector<1x256xf32>
    %740 = vector.broadcast %739 : vector<1x256xf32> to vector<8x256xf32>
    %741 = arith.mulf %738, %740 : vector<8x256xf32>
    %c264_639 = arith.constant 264 : index
    %c0_640 = arith.constant 0 : index
    %742 = vector.load %arg16[%c264_639, %c0_640] : memref<280x256xf32, #tpu.memory_space<vmem>>, vector<8x256xf32>
    tpu.vector_store %arg16[%c264_639, %c0_640], %741 {strides = array<i32>} : memref<280x256xf32, #tpu.memory_space<vmem>>, vector<8x256xf32>,
    %c221_i32_641 = arith.constant 221 : i32
    %743 = tpu.dynamic_rotate %569 by %c221_i32_641 dim 1 : vector<8x256xf32>, i32 -> vector<8x256xf32>
    %c34_642 = arith.constant 34 : index
    %c0_643 = arith.constant 0 : index
    %744 = vector.load %arg12[%c34_642, %c0_643] : memref<35x256xf32, #tpu.memory_space<vmem>>, vector<1x256xf32>
    %745 = vector.broadcast %744 : vector<1x256xf32> to vector<8x256xf32>
    %746 = arith.mulf %743, %745 : vector<8x256xf32>
    %c272_644 = arith.constant 272 : index
    %c0_645 = arith.constant 0 : index
    %747 = vector.load %arg16[%c272_644, %c0_645] : memref<280x256xf32, #tpu.memory_space<vmem>>, vector<8x256xf32>
    tpu.vector_store %arg16[%c272_644, %c0_645], %746 {strides = array<i32>} : memref<280x256xf32, #tpu.memory_space<vmem>>, vector<8x256xf32>,
    %c0_646 = arith.constant 0 : index
    %c0_647 = arith.constant 0 : index
    %748 = vector.load %arg16[%c0_646, %c0_647] : memref<280x256xf32, #tpu.memory_space<vmem>>, vector<280x256xf32>
    %cst_648 = arith.constant dense<0.000000e+00> : vector<8x256xf32>
    %749 = tpu.matmul %571, %748, %cst_648 {dimension_numbers = #tpu.dot_dimension_numbers<[1], [0], [0], [1], [0, 0, 1, 1], [], []>} : vector<8x280xf32>, vector<280x256xf32>, vector<8x256xf32> -> vector<8x256xf32>
    %750 = vector.broadcast %573 : vector<8x1xf32> to vector<8x256xf32>
    %751 = arith.addf %749, %750 : vector<8x256xf32>
    %752 = arith.addf %751, %380 : vector<8x256xf32>
    %753 = arith.index_cast %arg0 : i32 to index
    %c3_649 = arith.constant 3 : index
    %754 = memref.load %arg1[%753, %c3_649] : memref<2x8xf32, #tpu.memory_space<smem>>
    %cst_650 = arith.constant 0.000000e+00 : f32
    %755 = vector.broadcast %cst_650 : f32 to vector<8x256xf32>
    %756 = arith.cmpf ogt, %752, %755 : vector<8x256xf32>
    %757 = vector.broadcast %754 : f32 to vector<8x256xf32>
    %758 = arith.mulf %757, %752 : vector<8x256xf32>
    %759 = arith.select %756, %752, %758 : vector<8x256xi1>, vector<8x256xf32>
    %c0_651 = arith.constant 0 : index
    %c0_652 = arith.constant 0 : index
    %c0_653 = arith.constant 0 : index
    %760 = vector.load %arg5[%c0_651, %c0_652, %c0_653] : memref<1x24x8xf32, #tpu.memory_space<vmem>>, vector<1x24x8xf32>
    %761 = vector.shape_cast %760 : vector<1x24x8xf32> to vector<24x8xf32>
    %cst_654 = arith.constant dense<0.000000e+00> : vector<24x256xf32>
    %762 = tpu.matmul %761, %759, %cst_654 {dimension_numbers = #tpu.dot_dimension_numbers<[1], [0], [0], [1], [0, 0, 1, 1], [], []>} : vector<24x8xf32>, vector<8x256xf32>, vector<24x256xf32> -> vector<24x256xf32>
    %c0_655 = arith.constant 0 : index
    %c0_656 = arith.constant 0 : index
    %c0_657 = arith.constant 0 : index
    %763 = vector.load %arg6[%c0_655, %c0_656, %c0_657] : memref<1x24x1xf32, #tpu.memory_space<vmem>>, vector<1x24x1xf32>
    %764 = vector.shape_cast %763 : vector<1x24x1xf32> to vector<24x1xf32>
    %765 = vector.broadcast %764 : vector<24x1xf32> to vector<24x256xf32>
    %766 = arith.addf %762, %765 : vector<24x256xf32>
    %cst_658 = arith.constant 0.000000e+00 : f32
    %767 = vector.broadcast %cst_658 : f32 to vector<24x256xf32>
    %768 = arith.cmpf ogt, %766, %767 : vector<24x256xf32>
    %c0_659 = arith.constant 0 : index
    %c0_660 = arith.constant 0 : index
    %c0_661 = arith.constant 0 : index
    %769 = vector.load %arg7[%c0_659, %c0_660, %c0_661] : memref<1x24x1xf32, #tpu.memory_space<vmem>>, vector<1x24x1xf32>
    %770 = vector.shape_cast %769 : vector<1x24x1xf32> to vector<24x1xf32>
    %771 = vector.broadcast %770 : vector<24x1xf32> to vector<24x256xf32>
    %772 = arith.mulf %771, %766 : vector<24x256xf32>
    %773 = arith.select %768, %766, %772 : vector<24x256xi1>, vector<24x256xf32>
    %774 = vector.extract_strided_slice %773 {offsets = [0, 0], sizes = [4, 256], strides = [1, 1]} : vector<24x256xf32> to vector<4x256xf32>
    %775 = vector.extract_strided_slice %773 {offsets = [4, 0], sizes = [4, 256], strides = [1, 1]} : vector<24x256xf32> to vector<4x256xf32>
    %776 = vector.extract_strided_slice %773 {offsets = [8, 0], sizes = [4, 256], strides = [1, 1]} : vector<24x256xf32> to vector<4x256xf32>
    %c0_662 = arith.constant 0 : index
    %c0_663 = arith.constant 0 : index
    %777 = vector.load %arg13[%c0_662, %c0_663] : memref<256x256xf32, #tpu.memory_space<vmem>>, vector<256x256xf32>
    %778 = vector.extract_strided_slice %774 {offsets = [0, 0], sizes = [1, 256], strides = [1, 1]} : vector<4x256xf32> to vector<1x256xf32>
    %779 = vector.broadcast %778 : vector<1x256xf32> to vector<4x256xf32>
    %780 = arith.mulf %779, %775 : vector<4x256xf32>
    %781 = vector.extract_strided_slice %774 {offsets = [1, 0], sizes = [1, 256], strides = [1, 1]} : vector<4x256xf32> to vector<1x256xf32>
    %782 = vector.broadcast %781 : vector<1x256xf32> to vector<4x256xf32>
    %783 = arith.mulf %782, %775 : vector<4x256xf32>
    %784 = vector.extract_strided_slice %774 {offsets = [2, 0], sizes = [1, 256], strides = [1, 1]} : vector<4x256xf32> to vector<1x256xf32>
    %785 = vector.broadcast %784 : vector<1x256xf32> to vector<4x256xf32>
    %786 = arith.mulf %785, %775 : vector<4x256xf32>
    %787 = vector.extract_strided_slice %774 {offsets = [3, 0], sizes = [1, 256], strides = [1, 1]} : vector<4x256xf32> to vector<1x256xf32>
    %788 = vector.broadcast %787 : vector<1x256xf32> to vector<4x256xf32>
    %789 = arith.mulf %788, %775 : vector<4x256xf32>
    %790 = tpu.concatenate %780, %783, %786, %789 in 0 : vector<4x256xf32>, vector<4x256xf32>, vector<4x256xf32>, vector<4x256xf32> -> vector<16x256xf32>
    %cst_664 = arith.constant dense<0.000000e+00> : vector<16x256xf32>
    %791 = tpu.matmul %790, %777, %cst_664 {dimension_numbers = #tpu.dot_dimension_numbers<[1], [0], [0], [1], [0, 0, 1, 1], [], []>} : vector<16x256xf32>, vector<256x256xf32>, vector<16x256xf32> -> vector<16x256xf32>
    %cst_665 = arith.constant 1.250000e-01 : f32
    %792 = vector.broadcast %cst_665 : f32 to vector<16x256xf32>
    %793 = arith.mulf %791, %792 : vector<16x256xf32>
    %794 = vector.extract_strided_slice %793 {offsets = [0, 0], sizes = [4, 256], strides = [1, 1]} : vector<16x256xf32> to vector<4x256xf32>
    %cst_666 = arith.constant dense<0xFF800000> : vector<256xf32>
    %795 = vector.multi_reduction <maximumf>, %794, %cst_666 [0] : vector<4x256xf32> to vector<256xf32>
    %796 = vector.shape_cast %795 : vector<256xf32> to vector<1x256xf32>
    %797 = vector.broadcast %796 : vector<1x256xf32> to vector<4x256xf32>
    %798 = arith.subf %794, %797 : vector<4x256xf32>
    %799 = math.exp %798 : vector<4x256xf32>
    %cst_667 = arith.constant dense<0.000000e+00> : vector<256xf32>
    %800 = vector.multi_reduction <add>, %799, %cst_667 [0] : vector<4x256xf32> to vector<256xf32>
    %801 = vector.shape_cast %800 : vector<256xf32> to vector<1x256xf32>
    %802 = vector.broadcast %801 : vector<1x256xf32> to vector<4x256xf32>
    %803 = arith.divf %799, %802 : vector<4x256xf32>
    %804 = arith.mulf %803, %776 : vector<4x256xf32>
    %cst_668 = arith.constant dense<0.000000e+00> : vector<256xf32>
    %805 = vector.multi_reduction <add>, %804, %cst_668 [0] : vector<4x256xf32> to vector<256xf32>
    %806 = vector.shape_cast %805 : vector<256xf32> to vector<1x256xf32>
    %807 = vector.extract_strided_slice %793 {offsets = [4, 0], sizes = [4, 256], strides = [1, 1]} : vector<16x256xf32> to vector<4x256xf32>
    %cst_669 = arith.constant dense<0xFF800000> : vector<256xf32>
    %808 = vector.multi_reduction <maximumf>, %807, %cst_669 [0] : vector<4x256xf32> to vector<256xf32>
    %809 = vector.shape_cast %808 : vector<256xf32> to vector<1x256xf32>
    %810 = vector.broadcast %809 : vector<1x256xf32> to vector<4x256xf32>
    %811 = arith.subf %807, %810 : vector<4x256xf32>
    %812 = math.exp %811 : vector<4x256xf32>
    %cst_670 = arith.constant dense<0.000000e+00> : vector<256xf32>
    %813 = vector.multi_reduction <add>, %812, %cst_670 [0] : vector<4x256xf32> to vector<256xf32>
    %814 = vector.shape_cast %813 : vector<256xf32> to vector<1x256xf32>
    %815 = vector.broadcast %814 : vector<1x256xf32> to vector<4x256xf32>
    %816 = arith.divf %812, %815 : vector<4x256xf32>
    %817 = arith.mulf %816, %776 : vector<4x256xf32>
    %cst_671 = arith.constant dense<0.000000e+00> : vector<256xf32>
    %818 = vector.multi_reduction <add>, %817, %cst_671 [0] : vector<4x256xf32> to vector<256xf32>
    %819 = vector.shape_cast %818 : vector<256xf32> to vector<1x256xf32>
    %820 = vector.extract_strided_slice %793 {offsets = [8, 0], sizes = [4, 256], strides = [1, 1]} : vector<16x256xf32> to vector<4x256xf32>
    %cst_672 = arith.constant dense<0xFF800000> : vector<256xf32>
    %821 = vector.multi_reduction <maximumf>, %820, %cst_672 [0] : vector<4x256xf32> to vector<256xf32>
    %822 = vector.shape_cast %821 : vector<256xf32> to vector<1x256xf32>
    %823 = vector.broadcast %822 : vector<1x256xf32> to vector<4x256xf32>
    %824 = arith.subf %820, %823 : vector<4x256xf32>
    %825 = math.exp %824 : vector<4x256xf32>
    %cst_673 = arith.constant dense<0.000000e+00> : vector<256xf32>
    %826 = vector.multi_reduction <add>, %825, %cst_673 [0] : vector<4x256xf32> to vector<256xf32>
    %827 = vector.shape_cast %826 : vector<256xf32> to vector<1x256xf32>
    %828 = vector.broadcast %827 : vector<1x256xf32> to vector<4x256xf32>
    %829 = arith.divf %825, %828 : vector<4x256xf32>
    %830 = arith.mulf %829, %776 : vector<4x256xf32>
    %cst_674 = arith.constant dense<0.000000e+00> : vector<256xf32>
    %831 = vector.multi_reduction <add>, %830, %cst_674 [0] : vector<4x256xf32> to vector<256xf32>
    %832 = vector.shape_cast %831 : vector<256xf32> to vector<1x256xf32>
    %833 = vector.extract_strided_slice %793 {offsets = [12, 0], sizes = [4, 256], strides = [1, 1]} : vector<16x256xf32> to vector<4x256xf32>
    %cst_675 = arith.constant dense<0xFF800000> : vector<256xf32>
    %834 = vector.multi_reduction <maximumf>, %833, %cst_675 [0] : vector<4x256xf32> to vector<256xf32>
    %835 = vector.shape_cast %834 : vector<256xf32> to vector<1x256xf32>
    %836 = vector.broadcast %835 : vector<1x256xf32> to vector<4x256xf32>
    %837 = arith.subf %833, %836 : vector<4x256xf32>
    %838 = math.exp %837 : vector<4x256xf32>
    %cst_676 = arith.constant dense<0.000000e+00> : vector<256xf32>
    %839 = vector.multi_reduction <add>, %838, %cst_676 [0] : vector<4x256xf32> to vector<256xf32>
    %840 = vector.shape_cast %839 : vector<256xf32> to vector<1x256xf32>
    %841 = vector.broadcast %840 : vector<1x256xf32> to vector<4x256xf32>
    %842 = arith.divf %838, %841 : vector<4x256xf32>
    %843 = arith.mulf %842, %776 : vector<4x256xf32>
    %cst_677 = arith.constant dense<0.000000e+00> : vector<256xf32>
    %844 = vector.multi_reduction <add>, %843, %cst_677 [0] : vector<4x256xf32> to vector<256xf32>
    %845 = vector.shape_cast %844 : vector<256xf32> to vector<1x256xf32>
    %846 = tpu.concatenate %806, %819, %832, %845 in 0 : vector<1x256xf32>, vector<1x256xf32>, vector<1x256xf32>, vector<1x256xf32> -> vector<4x256xf32>
    %847 = vector.extract_strided_slice %773 {offsets = [12, 0], sizes = [4, 256], strides = [1, 1]} : vector<24x256xf32> to vector<4x256xf32>
    %848 = vector.extract_strided_slice %773 {offsets = [16, 0], sizes = [4, 256], strides = [1, 1]} : vector<24x256xf32> to vector<4x256xf32>
    %849 = vector.extract_strided_slice %773 {offsets = [20, 0], sizes = [4, 256], strides = [1, 1]} : vector<24x256xf32> to vector<4x256xf32>
    %c0_678 = arith.constant 0 : index
    %c0_679 = arith.constant 0 : index
    %850 = vector.load %arg14[%c0_678, %c0_679] : memref<256x256xf32, #tpu.memory_space<vmem>>, vector<256x256xf32>
    %851 = vector.extract_strided_slice %847 {offsets = [0, 0], sizes = [1, 256], strides = [1, 1]} : vector<4x256xf32> to vector<1x256xf32>
    %852 = vector.broadcast %851 : vector<1x256xf32> to vector<4x256xf32>
    %853 = arith.mulf %852, %848 : vector<4x256xf32>
    %854 = vector.extract_strided_slice %847 {offsets = [1, 0], sizes = [1, 256], strides = [1, 1]} : vector<4x256xf32> to vector<1x256xf32>
    %855 = vector.broadcast %854 : vector<1x256xf32> to vector<4x256xf32>
    %856 = arith.mulf %855, %848 : vector<4x256xf32>
    %857 = vector.extract_strided_slice %847 {offsets = [2, 0], sizes = [1, 256], strides = [1, 1]} : vector<4x256xf32> to vector<1x256xf32>
    %858 = vector.broadcast %857 : vector<1x256xf32> to vector<4x256xf32>
    %859 = arith.mulf %858, %848 : vector<4x256xf32>
    %860 = vector.extract_strided_slice %847 {offsets = [3, 0], sizes = [1, 256], strides = [1, 1]} : vector<4x256xf32> to vector<1x256xf32>
    %861 = vector.broadcast %860 : vector<1x256xf32> to vector<4x256xf32>
    %862 = arith.mulf %861, %848 : vector<4x256xf32>
    %863 = tpu.concatenate %853, %856, %859, %862 in 0 : vector<4x256xf32>, vector<4x256xf32>, vector<4x256xf32>, vector<4x256xf32> -> vector<16x256xf32>
    %cst_680 = arith.constant dense<0.000000e+00> : vector<16x256xf32>
    %864 = tpu.matmul %863, %850, %cst_680 {dimension_numbers = #tpu.dot_dimension_numbers<[1], [0], [0], [1], [0, 0, 1, 1], [], []>} : vector<16x256xf32>, vector<256x256xf32>, vector<16x256xf32> -> vector<16x256xf32>
    %cst_681 = arith.constant 1.250000e-01 : f32
    %865 = vector.broadcast %cst_681 : f32 to vector<16x256xf32>
    %866 = arith.mulf %864, %865 : vector<16x256xf32>
    %867 = vector.extract_strided_slice %866 {offsets = [0, 0], sizes = [4, 256], strides = [1, 1]} : vector<16x256xf32> to vector<4x256xf32>
    %cst_682 = arith.constant dense<0xFF800000> : vector<256xf32>
    %868 = vector.multi_reduction <maximumf>, %867, %cst_682 [0] : vector<4x256xf32> to vector<256xf32>
    %869 = vector.shape_cast %868 : vector<256xf32> to vector<1x256xf32>
    %870 = vector.broadcast %869 : vector<1x256xf32> to vector<4x256xf32>
    %871 = arith.subf %867, %870 : vector<4x256xf32>
    %872 = math.exp %871 : vector<4x256xf32>
    %cst_683 = arith.constant dense<0.000000e+00> : vector<256xf32>
    %873 = vector.multi_reduction <add>, %872, %cst_683 [0] : vector<4x256xf32> to vector<256xf32>
    %874 = vector.shape_cast %873 : vector<256xf32> to vector<1x256xf32>
    %875 = vector.broadcast %874 : vector<1x256xf32> to vector<4x256xf32>
    %876 = arith.divf %872, %875 : vector<4x256xf32>
    %877 = arith.mulf %876, %849 : vector<4x256xf32>
    %cst_684 = arith.constant dense<0.000000e+00> : vector<256xf32>
    %878 = vector.multi_reduction <add>, %877, %cst_684 [0] : vector<4x256xf32> to vector<256xf32>
    %879 = vector.shape_cast %878 : vector<256xf32> to vector<1x256xf32>
    %880 = vector.extract_strided_slice %866 {offsets = [4, 0], sizes = [4, 256], strides = [1, 1]} : vector<16x256xf32> to vector<4x256xf32>
    %cst_685 = arith.constant dense<0xFF800000> : vector<256xf32>
    %881 = vector.multi_reduction <maximumf>, %880, %cst_685 [0] : vector<4x256xf32> to vector<256xf32>
    %882 = vector.shape_cast %881 : vector<256xf32> to vector<1x256xf32>
    %883 = vector.broadcast %882 : vector<1x256xf32> to vector<4x256xf32>
    %884 = arith.subf %880, %883 : vector<4x256xf32>
    %885 = math.exp %884 : vector<4x256xf32>
    %cst_686 = arith.constant dense<0.000000e+00> : vector<256xf32>
    %886 = vector.multi_reduction <add>, %885, %cst_686 [0] : vector<4x256xf32> to vector<256xf32>
    %887 = vector.shape_cast %886 : vector<256xf32> to vector<1x256xf32>
    %888 = vector.broadcast %887 : vector<1x256xf32> to vector<4x256xf32>
    %889 = arith.divf %885, %888 : vector<4x256xf32>
    %890 = arith.mulf %889, %849 : vector<4x256xf32>
    %cst_687 = arith.constant dense<0.000000e+00> : vector<256xf32>
    %891 = vector.multi_reduction <add>, %890, %cst_687 [0] : vector<4x256xf32> to vector<256xf32>
    %892 = vector.shape_cast %891 : vector<256xf32> to vector<1x256xf32>
    %893 = vector.extract_strided_slice %866 {offsets = [8, 0], sizes = [4, 256], strides = [1, 1]} : vector<16x256xf32> to vector<4x256xf32>
    %cst_688 = arith.constant dense<0xFF800000> : vector<256xf32>
    %894 = vector.multi_reduction <maximumf>, %893, %cst_688 [0] : vector<4x256xf32> to vector<256xf32>
    %895 = vector.shape_cast %894 : vector<256xf32> to vector<1x256xf32>
    %896 = vector.broadcast %895 : vector<1x256xf32> to vector<4x256xf32>
    %897 = arith.subf %893, %896 : vector<4x256xf32>
    %898 = math.exp %897 : vector<4x256xf32>
    %cst_689 = arith.constant dense<0.000000e+00> : vector<256xf32>
    %899 = vector.multi_reduction <add>, %898, %cst_689 [0] : vector<4x256xf32> to vector<256xf32>
    %900 = vector.shape_cast %899 : vector<256xf32> to vector<1x256xf32>
    %901 = vector.broadcast %900 : vector<1x256xf32> to vector<4x256xf32>
    %902 = arith.divf %898, %901 : vector<4x256xf32>
    %903 = arith.mulf %902, %849 : vector<4x256xf32>
    %cst_690 = arith.constant dense<0.000000e+00> : vector<256xf32>
    %904 = vector.multi_reduction <add>, %903, %cst_690 [0] : vector<4x256xf32> to vector<256xf32>
    %905 = vector.shape_cast %904 : vector<256xf32> to vector<1x256xf32>
    %906 = vector.extract_strided_slice %866 {offsets = [12, 0], sizes = [4, 256], strides = [1, 1]} : vector<16x256xf32> to vector<4x256xf32>
    %cst_691 = arith.constant dense<0xFF800000> : vector<256xf32>
    %907 = vector.multi_reduction <maximumf>, %906, %cst_691 [0] : vector<4x256xf32> to vector<256xf32>
    %908 = vector.shape_cast %907 : vector<256xf32> to vector<1x256xf32>
    %909 = vector.broadcast %908 : vector<1x256xf32> to vector<4x256xf32>
    %910 = arith.subf %906, %909 : vector<4x256xf32>
    %911 = math.exp %910 : vector<4x256xf32>
    %cst_692 = arith.constant dense<0.000000e+00> : vector<256xf32>
    %912 = vector.multi_reduction <add>, %911, %cst_692 [0] : vector<4x256xf32> to vector<256xf32>
    %913 = vector.shape_cast %912 : vector<256xf32> to vector<1x256xf32>
    %914 = vector.broadcast %913 : vector<1x256xf32> to vector<4x256xf32>
    %915 = arith.divf %911, %914 : vector<4x256xf32>
    %916 = arith.mulf %915, %849 : vector<4x256xf32>
    %cst_693 = arith.constant dense<0.000000e+00> : vector<256xf32>
    %917 = vector.multi_reduction <add>, %916, %cst_693 [0] : vector<4x256xf32> to vector<256xf32>
    %918 = vector.shape_cast %917 : vector<256xf32> to vector<1x256xf32>
    %919 = tpu.concatenate %879, %892, %905, %918 in 0 : vector<1x256xf32>, vector<1x256xf32>, vector<1x256xf32>, vector<1x256xf32> -> vector<4x256xf32>
    %920 = tpu.concatenate %846, %919 in 0 : vector<4x256xf32>, vector<4x256xf32> -> vector<8x256xf32>
    %c0_694 = arith.constant 0 : index
    %c0_695 = arith.constant 0 : index
    %c0_696 = arith.constant 0 : index
    %921 = vector.load %arg8[%c0_694, %c0_695, %c0_696] : memref<1x16x8xf32, #tpu.memory_space<vmem>>, vector<1x16x8xf32>
    %922 = vector.shape_cast %921 : vector<1x16x8xf32> to vector<16x8xf32>
    %cst_697 = arith.constant dense<0.000000e+00> : vector<16x256xf32>
    %923 = tpu.matmul %922, %920, %cst_697 {dimension_numbers = #tpu.dot_dimension_numbers<[1], [0], [0], [1], [0, 0, 1, 1], [], []>} : vector<16x8xf32>, vector<8x256xf32>, vector<16x256xf32> -> vector<16x256xf32>
    %c0_698 = arith.constant 0 : index
    %c0_699 = arith.constant 0 : index
    %c0_700 = arith.constant 0 : index
    %924 = vector.load %arg9[%c0_698, %c0_699, %c0_700] : memref<1x16x1xf32, #tpu.memory_space<vmem>>, vector<1x16x1xf32>
    %925 = vector.shape_cast %924 : vector<1x16x1xf32> to vector<16x1xf32>
    %926 = vector.broadcast %925 : vector<16x1xf32> to vector<16x256xf32>
    %927 = arith.addf %923, %926 : vector<16x256xf32>
    %928 = vector.extract_strided_slice %927 {offsets = [0, 0], sizes = [8, 256], strides = [1, 1]} : vector<16x256xf32> to vector<8x256xf32>
    %929 = arith.index_cast %arg0 : i32 to index
    %c4_701 = arith.constant 4 : index
    %930 = memref.load %arg1[%929, %c4_701] : memref<2x8xf32, #tpu.memory_space<smem>>
    %cst_702 = arith.constant 0.000000e+00 : f32
    %931 = vector.broadcast %cst_702 : f32 to vector<8x256xf32>
    %932 = arith.cmpf ogt, %928, %931 : vector<8x256xf32>
    %933 = vector.broadcast %930 : f32 to vector<8x256xf32>
    %934 = arith.mulf %933, %928 : vector<8x256xf32>
    %935 = arith.select %932, %928, %934 : vector<8x256xi1>, vector<8x256xf32>
    %936 = arith.addf %759, %935 : vector<8x256xf32>
    %937 = vector.extract_strided_slice %927 {offsets = [8, 0], sizes = [8, 256], strides = [1, 1]} : vector<16x256xf32> to vector<8x256xf32>
    %938 = arith.index_cast %arg0 : i32 to index
    %c5_703 = arith.constant 5 : index
    %939 = memref.load %arg1[%938, %c5_703] : memref<2x8xf32, #tpu.memory_space<smem>>
    %cst_704 = arith.constant 0.000000e+00 : f32
    %940 = vector.broadcast %cst_704 : f32 to vector<8x256xf32>
    %941 = arith.cmpf ogt, %937, %940 : vector<8x256xf32>
    %942 = vector.broadcast %939 : f32 to vector<8x256xf32>
    %943 = arith.mulf %942, %937 : vector<8x256xf32>
    %944 = arith.select %941, %937, %943 : vector<8x256xi1>, vector<8x256xf32>
    %945 = arith.addf %759, %944 : vector<8x256xf32>
    %946 = tpu.concatenate %759, %936, %945 in 0 : vector<8x256xf32>, vector<8x256xf32>, vector<8x256xf32> -> vector<24x256xf32>
    %c0_705 = arith.constant 0 : index
    %c0_706 = arith.constant 0 : index
    %c0_707 = arith.constant 0 : index
    %947 = vector.load %arg10[%c0_705, %c0_706, %c0_707] : memref<1x8x24xf32, #tpu.memory_space<vmem>>, vector<1x8x24xf32>
    %948 = vector.shape_cast %947 : vector<1x8x24xf32> to vector<8x24xf32>
    %cst_708 = arith.constant dense<0.000000e+00> : vector<8x256xf32>
    %949 = tpu.matmul %948, %946, %cst_708 {dimension_numbers = #tpu.dot_dimension_numbers<[1], [0], [0], [1], [0, 0, 1, 1], [], []>} : vector<8x24xf32>, vector<24x256xf32>, vector<8x256xf32> -> vector<8x256xf32>
    %c0_709 = arith.constant 0 : index
    %c0_710 = arith.constant 0 : index
    %c0_711 = arith.constant 0 : index
    %950 = vector.load %arg11[%c0_709, %c0_710, %c0_711] : memref<1x8x1xf32, #tpu.memory_space<vmem>>, vector<1x8x1xf32>
    %951 = vector.shape_cast %950 : vector<1x8x1xf32> to vector<8x1xf32>
    %952 = vector.broadcast %951 : vector<8x1xf32> to vector<8x256xf32>
    %953 = arith.addf %949, %952 : vector<8x256xf32>
    %954 = arith.index_cast %arg0 : i32 to index
    %c6_712 = arith.constant 6 : index
    %955 = memref.load %arg1[%954, %c6_712] : memref<2x8xf32, #tpu.memory_space<smem>>
    %cst_713 = arith.constant 0.000000e+00 : f32
    %956 = vector.broadcast %cst_713 : f32 to vector<8x256xf32>
    %957 = arith.cmpf ogt, %953, %956 : vector<8x256xf32>
    %958 = vector.broadcast %955 : f32 to vector<8x256xf32>
    %959 = arith.mulf %958, %953 : vector<8x256xf32>
    %960 = arith.select %957, %953, %959 : vector<8x256xi1>, vector<8x256xf32>
    %c0_714 = arith.constant 0 : index
    %c0_715 = arith.constant 0 : index
    %c0_716 = arith.constant 0 : index
    %961 = vector.load %arg15[%c0_714, %c0_715, %c0_716] : memref<1x8x256xf32, #tpu.memory_space<vmem>>, vector<1x8x256xf32>
    %962 = vector.shape_cast %961 : vector<1x8x256xf32> to vector<8x256xf32>
    %963 = vector.shape_cast %960 : vector<8x256xf32> to vector<1x8x256xf32>
    tpu.vector_store %arg15[%c0_714, %c0_715, %c0_716], %963 {strides = array<i32>} : memref<1x8x256xf32, #tpu.memory_space<vmem>>, vector<1x8x256xf32>,
    return
  }
  func.func @transform_0(%arg0: i32) -> (i32, i32) {
    %c0_i32 = arith.constant 0 : i32
    %c0_i32_0 = arith.constant 0 : i32
    %c0_i32_1 = arith.constant 0 : i32
    return %c0_i32, %c0_i32_0 : i32, i32
  }
  func.func @transform_1(%arg0: i32) -> (i32, i32, i32) {
    %c0_i32 = arith.constant 0 : i32
    %c0_i32_0 = arith.constant 0 : i32
    %c0_i32_1 = arith.constant 0 : i32
    return %arg0, %c0_i32, %c0_i32_0 : i32, i32, i32
  }
  func.func @transform_2(%arg0: i32) -> (i32, i32, i32, i32) {
    %c0_i32 = arith.constant 0 : i32
    %c0_i32_0 = arith.constant 0 : i32
    %c0_i32_1 = arith.constant 0 : i32
    %c0_i32_2 = arith.constant 0 : i32
    return %arg0, %c0_i32, %c0_i32_0, %c0_i32_1 : i32, i32, i32, i32
  }
  func.func @transform_3(%arg0: i32) -> (i32, i32, i32, i32) {
    %c0_i32 = arith.constant 0 : i32
    %c0_i32_0 = arith.constant 0 : i32
    %c0_i32_1 = arith.constant 0 : i32
    %c0_i32_2 = arith.constant 0 : i32
    return %arg0, %c0_i32, %c0_i32_0, %c0_i32_1 : i32, i32, i32, i32
  }
  func.func @transform_4(%arg0: i32) -> (i32, i32, i32) {
    %c0_i32 = arith.constant 0 : i32
    %c0_i32_0 = arith.constant 0 : i32
    %c0_i32_1 = arith.constant 0 : i32
    return %arg0, %c0_i32, %c0_i32_0 : i32, i32, i32
  }
  func.func @transform_5(%arg0: i32) -> (i32, i32, i32) {
    %c0_i32 = arith.constant 0 : i32
    %c0_i32_0 = arith.constant 0 : i32
    %c0_i32_1 = arith.constant 0 : i32
    return %arg0, %c0_i32, %c0_i32_0 : i32, i32, i32
  }
  func.func @transform_6(%arg0: i32) -> (i32, i32, i32) {
    %c0_i32 = arith.constant 0 : i32
    %c0_i32_0 = arith.constant 0 : i32
    %c0_i32_1 = arith.constant 0 : i32
    return %arg0, %c0_i32, %c0_i32_0 : i32, i32, i32
  }
  func.func @transform_7(%arg0: i32) -> (i32, i32, i32) {
    %c0_i32 = arith.constant 0 : i32
    %c0_i32_0 = arith.constant 0 : i32
    %c0_i32_1 = arith.constant 0 : i32
    return %arg0, %c0_i32, %c0_i32_0 : i32, i32, i32
  }
  func.func @transform_8(%arg0: i32) -> (i32, i32, i32) {
    %c0_i32 = arith.constant 0 : i32
    %c0_i32_0 = arith.constant 0 : i32
    %c0_i32_1 = arith.constant 0 : i32
    return %arg0, %c0_i32, %c0_i32_0 : i32, i32, i32
  }
  func.func @transform_9(%arg0: i32) -> (i32, i32, i32) {
    %c0_i32 = arith.constant 0 : i32
    %c0_i32_0 = arith.constant 0 : i32
    %c0_i32_1 = arith.constant 0 : i32
    return %arg0, %c0_i32, %c0_i32_0 : i32, i32, i32
  }
  func.func @transform_10(%arg0: i32) -> (i32, i32, i32) {
    %c0_i32 = arith.constant 0 : i32
    %c0_i32_0 = arith.constant 0 : i32
    %c0_i32_1 = arith.constant 0 : i32
    return %arg0, %c0_i32, %c0_i32_0 : i32, i32, i32
  }
  func.func @transform_11(%arg0: i32) -> (i32, i32) {
    %c0_i32 = arith.constant 0 : i32
    %c0_i32_0 = arith.constant 0 : i32
    %c0_i32_1 = arith.constant 0 : i32
    return %c0_i32, %c0_i32_0 : i32, i32
  }
  func.func @transform_12(%arg0: i32) -> (i32, i32) {
    %c0_i32 = arith.constant 0 : i32
    %c0_i32_0 = arith.constant 0 : i32
    %c0_i32_1 = arith.constant 0 : i32
    return %c0_i32, %c0_i32_0 : i32, i32
  }
  func.func @transform_13(%arg0: i32) -> (i32, i32) {
    %c0_i32 = arith.constant 0 : i32
    %c0_i32_0 = arith.constant 0 : i32
    %c0_i32_1 = arith.constant 0 : i32
    return %c0_i32, %c0_i32_0 : i32, i32
  }
  func.func @transform_14(%arg0: i32) -> (i32, i32, i32) {
    %c0_i32 = arith.constant 0 : i32
    %c0_i32_0 = arith.constant 0 : i32
    %c0_i32_1 = arith.constant 0 : i32
    return %arg0, %c0_i32, %c0_i32_0 : i32, i32, i32
  }
}

</mosaic_0001>

<bundles_post_ra>
// kernel: ra_block_forward.1
= control target key start
LH: loop header
LB: loop body
LE: loop exit
PB: predicated region body
PF: predicated region fallthrough
CT: control target
= control target key end

     0   :  { %s9203_s0 = inlined_call_operand.vmem [shape: f32[2,8], index: 0, kind: input, shape index: {}]   ;;  %s9204_s1 = inlined_call_operand.vmem [shape: f32[2,8,256], index: 1, kind: input, shape index: {}]   ;;  %s9205_s2 = inlined_call_operand.vmem [shape: f32[2,4,8,280], index: 2, kind: input, shape index: {}]   ;;  %s9206_s3 = inlined_call_operand.vmem [shape: f32[2,4,8,1], index: 3, kind: input, shape index: {}]   ;;  %s9207_s4 = inlined_call_operand.vmem [shape: f32[2,24,8], index: 4, kind: input, shape index: {}]   ;;  %s9208_s5 = inlined_call_operand.vmem [shape: f32[2,24,1], index: 5, kind: input, shape index: {}]   ;;  %s9209_s6 = inlined_call_operand.vmem [shape: f32[2,24,1], index: 6, kind: input, shape index: {}]   ;;  %s9210_s7 = inlined_call_operand.vmem [shape: f32[2,16,8], index: 7, kind: input, shape index: {}]   ;;  %s9211_s8 = inlined_call_operand.vmem [shape: f32[2,16,1], index: 8, kind: input, shape index: {}]   ;;  %s9212_s9 = inlined_call_operand.vmem [shape: f32[2,8,24], index: 9, kind: input, shape index: {}]   ;;  %s9213_s10 = inlined_call_operand.vmem [shape: f32[2,8,1], index: 10, kind: input, shape index: {}]   ;;  %s9214_s11 = inlined_call_operand.vmem [shape: f32[35,256], index: 11, kind: input, shape index: {}]   ;;  %s9215_s12 = inlined_call_operand.hbm [shape: f32[256,256], index: 12, kind: input, shape index: {}]   ;;  %s9216_s13 = inlined_call_operand.hbm [shape: f32[256,256], index: 13, kind: input, shape index: {}]   ;;  %s9217_s14 = inlined_call_operand.vmem [shape: f32[2,8,256], index: 14, kind: output, shape index: {}]  }
   0x1   :  { %9348 = sst [smem:[#allocation19_spill]] %s9203_s0 }
   0x2   :  { %9349 = sst [smem:[#allocation20_spill]] %s9204_s1 }
   0x3   :  { %9350 = sst [smem:[#allocation21_spill]] %s9205_s2 }
   0x4   :  { %9351 = sst [smem:[#allocation22_spill]] %s9206_s3 }
   0x5   :  { %9352 = sst [smem:[#allocation23_spill]] %s9207_s4 }
   0x6   :  { %9353 = sst [smem:[#allocation24_spill]] %s9208_s5 }
   0x7   :  { %9354 = sst [smem:[#allocation25_spill]] %s9209_s6 }
   0x8   :  { %9355 = sst [smem:[#allocation26_spill]] %s9210_s7 }
   0x9   :  { %9356 = sst [smem:[#allocation27_spill]] %s9211_s8 }
   0xa   :  { %9357 = sst [smem:[#allocation28_spill]] %s9212_s9 }
   0xb   :  { %9358 = sst [smem:[#allocation29_spill]] %s9213_s10 }
   0xc   :  { %9359 = sst [smem:[#allocation30_spill]] %s9214_s11 }
   0xd   :  { %9360 = sst [smem:[#allocation31_spill]] %s9215_s12 }
   0xe   :  { %9361 = sst [smem:[#allocation32_spill]] %s9216_s13 }
   0xf   :  { %9362 = sst [smem:[#allocation33_spill]] %s9217_s14 }
  0x10   :  { %19 = vsyncpa [#allocation5], 0 }
  0x11   :  { %20 = vsyncpa [#allocation4], 0 }
  0x12   :  { %21 = vsyncpa [#allocation8], 0  ;;  %s5967_s29 = smov 0  }
  0x13 LB: > { %9363 = sst [smem:[#allocation12_spill]] %s5850_s29  ;;  %s5976_s17 = sadd.s32 4294967295, %s5850_s29   ;;  %s5850_s29 = sphi %s5967_s29, %s27_s29  }
  0x14   : > { %s9364_s0 = sld [smem:[#allocation19_spill]]  ;;  %p5409_p0 = scmp.ge.s32.totalorder %s5850_s29, 1 }
  0x15   : > { %p402_p1 = scmp.lt.s32.totalorder %s5850_s29, 3  ;;  %p5634_p2 = scmp.eq.s32.totalorder %s5976_s17, 0 }
  0x16   : > { %s9366_s12 = sld [smem:[#allocation31_spill]]  ;;  %s5852_s22 = smov [#allocation6]  }
  0x17   : > { %p5981_p3 = pnand %p5409_p0, %p402_p1  ;;  %s428_s23 = sshll.u32 %s5852_s22, 4  ;;  %s429_s23 = int_to_ptr.vmem [resolvable:$true] %s428_s23 }
  0x18   : > { %s9367_s13 = sld [smem:[#allocation32_spill]]  ;;  %s5853_s27 = smov [#allocation3]  }
  0x19   : > { %p5624_p4 = pneg %p5981_p3  ;;  %s5854_s28 = smov 256  }
  0x1a   : > { %s414_s16 = sshll.u32 %s9364_s0, 4  ;;  %s5855_s30 = smov 16   ;;  %s415_s16 = int_to_ptr.vmem [resolvable:$true] %s414_s16 }
  0x1b   : > { %p5625_p5 = pnand %p5634_p2, %p5624_p4  ;;  %s5856_s15 = smov [#allocation7]  }
  0x1c   : > { %s426_s21 = sshll.u32 %s9366_s12, 4  ;;  %s442_s19 = sshll.u32 %s5856_s15, 4  ;;  %s427_s21 = int_to_ptr.hbm [resolvable:$true] %s426_s21  ;;  %s443_s19 = int_to_ptr.vmem [resolvable:$true] %s442_s19 }
  0x1d   : > { %5627 = dma.vmem_to_smem (!%p5625_p5), %s415_s16, 32, %s5853_s27, [#allocation5]  }
  0x1e   : > { %s440_s26 = sshll.u32 %s9367_s13, 4  ;;  %536 = sbr.rel (%p5981_p3) target bundleno = 2536 (0x9e8), region = 76  ;;  %s441_s26 = int_to_ptr.hbm [resolvable:$true] %s440_s26 }
  0x1f   : > { %5630 = dma.hbm_to_vmem [thread:$0]  (!%p5625_p5), %s427_s21, 8192, %s429_s23, [#allocation4], %s5854_s28, %s5854_s28, %s5855_s30  }
  0x20   : > { %5633 = dma.hbm_to_vmem [thread:$0]  (!%p5625_p5), %s441_s26, 8192, %s443_s19, [#allocation8], %s5854_s28, %s5854_s28, %s5855_s30  }
  0x23   : > { %5837 = dma.done.wait (%p5634_p2), [#allocation5], 32  }
  0x24   : > { %5839 = vsyncadd (%p5634_p2), [#allocation5], 4294967264 }
  0x25   : > { %5841 = dma.done.wait (%p5634_p2), [#allocation4], 8192  }
  0x26   : > { %5843 = vsyncadd (%p5634_p2), [#allocation4], 4294959104 }
  0x27   : > { %5845 = dma.done.wait (%p5634_p2), [#allocation8], 8192  }
  0x28   : > { %5847 = vsyncadd (%p5634_p2), [#allocation8], 4294959104 }
  0x29   : > { %553 = sfence }
  0x2a   : > { %p637_p6 = scmp.lt.s32.totalorder %s5976_s17, 1  ;;  %s9370_s1 = sld [smem:[#allocation20_spill]]  ;;  %v700_v2 = vlaneseq }
  0x2b   : > { %s9302_s23 = smov 3   ;;  %s9304_s24 = smov 2  }
  0x2c   : > { %s6011_s16 = scalar_select %p637_p6, %s5976_s17, 1  ;;  %v6102_v4 = vand.u32 127, %v700_v2 }
  0x2d   : > { %s9300_s25 = smov 96   ;;  %s9291_s26 = smov 13  }
  0x2e   : > { %9368 = sst [smem:[#allocation13_spill]] %s6011_s16  ;;  %s6014_s18 = sshll.u32 %s6011_s16, 4  ;;  %vm9288_vm0 = vcmp.lt.s32.totalorder %v6102_v4, 96  ;;  %vm9283_vm1 = vcmp.lt.s32.totalorder %v6102_v4, 2  ;;  %vm9282_vm2 = vcmp.lt.s32.totalorder %v6102_v4, 3  ;;  %vm9279_vm3 = vcmp.lt.s32.totalorder %v6102_v4, 13 }
  0x2f   : > { %9369 = sst [smem:[#allocation14_spill]] %s6014_s18  ;;  %s9250_s27 = smov 97   ;;  %vm9280_vm4 = vcmp.lt.s32.totalorder %v6102_v4, 14  ;;  %vm9287_vm5 = vcmp.lt.s32.totalorder %v6102_v4, 97  ;;  %vm9329_vm6 = vcmp.lt.s32.totalorder %v6102_v4, 98  ;;  %vm9277_vm7 = vcmp.lt.s32.totalorder %v6102_v4, 15 }
  0x30   : > { %s6020_s22 = scalar_lea.vmem %s9370_s1, %s6014_s18  ;;  %s9218_s28 = smov 14   ;;  %vm1198_vm8 = vcmp.lt.s32.totalorder %v6102_v4, 99  ;;  %vm9274_vm9 = vcmp.lt.s32.totalorder %v6102_v4, 16  ;;  %vm9276_vm10 = vcmp.lt.s32.totalorder %v6102_v4, 17  ;;  %vm1180_vm11 = vcmp.lt.s32.totalorder %v6102_v4, 109 }
  0x31   : > { %v6023_v0 = vld [vmem:[%s6020_s22] sm:$0xff]  ;;  %v6032_v1 = vld [vmem:[%s6020_s22 + $0x8] sm:$0xff]  ;;  %s9294_s30 = smov 98   ;;  %s9224_s15 = smov 15   ;;  %vm1162_vm12 = vcmp.lt.s32.totalorder %v6102_v4, 110  ;;  %vm9272_vm13 = vcmp.lt.s32.totalorder %v6102_v4, 18 }
  0x32   : > { %949 = vrot.lane.b32.xlu1 %v6023_v0, %s9302_s23  ;;  %967 = vrot.lane.b32.xlu0 %v6023_v0, %s9304_s24  ;;  %s9220_s19 = smov 99   ;;  %s9222_s20 = smov 16   ;;  %vm1144_vm14 = vcmp.lt.s32.totalorder %v6102_v4, 111  ;;  %vm9273_vm15 = vcmp.lt.s32.totalorder %v6102_v4, 19 }
  0x33   : > { %1248 = vrot.lane.b32.xlu2 %v6023_v0, %s9300_s25  ;;  %s9228_s21 = smov 109   ;;  %s9371_s11 = sld [smem:[#allocation30_spill]] }
  0x34   : > { %s9372_s2 = sld [smem:[#allocation21_spill]]  ;;  %s9386_s0 = smov 18  }
  0x35   : > { %s9374_s3 = sld [smem:[#allocation22_spill]]  ;;  %s9387_s1 = smov 111  }
  0x36   : > { %s9390_s12 = smov 19   ;;  %s9391_s13 = smov 112  }
  0x37   : > { %s9392_s29 = smov 93   ;;  %s9393_s14 = smov 114  }
  0x38   : > { %s9394_s9 = smov 29   ;;  %s9395_s7 = smov 2  }
  0x39   : > { %v6107_v5 = vld [vmem:[%s9371_s11 + $0x37] ss:$8 sm:$0x3]  ;;  %v5447_v17 = vld [vmem:[%s9371_s11 + $0x16] ss:$8 sm:$0x3] }
  0x3a   : > { %951 = vrot.lane.b32.xlu1 %v6032_v1, %s9302_s23  ;;  %969 = vrot.lane.b32.xlu0 %v6032_v1, %s9304_s24  ;;  %v1258_v6 = vperm.slane %v6107_v5, 0  ;;  %v5448_v14 = vld [vmem:[%s9371_s11 + $0x17] ss:$8 sm:$0x3]  ;;  %v959_v22 = vperm.slane %v5447_v17, 0  ;;  %v960_v23 = vperm.slane %v5447_v17, 1 }
  0x3b   : > { %1250 = vrot.lane.b32.xlu2 %v6032_v1, %s9300_s25  ;;  %v977_v15 = vperm.slane %v5448_v14, 0  ;;  %v978_v16 = vperm.slane %v5448_v14, 1  ;;  %v5446_v29 = vld [vmem:[%s9371_s11 + $0x15] ss:$8 sm:$0x3]  ;;  %s9396_s10 = smov 115  }
  0x3c   : > { %v941_v32 = vperm.slane %v5446_v29, 0  ;;  %v942_v33 = vperm.slane %v5446_v29, 1  ;;  %v5445_v41 = vld [vmem:[%s9371_s11 + $0x14] ss:$8 sm:$0x3]  ;;  %s9397_s4 = smov 30  }
  0x3d   : > { %v6183_v42 = vld [vmem:[%s9371_s11 + $0x36] ss:$8 sm:$0x3]  ;;  %v923_v43 = vperm.slane %v5445_v41, 0  ;;  %v924_v45 = vperm.slane %v5445_v41, 1  ;;  %s9398_s8 = smov 3  }
  0x3e   : > { %v1240_v44 = vperm.slane %v6183_v42, 0  ;;  %v6209_v55 = vld [vmem:[%s9371_s11 + $0x35] ss:$8 sm:$0x3]  ;;  %s9399_s6 = smov 96   ;;  %s9400_s18 = smov 94  }
  0x3f   : > { %v1222_v56 = vperm.slane %v6209_v55, 0  ;;  %v5444_v62 = vld [vmem:[%s9371_s11 + $0x13] ss:$8 sm:$0x3]  ;;  %s9401_s5 = smov 31  }
  0x40   : > { %v6233_v63 = vld [vmem:[%s9371_s11 + $0x34] ss:$8 sm:$0x3]  ;;  %v905_v2 = vperm.slane %v5444_v62, 0 }
  0x41   : > { %v5442_v29 = vld [vmem:[%s9371_s11 + $0x11] ss:$8 sm:$0x3] }
  0x42   : > { %933 = vrot.lane.b32.xlu1 %v6032_v1, %s9291_s26  ;;  %931 = vrot.lane.b32.xlu0 %v6023_v0, %s9291_s26  ;;  %s9381_s26 = smov 99  }
  0x43   : > { %1230 = vrot.lane.b32.xlu2 %v6023_v0, %s9250_s27 }
  0x4a   : > { %913 = vrot.lane.b32.xlu1 %v6023_v0, %s9218_s28  ;;  %1232 = vrot.lane.b32.xlu0 %v6032_v1, %s9250_s27  ;;  %s9260_s27 = smov 95  }
  0x4b   : > { %915 = vrot.lane.b32.xlu2 %v6032_v1, %s9218_s28  ;;  %s9226_s28 = smov 17  }
  0x52   : > { %1214 = vrot.lane.b32.xlu1 %v6032_v1, %s9294_s30  ;;  %1212 = vrot.lane.b32.xlu0 %v6023_v0, %s9294_s30  ;;  %s9380_s30 = smov 15  }
  0x53   : > { %895 = vrot.lane.b32.xlu2 %v6023_v0, %s9224_s15 }
  0x5a   : > { %1194 = vrot.lane.b32.xlu1 %v6023_v0, %s9220_s19  ;;  %897 = vrot.lane.b32.xlu0 %v6032_v1, %s9224_s15  ;;  %s9234_s15 = smov 111  }
  0x5b   : > { %1196 = vrot.lane.b32.xlu2 %v6032_v1, %s9220_s19  ;;  %s9230_s19 = smov 110  }
  0x62   : > { %879 = vrot.lane.b32.xlu1 %v6032_v1, %s9222_s20  ;;  %877 = vrot.lane.b32.xlu0 %v6023_v0, %s9222_s20  ;;  %s9236_s20 = smov 18  }
  0x63   : > { %1176 = vrot.lane.b32.xlu2 %v6023_v0, %s9228_s21 }
  0x6a   : > { %859 = vrot.lane.b32.xlu1 %v6023_v0, %s9226_s28  ;;  %1178 = vrot.lane.b32.xlu0 %v6032_v1, %s9228_s21  ;;  %s9238_s21 = smov 112  }
  0x6b   : > { %861 = vrot.lane.b32.xlu2 %v6032_v1, %s9226_s28  ;;  %s9232_s28 = smov 19  }
  0x72   : > { %1160 = vrot.lane.b32.xlu1 %v6032_v1, %s9230_s19  ;;  %1158 = vrot.lane.b32.xlu0 %v6023_v0, %s9230_s19  ;;  %s9240_s19 = smov 29  }
  0x73   : > { %841 = vrot.lane.b32.xlu2 %v6023_v0, %s9236_s20 }
  0x7a   : > { %1140 = vrot.lane.b32.xlu1 %v6023_v0, %s9234_s15  ;;  %843 = vrot.lane.b32.xlu0 %v6032_v1, %s9236_s20  ;;  %s9244_s20 = smov 113  }
  0x7b   : > { %1142 = vrot.lane.b32.xlu2 %v6032_v1, %s9234_s15  ;;  %s9248_s15 = smov 93  }
  0x82   : > { %825 = vrot.lane.b32.xlu1 %v6032_v1, %s9232_s28  ;;  %823 = vrot.lane.b32.xlu0 %v6023_v0, %s9232_s28  ;;  %s9246_s28 = smov 114  }
  0x83   : > { %1122 = vrot.lane.b32.xlu2 %v6023_v0, %s9238_s21 }
  0x8a   : > { %805 = vrot.lane.b32.xlu1 %v6023_v0, %s9240_s19  ;;  %1124 = vrot.lane.b32.xlu0 %v6032_v1, %s9238_s21  ;;  %s9242_s21 = smov 30  }
  0x8b   : > { %807 = vrot.lane.b32.xlu2 %v6032_v1, %s9240_s19  ;;  %s9252_s19 = smov 31  }
  0x8d   : > { %v6100_v3 = vpop.permute.xlu2 %1248 }
  0x92   : > { %1106 = vrot.lane.b32.xlu1 %v6032_v1, %s9244_s20  ;;  %1104 = vrot.lane.b32.xlu0 %v6023_v0, %s9244_s20  ;;  %s9266_s20 = smov 33  }
  0x93   : > { %787 = vrot.lane.b32.xlu2 %v6023_v0, %s9242_s21 }
  0x95   : > { %v6117_v7 = vpop.permute.xlu2 %1250 }
  0x96   : > { %v1253_v8 = vsel %vm9288_vm0, %v6100_v3, %v6117_v7 }
  0x97   : > { %v1262_v9 = vmul.f32 %v1258_v6, %v1253_v8  ;;  %v1204_v6 = vperm.slane %v6233_v63, 0  ;;  %v906_v8 = vperm.slane %v5444_v62, 1 }
  0x99   : > { %1419 = vmatpush.msra.mxu1 %v1262_v9 }
  0x9a   : > { %1086 = vrot.lane.b32.xlu1 %v6023_v0, %s9246_s28  ;;  %789 = vrot.lane.b32.xlu0 %v6032_v1, %s9242_s21  ;;  %s9254_s21 = smov 94  }
  0x9b   : > { %1088 = vrot.lane.b32.xlu2 %v6032_v1, %s9246_s28  ;;  %s9256_s28 = smov 115  }
  0x9d   : > { %v6129_v10 = vpop.permute.xlu2 %1230 }
  0xa2   : > { %1304 = vrot.lane.b32.xlu1 %v6032_v1, %s9248_s15  ;;  %1302 = vrot.lane.b32.xlu0 %v6023_v0, %s9248_s15  ;;  %s9258_s15 = smov 32  }
  0xa3   : > { %769 = vrot.lane.b32.xlu2 %v6023_v0, %s9252_s19 }
  0xa4   : > { %v950_v11 = vpop.permute.xlu1 %949  ;;  %v968_v12 = vpop.permute.xlu0 %967 }
  0xa5   : > { %v916_v13 = vpop.permute.xlu2 %915 }
  0xaa   : > { %1068 = vrot.lane.b32.xlu1 %v6023_v0, %s9256_s28  ;;  %771 = vrot.lane.b32.xlu0 %v6032_v1, %s9252_s19  ;;  %s9264_s19 = smov 34  }
  0xab   : > { %1070 = vrot.lane.b32.xlu2 %v6032_v1, %s9256_s28  ;;  %s9262_s28 = smov 125  }
  0xac   : > { %v952_v18 = vpop.permute.xlu1 %951  ;;  %v970_v19 = vpop.permute.xlu0 %969 }
  0xad   : > { %v973_v20 = vsel %vm9283_vm1, %v970_v19, %v968_v12  ;;  %v972_v21 = vsel %vm9283_vm1, %v968_v12, %v970_v19  ;;  %v6155_v24 = vpop.permute.xlu2 %895  ;;  %v955_v27 = vsel %vm9282_vm2, %v952_v18, %v950_v11  ;;  %v954_v28 = vsel %vm9282_vm2, %v950_v11, %v952_v18  ;;  %v5443_v19 = vld [vmem:[%s9371_s11 + $0x12] ss:$8 sm:$0x3] }
  0xae   : > { %v981_v25 = vmul.f32 %v977_v15, %v973_v20  ;;  %v982_v26 = vmul.f32 %v978_v16, %v972_v21  ;;  %v963_v30 = vmul.f32 %v959_v22, %v955_v27  ;;  %v964_v31 = vmul.f32 %v960_v23, %v954_v28 }
  0xaf   : > { %v887_v20 = vperm.slane %v5443_v19, 0  ;;  %v888_v21 = vperm.slane %v5443_v19, 1  ;;  %vm1054_vm2 = vcmp.lt.s32.totalorder %v6102_v4, 125  ;;  %vm1270_vm1 = vcmp.lt.s32.totalorder %v6102_v4, 95 }
  0xb0   : > { %1399 = vmatpush.msra.mxu0 %v981_v25  ;;  %1459 = vmatpush.msra.mxu3 %v982_v26 }
  0xb2   : > { %1286 = vrot.lane.b32.xlu1 %v6032_v1, %s9254_s21  ;;  %1284 = vrot.lane.b32.xlu0 %v6023_v0, %s9254_s21  ;;  %s9289_s21 = smov 127  }
  0xb3   : > { %1400 = vmatpush.msra.mxu0 %v963_v30  ;;  %1460 = vmatpush.msra.mxu3 %v964_v31  ;;  %v6280_v30 = vld [vmem:[%s9371_s11 + $0x33] ss:$8 sm:$0x3]  ;;  %v869_v31 = vperm.slane %v5442_v29, 0 }
  0xb4   : > { %v934_v34 = vpop.permute.xlu1 %933  ;;  %v932_v35 = vpop.permute.xlu0 %931  ;;  %751 = vrot.lane.b32.xlu2 %v6023_v0, %s9258_s15 }
  0xb5   : > { %v937_v36 = vsel %vm9279_vm3, %v934_v34, %v932_v35  ;;  %v936_v37 = vsel %vm9279_vm3, %v932_v35, %v934_v34  ;;  %v6175_v38 = vpop.permute.xlu2 %1196  ;;  %vm9297_vm3 = vcmp.lt.s32.totalorder %v6102_v4, 115 }
  0xb6   : > { %v945_v39 = vmul.f32 %v941_v32, %v937_v36  ;;  %v946_v40 = vmul.f32 %v942_v33, %v936_v37  ;;  %v1186_v32 = vperm.slane %v6280_v30, 0  ;;  %v870_v33 = vperm.slane %v5442_v29, 1 }
  0xb8   : > { %1401 = vmatpush.msra.mxu0 %v945_v39  ;;  %1461 = vmatpush.msra.mxu3 %v946_v40 }
  0xba   : > { %1050 = vrot.lane.b32.xlu1 %v6023_v0, %s9262_s28  ;;  %753 = vrot.lane.b32.xlu0 %v6032_v1, %s9258_s15  ;;  %s9270_s15 = smov 1  }
  0xbc   : > { %v914_v46 = vpop.permute.xlu1 %913  ;;  %v6192_v47 = vpop.permute.xlu0 %1232  ;;  %1052 = vrot.lane.b32.xlu2 %v6032_v1, %s9262_s28  ;;  %s9268_s28 = smov 126  }
  0xbd   : > { %v919_v48 = vsel %vm9280_vm4, %v916_v13, %v914_v46  ;;  %v1235_v49 = vsel %vm9287_vm5, %v6129_v10, %v6192_v47  ;;  %v918_v50 = vsel %vm9280_vm4, %v914_v46, %v916_v13  ;;  %v6204_v51 = vpop.permute.xlu2 %1176  ;;  %vm1288_vm4 = vcmp.lt.s32.totalorder %v6102_v4, 94 }
  0xbe   : > { %v927_v52 = vmul.f32 %v923_v43, %v919_v48  ;;  %v1244_v53 = vmul.f32 %v1240_v44, %v1235_v49  ;;  %v928_v54 = vmul.f32 %v924_v45, %v918_v50  ;;  %v6306_v45 = vld [vmem:[%s9371_s11 + $0x32] ss:$8 sm:$0x3] }
  0xbf   : > { %v1168_v46 = vperm.slane %v6306_v45, 0 }
  0xc0   : > { %1402 = vmatpush.msra.mxu0 %v927_v52  ;;  %1420 = vmatpush.msra.mxu1 %v1244_v53 }
  0xc1   : > { %1462 = vmatpush.msra.mxu3 %v928_v54  ;;  %v5441_v54 = vld [vmem:[%s9371_s11 + $0x10] ss:$8 sm:$0x3] }
  0xc2   : > { %1268 = vrot.lane.b32.xlu1 %v6032_v1, %s9260_s27  ;;  %1266 = vrot.lane.b32.xlu0 %v6023_v0, %s9260_s27 }
  0xc4   : > { %v6217_v57 = vpop.permute.xlu1 %1214  ;;  %v6219_v58 = vpop.permute.xlu0 %1212  ;;  %733 = vrot.lane.b32.xlu2 %v6023_v0, %s9266_s20 }
  0xc5   : > { %v1217_v59 = vsel %vm9329_vm6, %v6219_v58, %v6217_v57  ;;  %v862_v60 = vpop.permute.xlu2 %861 }
  0xc6   : > { %v1226_v61 = vmul.f32 %v1222_v56, %v1217_v59  ;;  %v6328_v56 = vld [vmem:[%s9371_s11 + $0x31] ss:$8 sm:$0x3]  ;;  %v851_v59 = vperm.slane %v5441_v54, 0 }
  0xc8   : > { %1421 = vmatpush.msra.mxu1 %v1226_v61  ;;  %v852_v61 = vperm.slane %v5441_v54, 1 }
  0xca   : > { %1032 = vrot.lane.b32.xlu1 %v6023_v0, %s9268_s28  ;;  %735 = vrot.lane.b32.xlu0 %v6032_v1, %s9266_s20  ;;  %s5610_s20 = smul.u32 96, %s6011_s16 }
  0xcc   : > { %v6242_v9 = vpop.permute.xlu1 %1194  ;;  %v898_v11 = vpop.permute.xlu0 %897  ;;  %1034 = vrot.lane.b32.xlu2 %v6032_v1, %s9268_s28  ;;  %s9284_s28 = smov 35   ;;  %s6508_s27 = scalar_lea.vmem %s9372_s2, %s5610_s20 }
  0xcd   : > { %v901_v12 = vsel %vm9277_vm7, %v898_v11, %v6155_v24  ;;  %v1199_v13 = vsel %vm1198_vm8, %v6242_v9, %v6175_v38  ;;  %v900_v14 = vsel %vm9277_vm7, %v6155_v24, %v898_v11  ;;  %v6256_v15 = vpop.permute.xlu2 %841  ;;  %vm1306_vm7 = vcmp.lt.s32.totalorder %v6102_v4, 93  ;;  %9373 = sst [smem:[#allocation15_spill]] %s6508_s27  ;;  %s9379_s20 = smov 97  }
  0xce   : > { %v909_v16 = vmul.f32 %v905_v2, %v901_v12  ;;  %v1208_v17 = vmul.f32 %v1204_v6, %v1199_v13  ;;  %v910_v18 = vmul.f32 %v906_v8, %v900_v14  ;;  %s9388_s2 = smov 17  }
  0xd0   : > { %1403 = vmatpush.msra.mxu0 %v909_v16  ;;  %1422 = vmatpush.msra.mxu1 %v1208_v17  ;;  %v5440_v16 = vld [vmem:[%s9371_s11 + $0x7] ss:$8 sm:$0x3] }
  0xd1   : > { %1463 = vmatpush.msra.mxu3 %v910_v18  ;;  %v833_v18 = vperm.slane %v5440_v16, 0  ;;  %v834_v19 = vperm.slane %v5440_v16, 1 }
  0xd2   : > { %717 = vrot.lane.b32.xlu1 %v6032_v1, %s9264_s19  ;;  %715 = vrot.lane.b32.xlu0 %v6023_v0, %s9264_s19  ;;  %s9378_s19 = smov 13  }
  0xd4   : > { %v880_v22 = vpop.permute.xlu1 %879  ;;  %v878_v23 = vpop.permute.xlu0 %877  ;;  %1014 = vrot.lane.b32.xlu2 %v6023_v0, %s9289_s21 }
  0xd5   : > { %v883_v24 = vsel %vm9274_vm9, %v880_v22, %v878_v23  ;;  %v882_v25 = vsel %vm9274_vm9, %v878_v23, %v880_v22  ;;  %v6272_v26 = vpop.permute.xlu2 %1142  ;;  %vm1108_vm9 = vcmp.lt.s32.totalorder %v6102_v4, 113 }
  0xd6   : > { %v891_v27 = vmul.f32 %v887_v20, %v883_v24  ;;  %v892_v28 = vmul.f32 %v888_v21, %v882_v25  ;;  %v5439_v25 = vld [vmem:[%s9371_s11 + $0x6] ss:$8 sm:$0x3] }
  0xd7   : > { %v815_v29 = vperm.slane %v5439_v25, 0 }
  0xd8   : > { %1404 = vmatpush.msra.mxu0 %v891_v27  ;;  %1464 = vmatpush.msra.mxu3 %v892_v28  ;;  %v6359_v27 = vld [vmem:[%s9371_s11 + $0x30] ss:$8 sm:$0x3] }
  0xda   : > { %696 = vrot.lane.b32.xlu1 %v6023_v0, %s9284_s28  ;;  %1016 = vrot.lane.b32.xlu0 %v6032_v1, %s9289_s21  ;;  %s6670_s21 = sshll.u32 %s5976_s17, 7  ;;  %s9377_s17 = smov 98  }
  0xdb   : > { %9376 = sst [smem:[#allocation17_spill]] %s6670_s21 }
  0xdc   : > { %v860_v34 = vpop.permute.xlu1 %859  ;;  %v6289_v35 = vpop.permute.xlu0 %1178  ;;  %698 = vrot.lane.b32.xlu2 %v6032_v1, %s9284_s28  ;;  %s5606_s28 = sshll.u32 %s6011_s16, 5  ;;  %s9402_s16 = smov 125  }
  0xdd   : > { %v865_v36 = vsel %vm9276_vm10, %v862_v60, %v860_v34  ;;  %v1181_v37 = vsel %vm1180_vm11, %v6204_v51, %v6289_v35  ;;  %v864_v39 = vsel %vm9276_vm10, %v860_v34, %v862_v60  ;;  %v6301_v40 = vpop.permute.xlu2 %1122  ;;  %v1150_v60 = vperm.slane %v6328_v56, 0 }
  0xde   : > { %v873_v41 = vmul.f32 %v869_v31, %v865_v36  ;;  %v1190_v43 = vmul.f32 %v1186_v32, %v1181_v37  ;;  %v874_v44 = vmul.f32 %v870_v33, %v864_v39  ;;  %v1132_v31 = vperm.slane %v6359_v27, 0 }
  0xdf   : > { %v816_v32 = vperm.slane %v5439_v25, 1  ;;  %vm1090_vm10 = vcmp.lt.s32.totalorder %v6102_v4, 114 }
  0xe0   : > { %1405 = vmatpush.msra.mxu0 %v873_v41  ;;  %1423 = vmatpush.msra.mxu1 %v1190_v43 }
  0xe1   : > { %1465 = vmatpush.msra.mxu3 %v874_v44 }
  0xe2   : > { %987 = vrot.lane.b32.xlu1 %v6032_v1, %s9270_s15  ;;  %985 = vrot.lane.b32.xlu0 %v6023_v0, %s9270_s15  ;;  %s6567_s15 = scalar_lea.vmem %s9374_s3, %s5606_s28  ;;  %s6673_s28 = sld [smem:[#allocation3 + %s6670_s21]] }
  0xe3   : > { %9375 = sst [smem:[#allocation16_spill]] %s6567_s15  ;;  %s9389_s3 = smov 113  }
  0xe4   : > { %v6314_v48 = vpop.permute.xlu1 %1160  ;;  %v6316_v49 = vpop.permute.xlu0 %1158 }
  0xe5   : > { %v1163_v50 = vsel %vm1162_vm12, %v6316_v49, %v6314_v48  ;;  %v808_v52 = vpop.permute.xlu2 %807 }
  0xe6   : > { %v1172_v53 = vmul.f32 %v1168_v46, %v1163_v50  ;;  %v6379_v46 = vld [vmem:[%s9371_s11 + $0x27] ss:$8 sm:$0x3] }
  0xe7   : > { %v1114_v50 = vperm.slane %v6379_v46, 0 }
  0xe8   : > { %1424 = vmatpush.msra.mxu1 %v1172_v53 }
  0xec   : > { %v6333_v62 = vpop.permute.xlu1 %1140  ;;  %v844_v2 = vpop.permute.xlu0 %843 }
  0xed   : > { %v847_v6 = vsel %vm9272_vm13, %v844_v2, %v6256_v15  ;;  %v1145_v8 = vsel %vm1144_vm14, %v6333_v62, %v6272_v26  ;;  %v846_v11 = vsel %vm9272_vm13, %v6256_v15, %v844_v2  ;;  %v788_v17 = vpop.permute.xlu2 %787  ;;  %vm9275_vm13 = vcmp.lt.s32.totalorder %v6102_v4, 29  ;;  %v6397_v2 = vld [vmem:[%s9371_s11 + $0x26] ss:$8 sm:$0x3] }
  0xee   : > { %v855_v12 = vmul.f32 %v851_v59, %v847_v6  ;;  %v1154_v13 = vmul.f32 %v1150_v60, %v1145_v8  ;;  %v856_v14 = vmul.f32 %v852_v61, %v846_v11  ;;  %v5438_v61 = vld [vmem:[%s9371_s11 + $0x5] ss:$8 sm:$0x3]  ;;  %v1096_v8 = vperm.slane %v6397_v2, 0 }
  0xef   : > { %v797_v6 = vperm.slane %v5438_v61, 0  ;;  %v798_v11 = vperm.slane %v5438_v61, 1 }
  0xf0   : > { %1406 = vmatpush.msra.mxu0 %v855_v12  ;;  %1425 = vmatpush.msra.mxu1 %v1154_v13 }
  0xf1   : > { %1466 = vmatpush.msra.mxu3 %v856_v14 }
  0xf4   : > { %v826_v20 = vpop.permute.xlu1 %825  ;;  %v824_v21 = vpop.permute.xlu0 %823 }
  0xf5   : > { %v829_v15 = vsel %vm9273_vm15, %v826_v20, %v824_v21  ;;  %v828_v22 = vsel %vm9273_vm15, %v824_v21, %v826_v20  ;;  %v6362_v28 = vpop.permute.xlu2 %1088  ;;  %vm1126_vm15 = vcmp.lt.s32.totalorder %v6102_v4, 112 }
  0xf6   : > { %v837_v23 = vmul.f32 %v833_v18, %v829_v15  ;;  %v838_v24 = vmul.f32 %v834_v19, %v828_v22  ;;  %v6417_v22 = vld [vmem:[%s9371_s11 + $0x42] ss:$8 sm:$0x3] }
  0xf8   : > { %1407 = vmatpush.msra.mxu0 %v837_v23  ;;  %1467 = vmatpush.msra.mxu3 %v838_v24  ;;  %v1312_v23 = vperm.slane %v6417_v22, 0 }
  0xfc   : > { %v806_v33 = vpop.permute.xlu1 %805  ;;  %v6366_v34 = vpop.permute.xlu0 %1124 }
  0xfd   : > { %v811_v36 = vsel %vm9275_vm13, %v808_v52, %v806_v33  ;;  %v1127_v37 = vsel %vm1126_vm15, %v6301_v40, %v6366_v34  ;;  %v810_v39 = vsel %vm9275_vm13, %v806_v33, %v808_v52  ;;  %v770_v53 = vpop.permute.xlu2 %769  ;;  %vm9278_vm13 = vcmp.lt.s32.totalorder %v6102_v4, 30 }
  0xfe   : > { %v819_v41 = vmul.f32 %v815_v29, %v811_v36  ;;  %v1136_v43 = vmul.f32 %v1132_v31, %v1127_v37  ;;  %v820_v44 = vmul.f32 %v816_v32, %v810_v39  ;;  %v5437_v31 = vld [vmem:[%s9371_s11 + $0x4] ss:$8 sm:$0x3]  ;;  %v6435_v32 = vld [vmem:[%s9371_s11 + $0x25] ss:$8 sm:$0x3] }
  0xff   : > { %v779_v36 = vperm.slane %v5437_v31, 0  ;;  %v1078_v37 = vperm.slane %v6435_v32, 0  ;;  %v780_v39 = vperm.slane %v5437_v31, 1 }
 0x100   : > { %1408 = vmatpush.msra.mxu0 %v819_v41  ;;  %1426 = vmatpush.msra.mxu1 %v1136_v43 }
 0x101   : > { %1468 = vmatpush.msra.mxu3 %v820_v44 }
 0x104   : > { %v6383_v54 = vpop.permute.xlu1 %1106  ;;  %v6385_v59 = vpop.permute.xlu0 %1104 }
 0x105   : > { %v1109_v52 = vsel %vm1108_vm9, %v6385_v59, %v6383_v54  ;;  %v6412_v19 = vpop.permute.xlu2 %1070 }
 0x106   : > { %v1118_v60 = vmul.f32 %v1114_v50, %v1109_v52 }
 0x108   : > { %1427 = vmatpush.msra.mxu1 %v1118_v60 }
 0x10c   : > { %v6402_v12 = vpop.permute.xlu1 %1086  ;;  %v790_v13 = vpop.permute.xlu0 %789 }
 0x10d   : > { %v793_v14 = vsel %vm9278_vm13, %v790_v13, %v788_v17  ;;  %v1091_v16 = vsel %vm1090_vm10, %v6402_v12, %v6362_v28  ;;  %v792_v18 = vsel %vm9278_vm13, %v788_v17, %v790_v13  ;;  %vm9281_vm13 = vcmp.lt.s32.totalorder %v6102_v4, 31 }
 0x10e   : > { %v801_v20 = vmul.f32 %v797_v6, %v793_v14  ;;  %v1100_v21 = vmul.f32 %v1096_v8, %v1091_v16  ;;  %v802_v15 = vmul.f32 %v798_v11, %v792_v18  ;;  %v752_v33 = vpop.permute.xlu2 %751  ;;  %v6453_v8 = vld [vmem:[%s9371_s11 + $0x41] ss:$8 sm:$0x3] }
 0x10f   : > { %v1294_v13 = vperm.slane %v6453_v8, 0 }
 0x110   : > { %1409 = vmatpush.msra.mxu0 %v801_v20  ;;  %1428 = vmatpush.msra.mxu1 %v1100_v21  ;;  %v5436_v20 = vld [vmem:[%s9371_s11 + $0x3] ss:$8 sm:$0x3]  ;;  %v6473_v21 = vld [vmem:[%s9371_s11 + $0x24] ss:$8 sm:$0x3] }
 0x111   : > { %1469 = vmatpush.msra.mxu3 %v802_v15  ;;  %v761_v15 = vperm.slane %v5436_v20, 0 }
 0x114   : > { %v6421_v24 = vpop.permute.xlu1 %1304  ;;  %v6423_v17 = vpop.permute.xlu0 %1302 }
 0x115   : > { %v1307_v25 = vsel %vm1306_vm7, %v6423_v17, %v6421_v24 }
 0x116   : > { %v1316_v29 = vmul.f32 %v1312_v23, %v1307_v25  ;;  %v6455_v11 = vpop.permute.xlu2 %1052  ;;  %v1060_v23 = vperm.slane %v6473_v21, 0  ;;  %v762_v25 = vperm.slane %v5436_v20, 1 }
 0x118   : > { %1452 = vmatpush.msra.mxu2 %v1316_v29 }
 0x11c   : > { %v6440_v41 = vpop.permute.xlu1 %1068  ;;  %v772_v43 = vpop.permute.xlu0 %771 }
 0x11d   : > { %v775_v44 = vsel %vm9281_vm13, %v772_v43, %v770_v53  ;;  %v1073_v50 = vsel %vm9297_vm3, %v6440_v41, %v6412_v19  ;;  %v774_v52 = vsel %vm9281_vm13, %v770_v53, %v772_v43  ;;  %vm9286_vm13 = vcmp.lt.s32.totalorder %v6102_v4, 32 }
 0x11e   : > { %v783_v60 = vmul.f32 %v779_v36, %v775_v44  ;;  %v1082_v61 = vmul.f32 %v1078_v37, %v1073_v50  ;;  %v784_v6 = vmul.f32 %v780_v39, %v774_v52  ;;  %v734_v29 = vpop.permute.xlu2 %733 }
 0x120   : > { %1410 = vmatpush.msra.mxu0 %v783_v60  ;;  %1429 = vmatpush.msra.mxu1 %v1082_v61  ;;  %v6491_v60 = vld [vmem:[%s9371_s11 + $0x40] ss:$8 sm:$0x3] }
 0x121   : > { %1470 = vmatpush.msra.mxu3 %v784_v6  ;;  %v1276_v61 = vperm.slane %v6491_v60, 0  ;;  %v1259_v6 = vperm.slane %v6107_v5, 1 }
 0x124   : > { %v6459_v14 = vpop.permute.xlu1 %1286  ;;  %v6461_v53 = vpop.permute.xlu0 %1284 }
 0x125   : > { %v1289_v16 = vsel %vm1288_vm4, %v6461_v53, %v6459_v14 }
 0x126   : > { %v1298_v18 = vmul.f32 %v1294_v13, %v1289_v16  ;;  %v1254_v16 = vsel %vm9288_vm0, %v6117_v7, %v6100_v3  ;;  %v6519_v3 = vpop.permute.xlu2 %1034  ;;  %v5435_v7 = vld [vmem:[%s9371_s11 + $0x2] ss:$8 sm:$0x3]  ;;  %vm9323_vm0 = vcmp.lt.s32.totalorder %v6102_v4, 126 }
 0x128   : > { %1453 = vmatpush.msra.mxu2 %v1298_v18  ;;  %v1241_v18 = vperm.slane %v6183_v42, 1  ;;  %v6528_v42 = vld [vmem:[%s9371_s11 + $0x23] ss:$8 sm:$0x3] }
 0x12c   : > { %v6478_v31 = vpop.permute.xlu1 %1050  ;;  %v754_v36 = vpop.permute.xlu0 %753 }
 0x12d   : > { %v757_v37 = vsel %vm9286_vm13, %v754_v36, %v752_v33  ;;  %v1055_v39 = vsel %vm1054_vm2, %v6478_v31, %v6455_v11  ;;  %v756_v43 = vsel %vm9286_vm13, %v752_v33, %v754_v36  ;;  %v6531_v36 = vld [vmem:[%s6508_s27 + $0x10] sm:$0xff]  ;;  %vm9324_vm13 = vcmask 195584  }
 0x12e   : > { %v765_v44 = vmul.f32 %v761_v15, %v757_v37  ;;  %v1064_v50 = vmul.f32 %v1060_v23, %v1055_v39  ;;  %v766_v52 = vmul.f32 %v762_v25, %v756_v43  ;;  %v1236_v15 = vsel %vm9287_vm5, %v6192_v47, %v6129_v10 }
 0x12f   : > { %v1263_v23 = vmul.f32 %v1259_v6, %v1254_v16  ;;  %v1223_v25 = vperm.slane %v6209_v55, 1  ;;  %v1218_v10 = vsel %vm9329_vm6, %v6217_v57, %v6219_v58  ;;  %v1245_v47 = vmul.f32 %v1241_v18, %v1236_v15 }
 0x130   : > { %1411 = vmatpush.msra.mxu0 %v765_v44  ;;  %1430 = vmatpush.msra.mxu1 %v1064_v50  ;;  %v1200_v55 = vsel %vm1198_vm8, %v6175_v38, %v6242_v9  ;;  %v1205_v37 = vperm.slane %v6233_v63, 1  ;;  %vm9293_vm5 = vcmp.lt.s32.totalorder %v6102_v4, 33  ;;  %v743_v39 = vperm.slane %v5435_v7, 0 }
 0x131   : > { %1471 = vmatpush.msra.mxu3 %v766_v52  ;;  %v1042_v43 = vperm.slane %v6528_v42, 0  ;;  %v744_v44 = vperm.slane %v5435_v7, 1  ;;  %v1227_v57 = vmul.f32 %v1223_v25, %v1218_v10  ;;  %v1187_v58 = vperm.slane %v6280_v30, 1  ;;  %v695_v7 = vld [vmem:[%s6567_s15] sm:$0xff] }
 0x132   : > { %v1182_v63 = vsel %vm1180_vm11, %v6289_v35, %v6204_v51  ;;  %v1169_v9 = vperm.slane %v6306_v45, 1  ;;  %v1209_v52 = vmul.f32 %v1205_v37, %v1200_v55  ;;  %v1164_v16 = vsel %vm1162_vm12, %v6314_v48, %v6316_v49 }
 0x133   : > { %v1151_v18 = vperm.slane %v6328_v56, 1  ;;  %v1146_v15 = vsel %vm1144_vm14, %v6272_v26, %v6333_v62  ;;  %v1133_v49 = vperm.slane %v6359_v27, 1  ;;  %v1128_v56 = vsel %vm1126_vm15, %v6366_v34, %v6301_v40 }
 0x134   : > { %v6497_v13 = vpop.permute.xlu1 %1268  ;;  %v6499_v33 = vpop.permute.xlu0 %1266  ;;  %v1173_v48 = vmul.f32 %v1169_v9, %v1164_v16  ;;  %v5891_v10 = vmov 0   ;;  %v1115_v62 = vperm.slane %v6379_v46, 1  ;;  %v1110_v27 = vsel %vm1108_vm9, %v6383_v54, %v6385_v59 }
 0x135   : > { %v1271_v5 = vsel %vm1270_vm1, %v6499_v33, %v6497_v13  ;;  %5688 = vset.pattern.permute.xlu2 %v5891_v10  ;;  %5689 = vset.pattern.permute.xlu0 %v5891_v10  ;;  %v1155_v26 = vmul.f32 %v1151_v18, %v1146_v15  ;;  %v1137_v40 = vmul.f32 %v1133_v49, %v1128_v56  ;;  %v1079_v54 = vperm.slane %v6435_v32, 1 }
 0x136   : > { %v1280_v20 = vmul.f32 %v1276_v61, %v1271_v5  ;;  %v1191_v5 = vmul.f32 %v1187_v58, %v1182_v63  ;;  %1392 = vperm.xlu2 %5688, %v695_v7   ;;  %5690 = vset.pattern.permute.xlu1 %v5891_v10  ;;  %v1119_v59 = vmul.f32 %v1115_v62, %v1110_v27  ;;  %v5451_v58 = vld [vmem:[%s9371_s11 + $0x22] ss:$8 sm:$0x3]  ;;  %v1313_v63 = vperm.slane %v6417_v22, 1 }
 0x137   : > { %v1290_v15 = vsel %vm1288_vm4, %v6459_v14, %v6461_v53  ;;  %v1277_v56 = vperm.slane %v6491_v60, 1 }
 0x138   : > { %1454 = vmatpush.msra.mxu2 %v1280_v20  ;;  %v6577_v20 = vpop.permute.xlu2 %1014 }
 0x139   : > { %5468 = vmatmul.msk.f32.vlgmr.msra.gmra.mxu2 %vm9324_vm13, %v6531_v36 }
 0x13a   : > { %1479 = vmatpush.msrb.mxu2 %v1263_v23 }
 0x13c   : > { %1480 = vmatpush.msrb.mxu2 %v1245_v47  ;;  %v6549_v50 = vpop.permute.xlu1 %1032  ;;  %v736_v38 = vpop.permute.xlu0 %735 }
 0x13d   : > { %v739_v61 = vsel %vm9293_vm5, %v736_v38, %v734_v29  ;;  %v1037_v30 = vsel %vm9323_vm0, %v6549_v50, %v6519_v3  ;;  %v738_v6 = vsel %vm9293_vm5, %v734_v29, %v736_v38  ;;  %v5434_v29 = vld [vmem:[%s9371_s11 + $0x1] ss:$8 sm:$0x3]  ;;  %vm9296_vm5 = vcmp.lt.s32.totalorder %v6102_v4, 34 }
 0x13e   : > { %1481 = vmatpush.msrb.mxu2 %v1227_v57  ;;  %v747_v51 = vmul.f32 %v743_v39, %v739_v61  ;;  %v1046_v35 = vmul.f32 %v1042_v43, %v1037_v30  ;;  %v748_v45 = vmul.f32 %v744_v44, %v738_v6  ;;  %v725_v23 = vperm.slane %v5434_v29, 0  ;;  %v705_v57 = vld [vmem:[%s9371_s11] ss:$8 sm:$0x3] }
 0x13f   : > { %v726_v25 = vperm.slane %v5434_v29, 1  ;;  %v1097_v39 = vperm.slane %v6397_v2, 1  ;;  %v1092_v44 = vsel %vm1090_vm10, %v6362_v28, %v6402_v12  ;;  %v1074_v2 = vsel %vm9297_vm3, %v6412_v19, %v6440_v41  ;;  %v5450_v12 = vld [vmem:[%s9371_s11 + $0x21] ss:$8 sm:$0x3] }
 0x140   : > { %1482 = vmatpush.msrb.mxu2 %v1209_v52  ;;  %1412 = vmatpush.msra.mxu0 %v747_v51  ;;  %v1061_v28 = vperm.slane %v6473_v21, 1  ;;  %v1056_v38 = vsel %vm1054_vm2, %v6455_v11, %v6478_v31  ;;  %v699_v9 = vpop.permute.xlu2 %698  ;;  %v707_v52 = vperm.slane %v705_v57, 0  ;;  %vm9322_vm3 = vcmp.lt.s32.totalorder %v6102_v4, 127 }
 0x141   : > { %1431 = vmatpush.msra.mxu1 %v1046_v35  ;;  %1472 = vmatpush.msra.mxu3 %v748_v45  ;;  %v1101_v32 = vmul.f32 %v1097_v39, %v1092_v44  ;;  %v1024_v19 = vperm.slane %v5451_v58, 0  ;;  %v708_v41 = vperm.slane %v705_v57, 1  ;;  %v1083_v21 = vmul.f32 %v1079_v54, %v1074_v2 }
 0x142   : > { %1483 = vmatpush.msrb.mxu2 %v1191_v5  ;;  %v1043_v61 = vperm.slane %v6528_v42, 1  ;;  %v1295_v30 = vperm.slane %v6453_v8, 1  ;;  %v1006_v6 = vperm.slane %v5450_v12, 0  ;;  %v1065_v31 = vmul.f32 %v1061_v28, %v1056_v38 }
 0x143   : > { %v1038_v22 = vsel %vm9323_vm0, %v6519_v3, %v6549_v50  ;;  %v1308_v35 = vsel %vm1306_vm7, %v6421_v24, %v6423_v17  ;;  %v1025_v45 = vperm.slane %v5451_v58, 1  ;;  %v1007_v5 = vperm.slane %v5450_v12, 1  ;;  %v692_v17 = vld [vmem:[%s6508_s27] sm:$0xff] }
 0x144   : > { %1484 = vmatpush.msrb.mxu2 %v1173_v48  ;;  %v718_v47 = vpop.permute.xlu1 %717  ;;  %v716_v55 = vpop.permute.xlu0 %715  ;;  %v1047_v29 = vmul.f32 %v1043_v61, %v1038_v22  ;;  %v1010_v7 = vmul.f32 %v1006_v6, %v6023_v0  ;;  %v5449_v48 = vld [vmem:[%s9371_s11 + $0x20] ss:$8 sm:$0x3]  ;;  %v1317_v49 = vmul.f32 %v1313_v63, %v1308_v35  ;;  %v1299_v0 = vmul.f32 %v1295_v30, %v1290_v15 }
 0x145   : > { %v721_v34 = vsel %vm9296_vm5, %v718_v47, %v716_v55  ;;  %v720_v37 = vsel %vm9296_vm5, %v716_v55, %v718_v47  ;;  %vm9298_vm5 = vcmp.lt.s32.totalorder %v6102_v4, 35  ;;  %v1011_v14 = vmul.f32 %v1007_v5, %v6032_v1  ;;  %v693_v47 = vld [vmem:[%s6508_s27 + $0x8] sm:$0xff] }
 0x146   : > { %1485 = vmatpush.msrb.mxu2 %v1155_v26  ;;  %v729_v46 = vmul.f32 %v725_v23, %v721_v34  ;;  %v730_v43 = vmul.f32 %v726_v25, %v720_v37  ;;  %v1272_v23 = vsel %vm1270_vm1, %v6497_v13, %v6499_v33  ;;  %v995_v53 = vperm.slane %v5449_v48, 0 }
 0x147   : > { %v996_v25 = vperm.slane %v5449_v48, 1  ;;  %v1281_v26 = vmul.f32 %v1277_v56, %v1272_v23  ;;  %vm9412_vm0 = vcmp.lt.s32.totalorder %v6102_v4, 3 }
 0x148   : > { %1486 = vmatpush.msrb.mxu2 %v1137_v40  ;;  %1413 = vmatpush.msra.mxu0 %v729_v46  ;;  %v1523_v46 = vstv %s6673_s28  ;;  %s9382_s28 = smov 14  }
 0x149   : > { %1473 = vmatpush.msra.mxu3 %v730_v43 }
 0x14a   : > { %1487 = vmatpush.msrb.mxu2 %v1119_v59 }
 0x14c   : > { %1488 = vmatpush.msrb.mxu2 %v1101_v32  ;;  %v697_v51 = vpop.permute.xlu1 %696  ;;  %v1017_v11 = vpop.permute.xlu0 %1016 }
 0x14d   : > { %v704_v8 = vsel %vm9298_vm5, %v699_v9, %v697_v51  ;;  %v1019_v42 = vsel %vm9322_vm3, %v6577_v20, %v1017_v11  ;;  %v703_v16 = vsel %vm9298_vm5, %v697_v51, %v699_v9  ;;  %v1020_v24 = vsel %vm9322_vm3, %v1017_v11, %v6577_v20 }
 0x14e   : > { %1489 = vmatpush.msrb.mxu2 %v1083_v21  ;;  %v711_v18 = vmul.f32 %v707_v52, %v704_v8  ;;  %v1028_v3 = vmul.f32 %v1024_v19, %v1019_v42  ;;  %v712_v50 = vmul.f32 %v708_v41, %v703_v16  ;;  %v1029_v20 = vmul.f32 %v1025_v45, %v1020_v24 }
 0x14f   : > { %vm9299_vm5 = vcmp.lt.s32.totalorder %v6102_v4, 1 }
 0x150   : > { %1490 = vmatpush.msrb.mxu2 %v1065_v31  ;;  %1414 = vmatpush.msra.mxu0 %v711_v18 }
 0x151   : > { %1432 = vmatpush.msra.mxu1 %v1028_v3  ;;  %1474 = vmatpush.msra.mxu3 %v712_v50 }
 0x152   : > { %1491 = vmatpush.msrb.mxu2 %v1047_v29  ;;  %1475 = vmatmul.f32.vlgmr.msra.gmra.mxu3 %v692_v17 }
 0x153   : > { %1512 = vmatpush.msrb.mxu0 %v1317_v49  ;;  %1433 = vmatpush.msra.mxu1 %v1010_v7  ;;  %v5488_v7 = vld [vmem:[%s9371_s11 + $0x16] ss:$8 sm:$0x3] }
 0x154   : > { %1492 = vmatpush.msrb.mxu2 %v1029_v20  ;;  %v988_v60 = vpop.permute.xlu1 %987  ;;  %v986_v10 = vpop.permute.xlu0 %985  ;;  %1415 = vmatmul.f32.vlgmr.msra.gmra.mxu0 %v692_v17  ;;  %v5489_v17 = vld [vmem:[%s9371_s11 + $0x17] ss:$8 sm:$0x3] }
 0x155   : > { %1513 = vmatpush.msrb.mxu0 %v1299_v0  ;;  %v991_v1 = vsel %vm9299_vm5, %v988_v60, %v986_v10  ;;  %v990_v13 = vsel %vm9299_vm5, %v986_v10, %v988_v60  ;;  %v1783_v29 = vperm.slane %v5489_v17, 1  ;;  %v1782_v15 = vperm.slane %v5489_v17, 0 }
 0x156   : > { %1493 = vmatpush.msrb.mxu2 %v1011_v14  ;;  %v999_v33 = vmul.f32 %v995_v53, %v991_v1  ;;  %v1000_v62 = vmul.f32 %v996_v25, %v990_v13  ;;  %v1766_v14 = vperm.slane %v5488_v7, 0  ;;  %v1767_v60 = vperm.slane %v5488_v7, 1  ;;  %v6874_v1 = vld [vmem:[%s9371_s11 + $0x37] ss:$8 sm:$0x3] }
 0x157   : > { %1514 = vmatpush.msrb.mxu0 %v1281_v26  ;;  %v5474_v26 = vld [vmem:[%s6567_s15 + $0x8] sm:$0xff]  ;;  %s2288_s15 = sadd.s32 1, %s6670_s21 }
 0x158   : > { %1434 = vmatpush.msra.mxu1 %v999_v33  ;;  %1494 = vmatpush.msrb.mxu2 %v1000_v62  ;;  %v6881_v62 = vld [vmem:[%s9371_s11 + $0x36] ss:$8 sm:$0x3] }
 0x159   : > { %1435 = vmatmul.f32.vlgmr.msra.gmra.mxu1 %v693_v47  ;;  %1495 = vmatmul.f32.vlgmr.msrb.gmra.mxu2 %v693_v47  ;;  %v2032_v47 = vperm.slane %v6874_v1, 0 }
 0x15c   : > { %5469 = vmatmul.msk.f32.vlgmr.msrb.gmra.mxu0 %vm9324_vm13, %v6531_v36  ;;  %vm9413_vm13 = vmmov %vm9412_vm0 }
 0x190   : > { %v1393_v55 = vpop.permute.xlu2 %1392 }
 0x1bc   : > { %v1456_v39 = vpop.f32.mrf.mxu2 }
 0x1d1   : > { %v1416_v27 = vpop.f32.mrf.mxu0 }
 0x1d2   : > { %v1417_v40 = vadd.f32 %v1416_v27, %v1393_v55 }
 0x1d5   : > { %v1476_v36 = vpop.f32.mrf.mxu3 }
 0x1d6   : > { %v1436_v34 = vpop.f32.mrf.mxu1  ;;  %v1477_v57 = vadd.f32 %v1476_v36, %v1393_v55 }
 0x1d7   : > { %v1437_v37 = vadd.f32 %v1436_v34, %v1417_v40  ;;  %v6893_v40 = vld [vmem:[%s9371_s11 + $0x35] ss:$8 sm:$0x3] }
 0x1d9   : > { %v1457_v43 = vadd.f32 %v1456_v39, %v1437_v37  ;;  %v1516_v2 = vpop.f32.mrf.mxu0  ;;  %v2016_v37 = vperm.slane %v6881_v62, 0 }
 0x1db   : > { %vm1521_vm5 = vcmp.gt.f32.partialorder %v1457_v43, 0.0  ;;  %v1524_v44 = vmul.f32 %v1523_v46, %v1457_v43 }
 0x1dc   : > { %v1496_v59 = vpop.f32.mrf.mxu2 }
 0x1dd   : > { %v6676_v54 = vsel %vm1521_vm5, %v1457_v43, %v1524_v44  ;;  %v1497_v58 = vadd.f32 %v1496_v59, %v1477_v57  ;;  %v2000_v44 = vperm.slane %v6893_v40, 0  ;;  %v5487_v59 = vld [vmem:[%s9371_s11 + $0x15] ss:$8 sm:$0x3] }
 0x1de   : > { %1758 = vrot.lane.b32.xlu1 %v6676_v54, %s9302_s23  ;;  %2024 = vrot.lane.b32.xlu2 %v6676_v54, %s9300_s25  ;;  %s9383_s25 = smov 110   ;;  %s9384_s23 = smov 16  }
 0x1df   : > { %1774 = vrot.lane.b32.xlu0 %v6676_v54, %s9304_s24  ;;  %s9385_s24 = smov 109   ;;  %v1517_v28 = vadd.f32 %v1516_v2, %v1497_v58  ;;  %v5486_v58 = vld [vmem:[%s9371_s11 + $0x14] ss:$8 sm:$0x3] }
 0x1e1   : > { %v1525_v12 = vmul.f32 %v1523_v46, %v1517_v28  ;;  %vm1522_vm5 = vcmp.gt.f32.partialorder %v1517_v28, 0.0 }
 0x1e3   : > { %v6720_v32 = vsel %vm1522_vm5, %v1517_v28, %v1525_v12  ;;  %vm9410_vm5 = vcmp.lt.s32.totalorder %v6102_v4, 2  ;;  %v1750_v28 = vperm.slane %v5487_v59, 0  ;;  %v1751_v12 = vperm.slane %v5487_v59, 1 }
 0x1e4   : > { %vm9411_vm3 = vmmov %vm9410_vm5 }
 0x1e6   : > { %1992 = vrot.lane.b32.xlu1 %v6676_v54, %s9377_s17  ;;  %1742 = vrot.lane.b32.xlu2 %v6676_v54, %s9378_s19 }
 0x1e7   : > { %2008 = vrot.lane.b32.xlu0 %v6676_v54, %s9379_s20 }
 0x1ee   : > { %1710 = vrot.lane.b32.xlu1 %v6676_v54, %s9380_s30  ;;  %1976 = vrot.lane.b32.xlu2 %v6676_v54, %s9381_s26 }
 0x1ef   : > { %1726 = vrot.lane.b32.xlu0 %v6676_v54, %s9382_s28 }
 0x1f6   : > { %1944 = vrot.lane.b32.xlu1 %v6676_v54, %s9383_s25  ;;  %1694 = vrot.lane.b32.xlu2 %v6676_v54, %s9384_s23 }
 0x1f7   : > { %1960 = vrot.lane.b32.xlu0 %v6676_v54, %s9385_s24 }
 0x1fe   : > { %1662 = vrot.lane.b32.xlu1 %v6676_v54, %s9386_s0  ;;  %1928 = vrot.lane.b32.xlu2 %v6676_v54, %s9387_s1 }
 0x1ff   : > { %1678 = vrot.lane.b32.xlu0 %v6676_v54, %s9388_s2 }
 0x206   : > { %1896 = vrot.lane.b32.xlu1 %v6676_v54, %s9389_s3  ;;  %1646 = vrot.lane.b32.xlu2 %v6676_v54, %s9390_s12 }
 0x207   : > { %1912 = vrot.lane.b32.xlu0 %v6676_v54, %s9391_s13 }
 0x20e   : > { %2072 = vrot.lane.b32.xlu1 %v6676_v54, %s9392_s29  ;;  %1880 = vrot.lane.b32.xlu2 %v6676_v54, %s9393_s14 }
 0x20f   : > { %1630 = vrot.lane.b32.xlu0 %v6676_v54, %s9394_s9 }
 0x216   : > { %1776 = vrot.lane.b32.xlu1 %v6720_v32, %s9395_s7  ;;  %1864 = vrot.lane.b32.xlu2 %v6676_v54, %s9396_s10 }
 0x217   : > { %1614 = vrot.lane.b32.xlu0 %v6676_v54, %s9397_s4 }
 0x21e   : > { %2010 = vrot.lane.b32.xlu1 %v6720_v32, %s9379_s20  ;;  %1760 = vrot.lane.b32.xlu2 %v6720_v32, %s9398_s8 }
 0x21f   : > { %2026 = vrot.lane.b32.xlu0 %v6720_v32, %s9399_s6 }
 0x226   : > { %1728 = vrot.lane.b32.xlu1 %v6720_v32, %s9382_s28  ;;  %1994 = vrot.lane.b32.xlu2 %v6720_v32, %s9377_s17 }
 0x227   : > { %1744 = vrot.lane.b32.xlu0 %v6720_v32, %s9378_s19 }
 0x22e   : > { %1962 = vrot.lane.b32.xlu1 %v6720_v32, %s9385_s24  ;;  %1712 = vrot.lane.b32.xlu2 %v6720_v32, %s9380_s30 }
 0x22f   : > { %1978 = vrot.lane.b32.xlu0 %v6720_v32, %s9381_s26 }
 0x236   : > { %1680 = vrot.lane.b32.xlu1 %v6720_v32, %s9388_s2  ;;  %1946 = vrot.lane.b32.xlu2 %v6720_v32, %s9383_s25 }
 0x237   : > { %1696 = vrot.lane.b32.xlu0 %v6720_v32, %s9384_s23 }
 0x238   : > { %v6752_v38 = vpop.permute.xlu2 %2024 }
 0x23e   : > { %1914 = vrot.lane.b32.xlu1 %v6720_v32, %s9391_s13  ;;  %1664 = vrot.lane.b32.xlu2 %v6720_v32, %s9386_s0  ;;  %s9409_s13 = smov 35  }
 0x23f   : > { %1930 = vrot.lane.b32.xlu0 %v6720_v32, %s9387_s1 }
 0x240   : > { %v6760_v63 = vpop.permute.xlu2 %1742 }
 0x246   : > { %1632 = vrot.lane.b32.xlu1 %v6720_v32, %s9394_s9  ;;  %1898 = vrot.lane.b32.xlu2 %v6720_v32, %s9389_s3  ;;  %s9460_s3 = smov 112  }
 0x247   : > { %1648 = vrot.lane.b32.xlu0 %v6720_v32, %s9390_s12 }
 0x248   : > { %v6768_v9 = vpop.permute.xlu2 %1976 }
 0x24e   : > { %1616 = vrot.lane.b32.xlu1 %v6720_v32, %s9397_s4  ;;  %2074 = vrot.lane.b32.xlu2 %v6720_v32, %s9392_s29  ;;  %s9405_s29 = smov 126  }
 0x24f   : > { %1882 = vrot.lane.b32.xlu0 %v6720_v32, %s9393_s14  ;;  %s9408_s14 = smov 34  }
 0x250   : > { %v1759_v52 = vpop.permute.xlu1 %1758  ;;  %v6776_v19 = vpop.permute.xlu2 %1694 }
 0x251   : > { %v1775_v41 = vpop.permute.xlu0 %1774 }
 0x256   : > { %2056 = vrot.lane.b32.xlu1 %v6676_v54, %s9400_s18  ;;  %2058 = vrot.lane.b32.xlu2 %v6720_v32, %s9400_s18  ;;  %s9404_s18 = smov 32  }
 0x257   : > { %1866 = vrot.lane.b32.xlu0 %v6720_v32, %s9396_s10  ;;  %s9403_s10 = smov 95  }
 0x258   : > { %v6784_v21 = vpop.permute.xlu1 %1992  ;;  %v6786_v61 = vpop.permute.xlu2 %1928 }
 0x259   : > { %v6788_v30 = vpop.permute.xlu0 %2008 }
 0x25e   : > { %1600 = vrot.lane.b32.xlu1 %v6720_v32, %s9401_s5  ;;  %1848 = vrot.lane.b32.xlu2 %v6676_v54, %s9402_s16 }
 0x25f   : > { %1598 = vrot.lane.b32.xlu0 %v6676_v54, %s9401_s5 }
 0x260   : > { %v6796_v6 = vpop.permute.xlu1 %1710  ;;  %v6798_v51 = vpop.permute.xlu2 %1646 }
 0x261   : > { %v6800_v11 = vpop.permute.xlu0 %1726 }
 0x266   : > { %2040 = vrot.lane.b32.xlu1 %v6676_v54, %s9403_s10  ;;  %2042 = vrot.lane.b32.xlu2 %v6720_v32, %s9403_s10  ;;  %s9406_s10 = smov 33  }
 0x267   : > { %1850 = vrot.lane.b32.xlu0 %v6720_v32, %s9402_s16  ;;  %s9407_s16 = smov 127  }
 0x268   : > { %v6808_v31 = vpop.permute.xlu1 %1944  ;;  %v6810_v22 = vpop.permute.xlu2 %1880 }
 0x269   : > { %v6812_v35 = vpop.permute.xlu0 %1960 }
 0x26e   : > { %1584 = vrot.lane.b32.xlu1 %v6720_v32, %s9404_s18  ;;  %1832 = vrot.lane.b32.xlu2 %v6676_v54, %s9405_s29 }
 0x26f   : > { %1582 = vrot.lane.b32.xlu0 %v6676_v54, %s9404_s18 }
 0x270   : > { %v6820_v45 = vpop.permute.xlu1 %1662  ;;  %v6822_v8 = vpop.permute.xlu2 %1864 }
 0x271   : > { %v6824_v42 = vpop.permute.xlu0 %1678 }
 0x276   : > { %1566 = vrot.lane.b32.xlu1 %v6676_v54, %s9406_s10  ;;  %1568 = vrot.lane.b32.xlu2 %v6720_v32, %s9406_s10  ;;  %s9477_s10 = smov 94  }
 0x277   : > { %1834 = vrot.lane.b32.xlu0 %v6720_v32, %s9405_s29  ;;  %s9414_s29 = smov 1  }
 0x278   : > { %v6832_v16 = vpop.permute.xlu1 %1896  ;;  %v1761_v5 = vpop.permute.xlu2 %1760 }
 0x279   : > { %v6834_v18 = vpop.permute.xlu0 %1912  ;;  %v1763_v25 = vsel %vm9412_vm0, %v1761_v5, %v1759_v52  ;;  %v1762_v10 = vsel %vm9413_vm13, %v1759_v52, %v1761_v5  ;;  %vm9415_vm0 = vcmp.lt.s32.totalorder %v6102_v4, 96  ;;  %v5485_v5 = vld [vmem:[%s9371_s11 + $0x13] ss:$8 sm:$0x3]  ;;  %vm9417_vm13 = vcmp.lt.s32.totalorder %v6102_v4, 14 }
 0x27a   : > { %v1770_v13 = vmul.f32 %v1766_v14, %v1763_v25  ;;  %v1771_v33 = vmul.f32 %v1767_v60, %v1762_v10  ;;  %v1719_v25 = vperm.slane %v5485_v5, 1 }
 0x27e   : > { %1818 = vrot.lane.b32.xlu1 %v6720_v32, %s9407_s16  ;;  %1550 = vrot.lane.b32.xlu2 %v6676_v54, %s9408_s14 }
 0x27f   : > { %1816 = vrot.lane.b32.xlu0 %v6676_v54, %s9407_s16  ;;  %s9469_s16 = smov 35  }
 0x280   : > { %v6842_v3 = vpop.permute.xlu1 %2072  ;;  %v6844_v50 = vpop.permute.xlu2 %1994 }
 0x281   : > { %v6846_v24 = vpop.permute.xlu0 %1630  ;;  %v1996_v36 = vsel %vm9329_vm6, %v6784_v21, %v6844_v50  ;;  %vm9421_vm6 = vcmp.lt.s32.totalorder %v6102_v4, 15 }
 0x282   : > { %v2004_v2 = vmul.f32 %v2000_v44, %v1996_v36 }
 0x286   : > { %1534 = vrot.lane.b32.xlu1 %v6676_v54, %s9409_s13  ;;  %1536 = vrot.lane.b32.xlu2 %v6720_v32, %s9409_s13  ;;  %s9468_s13 = smov 114  }
 0x287   : > { %1552 = vrot.lane.b32.xlu0 %v6720_v32, %s9408_s14 }
 0x288   : > { %v1777_v48 = vpop.permute.xlu1 %1776  ;;  %v1713_v49 = vpop.permute.xlu2 %1712 }
 0x289   : > { %v1778_v56 = vsel %vm9410_vm5, %v1775_v41, %v1777_v48  ;;  %v6862_v20 = vpop.permute.xlu0 %1614  ;;  %v1779_v23 = vsel %vm9411_vm3, %v1777_v48, %v1775_v41  ;;  %vm9416_vm3 = vcmp.lt.s32.totalorder %v6102_v4, 97  ;;  %vm9418_vm5 = vcmp.lt.s32.totalorder %v6102_v4, 13 }
 0x28a   : > { %v1787_v0 = vmul.f32 %v1783_v29, %v1778_v56  ;;  %v1786_v53 = vmul.f32 %v1782_v15, %v1779_v23  ;;  %v1734_v29 = vperm.slane %v5486_v58, 0  ;;  %v1735_v15 = vperm.slane %v5486_v58, 1 }
 0x28b   : > { %v1714_v60 = vsel %vm9421_vm6, %v6796_v6, %v1713_v49 }
 0x28c   : > { %2166 = vmatpush.msrb.mxu1 %v1786_v53  ;;  %2226 = vmatpush.msra.mxu0 %v1787_v0  ;;  %v1718_v53 = vperm.slane %v5485_v5, 0  ;;  %v5483_v5 = vld [vmem:[%s9371_s11 + $0x11] ss:$8 sm:$0x3] }
 0x28e   : > { %1792 = vrot.lane.b32.xlu1 %v6720_v32, %s9414_s29  ;;  %2160 = vperm.xlu2 %5688, %v5474_v26  }
 0x28f   : > { %1790 = vrot.lane.b32.xlu0 %v6676_v54, %s9414_s29  ;;  %2167 = vmatpush.msrb.mxu1 %v1770_v13  ;;  %v6948_v13 = vld [vmem:[%s9371_s11 + $0x33] ss:$8 sm:$0x3]  ;;  %s2289_s29 = sld [smem:[#allocation3 + %s2288_s15]]  ;;  %s9478_s15 = smov 115  }
 0x290   : > { %2227 = vmatpush.msra.mxu0 %v1771_v33  ;;  %v6886_v55 = vpop.permute.xlu1 %2010  ;;  %v6888_v27 = vpop.permute.xlu2 %1946 }
 0x291   : > { %v6895_v34 = vpop.permute.xlu0 %2026  ;;  %v2012_v46 = vsel %vm9416_vm3, %v6788_v30, %v6886_v55  ;;  %vm9420_vm3 = vmmov %vm9417_vm13 }
 0x292   : > { %v2028_v39 = vsel %vm9415_vm0, %v6752_v38, %v6895_v34  ;;  %v2020_v57 = vmul.f32 %v2016_v37, %v2012_v46  ;;  %vm9419_vm0 = vmmov %vm9418_vm5 }
 0x293   : > { %v2036_v43 = vmul.f32 %v2032_v47, %v2028_v39  ;;  %v1723_v47 = vmul.f32 %v1719_v25, %v1714_v60  ;;  %v6958_v39 = vld [vmem:[%s9371_s11 + $0x32] ss:$8 sm:$0x3]  ;;  %v1687_v25 = vperm.slane %v5483_v5, 1 }
 0x294   : > { %v1952_v58 = vperm.slane %v6958_v39, 0 }
 0x295   : > { %2186 = vmatpush.msrb.mxu3 %v2036_v43  ;;  %v1968_v43 = vperm.slane %v6948_v13, 0 }
 0x297   : > { %2187 = vmatpush.msrb.mxu3 %v2020_v57  ;;  %v6974_v57 = vld [vmem:[%s9371_s11 + $0x42] ss:$8 sm:$0x3] }
 0x298   : > { %v1729_v52 = vpop.permute.xlu1 %1728  ;;  %v6917_v41 = vpop.permute.xlu2 %1664 }
 0x299   : > { %2188 = vmatpush.msrb.mxu3 %v2004_v2  ;;  %v1745_v17 = vpop.permute.xlu0 %1744  ;;  %v1730_v7 = vsel %vm9417_vm13, %v6800_v11, %v1729_v52  ;;  %v1731_v23 = vsel %vm9420_vm3, %v1729_v52, %v6800_v11  ;;  %vm9422_vm13 = vmmov %vm9421_vm6  ;;  %v1948_v2 = vsel %vm1162_vm12, %v6808_v31, %v6888_v27  ;;  %v2080_v52 = vperm.slane %v6974_v57, 0 }
 0x29a   : > { %v1746_v48 = vsel %vm9418_vm5, %v6760_v63, %v1745_v17  ;;  %v1747_v56 = vsel %vm9419_vm0, %v1745_v17, %v6760_v63  ;;  %v1715_v10 = vsel %vm9422_vm13, %v1713_v49, %v6796_v6  ;;  %v6943_v63 = vld [vmem:[%s9371_s11 + $0x34] ss:$8 sm:$0x3]  ;;  %v1738_v11 = vmul.f32 %v1734_v29, %v1731_v23 }
 0x29b   : > { %v1754_v14 = vmul.f32 %v1750_v28, %v1747_v56  ;;  %v1755_v0 = vmul.f32 %v1751_v12, %v1746_v48  ;;  %v1739_v26 = vmul.f32 %v1735_v15, %v1730_v7  ;;  %v1722_v33 = vmul.f32 %v1718_v53, %v1715_v10  ;;  %v5484_v28 = vld [vmem:[%s9371_s11 + $0x12] ss:$8 sm:$0x3]  ;;  %v5482_v56 = vld [vmem:[%s9371_s11 + $0x10] ss:$8 sm:$0x3] }
 0x29c   : > { %v1984_v6 = vperm.slane %v6943_v63, 0  ;;  %v1956_v17 = vmul.f32 %v1952_v58, %v1948_v2  ;;  %v1702_v29 = vperm.slane %v5484_v28, 0  ;;  %v1703_v15 = vperm.slane %v5484_v28, 1  ;;  %v7025_v58 = vld [vmem:[%s9371_s11 + $0x30] ss:$8 sm:$0x3] }
 0x29d   : > { %2168 = vmatpush.msrb.mxu1 %v1754_v14  ;;  %2228 = vmatpush.msra.mxu0 %v1755_v0  ;;  %vm9423_vm6 = vcmp.lt.s32.totalorder %v6102_v4, 17  ;;  %v1686_v53 = vperm.slane %v5483_v5, 0  ;;  %vm9424_vm5 = vcmp.lt.s32.totalorder %v6102_v4, 16  ;;  %vm9427_vm13 = vcmp.lt.s32.totalorder %v6102_v4, 18 }
 0x29e   : > { %vm9425_vm0 = vmmov %vm9424_vm5  ;;  %v1920_v5 = vperm.slane %v7025_v58, 0 }
 0x29f   : > { %2169 = vmatpush.msrb.mxu1 %v1738_v11  ;;  %2229 = vmatpush.msra.mxu0 %v1739_v26  ;;  %vm9426_vm3 = vmmov %vm9423_vm6 }
 0x2a0   : > { %v6951_v49 = vpop.permute.xlu1 %1962  ;;  %v6953_v37 = vpop.permute.xlu2 %1898 }
 0x2a1   : > { %2170 = vmatpush.msrb.mxu1 %v1722_v33  ;;  %2230 = vmatpush.msra.mxu0 %v1723_v47  ;;  %v6960_v46 = vpop.permute.xlu0 %1978  ;;  %v1964_v36 = vsel %vm1180_vm11, %v6812_v35, %v6951_v49 }
 0x2a2   : > { %v1980_v44 = vsel %vm1198_vm8, %v6768_v9, %v6960_v46  ;;  %v1972_v12 = vmul.f32 %v1968_v43, %v1964_v36  ;;  %v1671_v43 = vperm.slane %v5482_v56, 1 }
 0x2a3   : > { %v1988_v59 = vmul.f32 %v1984_v6, %v1980_v44  ;;  %v1670_v6 = vperm.slane %v5482_v56, 0  ;;  %v1666_v44 = vsel %vm9427_vm13, %v6820_v45, %v6917_v41  ;;  %v1900_v56 = vsel %vm1108_vm9, %v6832_v16, %v6953_v37 }
 0x2a4   : > { %v1675_v28 = vmul.f32 %v1671_v43, %v1666_v44 }
 0x2a5   : > { %2189 = vmatpush.msrb.mxu3 %v1988_v59 }
 0x2a7   : > { %2190 = vmatpush.msrb.mxu3 %v1972_v12  ;;  %v7033_v12 = vld [vmem:[%s9371_s11 + $0x27] ss:$8 sm:$0x3] }
 0x2a8   : > { %v1681_v7 = vpop.permute.xlu1 %1680  ;;  %v6988_v48 = vpop.permute.xlu2 %2074 }
 0x2a9   : > { %v1682_v23 = vsel %vm9423_vm6, %v6824_v42, %v1681_v7  ;;  %v2076_v14 = vsel %vm1306_vm7, %v6842_v3, %v6988_v48  ;;  %2191 = vmatpush.msrb.mxu3 %v1956_v17  ;;  %v1697_v0 = vpop.permute.xlu0 %1696  ;;  %v1683_v26 = vsel %vm9426_vm3, %v1681_v7, %v6824_v42  ;;  %vm9428_vm6 = vmmov %vm9427_vm13  ;;  %v1904_v7 = vperm.slane %v7033_v12, 0 }
 0x2aa   : > { %v2084_v60 = vmul.f32 %v2080_v52, %v2076_v14  ;;  %v1698_v10 = vsel %vm9424_vm5, %v6776_v19, %v1697_v0  ;;  %v1699_v11 = vsel %vm9425_vm0, %v1697_v0, %v6776_v19  ;;  %v1667_v36 = vsel %vm9428_vm6, %v6917_v41, %v6820_v45  ;;  %v7020_v19 = vld [vmem:[%s9371_s11 + $0x31] ss:$8 sm:$0x3]  ;;  %v5480_v0 = vld [vmem:[%s9371_s11 + $0x6] ss:$8 sm:$0x3] }
 0x2ab   : > { %v1706_v33 = vmul.f32 %v1702_v29, %v1699_v11  ;;  %v1707_v47 = vmul.f32 %v1703_v15, %v1698_v10  ;;  %v1690_v42 = vmul.f32 %v1686_v53, %v1683_v26  ;;  %v1691_v59 = vmul.f32 %v1687_v25, %v1682_v23  ;;  %v5481_v23 = vld [vmem:[%s9371_s11 + $0x7] ss:$8 sm:$0x3] }
 0x2ac   : > { %2219 = vmatpush.msra.mxu2 %v2084_v60  ;;  %v1674_v2 = vmul.f32 %v1670_v6, %v1667_v36  ;;  %v1936_v45 = vperm.slane %v7020_v19, 0  ;;  %v1908_v53 = vmul.f32 %v1904_v7, %v1900_v56  ;;  %v1654_v25 = vperm.slane %v5481_v23, 0 }
 0x2ad   : > { %2171 = vmatpush.msrb.mxu1 %v1706_v33  ;;  %2231 = vmatpush.msra.mxu0 %v1707_v47  ;;  %v1655_v60 = vperm.slane %v5481_v23, 1  ;;  %v1638_v26 = vperm.slane %v5480_v0, 0  ;;  %v1639_v33 = vperm.slane %v5480_v0, 1  ;;  %vm9429_vm5 = vcmp.lt.s32.totalorder %v6102_v4, 29 }
 0x2ae   : > { %vm9430_vm0 = vcmp.lt.s32.totalorder %v6102_v4, 19  ;;  %vm9432_vm13 = vmmov %vm9429_vm5  ;;  %vm9433_vm6 = vcmp.lt.s32.totalorder %v6102_v4, 30 }
 0x2af   : > { %2172 = vmatpush.msrb.mxu1 %v1690_v42  ;;  %2232 = vmatpush.msra.mxu0 %v1691_v59  ;;  %vm9431_vm3 = vmmov %vm9430_vm0  ;;  %v5479_v59 = vld [vmem:[%s9371_s11 + $0x5] ss:$8 sm:$0x3] }
 0x2b0   : > { %v7028_v41 = vpop.permute.xlu1 %1914 }
 0x2b1   : > { %2173 = vmatpush.msrb.mxu1 %v1674_v2  ;;  %2233 = vmatpush.msra.mxu0 %v1675_v28  ;;  %v7035_v52 = vpop.permute.xlu0 %1930  ;;  %v1916_v29 = vsel %vm1126_vm15, %v6834_v18, %v7028_v41  ;;  %v7075_v2 = vld [vmem:[%s9371_s11 + $0x26] ss:$8 sm:$0x3]  ;;  %v7077_v28 = vpop.permute.xlu2 %2058 }
 0x2b2   : > { %v1932_v17 = vsel %vm1144_vm14, %v6786_v61, %v7035_v52  ;;  %v1924_v14 = vmul.f32 %v1920_v5, %v1916_v29  ;;  %v1622_v5 = vperm.slane %v5479_v59, 0 }
 0x2b3   : > { %v1940_v15 = vmul.f32 %v1936_v45, %v1932_v17  ;;  %v1623_v17 = vperm.slane %v5479_v59, 1 }
 0x2b5   : > { %2192 = vmatpush.msrb.mxu3 %v1940_v15 }
 0x2b7   : > { %2193 = vmatpush.msrb.mxu3 %v1924_v14 }
 0x2b8   : > { %v1633_v10 = vpop.permute.xlu1 %1632 }
 0x2b9   : > { %2194 = vmatpush.msrb.mxu3 %v1908_v53  ;;  %v1649_v11 = vpop.permute.xlu0 %1648  ;;  %v1634_v47 = vsel %vm9429_vm5, %v6846_v24, %v1633_v10  ;;  %v1635_v44 = vsel %vm9432_vm13, %v1633_v10, %v6846_v24  ;;  %v1888_v24 = vperm.slane %v7075_v2, 0  ;;  %vm9434_vm5 = vmmov %vm9433_vm6  ;;  %v7103_v10 = vpop.permute.xlu2 %1848 }
 0x2ba   : > { %v1650_v6 = vsel %vm9430_vm0, %v6798_v51, %v1649_v11  ;;  %v1651_v43 = vsel %vm9431_vm3, %v1649_v11, %v6798_v51  ;;  %v1642_v51 = vmul.f32 %v1638_v26, %v1635_v44  ;;  %v1643_v45 = vmul.f32 %v1639_v33, %v1634_v47 }
 0x2bb   : > { %v1658_v36 = vmul.f32 %v1654_v25, %v1651_v43  ;;  %v1659_v42 = vmul.f32 %v1655_v60, %v1650_v6  ;;  %v7095_v25 = vld [vmem:[%s9371_s11 + $0x41] ss:$8 sm:$0x3]  ;;  %v7100_v60 = vld [vmem:[%s9371_s11 + $0x25] ss:$8 sm:$0x3] }
 0x2bc   : > { %v1872_v11 = vperm.slane %v7100_v60, 0  ;;  %vm9435_vm0 = vcmp.lt.s32.totalorder %v6102_v4, 115  ;;  %vm9436_vm3 = vcmp.lt.s32.totalorder %v6102_v4, 31 }
 0x2bd   : > { %2174 = vmatpush.msrb.mxu1 %v1658_v36  ;;  %2234 = vmatpush.msra.mxu0 %v1659_v42  ;;  %v5478_v36 = vld [vmem:[%s9371_s11 + $0x4] ss:$8 sm:$0x3]  ;;  %vm9437_vm13 = vmmov %vm9436_vm3 }
 0x2be   : > { %v1606_v42 = vperm.slane %v5478_v36, 0  ;;  %v1607_v59 = vperm.slane %v5478_v36, 1 }
 0x2bf   : > { %2175 = vmatpush.msrb.mxu1 %v1642_v51  ;;  %2235 = vmatpush.msra.mxu0 %v1643_v45 }
 0x2c0   : > { %v1617_v29 = vpop.permute.xlu1 %1616 }
 0x2c1   : > { %v1618_v15 = vsel %vm9433_vm6, %v6862_v20, %v1617_v29  ;;  %v7083_v7 = vpop.permute.xlu0 %1882  ;;  %v1619_v56 = vsel %vm9434_vm5, %v1617_v29, %v6862_v20  ;;  %v2064_v20 = vperm.slane %v7095_v25, 0  ;;  %v7121_v45 = vpop.permute.xlu2 %2042  ;;  %vm9438_vm6 = vcmp.lt.s32.totalorder %v6102_v4, 96 }
 0x2c2   : > { %v1626_v23 = vmul.f32 %v1622_v5, %v1619_v56  ;;  %v1884_v14 = vsel %vm1090_vm10, %v6810_v22, %v7083_v7  ;;  %v1627_v0 = vmul.f32 %v1623_v17, %v1618_v15  ;;  %v7130_v56 = vld [vmem:[%s9371_s11 + $0x40] ss:$8 sm:$0x3]  ;;  %vm9439_vm5 = vcmp.lt.s32.totalorder %v6102_v4, 97 }
 0x2c3   : > { %v1892_v53 = vmul.f32 %v1888_v24, %v1884_v14  ;;  %v2048_v14 = vperm.slane %v7130_v56, 0 }
 0x2c4   : > { %2176 = vmatpush.msrb.mxu1 %v1626_v23  ;;  %2236 = vmatpush.msra.mxu0 %v1627_v0  ;;  %v7135_v23 = vld [vmem:[%s9371_s11 + $0x24] ss:$8 sm:$0x3]  ;;  %v2033_v0 = vperm.slane %v6874_v1, 1  ;;  %v2013_v1 = vsel %vm9439_vm5, %v6886_v55, %v6788_v30  ;;  %v1985_v55 = vperm.slane %v6943_v63, 1  ;;  %vm9444_vm5 = vcmp.lt.s32.totalorder %v6102_v4, 33 }
 0x2c5   : > { %2195 = vmatpush.msrb.mxu3 %v1892_v53  ;;  %v1856_v53 = vperm.slane %v7135_v23, 0  ;;  %v5477_v30 = vld [vmem:[%s9371_s11 + $0x3] ss:$8 sm:$0x3] }
 0x2c8   : > { %v7106_v26 = vpop.permute.xlu1 %2056 }
 0x2c9   : > { %v2060_v33 = vsel %vm1288_vm4, %v7106_v26, %v7077_v28  ;;  %v7112_v47 = vpop.permute.xlu0 %1866  ;;  %v7162_v36 = vpop.permute.xlu2 %1832 }
 0x2ca   : > { %v1868_v6 = vsel %vm9435_vm0, %v6822_v8, %v7112_v47  ;;  %v2068_v43 = vmul.f32 %v2064_v20, %v2060_v33  ;;  %v2029_v20 = vsel %vm9438_vm6, %v6895_v34, %v6752_v38  ;;  %v2017_v33 = vperm.slane %v6881_v62, 1 }
 0x2cb   : > { %v1876_v44 = vmul.f32 %v1872_v11, %v1868_v6  ;;  %v2037_v62 = vmul.f32 %v2033_v0, %v2029_v20  ;;  %vm9440_vm0 = vcmp.lt.s32.totalorder %v6102_v4, 98 }
 0x2cc   : > { %2220 = vmatpush.msra.mxu2 %v2068_v43 }
 0x2cd   : > { %2196 = vmatpush.msrb.mxu3 %v1876_v44  ;;  %v2001_v44 = vperm.slane %v6893_v40, 1  ;;  %v1981_v40 = vsel %vm1198_vm8, %v6960_v46, %v6768_v9  ;;  %v1953_v9 = vperm.slane %v6958_v39, 1 }
 0x2d0   : > { %v1601_v51 = vpop.permute.xlu1 %1600 }
 0x2d1   : > { %v1599_v5 = vpop.permute.xlu0 %1598 }
 0x2d2   : > { %v1602_v17 = vsel %vm9436_vm3, %v1599_v5, %v1601_v51  ;;  %v1603_v24 = vsel %vm9437_vm13, %v1601_v51, %v1599_v5  ;;  %v2021_v51 = vmul.f32 %v2017_v33, %v2013_v1  ;;  %v7173_v5 = vld [vmem:[%s6508_s27 + $0x28] sm:$0xff]  ;;  %vm9441_vm3 = vcmask 195584  }
 0x2d3   : > { %v1610_v29 = vmul.f32 %v1606_v42, %v1603_v24  ;;  %v1611_v15 = vmul.f32 %v1607_v59, %v1602_v17  ;;  %v1997_v59 = vsel %vm9440_vm0, %v6844_v50, %v6784_v21  ;;  %v1590_v50 = vperm.slane %v5477_v30, 0  ;;  %v5493_v33 = vld [vmem:[%s9371_s11 + $0x23] ss:$8 sm:$0x3]  ;;  %vm9445_vm0 = vmmov %vm9444_vm5 }
 0x2d4   : > { %v2005_v21 = vmul.f32 %v2001_v44, %v1997_v59  ;;  %v1591_v17 = vperm.slane %v5477_v30, 1  ;;  %v1969_v24 = vperm.slane %v6948_v13, 1  ;;  %vm9442_vm13 = vcmp.lt.s32.totalorder %v6102_v4, 32 }
 0x2d5   : > { %2177 = vmatpush.msrb.mxu1 %v1610_v29  ;;  %2237 = vmatpush.msra.mxu0 %v1611_v15  ;;  %v1965_v29 = vsel %vm1180_vm11, %v6951_v49, %v6812_v35  ;;  %vm9443_vm6 = vmmov %vm9442_vm13  ;;  %v1949_v13 = vsel %vm1162_vm12, %v6888_v27, %v6808_v31  ;;  %v5476_v35 = vld [vmem:[%s9371_s11 + $0x2] ss:$8 sm:$0x3]  ;;  %v1937_v49 = vperm.slane %v7020_v19, 1  ;;  %v1569_v31 = vpop.permute.xlu2 %1568  ;;  %v1921_v27 = vperm.slane %v7025_v58, 1 }
 0x2d6   : > { %v1973_v39 = vmul.f32 %v1969_v24, %v1965_v29  ;;  %v1957_v1 = vmul.f32 %v1953_v9, %v1949_v13  ;;  %v1917_v19 = vsel %vm1126_vm15, %v7028_v41, %v6834_v18  ;;  %v1905_v44 = vperm.slane %v7033_v12, 1 }
 0x2d7   : > { %v1901_v58 = vsel %vm1108_vm9, %v6953_v37, %v6832_v16  ;;  %v1925_v41 = vmul.f32 %v1921_v27, %v1917_v19  ;;  %v1885_v16 = vsel %vm1090_vm10, %v7083_v7, %v6810_v22  ;;  %v5491_v7 = vld [vmem:[%s9371_s11 + $0x21] ss:$8 sm:$0x3]  ;;  %v1841_v29 = vperm.slane %v5493_v33, 1 }
 0x2d8   : > { %v7144_v11 = vpop.permute.xlu1 %2040 }
 0x2d9   : > { %v2044_v6 = vsel %vm1270_vm1, %v7144_v11, %v7121_v45  ;;  %v7151_v43 = vpop.permute.xlu0 %1850 }
 0x2da   : > { %v1852_v38 = vsel %vm1054_vm2, %v7103_v10, %v7151_v43  ;;  %v2052_v34 = vmul.f32 %v2048_v14, %v2044_v6  ;;  %v1989_v14 = vmul.f32 %v1985_v55, %v1981_v40  ;;  %v1933_v6 = vsel %vm1144_vm14, %v7035_v52, %v6786_v61 }
 0x2db   : > { %v1860_v42 = vmul.f32 %v1856_v53, %v1852_v38  ;;  %v1574_v38 = vperm.slane %v5476_v35, 0  ;;  %v1941_v61 = vmul.f32 %v1937_v49, %v1933_v6  ;;  %v1889_v52 = vperm.slane %v7075_v2, 1  ;;  %v1540_v49 = vld [vmem:[%s9371_s11] ss:$8 sm:$0x3] }
 0x2dc   : > { %2221 = vmatpush.msra.mxu2 %v2052_v34  ;;  %v1575_v34 = vperm.slane %v5476_v35, 1  ;;  %v1873_v2 = vperm.slane %v7100_v60, 1  ;;  %v1909_v40 = vmul.f32 %v1905_v44, %v1901_v58  ;;  %v1853_v24 = vsel %vm1054_vm2, %v7151_v43, %v7103_v10 }
 0x2dd   : > { %2197 = vmatpush.msrb.mxu3 %v1860_v42  ;;  %5509 = vmatmul.msk.f32.vlgmr.msra.gmra.mxu2 %vm9441_vm3, %v7173_v5  ;;  %vm9446_vm3 = vcmp.lt.s32.totalorder %v6102_v4, 126  ;;  %v1893_v22 = vmul.f32 %v1889_v52, %v1885_v16  ;;  %v1551_v60 = vpop.permute.xlu2 %1550  ;;  %v2077_v58 = vsel %vm1306_vm7, %v6988_v48, %v6842_v3  ;;  %v5490_v52 = vld [vmem:[%s9371_s11 + $0x20] ss:$8 sm:$0x3]  ;;  %v2049_v3 = vperm.slane %v7130_v56, 1 }
 0x2de   : > { %2246 = vmatpush.msrb.mxu2 %v2037_v62  ;;  %v1840_v62 = vperm.slane %v5493_v33, 0  ;;  %v1798_v48 = vperm.slane %v5490_v52, 0 }
 0x2e0   : > { %2247 = vmatpush.msrb.mxu2 %v2021_v51  ;;  %v1585_v63 = vpop.permute.xlu1 %1584 }
 0x2e1   : > { %v1583_v15 = vpop.permute.xlu0 %1582 }
 0x2e2   : > { %2248 = vmatpush.msrb.mxu2 %v2005_v21  ;;  %v1586_v46 = vsel %vm9442_vm13, %v1583_v15, %v1585_v63  ;;  %v1587_v0 = vsel %vm9443_vm6, %v1585_v63, %v1583_v15  ;;  %v5492_v21 = vld [vmem:[%s9371_s11 + $0x22] ss:$8 sm:$0x3]  ;;  %vm9447_vm13 = vcmp.lt.s32.totalorder %v6102_v4, 115  ;;  %vm9448_vm6 = vmmov %vm9446_vm3 }
 0x2e3   : > { %v1594_v53 = vmul.f32 %v1590_v50, %v1587_v0  ;;  %v1595_v20 = vmul.f32 %v1591_v17, %v1586_v46  ;;  %v1869_v50 = vsel %vm9447_vm13, %v7112_v47, %v6822_v8  ;;  %v1857_v17 = vperm.slane %v7135_v23, 1 }
 0x2e4   : > { %2249 = vmatpush.msrb.mxu2 %v1989_v14  ;;  %v1824_v63 = vperm.slane %v5492_v21, 0  ;;  %v1877_v47 = vmul.f32 %v1873_v2, %v1869_v50  ;;  %v1808_v14 = vperm.slane %v5491_v7, 0  ;;  %v1825_v0 = vperm.slane %v5492_v21, 1  ;;  %v5472_v21 = vld [vmem:[%s6508_s27 + $0x20] sm:$0xff] }
 0x2e5   : > { %2178 = vmatpush.msrb.mxu1 %v1594_v53  ;;  %2238 = vmatpush.msra.mxu0 %v1595_v20  ;;  %v1861_v9 = vmul.f32 %v1857_v17, %v1853_v24  ;;  %v1809_v53 = vperm.slane %v5491_v7, 1  ;;  %v5475_v20 = vld [vmem:[%s9371_s11 + $0x1] ss:$8 sm:$0x3]  ;;  %v1537_v27 = vpop.permute.xlu2 %1536  ;;  %vm9452_vm13 = vcmp.lt.s32.totalorder %v6102_v4, 34 }
 0x2e6   : > { %2250 = vmatpush.msrb.mxu2 %v1973_v39  ;;  %v1558_v39 = vperm.slane %v5475_v20, 0  ;;  %v1559_v33 = vperm.slane %v5475_v20, 1 }
 0x2e8   : > { %2251 = vmatpush.msrb.mxu2 %v1957_v1  ;;  %v1567_v42 = vpop.permute.xlu1 %1566 }
 0x2e9   : > { %v1570_v59 = vsel %vm9444_vm5, %v1567_v42, %v1569_v31  ;;  %v1835_v30 = vpop.permute.xlu0 %1834  ;;  %v1571_v18 = vsel %vm9445_vm0, %v1569_v31, %v1567_v42  ;;  %vm9449_vm5 = vcmp.lt.s32.totalorder %v6102_v4, 127  ;;  %v1813_v31 = vmul.f32 %v1809_v53, %v6720_v32 }
 0x2ea   : > { %2252 = vmatpush.msrb.mxu2 %v1941_v61  ;;  %v1578_v12 = vmul.f32 %v1574_v38, %v1571_v18  ;;  %v1836_v55 = vsel %vm9446_vm3, %v7162_v36, %v1835_v30  ;;  %v1579_v51 = vmul.f32 %v1575_v34, %v1570_v59  ;;  %v1837_v23 = vsel %vm9448_vm6, %v1835_v30, %v7162_v36  ;;  %vm9450_vm0 = vmmov %vm9449_vm5  ;;  %v5471_v18 = vld [vmem:[%s6508_s27 + $0x18] sm:$0xff] }
 0x2eb   : > { %v1844_v37 = vmul.f32 %v1840_v62, %v1836_v55  ;;  %v1845_v13 = vmul.f32 %v1841_v29, %v1837_v23  ;;  %v1812_v36 = vmul.f32 %v1808_v14, %v6676_v54  ;;  %v1542_v38 = vperm.slane %v1540_v49, 0  ;;  %vm9453_vm6 = vmmov %vm9452_vm13  ;;  %v5755_v14 = vld [vmem:[%s6020_s22] sm:$0xff] }
 0x2ec   : > { %2253 = vmatpush.msrb.mxu2 %v1925_v41  ;;  %2179 = vmatpush.msrb.mxu1 %v1578_v12  ;;  %v1543_v34 = vperm.slane %v1540_v49, 1  ;;  %vm9451_vm3 = vcmp.lt.s32.totalorder %v6102_v4, 35  ;;  %v2081_v32 = vperm.slane %v6974_v57, 1  ;;  %v2065_v41 = vperm.slane %v7095_v25, 1 }
 0x2ed   : > { %2198 = vmatpush.msrb.mxu3 %v1844_v37  ;;  %2239 = vmatpush.msra.mxu0 %v1579_v51  ;;  %v2061_v57 = vsel %vm1288_vm4, %v7077_v28, %v7106_v26  ;;  %v1799_v55 = vperm.slane %v5490_v52, 1  ;;  %v2045_v51 = vsel %vm1270_vm1, %v7121_v45, %v7144_v11  ;;  %v2161_v17 = vpop.permute.xlu2 %2160 }
 0x2ee   : > { %2254 = vmatpush.msrb.mxu2 %v1909_v40  ;;  %v2085_v12 = vmul.f32 %v2081_v32, %v2077_v58  ;;  %v2069_v37 = vmul.f32 %v2065_v41, %v2061_v57  ;;  %v2053_v56 = vmul.f32 %v2049_v3, %v2045_v51  ;;  %v5526_v3 = vld [vmem:[%s9371_s11 + $0x14] ss:$8 sm:$0x3] }
 0x2ef   : > { %v2503_v51 = vperm.slane %v5526_v3, 0 }
 0x2f0   : > { %2255 = vmatpush.msrb.mxu2 %v1893_v22  ;;  %v1819_v8 = vpop.permute.xlu1 %1818 }
 0x2f1   : > { %v1817_v15 = vpop.permute.xlu0 %1816 }
 0x2f2   : > { %2256 = vmatpush.msrb.mxu2 %v1877_v47  ;;  %v1820_v46 = vsel %vm9449_vm5, %v1817_v15, %v1819_v8  ;;  %v1821_v10 = vsel %vm9450_vm0, %v1819_v8, %v1817_v15  ;;  %vm9454_vm5 = vmmov %vm9451_vm3  ;;  %vm9455_vm0 = vcmp.lt.s32.totalorder %v6102_v4, 1  ;;  %v2292_v15 = vstv %s2289_s29  ;;  %s9463_s29 = smov 113  }
 0x2f3   : > { %v1828_v43 = vmul.f32 %v1824_v63, %v1820_v46  ;;  %v1829_v35 = vmul.f32 %v1825_v0, %v1821_v10 }
 0x2f4   : > { %2257 = vmatpush.msrb.mxu2 %v1861_v9  ;;  %v5756_v9 = vld [vmem:[%s6020_s22 + $0x8] sm:$0xff]  ;;  %s9459_s22 = smov 33  }
 0x2f5   : > { %2199 = vmatpush.msrb.mxu3 %v1828_v43 }
 0x2f6   : > { %2258 = vmatpush.msrb.mxu2 %v1845_v13 }
 0x2f7   : > { %2200 = vmatpush.msrb.mxu3 %v1812_v36 }
 0x2f8   : > { %2259 = vmatpush.msrb.mxu2 %v1829_v35  ;;  %v1535_v6 = vpop.permute.xlu1 %1534  ;;  %v5529_v35 = vld [vmem:[%s9371_s11 + $0x17] ss:$8 sm:$0x3] }
 0x2f9   : > { %v1553_v1 = vpop.permute.xlu0 %1552  ;;  %v1538_v54 = vsel %vm9451_vm3, %v1535_v6, %v1537_v27  ;;  %v1539_v44 = vsel %vm9454_vm5, %v1537_v27, %v1535_v6  ;;  %vm9456_vm3 = vmmov %vm9455_vm0  ;;  %v2551_v49 = vperm.slane %v5529_v35, 0 }
 0x2fa   : > { %v1554_v19 = vsel %vm9452_vm13, %v1551_v60, %v1553_v1  ;;  %2260 = vmatpush.msrb.mxu2 %v1813_v31  ;;  %v1555_v62 = vsel %vm9453_vm6, %v1553_v1, %v1551_v60  ;;  %v1546_v59 = vmul.f32 %v1542_v38, %v1539_v44  ;;  %v1547_v30 = vmul.f32 %v1543_v34, %v1538_v54  ;;  %v5528_v54 = vld [vmem:[%s9371_s11 + $0x16] ss:$8 sm:$0x3] }
 0x2fb   : > { %v1562_v42 = vmul.f32 %v1558_v39, %v1555_v62  ;;  %v1563_v61 = vmul.f32 %v1559_v33, %v1554_v19  ;;  %vm9457_vm13 = vcmask 195584   ;;  %v2552_v39 = vperm.slane %v5529_v35, 1  ;;  %v5527_v19 = vld [vmem:[%s9371_s11 + $0x15] ss:$8 sm:$0x3] }
 0x2fc   : > { %v2535_v62 = vperm.slane %v5528_v54, 0  ;;  %v2536_v44 = vperm.slane %v5528_v54, 1 }
 0x2fd   : > { %2180 = vmatpush.msrb.mxu1 %v1562_v42  ;;  %2240 = vmatpush.msra.mxu0 %v1563_v61  ;;  %v2519_v61 = vperm.slane %v5527_v19, 0 }
 0x2ff   : > { %2181 = vmatpush.msrb.mxu1 %v1546_v59  ;;  %2241 = vmatpush.msra.mxu0 %v1547_v30  ;;  %v2520_v30 = vperm.slane %v5527_v19, 1 }
 0x300   : > { %2182 = vmatmul.f32.vlgmr.msrb.gmra.mxu1 %v5471_v18  ;;  %2242 = vmatmul.f32.vlgmr.msra.gmra.mxu0 %v5471_v18  ;;  %v1793_v25 = vpop.permute.xlu1 %1792 }
 0x301   : > { %2279 = vmatpush.msra.mxu1 %v2085_v12  ;;  %v1791_v16 = vpop.permute.xlu0 %1790 }
 0x302   : > { %v1794_v28 = vsel %vm9455_vm0, %v1791_v16, %v1793_v25  ;;  %v1795_v26 = vsel %vm9456_vm3, %v1793_v25, %v1791_v16  ;;  %vm9461_vm0 = vcmp.lt.s32.totalorder %v6102_v4, 2  ;;  %v2504_v25 = vperm.slane %v5526_v3, 1 }
 0x303   : > { %2280 = vmatpush.msra.mxu1 %v2069_v37  ;;  %v1802_v2 = vmul.f32 %v1798_v48, %v1795_v26  ;;  %v1803_v40 = vmul.f32 %v1799_v55, %v1794_v28  ;;  %vm9462_vm3 = vmmov %vm9461_vm0 }
 0x305   : > { %2281 = vmatpush.msra.mxu1 %v2053_v56  ;;  %2201 = vmatpush.msrb.mxu3 %v1802_v2 }
 0x306   : > { %2261 = vmatpush.msrb.mxu2 %v1803_v40  ;;  %2202 = vmatmul.f32.vlgmr.msrb.gmra.mxu3 %v5472_v21 }
 0x307   : > { %2262 = vmatmul.f32.vlgmr.msrb.gmra.mxu2 %v5472_v21  ;;  %v5525_v21 = vld [vmem:[%s9371_s11 + $0x13] ss:$8 sm:$0x3] }
 0x308   : > { %5510 = vmatmul.msk.f32.vlgmr.msra.gmra.mxu1 %vm9457_vm13, %v7173_v5  ;;  %vm9464_vm13 = vcmp.lt.s32.totalorder %v6102_v4, 3 }
 0x360   : > { %v2223_v45 = vpop.f32.mrf.mxu2 }
 0x37d   : > { %v2183_v11 = vpop.f32.mrf.mxu1  ;;  %v2243_v50 = vpop.f32.mrf.mxu0 }
 0x37e   : > { %v2184_v22 = vadd.f32 %v2183_v11, %v2161_v17  ;;  %v2244_v7 = vadd.f32 %v2243_v50, %v2161_v17  ;;  %v2487_v11 = vperm.slane %v5525_v21, 0  ;;  %v2488_v50 = vperm.slane %v5525_v21, 1 }
 0x385   : > { %v2283_v29 = vpop.f32.mrf.mxu1 }
 0x389   : > { %v2203_v60 = vpop.f32.mrf.mxu3 }
 0x38a   : > { %v2204_v24 = vadd.f32 %v2203_v60, %v2184_v22  ;;  %v2263_v63 = vpop.f32.mrf.mxu2 }
 0x38b   : > { %v2264_v8 = vadd.f32 %v2263_v63, %v2244_v7 }
 0x38c   : > { %v2224_v47 = vadd.f32 %v2223_v45, %v2204_v24  ;;  %v5524_v45 = vld [vmem:[%s9371_s11 + $0x12] ss:$8 sm:$0x3] }
 0x38d   : > { %v2284_v23 = vadd.f32 %v2283_v29, %v2264_v8  ;;  %v2471_v7 = vperm.slane %v5524_v45, 0  ;;  %v2472_v29 = vperm.slane %v5524_v45, 1 }
 0x38e   : > { %v2286_v5 = vadd.f32 %v5755_v14, %v2224_v47  ;;  %v5523_v14 = vld [vmem:[%s9371_s11 + $0x11] ss:$8 sm:$0x3] }
 0x38f   : > { %v2287_v46 = vadd.f32 %v5756_v9, %v2284_v23 }
 0x390   : > { %vm2290_vm6 = vcmp.gt.f32.partialorder %v2286_v5, 0.0  ;;  %v2293_v0 = vmul.f32 %v2292_v15, %v2286_v5 }
 0x391   : > { %vm2291_vm5 = vcmp.gt.f32.partialorder %v2287_v46, 0.0  ;;  %v2294_v10 = vmul.f32 %v2292_v15, %v2287_v46 }
 0x392   : > { %v7296_v43 = vsel %vm2290_vm6, %v2286_v5, %v2293_v0  ;;  %vm9465_vm6 = vmmov %vm9464_vm13  ;;  %v2456_v0 = vperm.slane %v5523_v14, 1 }
 0x393   : > { %v7298_v13 = vsel %vm2291_vm5, %v2287_v46, %v2294_v10  ;;  %2527 = vrot.lane.b32.xlu2 %v7296_v43, %s9398_s8  ;;  %2543 = vrot.lane.b32.xlu0 %v7296_v43, %s9395_s7  ;;  %vm9466_vm5 = vcmp.lt.s32.totalorder %v6102_v4, 13  ;;  %v2455_v46 = vperm.slane %v5523_v14, 0 }
 0x394   : > { %9458 = vst [vmem:[#allocation18_spill] sm:$0xff] %v7298_v13  ;;  %2545 = vrot.lane.b32.xlu1 %v7298_v13, %s9395_s7 }
 0x39b   : > { %2513 = vrot.lane.b32.xlu2 %v7298_v13, %s9378_s19  ;;  %2529 = vrot.lane.b32.xlu0 %v7298_v13, %s9398_s8 }
 0x39c   : > { %2511 = vrot.lane.b32.xlu1 %v7296_v43, %s9378_s19 }
 0x3a3   : > { %2479 = vrot.lane.b32.xlu2 %v7296_v43, %s9380_s30  ;;  %2495 = vrot.lane.b32.xlu0 %v7296_v43, %s9382_s28 }
 0x3a4   : > { %2497 = vrot.lane.b32.xlu1 %v7298_v13, %s9382_s28 }
 0x3ab   : > { %2465 = vrot.lane.b32.xlu2 %v7298_v13, %s9384_s23  ;;  %2481 = vrot.lane.b32.xlu0 %v7298_v13, %s9380_s30 }
 0x3ac   : > { %2463 = vrot.lane.b32.xlu1 %v7296_v43, %s9384_s23 }
 0x3b3   : > { %2793 = vrot.lane.b32.xlu2 %v7296_v43, %s9399_s6  ;;  %2447 = vrot.lane.b32.xlu0 %v7296_v43, %s9388_s2 }
 0x3b4   : > { %2449 = vrot.lane.b32.xlu1 %v7298_v13, %s9388_s2 }
 0x3bb   : > { %2433 = vrot.lane.b32.xlu2 %v7298_v13, %s9386_s0  ;;  %2795 = vrot.lane.b32.xlu0 %v7298_v13, %s9399_s6 }
 0x3bc   : > { %2431 = vrot.lane.b32.xlu1 %v7296_v43, %s9386_s0 }
 0x3c3   : > { %2415 = vrot.lane.b32.xlu2 %v7296_v43, %s9390_s12  ;;  %2777 = vrot.lane.b32.xlu0 %v7296_v43, %s9379_s20 }
 0x3c4   : > { %2779 = vrot.lane.b32.xlu1 %v7298_v13, %s9379_s20 }
 0x3cb   : > { %2763 = vrot.lane.b32.xlu2 %v7298_v13, %s9377_s17  ;;  %2417 = vrot.lane.b32.xlu0 %v7298_v13, %s9390_s12 }
 0x3cc   : > { %2761 = vrot.lane.b32.xlu1 %v7296_v43, %s9377_s17 }
 0x3d3   : > { %2745 = vrot.lane.b32.xlu2 %v7296_v43, %s9381_s26  ;;  %2399 = vrot.lane.b32.xlu0 %v7296_v43, %s9394_s9 }
 0x3d4   : > { %2401 = vrot.lane.b32.xlu1 %v7298_v13, %s9394_s9 }
 0x3db   : > { %2385 = vrot.lane.b32.xlu2 %v7298_v13, %s9397_s4  ;;  %2747 = vrot.lane.b32.xlu0 %v7298_v13, %s9381_s26 }
 0x3dc   : > { %2383 = vrot.lane.b32.xlu1 %v7296_v43, %s9397_s4  ;;  %s9491_s4 = sld [smem:[#allocation16_spill]] }
 0x3e3   : > { %2367 = vrot.lane.b32.xlu2 %v7296_v43, %s9401_s5  ;;  %2729 = vrot.lane.b32.xlu0 %v7296_v43, %s9385_s24 }
 0x3e4   : > { %2731 = vrot.lane.b32.xlu1 %v7298_v13, %s9385_s24 }
 0x3eb   : > { %2715 = vrot.lane.b32.xlu2 %v7298_v13, %s9383_s25  ;;  %2369 = vrot.lane.b32.xlu0 %v7298_v13, %s9401_s5  ;;  %s9481_s5 = smov 125  }
 0x3ec   : > { %2713 = vrot.lane.b32.xlu1 %v7296_v43, %s9383_s25 }
 0x3ed   : > { %v2528_v53 = vpop.permute.xlu2 %2527 }
 0x3f3   : > { %2697 = vrot.lane.b32.xlu2 %v7296_v43, %s9387_s1  ;;  %2351 = vrot.lane.b32.xlu0 %v7296_v43, %s9404_s18 }
 0x3f4   : > { %2353 = vrot.lane.b32.xlu1 %v7298_v13, %s9404_s18  ;;  %s9496_s18 = smov 1  }
 0x3f5   : > { %v2514_v20 = vpop.permute.xlu2 %2513 }
 0x3fb   : > { %2337 = vrot.lane.b32.xlu2 %v7298_v13, %s9459_s22  ;;  %2699 = vrot.lane.b32.xlu0 %v7298_v13, %s9387_s1 }
 0x3fc   : > { %2335 = vrot.lane.b32.xlu1 %v7296_v43, %s9459_s22  ;;  %s9487_s22 = smov 95  }
 0x3fd   : > { %v7384_v36 = vpop.permute.xlu2 %2479 }
 0x403   : > { %2319 = vrot.lane.b32.xlu2 %v7296_v43, %s9408_s14  ;;  %2681 = vrot.lane.b32.xlu0 %v7296_v43, %s9460_s3 }
 0x404   : > { %2683 = vrot.lane.b32.xlu1 %v7298_v13, %s9460_s3 }
 0x405   : > { %v7395_v33 = vpop.permute.xlu2 %2465  ;;  %v2544_v6 = vpop.permute.xlu0 %2543 }
 0x406   : > { %v2546_v31 = vpop.permute.xlu1 %2545 }
 0x407   : > { %v2547_v27 = vsel %vm9461_vm0, %v2544_v6, %v2546_v31  ;;  %v2548_v1 = vsel %vm9462_vm3, %v2546_v31, %v2544_v6  ;;  %vm9467_vm0 = vmmov %vm9466_vm5  ;;  %vm9470_vm3 = vcmp.lt.s32.totalorder %v6102_v4, 14  ;;  %v5522_v6 = vld [vmem:[%s9371_s11 + $0x10] ss:$8 sm:$0x3] }
 0x408   : > { %v2555_v38 = vmul.f32 %v2551_v49, %v2548_v1  ;;  %v2556_v34 = vmul.f32 %v2552_v39, %v2547_v27  ;;  %v2439_v1 = vperm.slane %v5522_v6, 0 }
 0x40a   : > { %2935 = vmatpush.msra.mxu3 %v2555_v38  ;;  %2995 = vmatpush.msra.mxu2 %v2556_v34  ;;  %v2440_v38 = vperm.slane %v5522_v6, 1 }
 0x40b   : > { %2667 = vrot.lane.b32.xlu2 %v7298_v13, %s9463_s29  ;;  %2321 = vrot.lane.b32.xlu0 %v7298_v13, %s9408_s14  ;;  %s9486_s14 = smov 126  }
 0x40c   : > { %2665 = vrot.lane.b32.xlu1 %v7296_v43, %s9463_s29 }
 0x40d   : > { %v7413_v32 = vpop.permute.xlu2 %2793  ;;  %v2530_v42 = vpop.permute.xlu0 %2529 }
 0x40e   : > { %v2512_v58 = vpop.permute.xlu1 %2511  ;;  %v2531_v52 = vsel %vm9464_vm13, %v2528_v53, %v2530_v42  ;;  %v2532_v59 = vsel %vm9465_vm6, %v2530_v42, %v2528_v53  ;;  %vm9471_vm13 = vmmov %vm9470_vm3  ;;  %vm9473_vm6 = vcmp.lt.s32.totalorder %v6102_v4, 15 }
 0x40f   : > { %v2516_v18 = vsel %vm9466_vm5, %v2514_v20, %v2512_v58  ;;  %v2539_v41 = vmul.f32 %v2535_v62, %v2532_v59  ;;  %v2540_v57 = vmul.f32 %v2536_v44, %v2531_v52  ;;  %v2515_v12 = vsel %vm9467_vm0, %v2512_v58, %v2514_v20  ;;  %vm9474_vm5 = vmmov %vm9473_vm6 }
 0x410   : > { %v2523_v48 = vmul.f32 %v2519_v61, %v2516_v18  ;;  %v2524_v55 = vmul.f32 %v2520_v30, %v2515_v12  ;;  %vm9475_vm0 = vcmp.lt.s32.totalorder %v6102_v4, 16  ;;  %v5544_v18 = vld [vmem:[%s9371_s11 + $0x36] ss:$8 sm:$0x3] }
 0x411   : > { %2936 = vmatpush.msra.mxu3 %v2539_v41  ;;  %2996 = vmatpush.msra.mxu2 %v2540_v57  ;;  %v2786_v41 = vperm.slane %v5544_v18, 1 }
 0x413   : > { %2649 = vrot.lane.b32.xlu2 %v7296_v43, %s9468_s13  ;;  %2303 = vrot.lane.b32.xlu0 %v7296_v43, %s9469_s16 }
 0x414   : > { %2305 = vrot.lane.b32.xlu1 %v7298_v13, %s9469_s16  ;;  %2937 = vmatpush.msra.mxu3 %v2523_v48  ;;  %s9472_s16 = smov 93  }
 0x415   : > { %2997 = vmatpush.msra.mxu2 %v2524_v55  ;;  %v7432_v16 = vpop.permute.xlu2 %2433  ;;  %v2496_v37 = vpop.permute.xlu0 %2495 }
 0x416   : > { %v2498_v28 = vpop.permute.xlu1 %2497 }
 0x417   : > { %v2499_v26 = vsel %vm9470_vm3, %v2496_v37, %v2498_v28  ;;  %v2500_v56 = vsel %vm9471_vm13, %v2498_v28, %v2496_v37  ;;  %vm9476_vm3 = vmmov %vm9475_vm0  ;;  %vm9479_vm13 = vcmp.lt.s32.totalorder %v6102_v4, 17  ;;  %v5543_v37 = vld [vmem:[%s9371_s11 + $0x35] ss:$8 sm:$0x3] }
 0x418   : > { %v2507_v2 = vmul.f32 %v2503_v51, %v2500_v56  ;;  %v2508_v40 = vmul.f32 %v2504_v25, %v2499_v26  ;;  %v2769_v56 = vperm.slane %v5543_v37, 0 }
 0x41a   : > { %2938 = vmatpush.msra.mxu3 %v2507_v2  ;;  %2998 = vmatpush.msra.mxu2 %v2508_v40  ;;  %v2770_v2 = vperm.slane %v5543_v37, 1 }
 0x41b   : > { %2843 = vrot.lane.b32.xlu2 %v7298_v13, %s9472_s16  ;;  %2651 = vrot.lane.b32.xlu0 %v7298_v13, %s9468_s13 }
 0x41c   : > { %2841 = vrot.lane.b32.xlu1 %v7296_v43, %s9472_s16 }
 0x41d   : > { %v7450_v17 = vpop.permute.xlu2 %2415  ;;  %v2482_v22 = vpop.permute.xlu0 %2481 }
 0x41e   : > { %v2464_v60 = vpop.permute.xlu1 %2463  ;;  %v2483_v24 = vsel %vm9473_vm6, %v7384_v36, %v2482_v22  ;;  %v2484_v63 = vsel %vm9474_vm5, %v2482_v22, %v7384_v36  ;;  %vm9480_vm6 = vmmov %vm9479_vm13  ;;  %vm9482_vm5 = vcmp.lt.s32.totalorder %v6102_v4, 96 }
 0x41f   : > { %v2468_v8 = vsel %vm9475_vm0, %v7395_v33, %v2464_v60  ;;  %v2491_v47 = vmul.f32 %v2487_v11, %v2484_v63  ;;  %v2492_v23 = vmul.f32 %v2488_v50, %v2483_v24  ;;  %v2467_v15 = vsel %vm9476_vm3, %v2464_v60, %v7395_v33  ;;  %v5545_v33 = vld [vmem:[%s9371_s11 + $0x37] ss:$8 sm:$0x3]  ;;  %vm9483_vm0 = vmmov %vm9482_vm5 }
 0x420   : > { %v2475_v5 = vmul.f32 %v2471_v7, %v2468_v8  ;;  %v2476_v9 = vmul.f32 %v2472_v29, %v2467_v15  ;;  %v2801_v31 = vperm.slane %v5545_v33, 0  ;;  %v2802_v27 = vperm.slane %v5545_v33, 1  ;;  %v5514_v8 = vld [vmem:[%s9491_s4 + $0x10] sm:$0xff]  ;;  %s3055_s4 = sadd.s32 2, %s6670_s21  ;;  %s9527_s21 = smov 32  }
 0x421   : > { %2939 = vmatpush.msra.mxu3 %v2491_v47  ;;  %2999 = vmatpush.msra.mxu2 %v2492_v23  ;;  %vm9484_vm3 = vcmp.lt.s32.totalorder %v6102_v4, 18  ;;  %v5520_v47 = vld [vmem:[%s9371_s11 + $0x6] ss:$8 sm:$0x3]  ;;  %s7795_s16 = sld [smem:[#allocation3 + %s3055_s4]]  ;;  %s9525_s4 = smov 93  }
 0x422   : > { %v2408_v23 = vperm.slane %v5520_v47, 1 }
 0x423   : > { %2825 = vrot.lane.b32.xlu2 %v7296_v43, %s9477_s10  ;;  %2633 = vrot.lane.b32.xlu0 %v7296_v43, %s9478_s15 }
 0x424   : > { %2635 = vrot.lane.b32.xlu1 %v7298_v13, %s9478_s15  ;;  %2940 = vmatpush.msra.mxu3 %v2475_v5 }
 0x425   : > { %3000 = vmatpush.msra.mxu2 %v2476_v9  ;;  %v2764_v10 = vpop.permute.xlu2 %2763  ;;  %v2448_v53 = vpop.permute.xlu0 %2447 }
 0x426   : > { %v2450_v20 = vpop.permute.xlu1 %2449 }
 0x427   : > { %v2451_v36 = vsel %vm9479_vm13, %v2448_v53, %v2450_v20  ;;  %v2452_v35 = vsel %vm9480_vm6, %v2450_v20, %v2448_v53  ;;  %vm9485_vm13 = vmmov %vm9484_vm3  ;;  %vm9488_vm6 = vcmp.lt.s32.totalorder %v6102_v4, 97  ;;  %v5519_v53 = vld [vmem:[%s9371_s11 + $0x5] ss:$8 sm:$0x3] }
 0x428   : > { %v2459_v49 = vmul.f32 %v2455_v46, %v2452_v35  ;;  %v2460_v39 = vmul.f32 %v2456_v0, %v2451_v36 }
 0x42a   : > { %2941 = vmatpush.msra.mxu3 %v2459_v49  ;;  %3001 = vmatpush.msra.mxu2 %v2460_v39  ;;  %v2391_v49 = vperm.slane %v5519_v53, 0  ;;  %v2392_v39 = vperm.slane %v5519_v53, 1 }
 0x42b   : > { %2619 = vrot.lane.b32.xlu2 %v7298_v13, %s9481_s5  ;;  %2827 = vrot.lane.b32.xlu0 %v7298_v13, %s9477_s10  ;;  %s9521_s10 = smov 30  }
 0x42c   : > { %2617 = vrot.lane.b32.xlu1 %v7296_v43, %s9481_s5  ;;  %s9490_s5 = smov 127  }
 0x42d   : > { %v7489_v34 = vpop.permute.xlu2 %2745  ;;  %v2796_v54 = vpop.permute.xlu0 %2795 }
 0x42e   : > { %v2432_v19 = vpop.permute.xlu1 %2431  ;;  %v2797_v62 = vsel %vm9482_vm5, %v7413_v32, %v2796_v54  ;;  %v2798_v44 = vsel %vm9483_vm0, %v2796_v54, %v7413_v32  ;;  %v2785_v32 = vperm.slane %v5544_v18, 0  ;;  %vm9489_vm5 = vmmov %vm9488_vm6  ;;  %vm9492_vm0 = vcmp.lt.s32.totalorder %v6102_v4, 19 }
 0x42f   : > { %v2435_v42 = vsel %vm9484_vm3, %v2432_v19, %v7432_v16  ;;  %v2436_v61 = vsel %vm9485_vm13, %v7432_v16, %v2432_v19  ;;  %v2805_v58 = vmul.f32 %v2801_v31, %v2797_v62  ;;  %v7503_v52 = vmul.f32 %v2802_v27, %v2798_v44  ;;  %v5521_v16 = vld [vmem:[%s9371_s11 + $0x7] ss:$8 sm:$0x3]  ;;  %vm9493_vm3 = vmmov %vm9492_vm0 }
 0x430   : > { %v2443_v59 = vmul.f32 %v2439_v1, %v2436_v61  ;;  %v2444_v30 = vmul.f32 %v2440_v38, %v2435_v42  ;;  %v2423_v28 = vperm.slane %v5521_v16, 0  ;;  %v2424_v26 = vperm.slane %v5521_v16, 1  ;;  %v5541_v42 = vld [vmem:[%s9371_s11 + $0x33] ss:$8 sm:$0x3] }
 0x431   : > { %2955 = vmatpush.msrb.mxu0 %v2805_v58  ;;  %vm9494_vm13 = vcmp.lt.s32.totalorder %v6102_v4, 98  ;;  %v2738_v58 = vperm.slane %v5541_v42, 1 }
 0x432   : > { %2942 = vmatpush.msra.mxu3 %v2443_v59  ;;  %3002 = vmatpush.msra.mxu2 %v2444_v30 }
 0x433   : > { %2601 = vrot.lane.b32.xlu2 %v7296_v43, %s9486_s14  ;;  %2809 = vrot.lane.b32.xlu0 %v7296_v43, %s9487_s22 }
 0x434   : > { %2811 = vrot.lane.b32.xlu1 %v7298_v13, %s9487_s22  ;;  %s9522_s22 = smov 125  }
 0x435   : > { %v2778_v57 = vpop.permute.xlu0 %2777  ;;  %v2386_v3 = vpop.permute.xlu2 %2385 }
 0x436   : > { %v2780_v12 = vpop.permute.xlu1 %2779 }
 0x437   : > { %v2781_v48 = vsel %vm9488_vm6, %v2778_v57, %v2780_v12  ;;  %v2782_v55 = vsel %vm9489_vm5, %v2780_v12, %v2778_v57  ;;  %vm9495_vm6 = vmmov %vm9494_vm13  ;;  %vm9497_vm5 = vcmp.lt.s32.totalorder %v6102_v4, 29  ;;  %v5518_v12 = vld [vmem:[%s9371_s11 + $0x4] ss:$8 sm:$0x3] }
 0x438   : > { %v2789_v51 = vmul.f32 %v2785_v32, %v2781_v48  ;;  %v7518_v25 = vmul.f32 %v2786_v41, %v2782_v55  ;;  %v2375_v48 = vperm.slane %v5518_v12, 0  ;;  %v2376_v55 = vperm.slane %v5518_v12, 1 }
 0x43a   : > { %2956 = vmatpush.msrb.mxu0 %v2789_v51 }
 0x43b   : > { %2587 = vrot.lane.b32.xlu2 %v7298_v13, %s9490_s5  ;;  %2603 = vrot.lane.b32.xlu0 %v7298_v13, %s9486_s14 }
 0x43c   : > { %2585 = vrot.lane.b32.xlu1 %v7296_v43, %s9490_s5  ;;  %s9523_s5 = smov 127  }
 0x43d   : > { %v2418_v40 = vpop.permute.xlu0 %2417  ;;  %v2368_v29 = vpop.permute.xlu2 %2367 }
 0x43e   : > { %v2762_v21 = vpop.permute.xlu1 %2761  ;;  %v2419_v45 = vsel %vm9492_vm0, %v7450_v17, %v2418_v40  ;;  %v2420_v11 = vsel %vm9493_vm3, %v2418_v40, %v7450_v17  ;;  %v2407_v17 = vperm.slane %v5520_v47, 0  ;;  %vm9498_vm0 = vmmov %vm9497_vm5  ;;  %vm9499_vm3 = vcmp.lt.s32.totalorder %v6102_v4, 30 }
 0x43f   : > { %v2765_v50 = vsel %vm9494_vm13, %v2762_v21, %v2764_v10  ;;  %v2766_v22 = vsel %vm9495_vm6, %v2764_v10, %v2762_v21  ;;  %v2427_v7 = vmul.f32 %v2423_v28, %v2420_v11  ;;  %v2428_v60 = vmul.f32 %v2424_v26, %v2419_v45  ;;  %v5542_v10 = vld [vmem:[%s9371_s11 + $0x34] ss:$8 sm:$0x3]  ;;  %vm9500_vm13 = vmmov %vm9499_vm3 }
 0x440   : > { %v2773_v24 = vmul.f32 %v2769_v56, %v2765_v50  ;;  %v7542_v63 = vmul.f32 %v2770_v2, %v2766_v22  ;;  %v2753_v36 = vperm.slane %v5542_v10, 0  ;;  %v2754_v35 = vperm.slane %v5542_v10, 1 }
 0x441   : > { %2943 = vmatpush.msra.mxu3 %v2427_v7  ;;  %3003 = vmatpush.msra.mxu2 %v2428_v60  ;;  %vm9501_vm6 = vcmp.lt.s32.totalorder %v6102_v4, 31  ;;  %v5517_v7 = vld [vmem:[%s9371_s11 + $0x3] ss:$8 sm:$0x3] }
 0x442   : > { %2957 = vmatpush.msrb.mxu0 %v2773_v24  ;;  %v2359_v60 = vperm.slane %v5517_v7, 0  ;;  %v2360_v24 = vperm.slane %v5517_v7, 1 }
 0x443   : > { %2929 = vperm.xlu2 %5688, %v5514_v8   ;;  %2559 = vrot.lane.b32.xlu0 %v7296_v43, %s9496_s18 }
 0x444   : > { %2561 = vrot.lane.b32.xlu1 %v7298_v13, %s9496_s18  ;;  %s9524_s18 = smov 31  }
 0x445   : > { %v2400_v15 = vpop.permute.xlu0 %2399  ;;  %v2716_v20 = vpop.permute.xlu2 %2715 }
 0x446   : > { %v2402_v14 = vpop.permute.xlu1 %2401 }
 0x447   : > { %v2403_v5 = vsel %vm9497_vm5, %v2400_v15, %v2402_v14  ;;  %v2404_v9 = vsel %vm9498_vm0, %v2402_v14, %v2400_v15  ;;  %vm9502_vm5 = vmmov %vm9501_vm6  ;;  %vm9503_vm0 = vcmp.lt.s32.totalorder %v6102_v4, 32 }
 0x448   : > { %v2411_v46 = vmul.f32 %v2407_v17, %v2404_v9  ;;  %v2412_v0 = vmul.f32 %v2408_v23, %v2403_v5  ;;  %v5539_v5 = vld [vmem:[%s9371_s11 + $0x31] ss:$8 sm:$0x3]  ;;  %v5516_v9 = vld [vmem:[%s9371_s11 + $0x2] ss:$8 sm:$0x3] }
 0x449   : > { %v2343_v10 = vperm.slane %v5516_v9, 0  ;;  %v2344_v53 = vperm.slane %v5516_v9, 1 }
 0x44a   : > { %2944 = vmatpush.msra.mxu3 %v2411_v46  ;;  %3004 = vmatpush.msra.mxu2 %v2412_v0  ;;  %v2705_v46 = vperm.slane %v5539_v5, 0  ;;  %v2706_v0 = vperm.slane %v5539_v5, 1 }
 0x44d   : > { %v2748_v33 = vpop.permute.xlu0 %2747  ;;  %v2698_v61 = vpop.permute.xlu2 %2697 }
 0x44e   : > { %v2384_v6 = vpop.permute.xlu1 %2383  ;;  %v2749_v31 = vsel %vm1198_vm8, %v7489_v34, %v2748_v33  ;;  %v2750_v27 = vsel %vm1198_vm8, %v2748_v33, %v7489_v34  ;;  %v2737_v34 = vperm.slane %v5541_v42, 0 }
 0x44f   : > { %v2387_v1 = vsel %vm9499_vm3, %v2384_v6, %v2386_v3  ;;  %v2388_v38 = vsel %vm9500_vm13, %v2386_v3, %v2384_v6  ;;  %v2757_v54 = vmul.f32 %v2753_v36, %v2749_v31  ;;  %v7572_v19 = vmul.f32 %v2754_v35, %v2750_v27  ;;  %v5540_v3 = vld [vmem:[%s9371_s11 + $0x32] ss:$8 sm:$0x3]  ;;  %vm9504_vm3 = vmmov %vm9503_vm0 }
 0x450   : > { %v2395_v62 = vmul.f32 %v2391_v49, %v2388_v38  ;;  %v2396_v44 = vmul.f32 %v2392_v39, %v2387_v1  ;;  %v2721_v51 = vperm.slane %v5540_v3, 0  ;;  %v2722_v16 = vperm.slane %v5540_v3, 1  ;;  %v7625_v38 = vld [vmem:[%s9371_s11 + $0x30] ss:$8 sm:$0x3] }
 0x451   : > { %2958 = vmatpush.msrb.mxu0 %v2757_v54  ;;  %vm9505_vm13 = vcmp.lt.s32.totalorder %v6102_v4, 33 }
 0x452   : > { %2945 = vmatpush.msra.mxu3 %v2395_v62  ;;  %3005 = vmatpush.msra.mxu2 %v2396_v44  ;;  %v2689_v62 = vperm.slane %v7625_v38, 0 }
 0x455   : > { %v2730_v59 = vpop.permute.xlu0 %2729  ;;  %v2338_v28 = vpop.permute.xlu2 %2337 }
 0x456   : > { %v2732_v30 = vpop.permute.xlu1 %2731 }
 0x457   : > { %v2733_v18 = vsel %vm1180_vm11, %v2730_v59, %v2732_v30  ;;  %v2734_v32 = vsel %vm1180_vm11, %v2732_v30, %v2730_v59  ;;  %v7644_v59 = vld [vmem:[%s9371_s11 + $0x27] ss:$8 sm:$0x3] }
 0x458   : > { %v2741_v41 = vmul.f32 %v2737_v34, %v2733_v18  ;;  %v7581_v57 = vmul.f32 %v2738_v58, %v2734_v32  ;;  %v5515_v58 = vld [vmem:[%s9371_s11 + $0x1] ss:$8 sm:$0x3] }
 0x459   : > { %v2327_v30 = vperm.slane %v5515_v58, 0  ;;  %v2328_v18 = vperm.slane %v5515_v58, 1 }
 0x45a   : > { %2959 = vmatpush.msrb.mxu0 %v2741_v41  ;;  %v2673_v41 = vperm.slane %v7644_v59, 0 }
 0x45d   : > { %v2370_v37 = vpop.permute.xlu0 %2369  ;;  %v2320_v23 = vpop.permute.xlu2 %2319 }
 0x45e   : > { %v2714_v26 = vpop.permute.xlu1 %2713  ;;  %v2371_v56 = vsel %vm9501_vm6, %v2368_v29, %v2370_v37  ;;  %v2372_v2 = vsel %vm9502_vm5, %v2370_v37, %v2368_v29  ;;  %vm9506_vm6 = vmmov %vm9505_vm13  ;;  %vm9507_vm5 = vcmp.lt.s32.totalorder %v6102_v4, 34 }
 0x45f   : > { %v2717_v40 = vsel %vm1162_vm12, %v2714_v26, %v2716_v20  ;;  %v2718_v21 = vsel %vm1162_vm12, %v2716_v20, %v2714_v26  ;;  %v2379_v45 = vmul.f32 %v2375_v48, %v2372_v2  ;;  %v2380_v11 = vmul.f32 %v2376_v55, %v2371_v56  ;;  %v2309_v26 = vld [vmem:[%s9371_s11] ss:$8 sm:$0x3] }
 0x460   : > { %v2725_v50 = vmul.f32 %v2721_v51, %v2717_v40  ;;  %v7597_v22 = vmul.f32 %v2722_v16, %v2718_v21  ;;  %v2311_v56 = vperm.slane %v2309_v26, 0  ;;  %v2312_v2 = vperm.slane %v2309_v26, 1 }
 0x461   : > { %2946 = vmatpush.msra.mxu3 %v2379_v45  ;;  %3006 = vmatpush.msra.mxu2 %v2380_v11 }
 0x462   : > { %2960 = vmatpush.msrb.mxu0 %v2725_v50 }
 0x465   : > { %v2352_v29 = vpop.permute.xlu0 %2351  ;;  %v7627_v54 = vpop.permute.xlu2 %2667 }
 0x466   : > { %v2354_v8 = vpop.permute.xlu1 %2353 }
 0x467   : > { %v2355_v47 = vsel %vm9503_vm0, %v2352_v29, %v2354_v8  ;;  %v2356_v17 = vsel %vm9504_vm3, %v2354_v8, %v2352_v29  ;;  %vm9508_vm0 = vmmov %vm9507_vm5  ;;  %vm9509_vm3 = vcmp.lt.s32.totalorder %v6102_v4, 35  ;;  %v7670_v29 = vld [vmem:[%s9371_s11 + $0x26] ss:$8 sm:$0x3] }
 0x468   : > { %v2363_v15 = vmul.f32 %v2359_v60, %v2356_v17  ;;  %v2364_v14 = vmul.f32 %v2360_v24, %v2355_v47  ;;  %v5511_v24 = vld [vmem:[%s6508_s27 + $0x30] sm:$0xff]  ;;  %v5548_v8 = vld [vmem:[%s9371_s11 + $0x42] ss:$8 sm:$0x3]  ;;  %v2657_v47 = vperm.slane %v7670_v29, 0 }
 0x469   : > { %v2849_v17 = vperm.slane %v5548_v8, 0 }
 0x46a   : > { %2947 = vmatpush.msra.mxu3 %v2363_v15  ;;  %3007 = vmatpush.msra.mxu2 %v2364_v14 }
 0x46d   : > { %v2700_v20 = vpop.permute.xlu0 %2699  ;;  %v7646_v32 = vpop.permute.xlu2 %2649 }
 0x46e   : > { %v2336_v36 = vpop.permute.xlu1 %2335  ;;  %v2701_v35 = vsel %vm1144_vm14, %v2698_v61, %v2700_v20  ;;  %v2702_v49 = vsel %vm1144_vm14, %v2700_v20, %v2698_v61 }
 0x46f   : > { %v2339_v39 = vsel %vm9505_vm13, %v2336_v36, %v2338_v28  ;;  %v2340_v33 = vsel %vm9506_vm6, %v2338_v28, %v2336_v36  ;;  %v2709_v6 = vmul.f32 %v2705_v46, %v2701_v35  ;;  %v7620_v31 = vmul.f32 %v2706_v0, %v2702_v49  ;;  %vm9510_vm13 = vmmov %vm9509_vm3  ;;  %v7689_v36 = vld [vmem:[%s9371_s11 + $0x25] ss:$8 sm:$0x3] }
 0x470   : > { %v2347_v27 = vmul.f32 %v2343_v10, %v2340_v33  ;;  %v2348_v1 = vmul.f32 %v2344_v53, %v2339_v39  ;;  %v2641_v35 = vperm.slane %v7689_v36, 0  ;;  %vm9511_vm6 = vcmp.lt.s32.totalorder %v6102_v4, 115 }
 0x471   : > { %2961 = vmatpush.msrb.mxu0 %v2709_v6 }
 0x472   : > { %2948 = vmatpush.msra.mxu3 %v2347_v27  ;;  %3008 = vmatpush.msra.mxu2 %v2348_v1  ;;  %v5547_v27 = vld [vmem:[%s9371_s11 + $0x41] ss:$8 sm:$0x3]  ;;  %v7706_v1 = vld [vmem:[%s9371_s11 + $0x24] ss:$8 sm:$0x3] }
 0x473   : > { %v2625_v58 = vperm.slane %v7706_v1, 0 }
 0x475   : > { %v7630_v44 = vpop.permute.xlu0 %2681  ;;  %v2844_v21 = vpop.permute.xlu2 %2843 }
 0x476   : > { %v7632_v42 = vpop.permute.xlu1 %2683 }
 0x477   : > { %v2685_v61 = vsel %vm1126_vm15, %v7630_v44, %v7632_v42 }
 0x478   : > { %v2693_v34 = vmul.f32 %v2689_v62, %v2685_v61  ;;  %v2833_v61 = vperm.slane %v5547_v27, 0 }
 0x47a   : > { %2962 = vmatpush.msrb.mxu0 %v2693_v34  ;;  %v2834_v34 = vperm.slane %v5547_v27, 1  ;;  %v2658_v27 = vperm.slane %v7670_v29, 1 }
 0x47d   : > { %v2322_v12 = vpop.permute.xlu0 %2321  ;;  %v2826_v10 = vpop.permute.xlu2 %2825 }
 0x47e   : > { %v7649_v3 = vpop.permute.xlu1 %2665  ;;  %v2323_v48 = vsel %vm9507_vm5, %v2320_v23, %v2322_v12  ;;  %v2324_v55 = vsel %vm9508_vm0, %v2322_v12, %v2320_v23  ;;  %v2850_v23 = vperm.slane %v5548_v8, 1  ;;  %vm9512_vm5 = vcmask 195584  }
 0x47f   : > { %v2669_v51 = vsel %vm1108_vm9, %v7649_v3, %v7627_v54  ;;  %v2331_v16 = vmul.f32 %v2327_v30, %v2324_v55  ;;  %v2332_v37 = vmul.f32 %v2328_v18, %v2323_v48  ;;  %vm9513_vm0 = vmmov %vm9512_vm5 }
 0x480   : > { %v2677_v28 = vmul.f32 %v2673_v41, %v2669_v51 }
 0x481   : > { %2949 = vmatpush.msra.mxu3 %v2331_v16  ;;  %3009 = vmatpush.msra.mxu2 %v2332_v37  ;;  %v5546_v37 = vld [vmem:[%s9371_s11 + $0x40] ss:$8 sm:$0x3] }
 0x482   : > { %2963 = vmatpush.msrb.mxu0 %v2677_v28  ;;  %v2817_v26 = vperm.slane %v5546_v37, 0 }
 0x485   : > { %v2304_v40 = vpop.permute.xlu0 %2303  ;;  %v7708_v62 = vpop.permute.xlu2 %2619 }
 0x486   : > { %v2306_v45 = vpop.permute.xlu1 %2305 }
 0x487   : > { %v2307_v11 = vsel %vm9509_vm3, %v2304_v40, %v2306_v45  ;;  %v2308_v50 = vsel %vm9510_vm13, %v2306_v45, %v2304_v40  ;;  %vm9514_vm3 = vcmp.lt.s32.totalorder %v6102_v4, 126  ;;  %vm9515_vm13 = vcmp.lt.s32.totalorder %v6102_v4, 127 }
 0x488   : > { %v2315_v7 = vmul.f32 %v2311_v56, %v2308_v50  ;;  %v2316_v60 = vmul.f32 %v2312_v2, %v2307_v11  ;;  %v2818_v56 = vperm.slane %v5546_v37, 1 }
 0x48a   : > { %2950 = vmatpush.msra.mxu3 %v2315_v7  ;;  %3010 = vmatpush.msra.mxu2 %v2316_v60  ;;  %v5533_v7 = vld [vmem:[%s9371_s11 + $0x23] ss:$8 sm:$0x3] }
 0x48b   : > { %2951 = vmatmul.f32.vlgmr.msra.gmra.mxu3 %v5511_v24  ;;  %3011 = vmatmul.f32.vlgmr.msra.gmra.mxu2 %v5511_v24  ;;  %v5513_v60 = vld [vmem:[%s6508_s27 + $0x40] sm:$0xff]  ;;  %v2609_v8 = vperm.slane %v5533_v7, 0 }
 0x48c   : > { %v5532_v24 = vld [vmem:[%s9371_s11 + $0x22] ss:$8 sm:$0x3] }
 0x48d   : > { %v7676_v15 = vpop.permute.xlu0 %2651  ;;  %v7724_v28 = vpop.permute.xlu2 %2601 }
 0x48e   : > { %v2842_v14 = vpop.permute.xlu1 %2841  ;;  %v2653_v5 = vsel %vm1090_vm10, %v7646_v32, %v7676_v15 }
 0x48f   : > { %v2845_v9 = vsel %vm1306_vm7, %v2842_v14, %v2844_v21  ;;  %v2846_v46 = vsel %vm1306_vm7, %v2844_v21, %v2842_v14  ;;  %v2661_v0 = vmul.f32 %v2657_v47, %v2653_v5  ;;  %v5531_v47 = vld [vmem:[%s9371_s11 + $0x21] ss:$8 sm:$0x3] }
 0x490   : > { %v2853_v53 = vmul.f32 %v2849_v17, %v2845_v9  ;;  %v2854_v20 = vmul.f32 %v2850_v23, %v2846_v46  ;;  %v2593_v17 = vperm.slane %v5532_v24, 0 }
 0x491   : > { %2964 = vmatpush.msrb.mxu0 %v2661_v0  ;;  %v2577_v0 = vperm.slane %v5531_v47, 0 }
 0x492   : > { %2988 = vmatpush.msrb.mxu1 %v2853_v53  ;;  %3048 = vmatpush.msrb.mxu3 %v2854_v20  ;;  %v2690_v53 = vperm.slane %v7625_v38, 1 }
 0x493   : > { %v2581_v20 = vmul.f32 %v2577_v0, %v7296_v43 }
 0x495   : > { %v7692_v49 = vpop.permute.xlu0 %2633  ;;  %v2588_v14 = vpop.permute.xlu2 %2587 }
 0x496   : > { %v7694_v39 = vpop.permute.xlu1 %2635 }
 0x497   : > { %v2637_v33 = vsel %vm9511_vm6, %v7692_v49, %v7694_v39  ;;  %vm9516_vm6 = vcmp.lt.s32.totalorder %v6102_v4, 1 }
 0x498   : > { %v2645_v6 = vmul.f32 %v2641_v35, %v2637_v33 }
 0x49a   : > { %2965 = vmatpush.msrb.mxu0 %v2645_v6 }
 0x49d   : > { %v2828_v30 = vpop.permute.xlu0 %2827 }
 0x49e   : > { %v7711_v18 = vpop.permute.xlu1 %2617  ;;  %v2829_v41 = vsel %vm1288_vm4, %v2826_v10, %v2828_v30  ;;  %v2830_v12 = vsel %vm1288_vm4, %v2828_v30, %v2826_v10  ;;  %v2578_v30 = vperm.slane %v5531_v47, 1 }
 0x49f   : > { %v2621_v48 = vsel %vm1054_vm2, %v7711_v18, %v7708_v62  ;;  %v2837_v55 = vmul.f32 %v2833_v61, %v2829_v41  ;;  %v2838_v51 = vmul.f32 %v2834_v34, %v2830_v12  ;;  %v2642_v34 = vperm.slane %v7689_v36, 1 }
 0x4a0   : > { %v2629_v16 = vmul.f32 %v2625_v58, %v2621_v48 }
 0x4a1   : > { %2989 = vmatpush.msrb.mxu1 %v2837_v55  ;;  %3049 = vmatpush.msrb.mxu3 %v2838_v51  ;;  %v2930_v51 = vpop.permute.xlu2 %2929 }
 0x4a2   : > { %2966 = vmatpush.msrb.mxu0 %v2629_v16 }
 0x4a5   : > { %v2810_v2 = vpop.permute.xlu0 %2809 }
 0x4a6   : > { %v2812_v40 = vpop.permute.xlu1 %2811 }
 0x4a7   : > { %v2813_v21 = vsel %vm1270_vm1, %v2810_v2, %v2812_v40  ;;  %v2814_v45 = vsel %vm1270_vm1, %v2812_v40, %v2810_v2 }
 0x4a8   : > { %v2821_v11 = vmul.f32 %v2817_v26, %v2813_v21  ;;  %v2822_v50 = vmul.f32 %v2818_v56, %v2814_v45  ;;  %v3059_v56 = vstv %s7795_s16  ;;  %s9526_s16 = smov 95  }
 0x4aa   : > { %2990 = vmatpush.msrb.mxu1 %v2821_v11  ;;  %3050 = vmatpush.msrb.mxu3 %v2822_v50 }
 0x4ab   : > { %5550 = vmatmul.msk.f32.vlgmr.msrb.gmra.mxu3 %vm9512_vm5, %v5513_v60  ;;  %5549 = vmatmul.msk.f32.vlgmr.msrb.gmra.mxu1 %vm9513_vm0, %v5513_v60  ;;  %vm9517_vm5 = vcmp.lt.s32.totalorder %v6102_v4, 115  ;;  %vm9518_vm0 = vmmov %vm9514_vm3 }
 0x4ac   : > { %3015 = vmatpush.msra.mxu1 %v7503_v52 }
 0x4ad   : > { %v2604_v23 = vpop.permute.xlu0 %2603 }
 0x4ae   : > { %3016 = vmatpush.msra.mxu1 %v7518_v25  ;;  %v2586_v5 = vpop.permute.xlu1 %2585  ;;  %v2605_v9 = vsel %vm9514_vm3, %v7724_v28, %v2604_v23  ;;  %v5530_v25 = vld [vmem:[%s9371_s11 + $0x20] ss:$8 sm:$0x3]  ;;  %v2606_v36 = vsel %vm9518_vm0, %v2604_v23, %v7724_v28  ;;  %vm9519_vm3 = vmmov %vm9515_vm13  ;;  %s9529_s11 = smov 34   ;;  %vm9539_vm0 = vcmp.lt.s32.totalorder %v6102_v4, 2 }
 0x4af   : > { %v2589_v52 = vsel %vm9515_vm13, %v2586_v5, %v2588_v14  ;;  %v2613_v46 = vmul.f32 %v2609_v8, %v2605_v9  ;;  %v2567_v35 = vperm.slane %v5530_v25, 0  ;;  %v2568_v12 = vperm.slane %v5530_v25, 1  ;;  %vm9520_vm13 = vmmov %vm9516_vm6 }
 0x4b0   : > { %3017 = vmatpush.msra.mxu1 %v7542_v63  ;;  %v2597_v10 = vmul.f32 %v2593_v17, %v2589_v52  ;;  %v2686_v63 = vsel %vm1126_vm15, %v7632_v42, %v7630_v44  ;;  %v5512_v42 = vld [vmem:[%s6508_s27 + $0x38] sm:$0xff]  ;;  %s9528_s27 = smov 94  }
 0x4b1   : > { %2967 = vmatpush.msrb.mxu0 %v2613_v46  ;;  %v2694_v6 = vmul.f32 %v2690_v53, %v2686_v63 }
 0x4b2   : > { %3018 = vmatpush.msra.mxu1 %v7572_v19  ;;  %v2674_v19 = vperm.slane %v7644_v59, 1 }
 0x4b3   : > { %2968 = vmatpush.msrb.mxu0 %v2597_v10 }
 0x4b4   : > { %3019 = vmatpush.msra.mxu1 %v7581_v57  ;;  %v2670_v57 = vsel %vm1108_vm9, %v7627_v54, %v7649_v3  ;;  %v2638_v54 = vsel %vm9517_vm5, %v7694_v39, %v7692_v49  ;;  %v2594_v49 = vperm.slane %v5532_v24, 1  ;;  %v2590_v39 = vsel %vm9519_vm3, %v2588_v14, %v2586_v5  ;;  %vm9540_vm3 = vmmov %vm9539_vm0 }
 0x4b5   : > { %v2560_v33 = vpop.permute.xlu0 %2559  ;;  %2969 = vmatpush.msrb.mxu0 %v2581_v20  ;;  %v2678_v59 = vmul.f32 %v2674_v19, %v2670_v57  ;;  %v2646_v29 = vmul.f32 %v2642_v34, %v2638_v54 }
 0x4b6   : > { %3020 = vmatpush.msra.mxu1 %v7597_v22  ;;  %v2562_v38 = vpop.permute.xlu1 %2561  ;;  %v2654_v22 = vsel %vm1090_vm10, %v7676_v15, %v7646_v32  ;;  %v2622_v32 = vsel %vm1054_vm2, %v7708_v62, %v7711_v18  ;;  %v2610_v15 = vperm.slane %v5533_v7, 1  ;;  %v2598_v41 = vmul.f32 %v2594_v49, %v2590_v39 }
 0x4b7   : > { %v2564_v61 = vsel %vm9516_vm6, %v2562_v38, %v2560_v33  ;;  %v2662_v3 = vmul.f32 %v2658_v27, %v2654_v22  ;;  %v2563_v62 = vsel %vm9520_vm13, %v2560_v33, %v2562_v38  ;;  %v2582_v18 = vmul.f32 %v2578_v30, %v7298_v13 }
 0x4b8   : > { %3021 = vmatpush.msra.mxu1 %v7620_v31  ;;  %v2571_v44 = vmul.f32 %v2567_v35, %v2564_v61  ;;  %v2626_v31 = vperm.slane %v7706_v1, 1  ;;  %v2614_v1 = vmul.f32 %v2610_v15, %v2606_v36  ;;  %v2572_v48 = vmul.f32 %v2568_v12, %v2563_v62 }
 0x4b9   : > { %vm9544_vm13 = vcmp.lt.s32.totalorder %v6102_v4, 96 }
 0x4ba   : > { %3022 = vmatpush.msra.mxu1 %v2694_v6  ;;  %2970 = vmatpush.msrb.mxu0 %v2571_v44  ;;  %v2630_v58 = vmul.f32 %v2626_v31, %v2622_v32 }
 0x4bb   : > { %2971 = vmatmul.f32.vlgmr.msrb.gmra.mxu0 %v5512_v42 }
 0x4bc   : > { %3023 = vmatpush.msra.mxu1 %v2678_v59 }
 0x4be   : > { %3024 = vmatpush.msra.mxu1 %v2662_v3 }
 0x4c0   : > { %3025 = vmatpush.msra.mxu1 %v2646_v29 }
 0x4c2   : > { %3026 = vmatpush.msra.mxu1 %v2630_v58 }
 0x4c4   : > { %3027 = vmatpush.msra.mxu1 %v2614_v1 }
 0x4c6   : > { %3028 = vmatpush.msra.mxu1 %v2598_v41 }
 0x4c8   : > { %3029 = vmatpush.msra.mxu1 %v2582_v18 }
 0x4ca   : > { %3030 = vmatpush.msra.mxu1 %v2572_v48 }
 0x4cb   : > { %3031 = vmatmul.f32.vlgmr.msra.gmra.mxu1 %v5512_v42 }
 0x50e   : > { %v2952_v55 = vpop.f32.mrf.mxu3  ;;  %v3012_v45 = vpop.f32.mrf.mxu2 }
 0x50f   : > { %v2953_v16 = vadd.f32 %v2952_v55, %v2930_v51  ;;  %v3013_v50 = vadd.f32 %v3012_v45, %v2930_v51 }
 0x528   : > { %v2992_v28 = vpop.f32.mrf.mxu1 }
 0x52e   : > { %v3052_v60 = vpop.f32.mrf.mxu3 }
 0x538   : > { %v2972_v37 = vpop.f32.mrf.mxu0 }
 0x539   : > { %v2973_v26 = vadd.f32 %v2972_v37, %v2953_v16 }
 0x53b   : > { %v2993_v2 = vadd.f32 %v2992_v28, %v2973_v26 }
 0x53d   : > { %vm3057_vm6 = vcmp.gt.f32.partialorder %v2993_v2, 0.0  ;;  %v3060_v40 = vmul.f32 %v3059_v56, %v2993_v2 }
 0x53f   : > { %v7798_v21 = vsel %vm3057_vm6, %v2993_v2, %v3060_v40  ;;  %vm9545_vm6 = vmmov %vm9544_vm13 }
 0x540   : > { %3310 = vrot.lane.b32.xlu1 %v7798_v21, %s9395_s7  ;;  %3544 = vrot.lane.b32.xlu2 %v7798_v21, %s9379_s20 }
 0x541   : > { %3560 = vrot.lane.b32.xlu0 %v7798_v21, %s9399_s6 }
 0x548   : > { %3512 = vrot.lane.b32.xlu1 %v7798_v21, %s9381_s26  ;;  %3294 = vrot.lane.b32.xlu2 %v7798_v21, %s9398_s8  ;;  %v3032_v11 = vpop.f32.mrf.mxu1 }
 0x549   : > { %3528 = vrot.lane.b32.xlu0 %v7798_v21, %s9377_s17  ;;  %v3033_v7 = vadd.f32 %v3032_v11, %v3013_v50 }
 0x54b   : > { %v3053_v24 = vadd.f32 %v3052_v60, %v3033_v7 }
 0x54d   : > { %v3061_v8 = vmul.f32 %v3059_v56, %v3053_v24  ;;  %vm3058_vm5 = vcmp.gt.f32.partialorder %v3053_v24, 0.0 }
 0x54f   : > { %v7866_v47 = vsel %vm3058_vm5, %v3053_v24, %v3061_v8  ;;  %vm9546_vm5 = vcmp.lt.s32.totalorder %v6102_v4, 97 }
 0x550   : > { %3262 = vrot.lane.b32.xlu1 %v7798_v21, %s9382_s28  ;;  %3496 = vrot.lane.b32.xlu2 %v7798_v21, %s9385_s24 }
 0x551   : > { %3278 = vrot.lane.b32.xlu0 %v7798_v21, %s9378_s19 }
 0x558   : > { %3464 = vrot.lane.b32.xlu1 %v7798_v21, %s9387_s1  ;;  %3246 = vrot.lane.b32.xlu2 %v7798_v21, %s9380_s30 }
 0x559   : > { %3480 = vrot.lane.b32.xlu0 %v7798_v21, %s9383_s25 }
 0x560   : > { %3214 = vrot.lane.b32.xlu1 %v7798_v21, %s9388_s2  ;;  %3448 = vrot.lane.b32.xlu2 %v7798_v21, %s9460_s3 }
 0x561   : > { %3230 = vrot.lane.b32.xlu0 %v7798_v21, %s9384_s23 }
 0x568   : > { %3416 = vrot.lane.b32.xlu1 %v7798_v21, %s9468_s13  ;;  %3198 = vrot.lane.b32.xlu2 %v7798_v21, %s9386_s0 }
 0x569   : > { %3432 = vrot.lane.b32.xlu0 %v7798_v21, %s9463_s29 }
 0x570   : > { %3166 = vrot.lane.b32.xlu1 %v7798_v21, %s9394_s9  ;;  %3400 = vrot.lane.b32.xlu2 %v7798_v21, %s9478_s15 }
 0x571   : > { %3182 = vrot.lane.b32.xlu0 %v7798_v21, %s9390_s12 }
 0x578   : > { %3368 = vrot.lane.b32.xlu1 %v7798_v21, %s9486_s14  ;;  %3150 = vrot.lane.b32.xlu2 %v7798_v21, %s9521_s10 }
 0x579   : > { %3384 = vrot.lane.b32.xlu0 %v7798_v21, %s9522_s22 }
 0x580   : > { %3352 = vrot.lane.b32.xlu1 %v7798_v21, %s9523_s5  ;;  %3134 = vrot.lane.b32.xlu2 %v7798_v21, %s9524_s18  ;;  %s9530_s18 = smov 1   ;;  %s9531_s5 = smov 33  }
 0x581   : > { %3608 = vrot.lane.b32.xlu0 %v7798_v21, %s9525_s4 }
 0x588   : > { %3576 = vrot.lane.b32.xlu1 %v7798_v21, %s9526_s16  ;;  %3118 = vrot.lane.b32.xlu2 %v7798_v21, %s9527_s21 }
 0x589   : > { %3592 = vrot.lane.b32.xlu0 %v7798_v21, %s9528_s27 }
 0x590   : > { %3086 = vrot.lane.b32.xlu1 %v7798_v21, %s9529_s11  ;;  %3326 = vrot.lane.b32.xlu2 %v7798_v21, %s9530_s18 }
 0x591   : > { %3102 = vrot.lane.b32.xlu0 %v7798_v21, %s9531_s5 }
 0x598   : > { %3562 = vrot.lane.b32.xlu1 %v7866_v47, %s9399_s6  ;;  %3312 = vrot.lane.b32.xlu2 %v7866_v47, %s9395_s7  ;;  %s9535_s6 = sld [smem:[#allocation13_spill]] }
 0x599   : > { %3546 = vrot.lane.b32.xlu0 %v7866_v47, %s9379_s20  ;;  %s9575_s7 = sld [smem:[#allocation15_spill]] }
 0x59a   : > { %v7874_v17 = vpop.permute.xlu2 %3544 }
 0x5a0   : > { %3530 = vrot.lane.b32.xlu1 %v7866_v47, %s9377_s17  ;;  %3514 = vrot.lane.b32.xlu2 %v7866_v47, %s9381_s26  ;;  %s9542_s26 = sld [smem:[#allocation25_spill]] }
 0x5a1   : > { %3296 = vrot.lane.b32.xlu0 %v7866_v47, %s9398_s8  ;;  %s9643_s17 = sld [smem:[#allocation33_spill]] }
 0x5a2   : > { %v7882_v23 = vpop.permute.xlu2 %3294 }
 0x5a8   : > { %3280 = vrot.lane.b32.xlu1 %v7866_v47, %s9378_s19  ;;  %3264 = vrot.lane.b32.xlu2 %v7866_v47, %s9382_s28  ;;  %s9541_s19 = sld [smem:[#allocation14_spill]] }
 0x5a9   : > { %3498 = vrot.lane.b32.xlu0 %v7866_v47, %s9385_s24 }
 0x5aa   : > { %v7890_v14 = vpop.permute.xlu2 %3496 }
 0x5ae   : > { %s689_s20 = scalar_lea.vmem %s9643_s17, %s9541_s19 }
 0x5b0   : > { %3482 = vrot.lane.b32.xlu1 %v7866_v47, %s9383_s25  ;;  %3466 = vrot.lane.b32.xlu2 %v7866_v47, %s9387_s1  ;;  %s9533_s1 = smov 31   ;;  %s9538_s25 = sld [smem:[#allocation24_spill]] }
 0x5b1   : > { %3248 = vrot.lane.b32.xlu0 %v7866_v47, %s9380_s30 }
 0x5b2   : > { %v3311_v5 = vpop.permute.xlu1 %3310  ;;  %v7898_v9 = vpop.permute.xlu2 %3246 }
 0x5b3   : > { %v7900_v52 = vpop.permute.xlu0 %3560 }
 0x5b8   : > { %3232 = vrot.lane.b32.xlu1 %v7866_v47, %s9384_s23  ;;  %3216 = vrot.lane.b32.xlu2 %v7866_v47, %s9388_s2  ;;  %s9534_s2 = sld [smem:[#allocation16_spill]]  ;;  %s9537_s23 = smov 35  }
 0x5b9   : > { %3450 = vrot.lane.b32.xlu0 %v7866_v47, %s9460_s3  ;;  %s5430_s3 = sshll.u32 %s9535_s6, 3 }
 0x5ba   : > { %v7908_v46 = vpop.permute.xlu1 %3512  ;;  %v7910_v0 = vpop.permute.xlu2 %3448 }
 0x5bb   : > { %v7912_v10 = vpop.permute.xlu0 %3528 }
 0x5be   : > { %v5554_v3 = vld [vmem:[%s9534_s2 + $0x18] sm:$0xff] }
 0x5c0   : > { %3434 = vrot.lane.b32.xlu1 %v7866_v47, %s9463_s29  ;;  %3418 = vrot.lane.b32.xlu2 %v7866_v47, %s9468_s13  ;;  %s9543_s13 = sld [smem:[#allocation27_spill]] }
 0x5c1   : > { %3200 = vrot.lane.b32.xlu0 %v7866_v47, %s9386_s0  ;;  %s9532_s0 = smov 127  }
 0x5c2   : > { %v7920_v25 = vpop.permute.xlu1 %3262  ;;  %v7922_v53 = vpop.permute.xlu2 %3198 }
 0x5c3   : > { %v7924_v20 = vpop.permute.xlu0 %3278 }
 0x5c8   : > { %3184 = vrot.lane.b32.xlu1 %v7866_v47, %s9390_s12  ;;  %3168 = vrot.lane.b32.xlu2 %v7866_v47, %s9394_s9  ;;  %s9536_s9 = sld [smem:[#allocation30_spill]]  ;;  %s7991_s12 = smul.u32 24, %s9535_s6 }
 0x5c9   : > { %3402 = vrot.lane.b32.xlu0 %v7866_v47, %s9478_s15  ;;  %s8039_s15 = scalar_lea.vmem %s9543_s13, %s9541_s19 }
 0x5ca   : > { %v7932_v63 = vpop.permute.xlu1 %3464  ;;  %v7934_v35 = vpop.permute.xlu2 %3400  ;;  %s8021_s28 = scalar_lea.vmem %s9542_s26, %s7991_s12  ;;  %v5063_v2 = vld [vmem:[%s8039_s15] sm:$0xff] }
 0x5cb   : > { %v7936_v19 = vpop.permute.xlu0 %3480  ;;  %v3923_v37 = vld [vmem:[%s8021_s28 + $0x8] sm:$0xff] }
 0x5ce   : > { %v5569_v31 = vld [vmem:[%s9536_s9 + $0x17] ss:$8 sm:$0x3]  ;;  %v5582_v12 = vld [vmem:[%s9536_s9 + $0x34] ss:$8 sm:$0x3] }
 0x5cf   : > { %v3318_v32 = vperm.slane %v5569_v31, 0  ;;  %v3319_v29 = vperm.slane %v5569_v31, 1  ;;  %v3521_v62 = vperm.slane %v5582_v12, 1  ;;  %v5585_v40 = vld [vmem:[%s9536_s9 + $0x37] ss:$8 sm:$0x3] }
 0x5d0   : > { %3386 = vrot.lane.b32.xlu1 %v7866_v47, %s9522_s22  ;;  %3370 = vrot.lane.b32.xlu2 %v7866_v47, %s9486_s14  ;;  %v5584_v45 = vld [vmem:[%s9536_s9 + $0x36] ss:$8 sm:$0x3]  ;;  %v3568_v11 = vperm.slane %v5585_v40, 0  ;;  %v3569_v50 = vperm.slane %v5585_v40, 1  ;;  %s9592_s14 = sld [smem:[#allocation23_spill]] }
 0x5d1   : > { %3152 = vrot.lane.b32.xlu0 %v7866_v47, %s9521_s10  ;;  %v3552_v24 = vperm.slane %v5584_v45, 0  ;;  %v3553_v8 = vperm.slane %v5584_v45, 1  ;;  %v3520_v45 = vperm.slane %v5582_v12, 0 }
 0x5d2   : > { %v7944_v33 = vpop.permute.xlu1 %3214  ;;  %v7946_v57 = vpop.permute.xlu2 %3150 }
 0x5d3   : > { %v7948_v38 = vpop.permute.xlu0 %3230 }
 0x5d6   : > { %s8491_s10 = scalar_lea.vmem %s9592_s14, %s7991_s12 }
 0x5d8   : > { %3610 = vrot.lane.b32.xlu1 %v7866_v47, %s9525_s4  ;;  %3354 = vrot.lane.b32.xlu2 %v7866_v47, %s9532_s0 }
 0x5d9   : > { %3136 = vrot.lane.b32.xlu0 %v7866_v47, %s9533_s1 }
 0x5da   : > { %v7956_v6 = vpop.permute.xlu1 %3416  ;;  %v7958_v27 = vpop.permute.xlu2 %3134 }
 0x5db   : > { %v7960_v61 = vpop.permute.xlu0 %3432 }
 0x5e0   : > { %3594 = vrot.lane.b32.xlu1 %v7866_v47, %s9528_s27  ;;  %3578 = vrot.lane.b32.xlu2 %v7866_v47, %s9526_s16  ;;  %s8003_s27 = scalar_lea.vmem %s9538_s25, %s7991_s12 }
 0x5e1   : > { %3120 = vrot.lane.b32.xlu0 %v7866_v47, %s9527_s21  ;;  %v3837_v41 = vld [vmem:[%s8003_s27 + $0x8] sm:$0xff] }
 0x5e2   : > { %v7968_v22 = vpop.permute.xlu1 %3166  ;;  %v7970_v44 = vpop.permute.xlu2 %3118 }
 0x5e3   : > { %v7972_v42 = vpop.permute.xlu0 %3182 }
 0x5e8   : > { %3104 = vrot.lane.b32.xlu1 %v7866_v47, %s9531_s5  ;;  %3088 = vrot.lane.b32.xlu2 %v7866_v47, %s9529_s11 }
 0x5e9   : > { %3328 = vrot.lane.b32.xlu0 %v7866_v47, %s9530_s18 }
 0x5ea   : > { %v7980_v59 = vpop.permute.xlu1 %3368  ;;  %v7982_v34 = vpop.permute.xlu2 %3326 }
 0x5eb   : > { %v7984_v54 = vpop.permute.xlu0 %3384 }
 0x5f0   : > { %3072 = vrot.lane.b32.xlu1 %v7866_v47, %s9537_s23  ;;  %3696 = vperm.xlu2 %5688, %v5554_v3  }
 0x5f1   : > { %3070 = vrot.lane.b32.xlu0 %v7798_v21, %s9537_s23  ;;  %s9640_s23 = sld [smem:[#allocation28_spill]] }
 0x5f2   : > { %v7997_v15 = vpop.permute.xlu1 %3352  ;;  %v3313_v36 = vpop.permute.xlu2 %3312 }
 0x5f3   : > { %v3314_v58 = vsel %vm9539_vm0, %v3311_v5, %v3313_v36  ;;  %v3315_v49 = vsel %vm9540_vm3, %v3313_v36, %v3311_v5  ;;  %v8009_v39 = vpop.permute.xlu0 %3608  ;;  %vm9547_vm0 = vmmov %vm9546_vm5  ;;  %vm9548_vm3 = vcmp.lt.s32.totalorder %v6102_v4, 98 }
 0x5f4   : > { %v3322_v1 = vmul.f32 %v3318_v32, %v3315_v49  ;;  %v3323_v30 = vmul.f32 %v3319_v29, %v3314_v58 }
 0x5f6   : > { %3702 = vmatpush.msra.mxu0 %v3322_v1  ;;  %3762 = vmatpush.msrb.mxu1 %v3323_v30 }
 0x5f7   : > { %s680_s11 = scalar_lea.vmem %s9640_s23, %s5430_s3 }
 0x5f8   : > { %3846 = vperm.xlu2 %5688, %v3837_v41   ;;  %v5568_v41 = vld [vmem:[%s9536_s9 + $0x16] ss:$8 sm:$0x3] }
 0x5f9   : > { %v3303_v40 = vperm.slane %v5568_v41, 1 }
 0x5fa   : > { %v8015_v18 = vpop.permute.xlu1 %3576  ;;  %v3515_v48 = vpop.permute.xlu2 %3514 }
 0x5fb   : > { %v3517_v55 = vsel %vm1198_vm8, %v3515_v48, %v7908_v46  ;;  %v8026_v51 = vpop.permute.xlu0 %3592 }
 0x5fc   : > { %v8028_v16 = vmul.f32 %v3521_v62, %v3517_v55 }
 0x600   : > { %3932 = vperm.xlu2 %5688, %v3923_v37  }
 0x602   : > { %v8031_v28 = vpop.permute.xlu1 %3086  ;;  %v8033_v26 = vpop.permute.xlu2 %3264 }
 0x603   : > { %v8041_v56 = vpop.permute.xlu0 %3102 }
 0x608   : > { %5067 = vperm.xlu2 %5688, %v5063_v2   ;;  %v3302_v2 = vperm.slane %v5568_v41, 0 }
 0x60a   : > { %v3563_v7 = vpop.permute.xlu1 %3562  ;;  %v8050_v60 = vpop.permute.xlu2 %3466 }
 0x60b   : > { %v3564_v5 = vsel %vm9544_vm13, %v7900_v52, %v3563_v7  ;;  %v3565_v3 = vsel %vm9545_vm6, %v3563_v7, %v7900_v52  ;;  %v8062_v31 = vsel %vm1144_vm14, %v8050_v60, %v7932_v63  ;;  %v3547_v32 = vpop.permute.xlu0 %3546  ;;  %v5583_v52 = vld [vmem:[%s9536_s9 + $0x35] ss:$8 sm:$0x3]  ;;  %vm9549_vm13 = vmmov %vm9548_vm3  ;;  %v3516_v7 = vsel %vm1198_vm8, %v7908_v46, %v3515_v48  ;;  %v5566_v46 = vld [vmem:[%s9536_s9 + $0x14] ss:$8 sm:$0x3] }
 0x60c   : > { %v3572_v29 = vmul.f32 %v3568_v11, %v3564_v5  ;;  %v8064_v36 = vmul.f32 %v3569_v50, %v3565_v3  ;;  %v3548_v58 = vsel %vm9546_vm5, %v7874_v17, %v3547_v32  ;;  %v3549_v49 = vsel %vm9547_vm0, %v3547_v32, %v7874_v17  ;;  %v5581_v48 = vld [vmem:[%s9536_s9 + $0x33] ss:$8 sm:$0x3] }
 0x60d   : > { %v3556_v1 = vmul.f32 %v3552_v24, %v3548_v58  ;;  %v8075_v30 = vmul.f32 %v3553_v8, %v3549_v49  ;;  %v3536_v62 = vperm.slane %v5583_v52, 0  ;;  %v3537_v55 = vperm.slane %v5583_v52, 1 }
 0x60e   : > { %3722 = vmatpush.msra.mxu3 %v3572_v29  ;;  %vm9550_vm6 = vcmp.lt.s32.totalorder %v6102_v4, 3  ;;  %v3524_v29 = vmul.f32 %v3520_v45, %v3516_v7  ;;  %v3270_v49 = vperm.slane %v5566_v46, 0  ;;  %v3505_v41 = vperm.slane %v5581_v48, 1 }
 0x60f   : > { %vm9551_vm5 = vmmov %vm9550_vm6  ;;  %vm9552_vm8 = vcmp.lt.s32.totalorder %v6102_v4, 14  ;;  %vm9553_vm0 = vcmp.lt.s32.totalorder %v6102_v4, 13 }
 0x610   : > { %3723 = vmatpush.msra.mxu3 %v3556_v1  ;;  %v3504_v1 = vperm.slane %v5581_v48, 0 }
 0x612   : > { %v3531_v37 = vpop.permute.xlu1 %3530 }
 0x613   : > { %v3532_v17 = vsel %vm9548_vm3, %v7912_v10, %v3531_v37  ;;  %v3533_v11 = vsel %vm9549_vm13, %v3531_v37, %v7912_v10  ;;  %v3297_v50 = vpop.permute.xlu0 %3296  ;;  %v5567_v10 = vld [vmem:[%s9536_s9 + $0x15] ss:$8 sm:$0x3]  ;;  %v3217_v37 = vpop.permute.xlu2 %3216  ;;  %vm9554_vm3 = vmmov %vm9553_vm0 }
 0x614   : > { %v3540_v24 = vmul.f32 %v3536_v62, %v3532_v17  ;;  %v8089_v8 = vmul.f32 %v3537_v55, %v3533_v11  ;;  %v3298_v12 = vsel %vm9550_vm6, %v7882_v23, %v3297_v50  ;;  %v3299_v5 = vsel %vm9551_vm5, %v3297_v50, %v7882_v23  ;;  %vm9555_vm13 = vmmov %vm9552_vm8 }
 0x615   : > { %v3306_v3 = vmul.f32 %v3302_v2, %v3299_v5  ;;  %v3307_v32 = vmul.f32 %v3303_v40, %v3298_v12  ;;  %v3286_v58 = vperm.slane %v5567_v10, 0  ;;  %v3287_v23 = vperm.slane %v5567_v10, 1 }
 0x616   : > { %3724 = vmatpush.msra.mxu3 %v3540_v24  ;;  %v3271_v62 = vperm.slane %v5566_v46, 1  ;;  %v3267_v55 = vsel %vm9552_vm8, %v8033_v26, %v7920_v25  ;;  %v3266_v17 = vsel %vm9555_vm13, %v7920_v25, %v8033_v26  ;;  %v5565_v26 = vld [vmem:[%s9536_s9 + $0x13] ss:$8 sm:$0x3]  ;;  %vm9559_vm5 = vcmp.lt.s32.totalorder %v6102_v4, 16 }
 0x617   : > { %3703 = vmatpush.msra.mxu0 %v3306_v3  ;;  %3763 = vmatpush.msrb.mxu1 %v3307_v32  ;;  %v3274_v12 = vmul.f32 %v3270_v49, %v3267_v55  ;;  %v3255_v46 = vperm.slane %v5565_v26, 1  ;;  %v3468_v49 = vsel %vm1144_vm14, %v7932_v63, %v8050_v60  ;;  %v5564_v55 = vld [vmem:[%s9536_s9 + $0x12] ss:$8 sm:$0x3]  ;;  %vm9558_vm14 = vcmp.lt.s32.totalorder %v6102_v4, 17  ;;  %vm9560_vm8 = vmmov %vm9559_vm5 }
 0x618   : > { %3725 = vmatpush.msra.mxu3 %v3524_v29  ;;  %v3275_v25 = vmul.f32 %v3271_v62, %v3266_v17  ;;  %v3254_v29 = vperm.slane %v5565_v26, 0  ;;  %v5563_v63 = vld [vmem:[%s9536_s9 + $0x11] ss:$8 sm:$0x3]  ;;  %v3239_v17 = vperm.slane %v5564_v55, 1 }
 0x619   : > { %v8170_v60 = vld [vmem:[%s9536_s9 + $0x30] ss:$8 sm:$0x3] }
 0x61a   : > { %v3281_v52 = vpop.permute.xlu1 %3280 }
 0x61b   : > { %v3282_v2 = vsel %vm9553_vm0, %v7924_v20, %v3281_v52  ;;  %v3283_v40 = vsel %vm9554_vm3, %v3281_v52, %v7924_v20  ;;  %v3499_v45 = vpop.permute.xlu0 %3498  ;;  %v8129_v20 = vld [vmem:[%s9536_s9 + $0x32] ss:$8 sm:$0x3]  ;;  %vm9561_vm0 = vmmov %vm9558_vm14  ;;  %vm9562_vm3 = vcmp.lt.s32.totalorder %v6102_v4, 18 }
 0x61c   : > { %v3290_v11 = vmul.f32 %v3286_v58, %v3283_v40  ;;  %v3291_v50 = vmul.f32 %v3287_v23, %v3282_v2  ;;  %v3500_v7 = vsel %vm1180_vm11, %v7890_v14, %v3499_v45  ;;  %v3501_v24 = vsel %vm1180_vm11, %v3499_v45, %v7890_v14  ;;  %v8139_v14 = vld [vmem:[%s9536_s9 + $0x31] ss:$8 sm:$0x3]  ;;  %vm9563_vm13 = vmmov %vm9562_vm3 }
 0x61d   : > { %v3508_v5 = vmul.f32 %v3504_v1, %v3500_v7  ;;  %v8131_v10 = vmul.f32 %v3505_v41, %v3501_v24  ;;  %v3488_v3 = vperm.slane %v8129_v20, 0  ;;  %v3472_v48 = vperm.slane %v8139_v14, 0  ;;  %v8153_v1 = vpop.permute.xlu2 %3418 }
 0x61e   : > { %3704 = vmatpush.msra.mxu0 %v3290_v11  ;;  %3764 = vmatpush.msrb.mxu1 %v3291_v50  ;;  %vm9556_vm11 = vcmp.lt.s32.totalorder %v6102_v4, 15  ;;  %v3222_v11 = vperm.slane %v5563_v63, 0  ;;  %v3456_v7 = vperm.slane %v8170_v60, 0  ;;  %v3223_v24 = vperm.slane %v5563_v63, 1 }
 0x61f   : > { %3726 = vmatpush.msra.mxu3 %v3508_v5  ;;  %vm9557_vm6 = vmmov %vm9556_vm11  ;;  %v3476_v45 = vmul.f32 %v3472_v48, %v3468_v49 }
 0x620   : > { %3705 = vmatpush.msra.mxu0 %v3274_v12  ;;  %3765 = vmatpush.msrb.mxu1 %v3275_v25  ;;  %v3219_v12 = vsel %vm9558_vm14, %v3217_v37, %v7944_v33 }
 0x622   : > { %v8142_v32 = vpop.permute.xlu1 %3482 }
 0x623   : > { %v3484_v58 = vsel %vm1162_vm12, %v7936_v19, %v8142_v32  ;;  %v3249_v23 = vpop.permute.xlu0 %3248 }
 0x624   : > { %v3492_v52 = vmul.f32 %v3488_v3, %v3484_v58  ;;  %v3250_v41 = vsel %vm9556_vm11, %v7898_v9, %v3249_v23  ;;  %v3251_v62 = vsel %vm9557_vm6, %v3249_v23, %v7898_v9  ;;  %v3238_v9 = vperm.slane %v5564_v55, 0  ;;  %v8194_v58 = vld [vmem:[%s9536_s9 + $0x27] ss:$8 sm:$0x3] }
 0x625   : > { %v3258_v2 = vmul.f32 %v3254_v29, %v3251_v62  ;;  %v3259_v40 = vmul.f32 %v3255_v46, %v3250_v41  ;;  %v3218_v3 = vsel %vm9561_vm0, %v7944_v33, %v3217_v37  ;;  %v3226_v23 = vmul.f32 %v3222_v11, %v3219_v12  ;;  %v5562_v33 = vld [vmem:[%s9536_s9 + $0x10] ss:$8 sm:$0x3]  ;;  %v8202_v37 = vld [vmem:[%s9536_s9 + $0x26] ss:$8 sm:$0x3] }
 0x626   : > { %3727 = vmatpush.msra.mxu3 %v3492_v52  ;;  %v3227_v49 = vmul.f32 %v3223_v24, %v3218_v3  ;;  %v3169_v52 = vpop.permute.xlu2 %3168  ;;  %v3440_v41 = vperm.slane %v8194_v58, 0  ;;  %v3206_v55 = vperm.slane %v5562_v33, 0  ;;  %v8231_v3 = vld [vmem:[%s9536_s9 + $0x25] ss:$8 sm:$0x3]  ;;  %vm9564_vm11 = vcmp.lt.s32.totalorder %v6102_v4, 29 }
 0x627   : > { %3706 = vmatpush.msra.mxu0 %v3258_v2  ;;  %3766 = vmatpush.msrb.mxu1 %v3259_v40  ;;  %v3207_v2 = vperm.slane %v5562_v33, 1  ;;  %v3424_v40 = vperm.slane %v8202_v37, 0  ;;  %v3171_v33 = vsel %vm9564_vm11, %v3169_v52, %v7968_v22  ;;  %vm9565_vm6 = vcmp.lt.s32.totalorder %v6102_v4, 19 }
 0x628   : > { %3728 = vmatpush.msra.mxu3 %v3476_v45  ;;  %vm9566_vm14 = vmmov %vm9565_vm6  ;;  %vm9569_vm0 = vcmp.lt.s32.totalorder %v6102_v4, 126 }
 0x62a   : > { %v3233_v50 = vpop.permute.xlu1 %3232 }
 0x62b   : > { %v3234_v5 = vsel %vm9559_vm5, %v7948_v38, %v3233_v50  ;;  %v3235_v25 = vsel %vm9560_vm8, %v3233_v50, %v7948_v38  ;;  %v8182_v26 = vpop.permute.xlu0 %3450  ;;  %vm9567_vm5 = vmmov %vm9564_vm11  ;;  %vm9568_vm8 = vcmp.lt.s32.totalorder %v6102_v4, 115  ;;  %vm9572_vm11 = vcmp.lt.s32.totalorder %v6102_v4, 127 }
 0x62c   : > { %v3242_v29 = vmul.f32 %v3238_v9, %v3235_v25  ;;  %v3243_v46 = vmul.f32 %v3239_v17, %v3234_v5  ;;  %v3452_v48 = vsel %vm1126_vm15, %v7910_v0, %v8182_v26  ;;  %v3420_v9 = vsel %vm1090_vm10, %v7956_v6, %v8153_v1  ;;  %v5560_v25 = vld [vmem:[%s9536_s9 + $0x6] ss:$8 sm:$0x3] }
 0x62d   : > { %v3460_v38 = vmul.f32 %v3456_v7, %v3452_v48  ;;  %v5561_v7 = vld [vmem:[%s9536_s9 + $0x7] ss:$8 sm:$0x3]  ;;  %v3428_v5 = vmul.f32 %v3424_v40, %v3420_v9  ;;  %v3174_v48 = vperm.slane %v5560_v25, 0  ;;  %v3170_v40 = vsel %vm9567_vm5, %v7968_v22, %v3169_v52 }
 0x62e   : > { %3707 = vmatpush.msra.mxu0 %v3242_v29  ;;  %3767 = vmatpush.msrb.mxu1 %v3243_v46  ;;  %v3191_v29 = vperm.slane %v5561_v7, 1  ;;  %v8233_v46 = vpop.permute.xlu2 %3370  ;;  %v5559_v22 = vld [vmem:[%s9536_s9 + $0x5] ss:$8 sm:$0x3]  ;;  %vm9576_vm5 = vcmp.lt.s32.totalorder %v6102_v4, 32 }
 0x62f   : > { %3729 = vmatpush.msra.mxu3 %v3460_v38  ;;  %v3408_v38 = vperm.slane %v8231_v3, 0  ;;  %v8265_v52 = vld [vmem:[%s9536_s9 + $0x23] ss:$8 sm:$0x3] }
 0x630   : > { %3708 = vmatpush.msra.mxu0 %v3226_v23  ;;  %3768 = vmatpush.msrb.mxu1 %v3227_v49  ;;  %v3175_v49 = vperm.slane %v5560_v25, 1  ;;  %v3159_v25 = vperm.slane %v5559_v22, 1 }
 0x632   : > { %v8205_v62 = vpop.permute.xlu1 %3434 }
 0x633   : > { %v3436_v45 = vsel %vm1108_vm9, %v7960_v61, %v8205_v62  ;;  %v3201_v63 = vpop.permute.xlu0 %3200 }
 0x634   : > { %v3444_v17 = vmul.f32 %v3440_v41, %v3436_v45  ;;  %v3202_v11 = vsel %vm9562_vm3, %v7922_v53, %v3201_v63  ;;  %v3203_v50 = vsel %vm9563_vm13, %v3201_v63, %v7922_v53  ;;  %v3190_v53 = vperm.slane %v5561_v7, 0 }
 0x635   : > { %v3210_v24 = vmul.f32 %v3206_v55, %v3203_v50  ;;  %v3211_v12 = vmul.f32 %v3207_v2, %v3202_v11  ;;  %v3178_v11 = vmul.f32 %v3174_v48, %v3171_v33  ;;  %v3179_v50 = vmul.f32 %v3175_v49, %v3170_v40  ;;  %v8289_v33 = vld [vmem:[%s9536_s9 + $0x21] ss:$8 sm:$0x3] }
 0x636   : > { %3730 = vmatpush.msra.mxu3 %v3444_v17  ;;  %v8257_v17 = vld [vmem:[%s9536_s9 + $0x24] ss:$8 sm:$0x3]  ;;  %vm9570_vm3 = vcmp.lt.s32.totalorder %v6102_v4, 30 }
 0x637   : > { %3709 = vmatpush.msra.mxu0 %v3210_v24  ;;  %3769 = vmatpush.msrb.mxu1 %v3211_v12  ;;  %v3392_v7 = vperm.slane %v8257_v17, 0  ;;  %v8271_v24 = vld [vmem:[%s9536_s9 + $0x22] ss:$8 sm:$0x3]  ;;  %vm9571_vm13 = vmmov %vm9570_vm3 }
 0x638   : > { %3731 = vmatpush.msra.mxu3 %v3428_v5  ;;  %v3158_v5 = vperm.slane %v5559_v22, 0 }
 0x63a   : > { %v3185_v23 = vpop.permute.xlu1 %3184 }
 0x63b   : > { %v3186_v41 = vsel %vm9565_vm6, %v7972_v42, %v3185_v23  ;;  %v3187_v55 = vsel %vm9566_vm14, %v3185_v23, %v7972_v42  ;;  %v8245_v2 = vpop.permute.xlu0 %3402  ;;  %vm9573_vm6 = vcmp.lt.s32.totalorder %v6102_v4, 31 }
 0x63c   : > { %v3194_v45 = vmul.f32 %v3190_v53, %v3187_v55  ;;  %v3195_v63 = vmul.f32 %v3191_v29, %v3186_v41  ;;  %v3404_v9 = vsel %vm9568_vm8, %v7934_v35, %v8245_v2  ;;  %v3376_v53 = vperm.slane %v8265_v52, 0  ;;  %v8276_v29 = vpop.permute.xlu2 %3354  ;;  %vm9574_vm14 = vmmov %vm9573_vm6 }
 0x63d   : > { %v3412_v42 = vmul.f32 %v3408_v38, %v3404_v9  ;;  %v3372_v38 = vsel %vm9569_vm0, %v7980_v59, %v8233_v46  ;;  %v3360_v41 = vperm.slane %v8271_v24, 0  ;;  %vm9577_vm8 = vmmov %vm9576_vm5  ;;  %vm9578_vm0 = vcmask 195584  }
 0x63e   : > { %3710 = vmatpush.msra.mxu0 %v3194_v45  ;;  %3770 = vmatpush.msrb.mxu1 %v3195_v63  ;;  %v8301_v45 = vld [vmem:[%s9536_s9 + $0x42] ss:$8 sm:$0x3]  ;;  %v3356_v63 = vsel %vm9572_vm11, %v7997_v15, %v8276_v29  ;;  %vm9581_vm11 = vcmp.lt.s32.totalorder %v6102_v4, 33 }
 0x63f   : > { %3732 = vmatpush.msra.mxu3 %v3412_v42  ;;  %v5558_v42 = vld [vmem:[%s9536_s9 + $0x4] ss:$8 sm:$0x3]  ;;  %v3616_v22 = vperm.slane %v8301_v45, 0 }
 0x640   : > { %3711 = vmatpush.msra.mxu0 %v3178_v11  ;;  %3771 = vmatpush.msrb.mxu1 %v3179_v50  ;;  %v3380_v50 = vmul.f32 %v3376_v53, %v3372_v38 }
 0x642   : > { %v8273_v12 = vpop.permute.xlu1 %3386 }
 0x643   : > { %v3388_v48 = vsel %vm1054_vm2, %v7984_v54, %v8273_v12  ;;  %v3153_v23 = vpop.permute.xlu0 %3152 }
 0x644   : > { %v3396_v49 = vmul.f32 %v3392_v7, %v3388_v48  ;;  %v3154_v55 = vsel %vm9570_vm3, %v7946_v57, %v3153_v23  ;;  %v3155_v40 = vsel %vm9571_vm13, %v3153_v23, %v7946_v57  ;;  %v3344_v57 = vperm.slane %v8289_v33, 0 }
 0x645   : > { %v3162_v9 = vmul.f32 %v3158_v5, %v3155_v40  ;;  %v3163_v11 = vmul.f32 %v3159_v25, %v3154_v55  ;;  %v3364_v7 = vmul.f32 %v3360_v41, %v3356_v63  ;;  %v3142_v48 = vperm.slane %v5558_v42, 0  ;;  %v8328_v63 = vld [vmem:[%s9536_s9 + $0x41] ss:$8 sm:$0x3] }
 0x646   : > { %3733 = vmatpush.msra.mxu3 %v3396_v49  ;;  %v3143_v23 = vperm.slane %v5558_v42, 1  ;;  %v3348_v53 = vmul.f32 %v3344_v57, %v7798_v21  ;;  %v5557_v21 = vld [vmem:[%s9536_s9 + $0x3] ss:$8 sm:$0x3]  ;;  %vm9579_vm3 = vcmp.lt.s32.totalorder %v6102_v4, 34 }
 0x647   : > { %3712 = vmatpush.msra.mxu0 %v3162_v9  ;;  %3772 = vmatpush.msrb.mxu1 %v3163_v11  ;;  %v8330_v9 = vpop.permute.xlu2 %3578  ;;  %v8338_v11 = vld [vmem:[%s9536_s9 + $0x40] ss:$8 sm:$0x3]  ;;  %v3126_v42 = vperm.slane %v5557_v21, 0  ;;  %vm9580_vm13 = vmmov %vm9579_vm3 }
 0x648   : > { %3734 = vmatpush.msra.mxu3 %v3380_v50  ;;  %v3127_v50 = vperm.slane %v5557_v21, 1  ;;  %v3584_v57 = vperm.slane %v8338_v11, 0  ;;  %v5555_v21 = vld [vmem:[%s9536_s9 + $0x1] ss:$8 sm:$0x3] }
 0x64a   : > { %v8312_v13 = vpop.permute.xlu1 %3610  ;;  %3735 = vmatpush.msra.mxu3 %v3364_v7  ;;  %v3580_v7 = vsel %vm1270_vm1, %v8015_v18, %v8330_v9 }
 0x64b   : > { %v3612_v5 = vsel %vm1306_vm7, %v8009_v39, %v8312_v13  ;;  %v3137_v25 = vpop.permute.xlu0 %3136 }
 0x64c   : > { %v3620_v38 = vmul.f32 %v3616_v22, %v3612_v5  ;;  %v3138_v49 = vsel %vm9573_vm6, %v7958_v27, %v3137_v25  ;;  %v3139_v41 = vsel %vm9574_vm14, %v3137_v25, %v7958_v27  ;;  %3736 = vmatpush.msra.mxu3 %v3348_v53  ;;  %v3600_v27 = vperm.slane %v8328_v63, 0  ;;  %vm9582_vm6 = vmmov %vm9581_vm11 }
 0x64d   : > { %v3146_v55 = vmul.f32 %v3142_v48, %v3139_v41  ;;  %v3147_v40 = vmul.f32 %v3143_v23, %v3138_v49  ;;  %v5556_v41 = vld [vmem:[%s9536_s9 + $0x2] ss:$8 sm:$0x3]  ;;  %vm9583_vm14 = vcmp.lt.s32.totalorder %v6102_v4, 1 }
 0x64e   : > { %3755 = vmatpush.msrb.mxu2 %v3620_v38 }
 0x64f   : > { %3713 = vmatpush.msra.mxu0 %v3146_v55  ;;  %3773 = vmatpush.msrb.mxu1 %v3147_v40  ;;  %v3588_v55 = vmul.f32 %v3584_v57, %v3580_v7  ;;  %v8364_v40 = vld [vmem:[%s9536_s9 + $0x20] ss:$8 sm:$0x3]  ;;  %v3094_v7 = vperm.slane %v5555_v21, 0 }
 0x650   : > { %v3334_v57 = vperm.slane %v8364_v40, 0 }
 0x652   : > { %v8342_v22 = vpop.permute.xlu1 %3594 }
 0x653   : > { %v3596_v48 = vsel %vm1288_vm4, %v8026_v51, %v8342_v22  ;;  %v3121_v23 = vpop.permute.xlu0 %3120 }
 0x654   : > { %v3604_v5 = vmul.f32 %v3600_v27, %v3596_v48  ;;  %v3122_v25 = vsel %vm9576_vm5, %v7970_v44, %v3121_v23  ;;  %v3123_v53 = vsel %vm9577_vm8, %v3121_v23, %v7970_v44  ;;  %v8370_v44 = vld [vmem:[%s9575_s7 + $0x58] sm:$0xff]  ;;  %v3089_v27 = vpop.permute.xlu2 %3088  ;;  %v3095_v48 = vperm.slane %v5555_v21, 1 }
 0x655   : > { %v3130_v38 = vmul.f32 %v3126_v42, %v3123_v53  ;;  %v3131_v49 = vmul.f32 %v3127_v50, %v3122_v25  ;;  %v3110_v42 = vperm.slane %v5556_v41, 0  ;;  %v3111_v50 = vperm.slane %v5556_v41, 1 }
 0x656   : > { %3756 = vmatpush.msrb.mxu2 %v3604_v5  ;;  %v3090_v5 = vsel %vm9579_vm3, %v8031_v28, %v3089_v27  ;;  %v3091_v25 = vsel %vm9580_vm13, %v3089_v27, %v8031_v28  ;;  %vm4044_vm3 = vcmask 1043456  }
 0x657   : > { %3714 = vmatpush.msra.mxu0 %v3130_v38  ;;  %3774 = vmatpush.msrb.mxu1 %v3131_v49  ;;  %v3098_v27 = vmul.f32 %v3094_v7, %v3091_v25  ;;  %v3457_v7 = vperm.slane %v8170_v60, 1  ;;  %v3441_v60 = vperm.slane %v8194_v58, 1  ;;  %v3585_v58 = vperm.slane %v8338_v11, 1 }
 0x658   : > { %3757 = vmatpush.msrb.mxu2 %v3588_v55  ;;  %v3489_v55 = vperm.slane %v8129_v20, 1  ;;  %v3473_v20 = vperm.slane %v8139_v14, 1  ;;  %v3617_v14 = vperm.slane %v8301_v45, 1  ;;  %v3601_v45 = vperm.slane %v8328_v63, 1 }
 0x659   : > { %5589 = vmatmul.msk.f32.vlgmr.msrb.gmra.mxu2 %vm9578_vm0, %v8370_v44 }
 0x65a   : > { %3782 = vmatpush.msra.mxu2 %v8064_v36  ;;  %v3105_v23 = vpop.permute.xlu1 %3104 }
 0x65b   : > { %v3106_v36 = vsel %vm9581_vm11, %v8041_v56, %v3105_v23  ;;  %v3107_v53 = vsel %vm9582_vm6, %v3105_v23, %v8041_v56  ;;  %v8388_v38 = vpop.permute.xlu0 %3328  ;;  %v3485_v56 = vsel %vm1162_vm12, %v8142_v32, %v7936_v19  ;;  %v3099_v23 = vmul.f32 %v3095_v48, %v3090_v5 }
 0x65c   : > { %3783 = vmatpush.msra.mxu2 %v8075_v30  ;;  %v3114_v49 = vmul.f32 %v3110_v42, %v3107_v53  ;;  %v3115_v41 = vmul.f32 %v3111_v50, %v3106_v36  ;;  %v3331_v28 = vsel %vm9583_vm14, %v8388_v38, %v7982_v34  ;;  %v3076_v30 = vld [vmem:[%s9536_s9] ss:$8 sm:$0x3]  ;;  %v8405_v42 = vld [vmem:[%s9575_s7 + $0x50] sm:$0xff]  ;;  %vm9584_vm12 = vcmp.lt.s32.totalorder %v6102_v4, 35  ;;  %s9589_s9 = sld [smem:[#allocation17_spill]] }
 0x65d   : > { %v3338_v21 = vmul.f32 %v3334_v57, %v3331_v28  ;;  %v3078_v19 = vperm.slane %v3076_v30, 0  ;;  %v3079_v32 = vperm.slane %v3076_v30, 1  ;;  %v3477_v57 = vmul.f32 %v3473_v20, %v8062_v31  ;;  %vm9585_vm5 = vmmov %vm9584_vm12  ;;  %v5551_v53 = vld [vmem:[%s9575_s7 + $0x48] sm:$0xff]  ;;  %v3924_v28 = vld [vmem:[%s8021_s28 + $0x10] sm:$0xff] }
 0x65e   : > { %3784 = vmatpush.msra.mxu2 %v8089_v8  ;;  %3715 = vmatpush.msra.mxu0 %v3114_v49  ;;  %v3493_v8 = vmul.f32 %v3489_v55, %v3485_v56  ;;  %v3421_v49 = vsel %vm1090_vm10, %v8153_v1, %v7956_v6  ;;  %v3393_v1 = vperm.slane %v8257_v17, 1  ;;  %v8499_v30 = vld [vmem:[%s8491_s10] sm:$0xff]  ;;  %v5064_v20 = vld [vmem:[%s8039_s15 + $0x8] sm:$0xff]  ;;  %s9639_s15 = sld [smem:[#allocation26_spill]] }
 0x65f   : > { %3775 = vmatpush.msrb.mxu1 %v3115_v41  ;;  %3737 = vmatpush.msra.mxu3 %v3338_v21  ;;  %v3838_v21 = vld [vmem:[%s8003_s27 + $0x10] sm:$0xff] }
 0x660   : > { %3785 = vmatpush.msra.mxu2 %v8028_v16  ;;  %3716 = vmatpush.msra.mxu0 %v3098_v27  ;;  %v3453_v16 = vsel %vm1126_vm15, %v8182_v26, %v7910_v0  ;;  %v3437_v0 = vsel %vm1108_vm9, %v8205_v62, %v7960_v61  ;;  %v3581_v61 = vsel %vm1270_vm1, %v8330_v9, %v8015_v18  ;;  %vm9587_vm1 = vcmp.lt.s32.totalorder %v6102_v4, 126  ;;  %vm9591_vm9 = vmmov %vm9583_vm14 }
 0x661   : > { %3776 = vmatpush.msrb.mxu1 %v3099_v23  ;;  %3738 = vmatmul.f32.vlgmr.msra.gmra.mxu3 %v8405_v42  ;;  %v3461_v26 = vmul.f32 %v3457_v7, %v3453_v16  ;;  %v3589_v6 = vmul.f32 %v3585_v58, %v3581_v61  ;;  %v3389_v18 = vsel %vm1054_vm2, %v8273_v12, %v7984_v54  ;;  %vm9590_vm2 = vmmov %vm9578_vm0  ;;  %v3345_v12 = vperm.slane %v8289_v33, 1  ;;  %v3836_v33 = vld [vmem:[%s8003_s27] sm:$0xff]  ;;  %v3981_v7 = vld [vmem:[#allocation6 + $0xe8] sm:$0xff] }
 0x662   : > { %3786 = vmatpush.msra.mxu2 %v8131_v10  ;;  %v3073_v50 = vpop.permute.xlu1 %3072  ;;  %v3613_v10 = vsel %vm1306_vm7, %v8312_v13, %v8009_v39  ;;  %v3597_v13 = vsel %vm1288_vm4, %v8342_v22, %v8026_v51  ;;  %v3425_v39 = vperm.slane %v8202_v37, 1  ;;  %v3445_v51 = vmul.f32 %v3441_v60, %v3437_v0  ;;  %s3824_s30 = sadd.s32 3, %s9589_s9  ;;  %3841 = vperm.xlu0 %5689, %v3836_v33   ;;  %v4012_v0 = vld [vmem:[#allocation6 + $0x1e0] sm:$0xff]  ;;  %v3973_v58 = vld [vmem:[#allocation6 + $0xa8] sm:$0xff]  ;;  %s5127_s16 = sadd.s32 4, %s9589_s9 }
 0x663   : > { %v3071_v48 = vpop.permute.xlu0 %3070  ;;  %v3621_v63 = vmul.f32 %v3617_v14, %v3613_v10  ;;  %v3409_v37 = vperm.slane %v8231_v3, 1  ;;  %v3605_v62 = vmul.f32 %v3601_v45, %v3597_v13  ;;  %vm9586_vm4 = vcmp.lt.s32.totalorder %v6102_v4, 115  ;;  %s8479_s26 = sld [smem:[#allocation3 + %s3824_s30]]  ;;  %v3978_v14 = vld [vmem:[#allocation6 + $0xd0] sm:$0xff]  ;;  %v3976_v10 = vld [vmem:[#allocation6 + $0xc0] sm:$0xff]  ;;  %v3961_v33 = vld [vmem:[#allocation6 + $0x48] sm:$0xff] }
 0x664   : > { %3787 = vmatpush.msra.mxu2 %v3493_v8  ;;  %v3074_v5 = vsel %vm9584_vm12, %v3071_v48, %v3073_v50  ;;  %v3075_v31 = vsel %vm9585_vm5, %v3073_v50, %v3071_v48  ;;  %v3405_v11 = vsel %vm9586_vm4, %v8245_v2, %v7934_v35  ;;  %v3429_v22 = vmul.f32 %v3425_v39, %v3421_v49  ;;  %v8508_v8 = vld [vmem:[%s8491_s10 + $0x8] sm:$0xff]  ;;  %v3980_v50 = vld [vmem:[#allocation6 + $0xe0] sm:$0xff]  ;;  %v3979_v48 = vld [vmem:[#allocation6 + $0xd8] sm:$0xff]  ;;  %s9151_s4 = scalar_lea.vmem %s9639_s15, %s9541_s19  ;;  %s5138_s0 = sadd.s32 5, %s9589_s9 }
 0x665   : > { %v3082_v25 = vmul.f32 %v3078_v19, %v3075_v31  ;;  %v3083_v36 = vmul.f32 %v3079_v32, %v3074_v5  ;;  %v3377_v3 = vperm.slane %v8265_v52, 1  ;;  %v3413_v9 = vmul.f32 %v3409_v37, %v3405_v11  ;;  %v3982_v19 = vld [vmem:[#allocation6 + $0xf0] sm:$0xff]  ;;  %v3983_v32 = vld [vmem:[#allocation6 + $0xf8] sm:$0xff]  ;;  %v3977_v5 = vld [vmem:[#allocation6 + $0xc8] sm:$0xff]  ;;  %s5128_s1 = sld [smem:[#allocation3 + %s5127_s16]]  ;;  %s5199_s6 = sadd.s32 6, %s9589_s9 }
 0x666   : > { %3788 = vmatpush.msra.mxu2 %v3477_v57  ;;  %v3373_v35 = vsel %vm9587_vm1, %v8233_v46, %v7980_v59  ;;  %v3361_v2 = vperm.slane %v8271_v24, 1  ;;  %v3397_v17 = vmul.f32 %v3393_v1, %v3389_v18  ;;  %vm9588_vm7 = vcmp.lt.s32.totalorder %v6102_v4, 127  ;;  %v3697_v4 = vpop.permute.xlu2 %3696  ;;  %v4014_v45 = vld [vmem:[#allocation6 + $0x1f0] sm:$0xff]  ;;  %v9594_v49 = vld [vmem:[#allocation18_spill] sm:$0xff]  ;;  %v3971_v37 = vld [vmem:[#allocation6 + $0x98] sm:$0xff]  ;;  %s5139_s2 = sld [smem:[#allocation3 + %s5138_s0]] }
 0x667   : > { %3717 = vmatpush.msra.mxu0 %v3082_v25  ;;  %3777 = vmatpush.msrb.mxu1 %v3083_v36  ;;  %v3357_v54 = vsel %vm9588_vm7, %v8276_v29, %v7997_v15  ;;  %v3381_v52 = vmul.f32 %v3377_v3, %v3373_v35  ;;  %v3335_v46 = vperm.slane %v8364_v40, 1  ;;  %v3330_v24 = vsel %vm9591_vm9, %v7982_v34, %v8388_v38  ;;  %v3922_v34 = vld [vmem:[%s8021_s28] sm:$0xff]  ;;  %s9593_s28 = sld [smem:[#allocation29_spill]]  ;;  %v3974_v36 = vld [vmem:[#allocation6 + $0xb0] sm:$0xff]  ;;  %v4015_v18 = vld [vmem:[#allocation6 + $0x1f8] sm:$0xff] }
 0x668   : > { %3718 = vmatmul.f32.vlgmr.msra.gmra.mxu0 %v5551_v53  ;;  %3778 = vmatmul.f32.vlgmr.msrb.gmra.mxu1 %v5551_v53  ;;  %v3365_v59 = vmul.f32 %v3361_v2, %v3357_v54  ;;  %v3349_v15 = vmul.f32 %v3345_v12, %v7866_v47  ;;  %vm3854_vm15 = vcmask 64512   ;;  %v3975_v53 = vld [vmem:[#allocation6 + $0xb8] sm:$0xff]  ;;  %v8513_v13 = vld [vmem:[%s8491_s10 + $0x10] sm:$0xff]  ;;  %v4013_v2 = vld [vmem:[#allocation6 + $0x1e8] sm:$0xff]  ;;  %vm4225_vm5 = vcmask 1047556   ;;  %s5200_s24 = sld [smem:[#allocation3 + %s5199_s6]] }
 0x669   : > { %3789 = vmatpush.msra.mxu2 %v3461_v26  ;;  %3815 = vmatpush.msrb.mxu0 %v3621_v63  ;;  %v3339_v29 = vmul.f32 %v3335_v46, %v3330_v24  ;;  %v3828_v56 = vstv %s8479_s26  ;;  %v3972_v26 = vld [vmem:[#allocation6 + $0xa0] sm:$0xff]  ;;  %v4010_v63 = vld [vmem:[#allocation6 + $0x1d0] sm:$0xff]  ;;  %v3965_v54 = vld [vmem:[#allocation6 + $0x68] sm:$0xff] }
 0x66a   : > { %3927 = vperm.xlu1 %5690, %v3922_v34   ;;  %3937 = vperm.xlu0 %5689, %v3924_v28   ;;  %v3966_v3 = vld [vmem:[#allocation6 + $0x70] sm:$0xff]  ;;  %v4011_v12 = vld [vmem:[#allocation6 + $0x1d8] sm:$0xff] }
 0x66b   : > { %3790 = vmatpush.msra.mxu2 %v3445_v51  ;;  %3816 = vmatpush.msrb.mxu0 %v3605_v62  ;;  %v3970_v51 = vld [vmem:[#allocation6 + $0x90] sm:$0xff]  ;;  %v4008_v62 = vld [vmem:[#allocation6 + $0x1c0] sm:$0xff]  ;;  %v3963_v46 = vld [vmem:[#allocation6 + $0x58] sm:$0xff] }
 0x66c   : > { %4049 = vmatpush.msra.mxu1 %v3982_v19  ;;  %v4006_v35 = vld [vmem:[#allocation6 + $0x1b0] sm:$0xff]  ;;  %v3996_v19 = vld [vmem:[#allocation6 + $0x160] sm:$0xff] }
 0x66d   : > { %3791 = vmatpush.msra.mxu2 %v3429_v22  ;;  %3817 = vmatpush.msrb.mxu0 %v3589_v6  ;;  %s684_s18 = scalar_lea.vmem %s9593_s28, %s5430_s3  ;;  %v3968_v22 = vld [vmem:[#allocation6 + $0x80] sm:$0xff]  ;;  %v3969_v6 = vld [vmem:[#allocation6 + $0x88] sm:$0xff]  ;;  %v4002_v24 = vld [vmem:[#allocation6 + $0x190] sm:$0xff] }
 0x66e   : > { %4050 = vmatpush.msra.mxu1 %v3980_v50  ;;  %v3958_v34 = vld [vmem:[#allocation6 + $0x30] sm:$0xff]  ;;  %v4533_v50 = vld [vmem:[#allocation7 + $0xe0] sm:$0xff] }
 0x66f   : > { %3792 = vmatpush.msra.mxu2 %v3413_v9  ;;  %v3967_v9 = vld [vmem:[#allocation6 + $0x78] sm:$0xff]  ;;  %v3998_v28 = vld [vmem:[#allocation6 + $0x170] sm:$0xff] }
 0x670   : > { %5590 = vmatmul.msk.f32.vlgmr.msrb.gmra.mxu0 %vm9590_vm2, %v8370_v44  ;;  %4051 = vmatpush.msra.mxu1 %v3978_v14  ;;  %v3995_v14 = vld [vmem:[#allocation6 + $0x158] sm:$0xff] }
 0x671   : > { %3793 = vmatpush.msra.mxu2 %v3397_v17  ;;  %v3964_v17 = vld [vmem:[#allocation6 + $0x60] sm:$0xff] }
 0x672   : > { %3851 = vperm.xlu1 %5690, %v3838_v21   ;;  %4052 = vmatpush.msra.mxu1 %v3976_v10  ;;  %v3954_v21 = vld [vmem:[#allocation6 + $0x10] sm:$0xff]  ;;  %v3992_v10 = vld [vmem:[#allocation6 + $0x140] sm:$0xff] }
 0x673   : > { %3794 = vmatpush.msra.mxu2 %v3381_v52  ;;  %v4004_v52 = vld [vmem:[#allocation6 + $0x1a0] sm:$0xff] }
 0x674   : > { %4053 = vmatpush.msra.mxu1 %v3974_v36  ;;  %v4527_v36 = vld [vmem:[#allocation7 + $0xb0] sm:$0xff] }
 0x675   : > { %3795 = vmatpush.msra.mxu2 %v3365_v59  ;;  %v3962_v59 = vld [vmem:[#allocation6 + $0x50] sm:$0xff] }
 0x676   : > { %4054 = vmatpush.msra.mxu1 %v3972_v26  ;;  %v4526_v26 = vld [vmem:[#allocation7 + $0xa8] sm:$0xff] }
 0x677   : > { %3796 = vmatpush.msra.mxu2 %v3349_v15  ;;  %v4009_v15 = vld [vmem:[#allocation6 + $0x1c8] sm:$0xff] }
 0x678   : > { %4055 = vmatpush.msra.mxu1 %v3970_v51  ;;  %v3984_v51 = vld [vmem:[#allocation6 + $0x100] sm:$0xff] }
 0x679   : > { %3797 = vmatpush.msra.mxu2 %v3339_v29  ;;  %v3960_v29 = vld [vmem:[#allocation6 + $0x40] sm:$0xff] }
 0x67a   : > { %3798 = vmatmul.f32.vlgmr.msra.gmra.mxu2 %v8405_v42  ;;  %5072 = vperm.xlu1 %5690, %v5064_v20   ;;  %v4535_v20 = vld [vmem:[#allocation7 + $0xf0] sm:$0xff] }
 0x67b   : > { %4095 = vmatpush.msrb.mxu2 %v3983_v32  ;;  %4056 = vmatpush.msra.mxu1 %v3968_v22  ;;  %v3997_v32 = vld [vmem:[#allocation6 + $0x168] sm:$0xff]  ;;  %v4567_v22 = vld [vmem:[#allocation7 + $0x1f0] sm:$0xff] }
 0x67d   : > { %4096 = vmatpush.msrb.mxu2 %v3981_v7  ;;  %4057 = vmatpush.msra.mxu1 %v3966_v3  ;;  %v3994_v7 = vld [vmem:[#allocation6 + $0x150] sm:$0xff]  ;;  %v4520_v3 = vld [vmem:[#allocation7 + $0x78] sm:$0xff] }
 0x67f   : > { %4097 = vmatpush.msrb.mxu2 %v3979_v48  ;;  %4058 = vmatpush.msra.mxu1 %v3964_v17  ;;  %v4531_v48 = vld [vmem:[#allocation7 + $0xd0] sm:$0xff]  ;;  %v4518_v17 = vld [vmem:[#allocation7 + $0x68] sm:$0xff] }
 0x681   : > { %4098 = vmatpush.msrb.mxu2 %v3977_v5  ;;  %4059 = vmatpush.msra.mxu1 %v3962_v59  ;;  %v3993_v5 = vld [vmem:[#allocation6 + $0x148] sm:$0xff]  ;;  %v4516_v59 = vld [vmem:[#allocation7 + $0x58] sm:$0xff] }
 0x683   : > { %4099 = vmatpush.msrb.mxu2 %v3975_v53  ;;  %4060 = vmatpush.msra.mxu1 %v3960_v29  ;;  %v4528_v53 = vld [vmem:[#allocation7 + $0xb8] sm:$0xff]  ;;  %v4514_v29 = vld [vmem:[#allocation7 + $0x48] sm:$0xff] }
 0x685   : > { %4100 = vmatpush.msrb.mxu2 %v3973_v58  ;;  %4061 = vmatpush.msra.mxu1 %v3958_v34  ;;  %v3986_v58 = vld [vmem:[#allocation6 + $0x110] sm:$0xff] }
 0x686   : > { %v4511_v34 = vld [vmem:[#allocation7 + $0x30] sm:$0xff] }
 0x687   : > { %4101 = vmatpush.msrb.mxu2 %v3971_v37  ;;  %v3985_v37 = vld [vmem:[#allocation6 + $0x108] sm:$0xff] }
 0x689   : > { %4102 = vmatpush.msrb.mxu2 %v3969_v6  ;;  %v4568_v6 = vld [vmem:[#allocation7 + $0x1f8] sm:$0xff] }
 0x68b   : > { %4103 = vmatpush.msrb.mxu2 %v3967_v9  ;;  %v4566_v9 = vld [vmem:[#allocation7 + $0x1e8] sm:$0xff] }
 0x68d   : > { %4104 = vmatpush.msrb.mxu2 %v3965_v54  ;;  %v4563_v54 = vld [vmem:[#allocation7 + $0x1d0] sm:$0xff] }
 0x68f   : > { %4105 = vmatpush.msrb.mxu2 %v3963_v46  ;;  %v4561_v46 = vld [vmem:[#allocation7 + $0x1c0] sm:$0xff] }
 0x691   : > { %4106 = vmatpush.msrb.mxu2 %v3961_v33  ;;  %v4559_v33 = vld [vmem:[#allocation7 + $0x1b0] sm:$0xff] }
 0x6dc   : > { %v3759_v38 = vpop.f32.mrf.mxu2 }
 0x6e4   : > { %v3739_v47 = vpop.f32.mrf.mxu3 }
 0x6e5   : > { %v3719_v40 = vpop.f32.mrf.mxu0  ;;  %v3779_v57 = vpop.f32.mrf.mxu1 }
 0x6e6   : > { %v3720_v44 = vadd.f32 %v3719_v40, %v3697_v4  ;;  %v3780_v16 = vadd.f32 %v3779_v57, %v3697_v4  ;;  %v4007_v4 = vld [vmem:[#allocation6 + $0x1b8] sm:$0xff]  ;;  %v4534_v57 = vld [vmem:[#allocation7 + $0xe8] sm:$0xff] }
 0x6e7   : > { %v3959_v40 = vld [vmem:[#allocation6 + $0x38] sm:$0xff] }
 0x6e8   : > { %v3740_v41 = vadd.f32 %v3739_v47, %v3720_v44  ;;  %v4000_v47 = vld [vmem:[#allocation6 + $0x180] sm:$0xff]  ;;  %v4005_v44 = vld [vmem:[#allocation6 + $0x1a8] sm:$0xff]  ;;  %4107 = vmatpush.msrb.mxu2 %v3959_v40  ;;  %v4512_v40 = vld [vmem:[#allocation7 + $0x38] sm:$0xff] }
 0x6ea   : > { %v3760_v55 = vadd.f32 %v3759_v38, %v3740_v41  ;;  %v3956_v38 = vld [vmem:[#allocation6 + $0x20] sm:$0xff]  ;;  %v3957_v41 = vld [vmem:[#allocation6 + $0x28] sm:$0xff] }
 0x6eb   : > { %4062 = vmatpush.msra.mxu1 %v3956_v38  ;;  %4108 = vmatpush.msrb.mxu2 %v3957_v41  ;;  %v4509_v38 = vld [vmem:[#allocation7 + $0x20] sm:$0xff]  ;;  %v4510_v41 = vld [vmem:[#allocation7 + $0x28] sm:$0xff] }
 0x6ec   : > { %v3822_v27 = vadd.f32 %v3760_v55, %v7296_v43  ;;  %v5150_v43 = vld [vmem:[%s684_s18] sm:$0xff]  ;;  %v4003_v55 = vld [vmem:[#allocation6 + $0x198] sm:$0xff] }
 0x6ed   : > { %5153 = vperm.xlu0 %5689, %v5150_v43   ;;  %v3819_v60 = vpop.f32.mrf.mxu0  ;;  %4063 = vmatpush.msra.mxu1 %v3954_v21  ;;  %v3999_v43 = vld [vmem:[#allocation6 + $0x178] sm:$0xff]  ;;  %v4507_v21 = vld [vmem:[#allocation7 + $0x10] sm:$0xff] }
 0x6ee   : > { %v3829_v23 = vmul.f32 %v3828_v56, %v3822_v27  ;;  %vm3826_vm10 = vcmp.gt.f32.partialorder %v3822_v27, 0.0 }
 0x6f0   : > { %v8501_v42 = vsel %vm3826_vm10, %v3822_v27, %v3829_v23  ;;  %v4001_v27 = vld [vmem:[#allocation6 + $0x188] sm:$0xff]  ;;  %v3952_v23 = vld [vmem:[#allocation6] sm:$0xff] }
 0x6f1   : > { %3879 = vmatpush.msrb.mxu3 %v8501_v42  ;;  %4064 = vmatpush.msra.mxu1 %v3952_v23  ;;  %v4554_v23 = vld [vmem:[#allocation7 + $0x188] sm:$0xff] }
 0x6f2   : > { %5591 = vmatmul.msk.f32.vlgmr.msrb.gmra.mxu3 %vm3854_vm15, %v8499_v30 }
 0x6f3   : > { %4072 = vmatpush.msra.mxu3 %v4014_v45  ;;  %4601 = vmatpush.msrb.mxu1 %v4535_v20  ;;  %v3990_v45 = vld [vmem:[#allocation6 + $0x130] sm:$0xff] }
 0x6f4   : > { %v4551_v20 = vld [vmem:[#allocation7 + $0x170] sm:$0xff] }
 0x6f5   : > { %4073 = vmatpush.msra.mxu3 %v4012_v0  ;;  %4602 = vmatpush.msrb.mxu1 %v4533_v50  ;;  %v3988_v0 = vld [vmem:[#allocation6 + $0x120] sm:$0xff]  ;;  %v4550_v50 = vld [vmem:[#allocation7 + $0x168] sm:$0xff] }
 0x6f7   : > { %4074 = vmatpush.msra.mxu3 %v4010_v63  ;;  %4603 = vmatpush.msrb.mxu1 %v4531_v48  ;;  %v3987_v63 = vld [vmem:[#allocation6 + $0x118] sm:$0xff]  ;;  %v4547_v48 = vld [vmem:[#allocation7 + $0x150] sm:$0xff] }
 0x6f9   : > { %4075 = vmatpush.msra.mxu3 %v4008_v62  ;;  %v4521_v62 = vld [vmem:[#allocation7 + $0x80] sm:$0xff] }
 0x6fa   : > { %5592 = vmatmul.msk.f32.gmra.mxu3 %vm3854_vm15, %v8508_v8 }
 0x6fb   : > { %4076 = vmatpush.msra.mxu3 %v4006_v35  ;;  %v4565_v35 = vld [vmem:[#allocation7 + $0x1e0] sm:$0xff] }
 0x6fd   : > { %v3799_v31 = vpop.f32.mrf.mxu2  ;;  %4077 = vmatpush.msra.mxu3 %v4004_v52  ;;  %v4564_v52 = vld [vmem:[#allocation7 + $0x1d8] sm:$0xff] }
 0x6fe   : > { %v3800_v25 = vadd.f32 %v3799_v31, %v3780_v16  ;;  %v4532_v16 = vld [vmem:[#allocation7 + $0xd8] sm:$0xff]  ;;  %v4529_v31 = vld [vmem:[#allocation7 + $0xc0] sm:$0xff] }
 0x6ff   : > { %4078 = vmatpush.msra.mxu3 %v4002_v24  ;;  %4604 = vmatpush.msrb.mxu1 %v4529_v31  ;;  %v4562_v24 = vld [vmem:[#allocation7 + $0x1c8] sm:$0xff]  ;;  %v4545_v31 = vld [vmem:[#allocation7 + $0x140] sm:$0xff] }
 0x700   : > { %v3820_v39 = vadd.f32 %v3819_v60, %v3800_v25  ;;  %v4530_v60 = vld [vmem:[#allocation7 + $0xc8] sm:$0xff]  ;;  %v3991_v25 = vld [vmem:[#allocation6 + $0x138] sm:$0xff] }
 0x701   : > { %4079 = vmatpush.msra.mxu3 %v4000_v47  ;;  %4605 = vmatpush.msrb.mxu1 %v4527_v36  ;;  %v4557_v47 = vld [vmem:[#allocation7 + $0x1a0] sm:$0xff] }
 0x702   : > { %v3823_v61 = vadd.f32 %v3820_v39, %v9594_v49  ;;  %5593 = vmatmul.msk.f32.gmra.mxu3 %vm3854_vm15, %v8513_v13  ;;  %v4525_v39 = vld [vmem:[#allocation7 + $0xa0] sm:$0xff]  ;;  %v4523_v49 = vld [vmem:[#allocation7 + $0x90] sm:$0xff] }
 0x703   : > { %4080 = vmatpush.msra.mxu3 %v3998_v28  ;;  %4606 = vmatpush.msrb.mxu1 %v4525_v39  ;;  %v4555_v28 = vld [vmem:[#allocation7 + $0x190] sm:$0xff]  ;;  %v4541_v39 = vld [vmem:[#allocation7 + $0x120] sm:$0xff] }
 0x704   : > { %v3830_v11 = vmul.f32 %v3828_v56, %v3823_v61  ;;  %vm3827_vm8 = vcmp.gt.f32.partialorder %v3823_v61, 0.0  ;;  %v3955_v56 = vld [vmem:[#allocation6 + $0x18] sm:$0xff] }
 0x705   : > { %4109 = vmatpush.msrb.mxu2 %v3955_v56  ;;  %4081 = vmatpush.msra.mxu3 %v3996_v19  ;;  %v4508_v56 = vld [vmem:[#allocation7 + $0x18] sm:$0xff]  ;;  %v3842_v19 = vpop.permute.xlu0 %3841 }
 0x706   : > { %v8518_v1 = vsel %vm3827_vm8, %v3823_v61, %v3830_v11  ;;  %v4524_v61 = vld [vmem:[#allocation7 + $0x98] sm:$0xff]  ;;  %4607 = vmatpush.msrb.mxu1 %v4523_v49  ;;  %v4522_v11 = vld [vmem:[#allocation7 + $0x88] sm:$0xff] }
 0x707   : > { %3905 = vmatpush.msra.mxu0 %v8518_v1  ;;  %4082 = vmatpush.msra.mxu3 %v3994_v7  ;;  %v3928_v7 = vpop.permute.xlu1 %3927 }
 0x708   : > { %5594 = vmatmul.msk.f32.vlgmr.msra.gmra.mxu0 %vm3854_vm15, %v8499_v30  ;;  %v3953_v30 = vld [vmem:[#allocation6 + $0x8] sm:$0xff]  ;;  %4608 = vmatpush.msrb.mxu1 %v4521_v62 }
 0x709   : > { %4118 = vmatpush.msrb.mxu0 %v4015_v18  ;;  %4110 = vmatpush.msrb.mxu2 %v3953_v30  ;;  %v4519_v18 = vld [vmem:[#allocation7 + $0x70] sm:$0xff]  ;;  %v4505_v30 = vld [vmem:[#allocation7] sm:$0xff] }
 0x70a   : > { %4083 = vmatpush.msra.mxu3 %v3992_v10  ;;  %4609 = vmatpush.msrb.mxu1 %v4519_v18  ;;  %v8527_v10 = vpop.permute.xlu2 %3846  ;;  %v4538_v18 = vld [vmem:[#allocation7 + $0x108] sm:$0xff] }
 0x70b   : > { %4119 = vmatpush.msrb.mxu0 %v4013_v2  ;;  %v4517_v2 = vld [vmem:[#allocation7 + $0x60] sm:$0xff] }
 0x70c   : > { %4084 = vmatpush.msra.mxu3 %v3990_v45  ;;  %4610 = vmatpush.msrb.mxu1 %v4517_v2 }
 0x70d   : > { %4120 = vmatpush.msrb.mxu0 %v4011_v12  ;;  %v4515_v12 = vld [vmem:[#allocation7 + $0x50] sm:$0xff] }
 0x70e   : > { %4085 = vmatpush.msra.mxu3 %v3988_v0  ;;  %4611 = vmatpush.msrb.mxu1 %v4515_v12  ;;  %v4543_v0 = vld [vmem:[#allocation7 + $0x130] sm:$0xff] }
 0x70f   : > { %4121 = vmatpush.msrb.mxu0 %v4009_v15  ;;  %v4513_v15 = vld [vmem:[#allocation7 + $0x40] sm:$0xff] }
 0x710   : > { %5595 = vmatmul.msk.f32.gmra.mxu0 %vm3854_vm15, %v8508_v8  ;;  %v4536_v8 = vld [vmem:[#allocation7 + $0xf8] sm:$0xff]  ;;  %4086 = vmatpush.msra.mxu3 %v3986_v58 }
 0x711   : > { %4122 = vmatpush.msrb.mxu0 %v4007_v4  ;;  %4647 = vmatpush.msra.mxu2 %v4536_v8  ;;  %v4560_v4 = vld [vmem:[#allocation7 + $0x1b8] sm:$0xff] }
 0x712   : > { %4087 = vmatpush.msra.mxu3 %v3984_v51  ;;  %4612 = vmatpush.msrb.mxu1 %v4513_v15  ;;  %v4552_v8 = vld [vmem:[#allocation7 + $0x178] sm:$0xff] }
 0x713   : > { %4123 = vmatpush.msrb.mxu0 %v4005_v44  ;;  %4648 = vmatpush.msra.mxu2 %v4534_v57  ;;  %v4558_v44 = vld [vmem:[#allocation7 + $0x1a8] sm:$0xff]  ;;  %v4540_v51 = vld [vmem:[#allocation7 + $0x118] sm:$0xff] }
 0x714   : > { %4624 = vmatpush.msrb.mxu3 %v4567_v22  ;;  %4613 = vmatpush.msrb.mxu1 %v4511_v34 }
 0x715   : > { %4124 = vmatpush.msrb.mxu0 %v4003_v55  ;;  %4649 = vmatpush.msra.mxu2 %v4532_v16  ;;  %v4556_v55 = vld [vmem:[#allocation7 + $0x198] sm:$0xff] }
 0x716   : > { %4625 = vmatpush.msrb.mxu3 %v4565_v35  ;;  %4614 = vmatpush.msrb.mxu1 %v4509_v38  ;;  %v4548_v16 = vld [vmem:[#allocation7 + $0x158] sm:$0xff] }
 0x717   : > { %4125 = vmatpush.msrb.mxu0 %v4001_v27  ;;  %4650 = vmatpush.msra.mxu2 %v4530_v60  ;;  %v4553_v27 = vld [vmem:[#allocation7 + $0x180] sm:$0xff]  ;;  %v4546_v60 = vld [vmem:[#allocation7 + $0x148] sm:$0xff] }
 0x718   : > { %5596 = vmatmul.msk.f32.gmra.mxu0 %vm3854_vm15, %v8513_v13  ;;  %v3989_v13 = vld [vmem:[#allocation6 + $0x128] sm:$0xff]  ;;  %4626 = vmatpush.msrb.mxu3 %v4563_v54  ;;  %v3852_v54 = vpop.permute.xlu1 %3851 }
 0x719   : > { %4126 = vmatpush.msrb.mxu0 %v3999_v43  ;;  %4651 = vmatpush.msra.mxu2 %v4528_v53  ;;  %v4506_v43 = vld [vmem:[#allocation7 + $0x8] sm:$0xff] }
 0x71a   : > { %4627 = vmatpush.msrb.mxu3 %v4561_v46  ;;  %4615 = vmatpush.msrb.mxu1 %v4507_v21 }
 0x71b   : > { %4127 = vmatpush.msrb.mxu0 %v3997_v32  ;;  %4652 = vmatpush.msra.mxu2 %v4526_v26  ;;  %v4549_v32 = vld [vmem:[#allocation7 + $0x160] sm:$0xff]  ;;  %v4542_v26 = vld [vmem:[#allocation7 + $0x128] sm:$0xff] }
 0x71c   : > { %4628 = vmatpush.msrb.mxu3 %v4559_v33  ;;  %4616 = vmatpush.msrb.mxu1 %v4505_v30 }
 0x71d   : > { %4128 = vmatpush.msrb.mxu0 %v3995_v14  ;;  %4653 = vmatpush.msra.mxu2 %v4524_v61  ;;  %v4539_v61 = vld [vmem:[#allocation7 + $0x110] sm:$0xff] }
 0x71e   : > { %4629 = vmatpush.msrb.mxu3 %v4557_v47 }
 0x71f   : > { %4129 = vmatpush.msrb.mxu0 %v3993_v5  ;;  %4654 = vmatpush.msra.mxu2 %v4522_v11 }
 0x720   : > { %4630 = vmatpush.msrb.mxu3 %v4555_v28 }
 0x721   : > { %4130 = vmatpush.msrb.mxu0 %v3991_v25  ;;  %4655 = vmatpush.msra.mxu2 %v4520_v3 }
 0x722   : > { %4631 = vmatpush.msrb.mxu3 %v4553_v27 }
 0x723   : > { %4131 = vmatpush.msrb.mxu0 %v3989_v13  ;;  %4656 = vmatpush.msra.mxu2 %v4518_v17  ;;  %v4544_v13 = vld [vmem:[#allocation7 + $0x138] sm:$0xff] }
 0x724   : > { %4632 = vmatpush.msrb.mxu3 %v4551_v20 }
 0x725   : > { %4132 = vmatpush.msrb.mxu0 %v3987_v63  ;;  %4657 = vmatpush.msra.mxu2 %v4516_v59 }
 0x726   : > { %4633 = vmatpush.msrb.mxu3 %v4549_v32 }
 0x727   : > { %4133 = vmatpush.msrb.mxu0 %v3985_v37  ;;  %4658 = vmatpush.msra.mxu2 %v4514_v29 }
 0x728   : > { %4634 = vmatpush.msrb.mxu3 %v4547_v48 }
 0x729   : > { %4670 = vmatpush.msra.mxu0 %v4568_v6  ;;  %4659 = vmatpush.msra.mxu2 %v4512_v40  ;;  %v4537_v6 = vld [vmem:[#allocation7 + $0x100] sm:$0xff] }
 0x72a   : > { %4635 = vmatpush.msrb.mxu3 %v4545_v31 }
 0x72b   : > { %4671 = vmatpush.msra.mxu0 %v4566_v9  ;;  %4660 = vmatpush.msra.mxu2 %v4510_v41  ;;  %v3933_v9 = vpop.permute.xlu2 %3932 }
 0x72c   : > { %4636 = vmatpush.msrb.mxu3 %v4543_v0 }
 0x72d   : > { %4672 = vmatpush.msra.mxu0 %v4564_v52  ;;  %4661 = vmatpush.msra.mxu2 %v4508_v56 }
 0x72e   : > { %4637 = vmatpush.msrb.mxu3 %v4541_v39 }
 0x72f   : > { %4673 = vmatpush.msra.mxu0 %v4562_v24  ;;  %4662 = vmatpush.msra.mxu2 %v4506_v43  ;;  %v3938_v24 = vpop.permute.xlu0 %3937 }
 0x730   : > { %4638 = vmatpush.msrb.mxu3 %v4539_v61 }
 0x731   : > { %4674 = vmatpush.msra.mxu0 %v4560_v4 }
 0x732   : > { %4639 = vmatpush.msrb.mxu3 %v4537_v6 }
 0x733   : > { %4675 = vmatpush.msra.mxu0 %v4558_v44 }
 0x735   : > { %4676 = vmatpush.msra.mxu0 %v4556_v55 }
 0x737   : > { %4677 = vmatpush.msra.mxu0 %v4554_v23 }
 0x739   : > { %4678 = vmatpush.msra.mxu0 %v4552_v8 }
 0x73b   : > { %4679 = vmatpush.msra.mxu0 %v4550_v50 }
 0x73d   : > { %4680 = vmatpush.msra.mxu0 %v4548_v16 }
 0x73f   : > { %4681 = vmatpush.msra.mxu0 %v4546_v60 }
 0x741   : > { %4682 = vmatpush.msra.mxu0 %v4544_v13 }
 0x743   : > { %4683 = vmatpush.msra.mxu0 %v4542_v26 }
 0x745   : > { %4684 = vmatpush.msra.mxu0 %v4540_v51 }
 0x747   : > { %4685 = vmatpush.msra.mxu0 %v4538_v18 }
 0x775   : > { %v3881_v57 = vpop.f32.mrf.mxu3 }
 0x776   : > { %v3882_v14 = vadd.f32 %v3881_v57, %v3842_v19 }
 0x778   : > { %vm3916_vm0 = vcmp.gt.f32.partialorder %v3882_v14, 0.0  ;;  %v3940_v5 = vmul.f32 %v3928_v7, %v3882_v14 }
 0x77a   : > { %v3946_v45 = vsel %vm3916_vm0, %v3882_v14, %v3940_v5 }
 0x77b   : > { %v4016_v25 = vperm.slane %v3946_v45, 0  ;;  %v4020_v36 = vperm.slane %v3946_v45, 1  ;;  %v4024_v53 = vperm.slane %v3946_v45, 2  ;;  %v4028_v22 = vperm.slane %v3946_v45, 3 }
 0x77d   : > { %v3884_v58 = vpop.f32.mrf.mxu3  ;;  %v4018_v63 = vmul.f32 %v4016_v25, %v3946_v45  ;;  %v4022_v49 = vmul.f32 %v4020_v36, %v3946_v45  ;;  %v4026_v11 = vmul.f32 %v4024_v53, %v3946_v45  ;;  %v4030_v2 = vmul.f32 %v4028_v22, %v3946_v45 }
 0x77e   : > { %v3885_v37 = vadd.f32 %v3884_v58, %v8527_v10 }
 0x77f   : > { %v4034_v62 = vrot.slane %v4018_v63, 4  ;;  %v4040_v17 = vrot.slane %v4026_v11, 4 }
 0x780   : > { %v3942_v35 = vmul.f32 %v3933_v9, %v3885_v37  ;;  %vm3918_vm13 = vcmp.gt.f32.partialorder %v3885_v37, 0.0 }
 0x781   : > { %v4045_v3 = vsel %vm4044_vm3, %v4034_v62, %v4022_v49  ;;  %v4047_v29 = vsel %vm4044_vm3, %v4040_v17, %v4030_v2 }
 0x782   : > { %4065 = vmatmul.f32.vlgmr.msra.gmra.mxu1 %v4045_v3  ;;  %4111 = vmatmul.f32.vlgmr.msrb.gmra.mxu2 %v4045_v3  ;;  %v8531_v15 = vsel %vm3918_vm13, %v3885_v37, %v3942_v35 }
 0x783   : > { %v4573_v47 = vperm.slane %v8531_v15, 5  ;;  %v4569_v27 = vperm.slane %v8531_v15, 4  ;;  %v4581_v8 = vperm.slane %v8531_v15, 7  ;;  %v4577_v31 = vperm.slane %v8531_v15, 6 }
 0x785   : > { %v3907_v52 = vpop.f32.mrf.mxu0  ;;  %v3887_v12 = vpop.f32.mrf.mxu3 }
 0x786   : > { %v3908_v59 = vadd.f32 %v3907_v52, %v3842_v19  ;;  %v3888_v46 = vadd.f32 %v3887_v12, %v3852_v54 }
 0x788   : > { %vm3917_vm11 = vcmp.gt.f32.partialorder %v3908_v59, 0.0  ;;  %v3941_v33 = vmul.f32 %v3928_v7, %v3908_v59  ;;  %vm3920_vm6 = vcmp.gt.f32.partialorder %v3888_v46, 0.0  ;;  %v3944_v4 = vmul.f32 %v3938_v24, %v3888_v46 }
 0x78a   : > { %v3947_v34 = vsel %vm3917_vm11, %v3908_v59, %v3941_v33  ;;  %v8534_v40 = vsel %vm3920_vm6, %v3888_v46, %v3944_v4  ;;  %4068 = vmatmul.f32.gmra.mxu1 %v4047_v29  ;;  %4114 = vmatmul.f32.gmra.mxu2 %v4047_v29 }
 0x78b   : > { %v4017_v44 = vperm.slane %v3947_v34, 0  ;;  %v4021_v38 = vperm.slane %v3947_v34, 1  ;;  %v4575_v41 = vmul.f32 %v4573_v47, %v8534_v40  ;;  %v4025_v21 = vperm.slane %v3947_v34, 2 }
 0x78c   : > { %v4571_v20 = vmul.f32 %v4569_v27, %v8534_v40  ;;  %v4583_v7 = vmul.f32 %v4581_v8, %v8534_v40  ;;  %v4029_v14 = vperm.slane %v3947_v34, 3  ;;  %v4579_v36 = vmul.f32 %v4577_v31, %v8534_v40 }
 0x78d   : > { %v3910_v28 = vpop.f32.mrf.mxu0  ;;  %v4019_v55 = vmul.f32 %v4017_v44, %v3947_v34  ;;  %v4587_v23 = vrot.slane %v4575_v41, 4  ;;  %v4023_v30 = vmul.f32 %v4021_v38, %v3947_v34  ;;  %v4027_v32 = vmul.f32 %v4025_v21, %v3947_v34 }
 0x78e   : > { %v3911_v56 = vadd.f32 %v3910_v28, %v8527_v10  ;;  %v4593_v60 = vrot.slane %v4583_v7, 4  ;;  %v4031_v45 = vmul.f32 %v4029_v14, %v3947_v34 }
 0x78f   : > { %v4035_v43 = vrot.slane %v4019_v55, 4  ;;  %v4597_v57 = vsel %vm4044_vm3, %v4571_v20, %v4587_v23  ;;  %v4041_v16 = vrot.slane %v4027_v32, 4 }
 0x790   : > { %v3943_v50 = vmul.f32 %v3933_v9, %v3911_v56  ;;  %vm3919_vm14 = vcmp.gt.f32.partialorder %v3911_v56, 0.0  ;;  %v4599_v39 = vsel %vm4044_vm3, %v4579_v36, %v4593_v60 }
 0x791   : > { %v4046_v19 = vsel %vm4044_vm3, %v4035_v43, %v4023_v30  ;;  %v4048_v53 = vsel %vm4044_vm3, %v4041_v16, %v4031_v45 }
 0x792   : > { %4088 = vmatmul.f32.vlgmr.msra.gmra.mxu3 %v4046_v19  ;;  %4134 = vmatmul.f32.vlgmr.msrb.gmra.mxu0 %v4046_v19  ;;  %v8545_v10 = vsel %vm3919_vm14, %v3911_v56, %v3943_v50 }
 0x793   : > { %4617 = vmatmul.f32.vlgmr.msrb.gmra.mxu1 %v4597_v57  ;;  %4663 = vmatmul.f32.vlgmr.msra.gmra.mxu2 %v4597_v57  ;;  %v4574_v0 = vperm.slane %v8545_v10, 5  ;;  %v4570_v58 = vperm.slane %v8545_v10, 4  ;;  %v4582_v61 = vperm.slane %v8545_v10, 7  ;;  %v4578_v62 = vperm.slane %v8545_v10, 6 }
 0x795   : > { %v3913_v48 = vpop.f32.mrf.mxu0 }
 0x796   : > { %v3914_v5 = vadd.f32 %v3913_v48, %v3852_v54 }
 0x798   : > { %vm3921_vm12 = vcmp.gt.f32.partialorder %v3914_v5, 0.0  ;;  %v3945_v25 = vmul.f32 %v3938_v24, %v3914_v5 }
 0x79a   : > { %v8551_v13 = vsel %vm3921_vm12, %v3914_v5, %v3945_v25  ;;  %4091 = vmatmul.f32.gmra.mxu3 %v4048_v53  ;;  %4137 = vmatmul.f32.gmra.mxu0 %v4048_v53 }
 0x79b   : > { %4620 = vmatmul.f32.gmra.mxu1 %v4599_v39  ;;  %4666 = vmatmul.f32.gmra.mxu2 %v4599_v39  ;;  %v4576_v26 = vmul.f32 %v4574_v0, %v8551_v13  ;;  %v4572_v49 = vmul.f32 %v4570_v58, %v8551_v13  ;;  %v4584_v37 = vmul.f32 %v4582_v61, %v8551_v13 }
 0x79c   : > { %v4580_v22 = vmul.f32 %v4578_v62, %v8551_v13 }
 0x79d   : > { %v4588_v63 = vrot.slane %v4576_v26, 4  ;;  %v4594_v11 = vrot.slane %v4584_v37, 4 }
 0x79f   : > { %v4598_v51 = vsel %vm4044_vm3, %v4572_v49, %v4588_v63  ;;  %v4600_v6 = vsel %vm4044_vm3, %v4580_v22, %v4594_v11 }
 0x7a2   : > { %4640 = vmatmul.f32.vlgmr.msrb.gmra.mxu3 %v4598_v51  ;;  %4686 = vmatmul.f32.vlgmr.msra.gmra.mxu0 %v4598_v51 }
 0x7aa   : > { %4643 = vmatmul.f32.gmra.mxu3 %v4600_v6  ;;  %4689 = vmatmul.f32.gmra.mxu0 %v4600_v6 }
 0x7ff   : > { %v4066_v2 = vpop.f32.mrf.mxu1 }
 0x805   : > { %v4112_v18 = vpop.f32.mrf.mxu2 }
 0x807   : > { %v4069_v20 = vpop.f32.mrf.mxu1 }
 0x80d   : > { %v4115_v52 = vpop.f32.mrf.mxu2 }
 0x80f   : > { %v4135_v3 = vpop.f32.mrf.mxu0 }
 0x810   : > { %v4136_v9 = vadd.f32 %v4135_v3, %v4112_v18 }
 0x812   : > { %v4142_v35 = vmul.f32 0.125, %v4136_v9 }
 0x814   : > { %v4152_v17 = vsel %vm4044_vm3, %v4142_v35, -inf  ;;  %v4233_v54 = vsel %vm4225_vm5, %v4142_v35, -inf }
 0x815   : > { %v4153_v12 = vrot.slane %v4152_v17, 4  ;;  %v4234_v59 = vrot.slane %v4233_v54, 4  ;;  %v4089_v46 = vpop.f32.mrf.mxu3 }
 0x816   : > { %v4090_v24 = vadd.f32 %v4089_v46, %v4066_v2  ;;  %v4664_v45 = vpop.f32.mrf.mxu2 }
 0x817   : > { %v4154_v29 = vmax.f32 %v4152_v17, %v4153_v12  ;;  %v4235_v33 = vmax.f32 %v4233_v54, %v4234_v59  ;;  %v4138_v4 = vpop.f32.mrf.mxu0 }
 0x818   : > { %v8565_v34 = vmul.f32 0.125, %v4090_v24  ;;  %v4139_v47 = vadd.f32 %v4138_v4, %v4115_v52 }
 0x819   : > { %v4155_v44 = vrot.slane %v4154_v29, 2  ;;  %v4236_v38 = vrot.slane %v4235_v33, 2 }
 0x81a   : > { %v4145_v41 = vsel %vm4044_vm3, %v8565_v34, -inf  ;;  %v4226_v28 = vsel %vm4225_vm5, %v8565_v34, -inf  ;;  %v8571_v55 = vmul.f32 0.125, %v4139_v47 }
 0x81b   : > { %v4156_v21 = vmax.f32 %v4154_v29, %v4155_v44  ;;  %v4237_v56 = vmax.f32 %v4235_v33, %v4236_v38  ;;  %v4146_v27 = vrot.slane %v4145_v41, 4  ;;  %v4227_v23 = vrot.slane %v4226_v28, 4 }
 0x81c   : > { %v4331_v30 = vsel %vm4044_vm3, %v8571_v55, -inf  ;;  %v4411_v43 = vsel %vm4225_vm5, %v8571_v55, -inf }
 0x81d   : > { %v4157_v8 = vrot.slane %v4156_v21, 1  ;;  %v4238_v19 = vrot.slane %v4237_v56, 1  ;;  %v4147_v32 = vmax.f32 %v4145_v41, %v4146_v27  ;;  %v4228_v50 = vmax.f32 %v4226_v28, %v4227_v23  ;;  %v4092_v57 = vpop.f32.mrf.mxu3 }
 0x81e   : > { %v4332_v7 = vrot.slane %v4331_v30, 4  ;;  %v4412_v14 = vrot.slane %v4411_v43, 4  ;;  %v4093_v48 = vadd.f32 %v4092_v57, %v4069_v20 }
 0x81f   : > { %v4158_v16 = vmax.f32 %v4156_v21, %v4157_v8  ;;  %v4239_v5 = vmax.f32 %v4237_v56, %v4238_v19  ;;  %v4148_v31 = vrot.slane %v4147_v32, 2  ;;  %v4229_v60 = vrot.slane %v4228_v50, 2  ;;  %v4687_v25 = vpop.f32.mrf.mxu0 }
 0x820   : > { %v4333_v36 = vmax.f32 %v4331_v30, %v4332_v7  ;;  %v4413_v53 = vmax.f32 %v4411_v43, %v4412_v14  ;;  %v8577_v0 = vmul.f32 0.125, %v4093_v48  ;;  %v4688_v39 = vadd.f32 %v4687_v25, %v4664_v45 }
 0x821   : > { %v4160_v26 = vsub.f32 %v4142_v35, %v4158_v16  ;;  %v4241_v58 = vsub.f32 %v4142_v35, %v4239_v5  ;;  %v4149_v63 = vmax.f32 %v4147_v32, %v4148_v31  ;;  %v4230_v49 = vmax.f32 %v4228_v50, %v4229_v60 }
 0x822   : > { %v4334_v61 = vrot.slane %v4333_v36, 2  ;;  %v4414_v51 = vrot.slane %v4413_v53, 2  ;;  %v4324_v37 = vsel %vm4044_vm3, %v8577_v0, -inf  ;;  %v4404_v62 = vsel %vm4225_vm5, %v8577_v0, -inf }
 0x823   : > { %v4163_v11 = vmul.f32 1.442695, %v4160_v26  ;;  %v4244_v22 = vmul.f32 1.442695, %v4241_v58  ;;  %v4150_v6 = vrot.slane %v4149_v63, 1  ;;  %v4231_v18 = vrot.slane %v4230_v49, 1 }
 0x824   : > { %v4335_v3 = vmax.f32 %v4333_v36, %v4334_v61  ;;  %v4415_v9 = vmax.f32 %v4413_v53, %v4414_v51  ;;  %v4325_v2 = vrot.slane %v4324_v37, 4  ;;  %v4405_v17 = vrot.slane %v4404_v62, 4 }
 0x825   : > { %5691 = vpow2.f32 %v4163_v11  ;;  %v4151_v35 = vmax.f32 %v4149_v63, %v4150_v6  ;;  %v4232_v54 = vmax.f32 %v4230_v49, %v4231_v18  ;;  %v8583_v52 = vmul.f32 0.125, %v4688_v39 }
 0x826   : > { %5693 = vpow2.f32 %v4244_v22  ;;  %v4336_v12 = vrot.slane %v4335_v3, 1  ;;  %v4416_v59 = vrot.slane %v4415_v9, 1  ;;  %v4326_v46 = vmax.f32 %v4324_v37, %v4325_v2 }
 0x827   : > { %v4159_v24 = vsub.f32 %v8565_v34, %v4151_v35  ;;  %v4240_v29 = vsub.f32 %v8565_v34, %v4232_v54  ;;  %v4406_v33 = vmax.f32 %v4404_v62, %v4405_v17  ;;  %v4704_v4 = vsel %vm4044_vm3, %v8583_v52, -inf }
 0x828   : > { %v4337_v47 = vmax.f32 %v4335_v3, %v4336_v12  ;;  %v4417_v44 = vmax.f32 %v4415_v9, %v4416_v59  ;;  %v4327_v38 = vrot.slane %v4326_v46, 2  ;;  %v4705_v41 = vrot.slane %v4704_v4, 4 }
 0x829   : > { %v4161_v28 = vmul.f32 1.442695, %v4159_v24  ;;  %v4242_v21 = vmul.f32 1.442695, %v4240_v29  ;;  %v4407_v56 = vrot.slane %v4406_v33, 2  ;;  %v4790_v22 = vsel %vm4225_vm5, %v8583_v52, -inf }
 0x82a   : > { %v4339_v27 = vsub.f32 %v8571_v55, %v4337_v47  ;;  %v4419_v23 = vsub.f32 %v8571_v55, %v4417_v44  ;;  %v4328_v30 = vmax.f32 %v4326_v46, %v4327_v38  ;;  %v4706_v20 = vmax.f32 %v4704_v4, %v4705_v41 }
 0x82b   : > { %v8591_v43 = vpop.eup %5691  ;;  %5695 = vpow2.f32 %v4161_v28  ;;  %v4408_v34 = vmax.f32 %v4406_v33, %v4407_v56  ;;  %v4791_v24 = vrot.slane %v4790_v22, 4 }
 0x82c   : > { %v8593_v8 = vpop.eup %5693  ;;  %v4172_v19 = vsel %vm4044_vm3, %v8591_v43, 0.0  ;;  %5697 = vpow2.f32 %v4242_v21  ;;  %v4342_v32 = vmul.f32 1.442695, %v4339_v27  ;;  %v4422_v50 = vmul.f32 1.442695, %v4419_v23 }
 0x82d   : > { %v4173_v57 = vrot.slane %v4172_v19, 4  ;;  %v4249_v7 = vrot.slane %v8593_v8, 4  ;;  %v4329_v14 = vrot.slane %v4328_v30, 1  ;;  %v4409_v31 = vrot.slane %v4408_v34, 1 }
 0x82e   : > { %5699 = vpow2.f32 %v4342_v32  ;;  %v4707_v60 = vrot.slane %v4706_v20, 2  ;;  %v4792_v23 = vmax.f32 %v4790_v22, %v4791_v24  ;;  %v4299_v22 = vrot.slane %v8545_v10, 4 }
 0x82f   : > { %v4174_v55 = vadd.f32 %v4173_v57, %v4172_v19  ;;  %v4259_v48 = vsel %vm4044_vm3, %v4249_v7, 0.0  ;;  %5701 = vpow2.f32 %v4422_v50  ;;  %v4330_v16 = vmax.f32 %v4328_v30, %v4329_v14 }
 0x830   : > { %v4260_v5 = vrot.slane %v4259_v48, 4  ;;  %v4410_v62 = vmax.f32 %v4408_v34, %v4409_v31  ;;  %v4708_v11 = vmax.f32 %v4706_v20, %v4707_v60  ;;  %v4793_v31 = vrot.slane %v4792_v23, 2 }
 0x831   : > { %v8599_v45 = vpop.eup %5695  ;;  %v4175_v25 = vrot.slane %v4174_v55, 2  ;;  %v4338_v36 = vsub.f32 %v8577_v0, %v4330_v16 }
 0x832   : > { %v8602_v53 = vpop.eup %5697  ;;  %v4261_v39 = vadd.f32 %v4260_v5, %v4259_v48  ;;  %v4165_v26 = vsel %vm4044_vm3, %v8599_v45, 0.0  ;;  %v4418_v44 = vsub.f32 %v8577_v0, %v4410_v62  ;;  %v4709_v38 = vrot.slane %v4708_v11, 1 }
 0x833   : > { %v4176_v58 = vadd.f32 %v4175_v25, %v4174_v55  ;;  %v4166_v63 = vrot.slane %v4165_v26, 4  ;;  %v4248_v49 = vrot.slane %v8602_v53, 4  ;;  %v4340_v61 = vmul.f32 1.442695, %v4338_v36 }
 0x834   : > { %v8607_v51 = vpop.eup %5699  ;;  %v4262_v37 = vrot.slane %v4261_v39, 2  ;;  %v4420_v50 = vmul.f32 1.442695, %v4418_v44  ;;  %v4710_v57 = vmax.f32 %v4708_v11, %v4709_v38  ;;  %v4763_v62 = vrot.slane %v8534_v40, 4 }
 0x835   : > { %v8611_v6 = vpop.eup %5701  ;;  %v4177_v18 = vrot.slane %v4176_v58, 1  ;;  %v4167_v3 = vadd.f32 %v4166_v63, %v4165_v26  ;;  %v4252_v9 = vsel %vm4044_vm3, %v4248_v49, 0.0  ;;  %v4351_v2 = vsel %vm4044_vm3, %v8607_v51, 0.0 }
 0x836   : > { %v4263_v17 = vadd.f32 %v4262_v37, %v4261_v39  ;;  %v4253_v35 = vrot.slane %v4252_v9, 4  ;;  %v4352_v54 = vrot.slane %v4351_v2, 4  ;;  %v4427_v12 = vrot.slane %v8611_v6, 4 }
 0x837   : > { %v8617_v59 = vadd.f32 %v4177_v18, %v4176_v58  ;;  %v4168_v46 = vrot.slane %v4167_v3, 2  ;;  %5703 = vpow2.f32 %v4340_v61  ;;  %v4712_v26 = vsub.f32 %v8583_v52, %v4710_v57  ;;  %v4641_v61 = vpop.f32.mrf.mxu3 }
 0x838   : > { %v4264_v29 = vrot.slane %v4263_v17, 1  ;;  %v4254_v33 = vadd.f32 %v4253_v35, %v4252_v9  ;;  %v4353_v4 = vadd.f32 %v4352_v54, %v4351_v2  ;;  %v4437_v47 = vsel %vm4044_vm3, %v4427_v12, 0.0  ;;  %v4618_v9 = vpop.f32.mrf.mxu1 }
 0x839   : > { %5705 = vrcp.f32 %v8617_v59  ;;  %v4169_v28 = vadd.f32 %v4168_v46, %v4167_v3  ;;  %v4438_v27 = vrot.slane %v4437_v47, 4  ;;  %v4298_v37 = vrot.slane %v8531_v15, 4 }
 0x83a   : > { %v8622_v41 = vadd.f32 %v4264_v29, %v4263_v17  ;;  %v4255_v21 = vrot.slane %v4254_v33, 2  ;;  %v4354_v56 = vrot.slane %v4353_v4, 2  ;;  %v4203_v18 = vand.u32 2147483647, %v8617_v59 }
 0x83b   : > { %v4170_v34 = vrot.slane %v4169_v28, 1  ;;  %v4439_v32 = vadd.f32 %v4438_v27, %v4437_v47  ;;  %v4764_v2 = vrot.slane %v8551_v13, 4  ;;  %v4715_v17 = vmul.f32 1.442695, %v4712_v26 }
 0x83c   : > { %5707 = vrcp.f32 %v8622_v41  ;;  %v4256_v20 = vadd.f32 %v4255_v21, %v4254_v33  ;;  %v4355_v19 = vadd.f32 %v4354_v56, %v4353_v4  ;;  %v8653_v35 = vmax.f32 %v4792_v23, %v4793_v31 }
 0x83d   : > { %v8625_v30 = vpop.eup %5703  ;;  %v8629_v0 = vadd.f32 %v4170_v34, %v4169_v28  ;;  %v4440_v48 = vrot.slane %v4439_v32, 2  ;;  %v8655_v54 = vadd.f32 %v4641_v61, %v4618_v9  ;;  %vm4199_vm1 = vweird.f32 %v8617_v59 }
 0x83e   : > { %v4257_v14 = vrot.slane %v4256_v20, 1  ;;  %v4356_v55 = vrot.slane %v4355_v19, 1  ;;  %v4344_v5 = vsel %vm4044_vm3, %v8625_v30, 0.0  ;;  %vm8668_vm2 = vcmp.eq.f32.partialorder %v4203_v18, 8.507059e+37 }
 0x83f   : > { %v8627_v7 = vpop.eup %5705  ;;  %5709 = vrcp.f32 %v8629_v0  ;;  %v4441_v63 = vadd.f32 %v4440_v48, %v4439_v32  ;;  %v4345_v49 = vrot.slane %v4344_v5, 4  ;;  %v4205_v38 = vand.u32 2147483648, %v8617_v59 }
 0x840   : > { %v4195_v16 = vmul.f32 %v8627_v7, %v8617_v59  ;;  %v8638_v36 = vadd.f32 %v4257_v14, %v4256_v20  ;;  %v8640_v39 = vadd.f32 %v4356_v55, %v4355_v19  ;;  %5711 = vpow2.f32 %v4420_v50 }
 0x841   : > { %vm4200_vm4 = vweird.f32 %v8627_v7  ;;  %v4442_v24 = vrot.slane %v4441_v63, 1  ;;  %v4346_v29 = vadd.f32 %v4345_v49, %v4344_v5  ;;  %v4292_v21 = vand.u32 2147483648, %v8622_v41 }
 0x842   : > { %v8636_v60 = vpop.eup %5707  ;;  %v4196_v25 = vsub.f32 1.0, %v4195_v16  ;;  %5713 = vrcp.f32 %v8638_v36  ;;  %vm8677_vm9 = vmor %vm4199_vm1, %vm4200_vm4  ;;  %vm4286_vm10 = vweird.f32 %v8622_v41  ;;  %v4290_v23 = vand.u32 2147483647, %v8622_v41 }
 0x843   : > { %v4282_v58 = vmul.f32 %v8636_v60, %v8622_v41  ;;  %5715 = vrcp.f32 %v8640_v39  ;;  %vm4287_vm7 = vweird.f32 %v8636_v60  ;;  %v4188_v19 = vand.u32 2147483647, %v8629_v0 }
 0x844   : > { %v4197_v11 = vmul.f32 %v8627_v7, %v4196_v25  ;;  %5717 = vpow2.f32 %v4715_v17  ;;  %vm8685_vm8 = vmor %vm4286_vm10, %vm4287_vm7  ;;  %v8692_v50 = vadd.f32 %v4442_v24, %v4441_v63  ;;  %v4347_v57 = vrot.slane %v4346_v29, 2 }
 0x845   : > { %v4283_v3 = vsub.f32 1.0, %v4282_v58  ;;  %v8657_v12 = vpop.eup %5709  ;;  %v4190_v55 = vand.u32 2147483648, %v8629_v0  ;;  %v4206_v16 = vor.u32 1.1754944e-38, %v4205_v38  ;;  %v4293_v5 = vor.u32 1.1754944e-38, %v4292_v21 }
 0x846   : > { %v4198_v33 = vadd.f32 %v8627_v7, %v4197_v11  ;;  %v4180_v4 = vmul.f32 %v8657_v12, %v8629_v0  ;;  %v8666_v47 = vpop.eup %5711  ;;  %vm4291_vm0 = vcmp.eq.f32.partialorder %v4290_v23, 8.507059e+37  ;;  %vm4184_vm13 = vweird.f32 %v8629_v0 }
 0x847   : > { %v4284_v46 = vmul.f32 %v8636_v60, %v4283_v3  ;;  %v4426_v48 = vrot.slane %v8666_v47, 4  ;;  %v4275_v26 = vand.u32 2147483647, %v8638_v36  ;;  %5719 = vrcp.f32 %v8692_v50 }
 0x848   : > { %v8675_v56 = vpop.eup %5713  ;;  %v4181_v34 = vsub.f32 1.0, %v4180_v4  ;;  %v4202_v41 = vsel %vm8677_vm9, %v8627_v7, %v4198_v33  ;;  %v4348_v63 = vadd.f32 %v4347_v57, %v4346_v29  ;;  %vm8712_vm11 = vcmp.eq.f32.partialorder %v4188_v19, 8.507059e+37 }
 0x849   : > { %v4285_v28 = vadd.f32 %v8636_v60, %v4284_v46  ;;  %v8683_v20 = vpop.eup %5715  ;;  %v4267_v32 = vmul.f32 %v8675_v56, %v8638_v36  ;;  %v4191_v11 = vor.u32 1.1754944e-38, %v4190_v55  ;;  %v4277_v18 = vand.u32 2147483648, %v8638_v36 }
 0x84a   : > { %v4182_v31 = vmul.f32 %v8657_v12, %v4181_v34  ;;  %v4374_v7 = vmul.f32 %v8683_v20, %v8640_v39  ;;  %v8710_v49 = vpop.eup %5717  ;;  %v4430_v3 = vsel %vm4044_vm3, %v4426_v48, 0.0  ;;  %vm4185_vm6 = vweird.f32 %v8657_v12  ;;  %v4690_v48 = vpop.f32.mrf.mxu0 }
 0x84b   : > { %v4289_v14 = vsel %vm8685_vm8, %v8636_v60, %v4285_v28  ;;  %v4268_v25 = vsub.f32 1.0, %v4267_v32  ;;  %v4207_v60 = vsel %vm8668_vm2, %v4206_v16, %v4202_v41  ;;  %v4349_v46 = vrot.slane %v4348_v63, 1  ;;  %vm8733_vm4 = vmor %vm4184_vm13, %vm4185_vm6 }
 0x84c   : > { %v4294_v58 = vsel %vm4291_vm0, %v4293_v5, %v4289_v14  ;;  %v4183_v9 = vadd.f32 %v8657_v12, %v4182_v31  ;;  %v4208_v24 = vmul.f32 %v8591_v43, %v4207_v60  ;;  %v4375_v33 = vsub.f32 1.0, %v4374_v7 }
 0x84d   : > { %v4269_v17 = vmul.f32 %v8675_v56, %v4268_v25  ;;  %v4295_v29 = vmul.f32 %v8593_v8, %v4294_v58  ;;  %v4384_v4 = vand.u32 2147483648, %v8640_v39  ;;  %vm4271_vm14 = vweird.f32 %v8638_v36  ;;  %v8742_v34 = vpop.eup %5719  ;;  %v4667_v58 = vpop.f32.mrf.mxu2 }
 0x84e   : > { %vm8725_vm12 = vcmp.eq.f32.partialorder %v4275_v26, 8.507059e+37  ;;  %v8729_v38 = vadd.f32 %v4349_v46, %v4348_v63  ;;  %v4431_v28 = vrot.slane %v4430_v3, 4  ;;  %v4278_v43 = vor.u32 1.1754944e-38, %v4277_v18 }
 0x84f   : > { %vm4378_vm1 = vweird.f32 %v8640_v39  ;;  %v4382_v8 = vand.u32 2147483647, %v8640_v39  ;;  %v4470_v27 = vand.u32 2147483648, %v8692_v50  ;;  %v4724_v23 = vsel %vm4044_vm3, %v8710_v49, 0.0 }
 0x850   : > { %v4187_v0 = vsel %vm8733_vm4, %v8657_v12, %v4183_v9  ;;  %v4270_v59 = vadd.f32 %v8675_v56, %v4269_v17  ;;  %vm4272_vm7 = vweird.f32 %v8675_v56  ;;  %5721 = vrcp.f32 %v8729_v38 }
 0x851   : > { %v8751_v19 = vmul.f32 %v4208_v24, %v8545_v10  ;;  %v8755_v32 = vmul.f32 %v4299_v22, %v4295_v29  ;;  %v4376_v57 = vmul.f32 %v8683_v20, %v4375_v33  ;;  %v4385_v41 = vor.u32 1.1754944e-38, %v4384_v4  ;;  %vm8764_vm9 = vmor %vm4271_vm14, %vm4272_vm7 }
 0x852   : > { %vm4379_vm2 = vweird.f32 %v8683_v20  ;;  %v4432_v14 = vadd.f32 %v4431_v28, %v4430_v3  ;;  %v4725_v12 = vrot.slane %v4724_v23, 4  ;;  %v4795_v55 = vrot.slane %v8653_v35, 1 }
 0x853   : > { %v4192_v16 = vsel %vm8712_vm11, %v4191_v11, %v4187_v0  ;;  %vm8768_vm10 = vcmp.eq.f32.partialorder %v4382_v8, 8.507059e+37  ;;  %v4460_v25 = vmul.f32 %v8742_v34, %v8692_v50  ;;  %v4468_v26 = vand.u32 2147483647, %v8692_v50  ;;  %vm8800_vm8 = vmor %vm4378_vm1, %vm4379_vm2 }
 0x854   : > { %v8775_v7 = vor.u32 1.1754944e-38, %v4470_v27  ;;  %v4274_v60 = vsel %vm8764_vm9, %v8675_v56, %v4270_v59  ;;  %v4433_v36 = vrot.slane %v4432_v14, 2  ;;  %v4726_v63 = vadd.f32 %v4725_v12, %v4724_v23 }
 0x855   : > { %v4796_v61 = vmax.f32 %v8653_v35, %v4795_v55  ;;  %v4307_v11 = vrot.slane %v8755_v32, 4  ;;  %v4377_v18 = vadd.f32 %v8683_v20, %v4376_v57  ;;  %v8784_v3 = vmul.f32 0.125, %v8655_v54  ;;  %v4644_v57 = vpop.f32.mrf.mxu3 }
 0x856   : > { %v4691_v9 = vadd.f32 %v4690_v48, %v4667_v58  ;;  %v8786_v17 = vpop.eup %5721  ;;  %v4193_v46 = vmul.f32 %v8599_v45, %v4192_v16  ;;  %v4434_v24 = vadd.f32 %v4433_v36, %v4432_v14  ;;  %v4727_v29 = vrot.slane %v4726_v63, 2 }
 0x857   : > { %v4798_v56 = vsub.f32 %v8583_v52, %v4796_v61  ;;  %v4279_v33 = vsel %vm8725_vm12, %v4278_v43, %v4274_v60  ;;  %v4461_v35 = vsub.f32 1.0, %v4460_v25  ;;  %v4359_v4 = vmul.f32 %v8786_v17, %v8729_v38  ;;  %v4621_v25 = vpop.f32.mrf.mxu1 }
 0x858   : > { %v4697_v54 = vsel %vm4044_vm3, %v8784_v3, -inf  ;;  %v4435_v28 = vrot.slane %v4434_v24, 1  ;;  %v4728_v52 = vadd.f32 %v4727_v29, %v4726_v63  ;;  %v4381_v43 = vsel %vm8800_vm8, %v8683_v20, %v4377_v18 }
 0x859   : > { %v4801_v21 = vmul.f32 1.442695, %v4798_v56  ;;  %v4698_v44 = vrot.slane %v4697_v54, 4  ;;  %vm4465_vm0 = vweird.f32 %v8742_v34  ;;  %v4360_v8 = vsub.f32 1.0, %v4359_v4 }
 0x85a   : > { %v4783_v27 = vsel %vm4225_vm5, %v8784_v3, -inf  ;;  %v8810_v23 = vmul.f32 0.125, %v4691_v9  ;;  %v8812_v39 = vadd.f32 %v4435_v28, %v4434_v24  ;;  %v4729_v0 = vrot.slane %v4728_v52, 1 }
 0x85b   : > { %5723 = vpow2.f32 %v4801_v21  ;;  %v4699_v59 = vmax.f32 %v4697_v54, %v4698_v44  ;;  %v4280_v14 = vmul.f32 %v8602_v53, %v4279_v33  ;;  %vm4464_vm13 = vweird.f32 %v8692_v50 }
 0x85c   : > { %v4784_v12 = vrot.slane %v4783_v27, 4  ;;  %v4882_v20 = vsel %vm4044_vm3, %v8810_v23, -inf  ;;  %v4962_v55 = vsel %vm4225_vm5, %v8810_v23, -inf  ;;  %v8821_v48 = vmul.f32 %v4193_v46, %v8531_v15  ;;  %vm8862_vm14 = vmor %vm4464_vm13, %vm4465_vm0 }
 0x85d   : > { %v4386_v16 = vsel %vm8768_vm10, %v4385_v41, %v4381_v43  ;;  %v4462_v5 = vmul.f32 %v8742_v34, %v4461_v35  ;;  %5725 = vrcp.f32 %v8812_v39  ;;  %v8827_v53 = vadd.f32 %v4729_v0, %v4728_v52 }
 0x85e   : > { %v4700_v60 = vrot.slane %v4699_v59, 2  ;;  %v4785_v36 = vmax.f32 %v4783_v27, %v4784_v12  ;;  %v4645_v58 = vadd.f32 %v4644_v57, %v4621_v25  ;;  %v4361_v63 = vmul.f32 %v8786_v17, %v4360_v8 }
 0x85f   : > { %vm4363_vm11 = vweird.f32 %v8729_v38  ;;  %v4883_v61 = vrot.slane %v4882_v20, 4  ;;  %v4963_v18 = vrot.slane %v4962_v55, 4  ;;  %v8833_v31 = vmul.f32 %v4298_v37, %v4280_v14 }
 0x860   : > { %v4387_v41 = vmul.f32 %v8607_v51, %v4386_v16  ;;  %v4369_v9 = vand.u32 2147483648, %v8729_v38  ;;  %5727 = vrcp.f32 %v8827_v53  ;;  %v8841_v24 = vadd.f32 %v8742_v34, %v4462_v5 }
 0x861   : > { %v8838_v46 = vpop.eup %5723  ;;  %v4367_v29 = vand.u32 2147483647, %v8729_v38  ;;  %v4701_v56 = vmax.f32 %v4699_v59, %v4700_v60  ;;  %v4786_v33 = vrot.slane %v4785_v36, 2  ;;  %vm4364_vm6 = vweird.f32 %v8786_v17 }
 0x862   : > { %v4806_v35 = vrot.slane %v8838_v46, 4  ;;  %v4884_v4 = vmax.f32 %v4882_v20, %v4883_v61  ;;  %v8846_v54 = vmul.f32 0.125, %v4645_v58  ;;  %v8851_v45 = vadd.f32 %v8786_v17, %v4361_v63  ;;  %vm8876_vm12 = vmor %vm4363_vm11, %vm4364_vm6 }
 0x863   : > { %v8848_v51 = vpop.eup %5725  ;;  %v4702_v28 = vrot.slane %v4701_v56, 1  ;;  %v4787_v52 = vmax.f32 %v4785_v36, %v4786_v33  ;;  %v4964_v21 = vmax.f32 %v4962_v55, %v4963_v18  ;;  %v4306_v44 = vrot.slane %v8833_v31, 4 }
 0x864   : > { %v8855_v43 = vmul.f32 %v4387_v41, %v8545_v10  ;;  %v4370_v8 = vor.u32 1.1754944e-38, %v4369_v9  ;;  %v4816_v27 = vsel %vm4044_vm3, %v4806_v35, 0.0  ;;  %v4885_v12 = vrot.slane %v4884_v4, 2 }
 0x865   : > { %v4817_v59 = vrot.slane %v4816_v27, 4  ;;  %v4703_v57 = vmax.f32 %v4701_v56, %v4702_v28  ;;  %v4788_v14 = vrot.slane %v4787_v52, 1  ;;  %v4467_v55 = vsel %vm8862_vm14, %v8742_v34, %v8841_v24 }
 0x866   : > { %v8866_v20 = vpop.eup %5727  ;;  %v4445_v5 = vmul.f32 %v8848_v51, %v8812_v39  ;;  %v4965_v25 = vrot.slane %v4964_v21, 2  ;;  %v4875_v60 = vsel %vm4044_vm3, %v8846_v54, -inf  ;;  %vm8886_vm4 = vcmp.eq.f32.partialorder %v4468_v26, 8.507059e+37 }
 0x867   : > { %v4366_v38 = vsel %vm8876_vm12, %v8786_v17, %v8851_v45  ;;  %v4747_v34 = vmul.f32 %v8866_v20, %v8827_v53  ;;  %v4818_v58 = vadd.f32 %v4817_v59, %v4816_v27  ;;  %v4711_v63 = vsub.f32 %v8784_v3, %v4703_v57 }
 0x868   : > { %vm8897_vm1 = vcmp.eq.f32.partialorder %v4367_v29, 8.507059e+37  ;;  %v4755_v50 = vand.u32 2147483647, %v8827_v53  ;;  %v4789_v26 = vmax.f32 %v4787_v52, %v4788_v14  ;;  %v4886_v18 = vmax.f32 %v4884_v4, %v4885_v12 }
 0x869   : > { %v4966_v41 = vmax.f32 %v4964_v21, %v4965_v25  ;;  %v4748_v9 = vsub.f32 1.0, %v4747_v34  ;;  %v4819_v24 = vrot.slane %v4818_v58, 2  ;;  %v4713_v56 = vmul.f32 1.442695, %v4711_v63 }
 0x86a   : > { %v4876_v33 = vrot.slane %v4875_v60, 4  ;;  %v4446_v17 = vsub.f32 1.0, %v4445_v5  ;;  %v4797_v35 = vsub.f32 %v8784_v3, %v4789_v26  ;;  %v4887_v45 = vrot.slane %v4886_v18, 1 }
 0x86b   : > { %v4967_v28 = vrot.slane %v4966_v41, 1  ;;  %v4749_v27 = vmul.f32 %v8866_v20, %v4748_v9  ;;  %v4820_v29 = vadd.f32 %v4819_v24, %v4818_v58  ;;  %5729 = vpow2.f32 %v4713_v56 }
 0x86c   : > { %v4877_v0 = vmax.f32 %v4875_v60, %v4876_v33  ;;  %v4799_v59 = vmul.f32 1.442695, %v4797_v35  ;;  %v4888_v57 = vmax.f32 %v4886_v18, %v4887_v45  ;;  %v4955_v4 = vsel %vm4225_vm5, %v8846_v54, -inf }
 0x86d   : > { %v4968_v16 = vmax.f32 %v4966_v41, %v4967_v28  ;;  %v4750_v52 = vadd.f32 %v8866_v20, %v4749_v27  ;;  %vm4752_vm7 = vweird.f32 %v8866_v20  ;;  %v4821_v21 = vrot.slane %v4820_v29, 1 }
 0x86e   : > { %v4878_v14 = vrot.slane %v4877_v0, 2  ;;  %v4757_v3 = vand.u32 2147483648, %v8827_v53  ;;  %5731 = vpow2.f32 %v4799_v59  ;;  %v4890_v12 = vsub.f32 %v8810_v23, %v4888_v57 }
 0x86f   : > { %v4970_v5 = vsub.f32 %v8810_v23, %v4968_v16  ;;  %v4447_v25 = vmul.f32 %v8848_v51, %v4446_v17  ;;  %vm4751_vm2 = vweird.f32 %v8827_v53  ;;  %v8913_v60 = vadd.f32 %v4821_v21, %v4820_v29 }
 0x870   : > { %v4879_v34 = vmax.f32 %v4877_v0, %v4878_v14  ;;  %v4472_v58 = vsel %vm8886_vm4, %v8775_v7, %v4467_v55  ;;  %vm8918_vm5 = vmor %vm4751_vm2, %vm4752_vm7  ;;  %v4893_v26 = vmul.f32 1.442695, %v4890_v12  ;;  %v4956_v41 = vrot.slane %v4955_v4, 4 }
 0x871   : > { %v4973_v18 = vmul.f32 1.442695, %v4970_v5  ;;  %v8922_v9 = vpop.eup %5729  ;;  %v4371_v23 = vsel %vm8897_vm1, %v4370_v8, %v4366_v38  ;;  %v4754_v53 = vsel %vm8918_vm5, %v8866_v20, %v4750_v52  ;;  %vm4756_vm9 = vcmp.eq.f32.partialorder %v4755_v50, 8.507059e+37 }
 0x872   : > { %5733 = vrcp.f32 %v8913_v60  ;;  %v4758_v7 = vor.u32 1.1754944e-38, %v4757_v3  ;;  %v4717_v55 = vsel %vm4044_vm3, %v8922_v9, 0.0  ;;  %v4880_v36 = vrot.slane %v4879_v34, 1 }
 0x873   : > { %5735 = vpow2.f32 %v4893_v26  ;;  %v8933_v24 = vadd.f32 %v8848_v51, %v4447_v25  ;;  %vm4450_vm10 = vweird.f32 %v8848_v51  ;;  %v4718_v61 = vrot.slane %v4717_v55, 4 }
 0x874   : > { %5737 = vpow2.f32 %v4973_v18  ;;  %v8936_v8 = vpop.eup %5731  ;;  %v8939_v20 = vmul.f32 %v8611_v6, %v4472_v58  ;;  %v4759_v38 = vsel %vm4756_vm9, %v4758_v7, %v4754_v53  ;;  %v4881_v50 = vmax.f32 %v4879_v34, %v4880_v36 }
 0x875   : > { %v4957_v56 = vmax.f32 %v4955_v4, %v4956_v41  ;;  %vm4449_vm8 = vweird.f32 %v8812_v39  ;;  %v4453_v33 = vand.u32 2147483647, %v8812_v39  ;;  %v4719_v17 = vadd.f32 %v4718_v61, %v4717_v55 }
 0x876   : > { %v4805_v35 = vrot.slane %v8936_v8, 4  ;;  %v8945_v45 = vmul.f32 %v8625_v30, %v4371_v23  ;;  %vm8947_vm0 = vmor %vm4449_vm8, %vm4450_vm10  ;;  %v4455_v6 = vand.u32 2147483648, %v8812_v39  ;;  %v4889_v27 = vsub.f32 %v8846_v54, %v4881_v50 }
 0x877   : > { %v4958_v29 = vrot.slane %v4957_v56, 2  ;;  %v4452_v59 = vsel %vm8947_vm0, %v8848_v51, %v8933_v24  ;;  %v4760_v57 = vmul.f32 %v8710_v49, %v4759_v38  ;;  %v4720_v16 = vrot.slane %v4719_v17, 2 }
 0x878   : > { %v5734_v0 = vpop.eup %5733  ;;  %v4809_v30 = vsel %vm4044_vm3, %v4805_v35, 0.0  ;;  %v4847_v39 = vand.u32 2147483647, %v8913_v60  ;;  %v4891_v14 = vmul.f32 1.442695, %v4889_v27  ;;  %v4849_v12 = vand.u32 2147483648, %v8913_v60 }
 0x879   : > { %v8959_v4 = vpop.eup %5735  ;;  %v4839_v52 = vmul.f32 %v5734_v0, %v8913_v60  ;;  %v4810_v21 = vrot.slane %v4809_v30, 4  ;;  %v4721_v5 = vadd.f32 %v4720_v16, %v4719_v17  ;;  %v4959_v49 = vmax.f32 %v4957_v56, %v4958_v29 }
 0x87a   : > { %v8963_v3 = vpop.eup %5737  ;;  %v4902_v51 = vsel %vm4044_vm3, %v8959_v4, 0.0  ;;  %vm8968_vm13 = vcmp.eq.f32.partialorder %v4453_v33, 8.507059e+37  ;;  %vm4844_vm11 = vweird.f32 %v5734_v0  ;;  %5739 = vpow2.f32 %v4891_v14 }
 0x87b   : > { %v4840_v34 = vsub.f32 1.0, %v4839_v52  ;;  %v4811_v58 = vadd.f32 %v4810_v21, %v4809_v30  ;;  %v4903_v63 = vrot.slane %v4902_v51, 4  ;;  %v4978_v26 = vrot.slane %v8963_v3, 4 }
 0x87c   : > { %v4722_v18 = vrot.slane %v4721_v5, 1  ;;  %v4960_v41 = vrot.slane %v4959_v49, 1  ;;  %vm4843_vm6 = vweird.f32 %v8913_v60  ;;  %v4218_v33 = vsel %vm4044_vm3, %v8751_v19, 0.0 }
 0x87d   : > { %v4841_v23 = vmul.f32 %v5734_v0, %v4840_v34  ;;  %v4812_v53 = vrot.slane %v4811_v58, 2  ;;  %v4904_v7 = vadd.f32 %v4903_v63, %v4902_v51  ;;  %v4988_v55 = vsel %vm4044_vm3, %v4978_v26, 0.0  ;;  %vm4845_vm14 = vmor %vm4843_vm6, %vm4844_vm11 }
 0x87e   : > { %v8975_v36 = vadd.f32 %v4722_v18, %v4721_v5  ;;  %v4989_v24 = vrot.slane %v4988_v55, 4  ;;  %v4961_v61 = vmax.f32 %v4959_v49, %v4960_v41  ;;  %v4768_v17 = vmul.f32 %v4764_v2, %v4760_v57 }
 0x87f   : > { %v4842_v38 = vadd.f32 %v5734_v0, %v4841_v23  ;;  %v4813_v50 = vadd.f32 %v4812_v53, %v4811_v58  ;;  %v4905_v56 = vrot.slane %v4904_v7, 2  ;;  %vm4848_vm12 = vcmp.eq.f32.partialorder %v4847_v39, 8.507059e+37 }
 0x880   : > { %v4850_v35 = vor.u32 1.1754944e-38, %v4849_v12  ;;  %5741 = vrcp.f32 %v8975_v36  ;;  %v4990_v29 = vadd.f32 %v4989_v24, %v4988_v55  ;;  %v8983_v16 = vpop.eup %5739  ;;  %v4456_v30 = vor.u32 1.1754944e-38, %v4455_v6 }
 0x881   : > { %v4846_v60 = vsel %vm4845_vm14, %v5734_v0, %v4842_v38  ;;  %v4814_v28 = vrot.slane %v4813_v50, 1  ;;  %v4906_v27 = vadd.f32 %v4905_v56, %v4904_v7  ;;  %v4969_v21 = vsub.f32 %v8846_v54, %v4961_v61 }
 0x882   : > { %v4851_v52 = vsel %vm4848_vm12, %v4850_v35, %v4846_v60  ;;  %v4219_v19 = vrot.slane %v4218_v33, 4  ;;  %v4991_v39 = vrot.slane %v4990_v29, 2  ;;  %v4457_v12 = vsel %vm8968_vm13, %v4456_v30, %v4452_v59 }
 0x883   : > { %v4852_v14 = vmul.f32 %v8838_v46, %v4851_v52  ;;  %v8987_v57 = vadd.f32 %v4814_v28, %v4813_v50  ;;  %v4907_v5 = vrot.slane %v4906_v27, 1  ;;  %v8992_v0 = vsel %vm4044_vm3, %v4768_v17, 0.0 }
 0x884   : > { %v4740_v51 = vand.u32 2147483647, %v8975_v36  ;;  %v4895_v6 = vsel %vm4044_vm3, %v8983_v16, 0.0  ;;  %v8999_v54 = vmul.f32 %v8945_v45, %v8531_v15  ;;  %v4742_v46 = vand.u32 2147483648, %v8975_v36 }
 0x885   : > { %5743 = vrcp.f32 %v8987_v57  ;;  %v4971_v49 = vmul.f32 1.442695, %v4969_v21  ;;  %v4854_v59 = vmul.f32 %v4852_v14, %v8551_v13  ;;  %v9004_v25 = vadd.f32 %v4907_v5, %v4906_v27 }
 0x886   : > { %v5742_v34 = vpop.eup %5741  ;;  %v4992_v58 = vadd.f32 %v4991_v39, %v4990_v29  ;;  %v4896_v63 = vrot.slane %v4895_v6, 4  ;;  %v9007_v26 = vmul.f32 %v8666_v47, %v4457_v12  ;;  %v4777_v18 = vrot.slane %v8992_v0, 4 }
 0x887   : > { %v4732_v45 = vmul.f32 %v5742_v34, %v8975_v36  ;;  %v4220_v41 = vadd.f32 %v4219_v19, %v4218_v33  ;;  %vm4736_vm4 = vweird.f32 %v8975_v36  ;;  %vm9012_vm1 = vcmp.eq.f32.partialorder %v4740_v51, 8.507059e+37 }
 0x888   : > { %5745 = vrcp.f32 %v9004_v25  ;;  %v4317_v53 = vsel %vm4044_vm3, %v4307_v11, 0.0  ;;  %v4743_v47 = vor.u32 1.1754944e-38, %v4742_v46  ;;  %v4832_v55 = vand.u32 2147483647, %v8987_v57 }
 0x889   : > { %v4733_v7 = vsub.f32 1.0, %v4732_v45  ;;  %v4993_v24 = vrot.slane %v4992_v58, 1  ;;  %v4858_v61 = vrot.slane %v4854_v59, 4  ;;  %v4834_v38 = vand.u32 2147483648, %v8987_v57 }
 0x88a   : > { %v4897_v50 = vadd.f32 %v4896_v63, %v4895_v6  ;;  %5747 = vpow2.f32 %v4971_v49  ;;  %vm4737_vm7 = vweird.f32 %v5742_v34  ;;  %v4221_v35 = vrot.slane %v4220_v41, 2 }
 0x88b   : > { %v5744_v56 = vpop.eup %5743  ;;  %v4734_v33 = vmul.f32 %v5742_v34, %v4733_v7  ;;  %v9022_v17 = vadd.f32 %v4993_v24, %v4992_v58  ;;  %vm4828_vm2 = vweird.f32 %v8987_v57  ;;  %v4318_v60 = vrot.slane %v4317_v53, 4  ;;  %vm4738_vm9 = vmor %vm4736_vm4, %vm4737_vm7 }
 0x88c   : > { %v4824_v32 = vmul.f32 %v5744_v56, %v8987_v57  ;;  %v4898_v11 = vrot.slane %v4897_v50, 2  ;;  %vm9026_vm5 = vcmp.eq.f32.partialorder %v4832_v55, 8.507059e+37  ;;  %v4933_v29 = vand.u32 2147483647, %v9004_v25 }
 0x88d   : > { %v4735_v28 = vadd.f32 %v5742_v34, %v4734_v33  ;;  %5749 = vrcp.f32 %v9022_v17  ;;  %v9033_v52 = vsel %vm4044_vm3, %v4858_v61, 0.0  ;;  %v4835_v19 = vor.u32 1.1754944e-38, %v4834_v38 }
 0x88e   : > { %v5746_v30 = vpop.eup %5745  ;;  %v4825_v21 = vsub.f32 1.0, %v4824_v32  ;;  %v4899_v14 = vadd.f32 %v4898_v11, %v4897_v50  ;;  %vm4929_vm10 = vweird.f32 %v9004_v25  ;;  %v4935_v12 = vand.u32 2147483648, %v9004_v25 }
 0x88f   : > { %v4739_v5 = vsel %vm4738_vm9, %v5742_v34, %v4735_v28  ;;  %v4925_v39 = vmul.f32 %v5746_v30, %v9004_v25  ;;  %vm4829_vm8 = vweird.f32 %v5744_v56  ;;  %v4869_v36 = vrot.slane %v9033_v52, 4 }
 0x890   : > { %v9040_v51 = vpop.eup %5747  ;;  %v4744_v6 = vsel %vm9012_vm1, %v4743_v47, %v4739_v5  ;;  %v4826_v46 = vmul.f32 %v5744_v56, %v4825_v21  ;;  %v4900_v49 = vrot.slane %v4899_v14, 1  ;;  %vm9045_vm0 = vcmp.eq.f32.partialorder %v4933_v29, 8.507059e+37  ;;  %vm4830_vm13 = vmor %vm4828_vm2, %vm4829_vm8 }
 0x891   : > { %v4926_v59 = vsub.f32 1.0, %v4925_v39  ;;  %v4977_v34 = vrot.slane %v9040_v51, 4  ;;  %v4222_v7 = vadd.f32 %v4221_v35, %v4220_v41  ;;  %v4319_v55 = vadd.f32 %v4318_v60, %v4317_v53 }
 0x892   : > { %v4827_v63 = vadd.f32 %v5744_v56, %v4826_v46  ;;  %v9050_v45 = vadd.f32 %v4900_v49, %v4899_v14  ;;  %v4745_v23 = vmul.f32 %v8922_v9, %v4744_v6  ;;  %vm4930_vm11 = vweird.f32 %v5746_v30 }
 0x893   : > { %v5750_v24 = vpop.eup %5749  ;;  %v4927_v47 = vmul.f32 %v5746_v30, %v4926_v59  ;;  %v4397_v61 = vsel %vm4044_vm3, %v8855_v43, 0.0  ;;  %v4981_v33 = vsel %vm4044_vm3, %v4977_v34, 0.0  ;;  %v5019_v9 = vand.u32 2147483647, %v9022_v17  ;;  %vm4931_vm6 = vmor %vm4929_vm10, %vm4930_vm11 }
 0x894   : > { %v4831_v38 = vsel %vm4830_vm13, %v5744_v56, %v4827_v63  ;;  %v5011_v50 = vmul.f32 %v5750_v24, %v9022_v17  ;;  %5751 = vrcp.f32 %v9050_v45  ;;  %v5021_v57 = vand.u32 2147483648, %v9022_v17 }
 0x895   : > { %v4836_v41 = vsel %vm9026_vm5, %v4835_v19, %v4831_v38  ;;  %v4928_v53 = vadd.f32 %v5746_v30, %v4927_v47  ;;  %v4936_v43 = vor.u32 1.1754944e-38, %v4935_v12  ;;  %v4398_v32 = vrot.slane %v4397_v61, 4 }
 0x896   : > { %v4837_v35 = vmul.f32 %v8936_v8, %v4836_v41  ;;  %v5012_v56 = vsub.f32 1.0, %v5011_v50  ;;  %v4982_v60 = vrot.slane %v4981_v33, 4  ;;  %v4223_v28 = vrot.slane %v4222_v7, 1 }
 0x897   : > { %v4932_v11 = vsel %vm4931_vm6, %v5746_v30, %v4928_v53  ;;  %v4320_v29 = vrot.slane %v4319_v55, 2  ;;  %v4767_v27 = vmul.f32 %v4763_v62, %v4745_v23  ;;  %vm5016_vm14 = vweird.f32 %v5750_v24 }
 0x898   : > { %v4937_v21 = vsel %vm9045_vm0, %v4936_v43, %v4932_v11  ;;  %v5013_v19 = vmul.f32 %v5750_v24, %v5012_v56  ;;  %vm5015_vm12 = vweird.f32 %v9022_v17  ;;  %vm9072_vm4 = vcmp.eq.f32.partialorder %v5019_v9, 8.507059e+37 }
 0x899   : > { %v5022_v25 = vor.u32 1.1754944e-38, %v5021_v57  ;;  %v4983_v14 = vadd.f32 %v4982_v60, %v4981_v33  ;;  %v4853_v5 = vmul.f32 %v4837_v35, %v8534_v40  ;;  %v4399_v12 = vadd.f32 %v4398_v32, %v4397_v61  ;;  %vm5017_vm1 = vmor %vm5015_vm12, %vm5016_vm14 }
 0x89a   : > { %v5752_v30 = vpop.eup %5751  ;;  %v5014_v39 = vadd.f32 %v5750_v24, %v5013_v19  ;;  %v4475_v6 = vmul.f32 %v8939_v20, %v4299_v22  ;;  %v4938_v46 = vmul.f32 %v8959_v4, %v4937_v21  ;;  %v4224_v59 = vadd.f32 %v4223_v28, %v4222_v7 }
 0x89b   : > { %v4910_v17 = vmul.f32 %v5752_v30, %v9050_v45  ;;  %v4984_v49 = vrot.slane %v4983_v14, 2  ;;  %v9083_v58 = vsel %vm4044_vm3, %v4767_v27, 0.0  ;;  %v4321_v63 = vadd.f32 %v4320_v29, %v4319_v55 }
 0x89c   : > { %v5018_v34 = vsel %vm5017_vm1, %v5750_v24, %v5014_v39  ;;  %v4400_v23 = vrot.slane %v4399_v12, 2  ;;  %v4918_v10 = vand.u32 2147483647, %v9050_v45  ;;  %v4857_v20 = vrot.slane %v4853_v5, 4 }
 0x89d   : > { %v5023_v47 = vsel %vm9072_vm4, %v5022_v25, %v5018_v34  ;;  %v4911_v61 = vsub.f32 1.0, %v4910_v17  ;;  %v4985_v22 = vadd.f32 %v4984_v49, %v4983_v14  ;;  %v4920_v38 = vand.u32 2147483648, %v9050_v45 }
 0x89e   : > { %v5024_v4 = vmul.f32 %v8963_v3, %v5023_v47  ;;  %v4479_v50 = vrot.slane %v4475_v6, 4  ;;  %v4940_v7 = vmul.f32 %v4938_v46, %v4764_v2  ;;  %v4401_v55 = vadd.f32 %v4400_v23, %v4399_v12 }
 0x89f   : > { %v4912_v33 = vmul.f32 %v5752_v30, %v4911_v61  ;;  %v4986_v24 = vrot.slane %v4985_v22, 1  ;;  %vm4915_vm7 = vweird.f32 %v5752_v30  ;;  %v4322_v53 = vrot.slane %v4321_v63, 1 }
 0x8a0   : > { %v5026_v41 = vmul.f32 %v5024_v4, %v8551_v13  ;;  %v4489_v9 = vsel %vm4044_vm3, %v4479_v50, 0.0  ;;  %v4778_v3 = vadd.f32 %v4777_v18, %v8992_v0  ;;  %v4770_v56 = vrot.slane %v9083_v58, 4 }
 0x8a1   : > { %v4913_v57 = vadd.f32 %v5752_v30, %v4912_v33  ;;  %v9094_v35 = vadd.f32 %v4986_v24, %v4985_v22  ;;  %v4490_v43 = vrot.slane %v4489_v9, 4  ;;  %vm4914_vm2 = vweird.f32 %v9050_v45 }
 0x8a2   : > { %v5030_v2 = vrot.slane %v5026_v41, 4  ;;  %v4870_v13 = vadd.f32 %v4869_v36, %v9033_v52  ;;  %v9105_v32 = vsel %vm4044_vm3, %v4857_v20, 0.0  ;;  %v4402_v11 = vrot.slane %v4401_v55, 1  ;;  %vm9110_vm5 = vmor %vm4914_vm2, %vm4915_vm7 }
 0x8a3   : > { %5753 = vrcp.f32 %v9094_v35  ;;  %v4948_v60 = vsel %vm4044_vm3, %v4940_v7, 0.0  ;;  %vm9114_vm9 = vcmp.eq.f32.partialorder %v4918_v10, 8.507059e+37  ;;  %v4921_v45 = vor.u32 1.1754944e-38, %v4920_v38 }
 0x8a4   : > { %v4323_v28 = vadd.f32 %v4322_v53, %v4321_v63  ;;  %v4491_v52 = vadd.f32 %v4490_v43, %v4489_v9  ;;  %v4917_v36 = vsel %vm9110_vm5, %v5752_v30, %v4913_v57  ;;  %vm4496_vm10 = vcmask 1040384  }
 0x8a5   : > { %v4779_v29 = vrot.slane %v4778_v3, 2  ;;  %v4871_v27 = vrot.slane %v4870_v13, 2  ;;  %v4862_v21 = vrot.slane %v9105_v32, 4  ;;  %v4949_v8 = vrot.slane %v4948_v60, 4 }
 0x8a6   : > { %v4492_v19 = vrot.slane %v4491_v52, 2  ;;  %v5040_v25 = vsel %vm4044_vm3, %v5030_v2, 0.0  ;;  %v4403_v14 = vadd.f32 %v4402_v11, %v4401_v55  ;;  %v4922_v6 = vsel %vm9114_vm9, %v4921_v45, %v4917_v36 }
 0x8a7   : > { %v4780_v5 = vadd.f32 %v4779_v29, %v4778_v3  ;;  %v4872_v39 = vadd.f32 %v4871_v27, %v4870_v13  ;;  %v5041_v12 = vrot.slane %v5040_v25, 4  ;;  %v4498_v46 = vsel %vm4496_vm10, %v4224_v59, %v4323_v28 }
 0x8a8   : > { %vm4499_vm8 = vcmask 1041408   ;;  %v4950_v30 = vadd.f32 %v4949_v8, %v4948_v60  ;;  %vm5000_vm0 = vweird.f32 %v9094_v35  ;;  %v4493_v49 = vadd.f32 %v4492_v19, %v4491_v52  ;;  %v5061_v8 = vld [vmem:[%s9151_s4] sm:$0xff] }
 0x8a9   : > { %v5754_v17 = vpop.eup %5753  ;;  %v4873_v34 = vrot.slane %v4872_v39, 1  ;;  %v5042_v63 = vadd.f32 %v5041_v12, %v5040_v25  ;;  %v5004_v47 = vand.u32 2147483647, %v9094_v35  ;;  %v5006_v61 = vand.u32 2147483648, %v9094_v35 }
 0x8aa   : > { %v4996_v23 = vmul.f32 %v5754_v17, %v9094_v35  ;;  %vm4502_vm13 = vcmask 1042432   ;;  %v4951_v10 = vrot.slane %v4950_v30, 2  ;;  %v4923_v22 = vmul.f32 %v8983_v16, %v4922_v6 }
 0x8ab   : > { %v4501_v59 = vsel %vm4499_vm8, %v4498_v46, %v4403_v14  ;;  %v4781_v20 = vrot.slane %v4780_v5, 1  ;;  %v5043_v4 = vrot.slane %v5042_v63, 2  ;;  %v4211_v7 = vsel %vm4044_vm3, %v8821_v48, 0.0 }
 0x8ac   : > { %v4997_v38 = vsub.f32 1.0, %v4996_v23  ;;  %v4952_v50 = vadd.f32 %v4951_v10, %v4950_v30  ;;  %v4310_v33 = vsel %vm4044_vm3, %v4306_v44, 0.0  ;;  %v4494_v24 = vrot.slane %v4493_v49, 1 }
 0x8ad   : > { %v4874_v55 = vadd.f32 %v4873_v34, %v4872_v39  ;;  %v5044_v41 = vadd.f32 %v5043_v4, %v5042_v63  ;;  %v4390_v53 = vsel %vm4044_vm3, %v8999_v54, 0.0  ;;  %vm5001_vm11 = vweird.f32 %v5754_v17 }
 0x8ae   : > { %v4998_v16 = vmul.f32 %v5754_v17, %v4997_v38  ;;  %v5007_v9 = vor.u32 1.1754944e-38, %v5006_v61  ;;  %v4953_v57 = vrot.slane %v4952_v50, 1  ;;  %v4782_v43 = vadd.f32 %v4781_v20, %v4780_v5  ;;  %vm5002_vm6 = vmor %vm5000_vm0, %vm5001_vm11 }
 0x8af   : > { %v5045_v3 = vrot.slane %v5044_v41, 1  ;;  %v4311_v2 = vrot.slane %v4310_v33, 4  ;;  %v4474_v48 = vmul.f32 %v9007_v26, %v4298_v37  ;;  %v4212_v13 = vrot.slane %v4211_v7, 4 }
 0x8b0   : > { %v4999_v31 = vadd.f32 %v5754_v17, %v4998_v16  ;;  %v4954_v44 = vadd.f32 %v4953_v57, %v4952_v50  ;;  %v4391_v11 = vrot.slane %v4390_v53, 4  ;;  %v4495_v54 = vadd.f32 %v4494_v24, %v4493_v49  ;;  %v5062_v50 = vld [vmem:[%s9151_s4 + $0x8] sm:$0xff] }
 0x8b1   : > { %v5046_v60 = vadd.f32 %v5045_v3, %v5044_v41  ;;  %v5048_v0 = vsel %vm4496_vm10, %v4782_v43, %v4874_v55  ;;  %v4478_v18 = vrot.slane %v4474_v48, 4  ;;  %v4939_v45 = vmul.f32 %v4923_v22, %v4763_v62 }
 0x8b2   : > { %v5003_v28 = vsel %vm5002_vm6, %v5754_v17, %v4999_v31  ;;  %vm5005_vm14 = vcmp.eq.f32.partialorder %v5004_v47, 8.507059e+37  ;;  %v5050_v15 = vsel %vm4499_vm8, %v5048_v0, %v4954_v44  ;;  %v4312_v35 = vadd.f32 %v4311_v2, %v4310_v33 }
 0x8b3   : > { %v5008_v37 = vsel %vm5005_vm14, %v5007_v9, %v5003_v28  ;;  %v5052_v26 = vsel %vm4502_vm13, %v5050_v15, %v5046_v60  ;;  %v4771_v52 = vadd.f32 %v4770_v56, %v9083_v58  ;;  %v4392_v29 = vadd.f32 %v4391_v11, %v4390_v53 }
 0x8b4   : > { %v5009_v62 = vmul.f32 %v9040_v51, %v5008_v37  ;;  %v5056_v36 = vrot.slane %v5052_v26, 4  ;;  %v4482_v27 = vsel %vm4044_vm3, %v4478_v18, 0.0  ;;  %v4504_v19 = vsel %vm4502_vm13, %v4501_v59, %v4495_v54 }
 0x8b5   : > { %v4213_v25 = vadd.f32 %v4212_v13, %v4211_v7  ;;  %v4483_v14 = vrot.slane %v4482_v27, 4  ;;  %v4863_v5 = vadd.f32 %v4862_v21, %v9105_v32  ;;  %v4941_v58 = vsel %vm4044_vm3, %v4939_v45, 0.0 }
 0x8b6   : > { %v5025_v39 = vmul.f32 %v5009_v62, %v8534_v40  ;;  %v5060_v12 = vsel %vm4044_vm3, %v4504_v19, %v5056_v36  ;;  %v4313_v51 = vrot.slane %v4312_v35, 2  ;;  %v4772_v6 = vrot.slane %v4771_v52, 2 }
 0x8b7   : > { %5119 = vmatpush.msra.mxu3 %v5060_v12  ;;  %v4484_v56 = vadd.f32 %v4483_v14, %v4482_v27  ;;  %v4864_v46 = vrot.slane %v4863_v5, 2  ;;  %v4393_v17 = vrot.slane %v4392_v29, 2  ;;  %v4942_v49 = vrot.slane %v4941_v58, 4 }
 0x8b8   : > { %v5029_v30 = vrot.slane %v5025_v39, 4  ;;  %5599 = vmatmul.msk.f32.vlgmr.msra.gmra.mxu3 %vm3854_vm15, %v5061_v8  ;;  %v4214_v34 = vrot.slane %v4213_v25, 2  ;;  %v4314_v23 = vadd.f32 %v4313_v51, %v4312_v35  ;;  %v4773_v47 = vadd.f32 %v4772_v6, %v4771_v52  ;;  %v5068_v52 = vpop.permute.xlu2 %5067 }
 0x8b9   : > { %v4485_v63 = vrot.slane %v4484_v56, 2  ;;  %v4865_v32 = vadd.f32 %v4864_v46, %v4863_v5  ;;  %v4943_v21 = vadd.f32 %v4942_v49, %v4941_v58  ;;  %v4394_v10 = vadd.f32 %v4393_v17, %v4392_v29  ;;  %v5073_v29 = vpop.permute.xlu1 %5072 }
 0x8ba   : > { %v5033_v40 = vsel %vm4044_vm3, %v5029_v30, 0.0  ;;  %v4215_v59 = vadd.f32 %v4214_v34, %v4213_v25  ;;  %v4315_v33 = vrot.slane %v4314_v23, 1  ;;  %v4774_v24 = vrot.slane %v4773_v47, 1 }
 0x8bb   : > { %v5034_v61 = vrot.slane %v5033_v40, 4  ;;  %v4944_v22 = vrot.slane %v4943_v21, 2  ;;  %v4486_v20 = vadd.f32 %v4485_v63, %v4484_v56  ;;  %v4866_v4 = vrot.slane %v4865_v32, 1  ;;  %v5149_v56 = vld [vmem:[%s680_s11] sm:$0xff] }
 0x8bc   : > { %v4395_v41 = vrot.slane %v4394_v10, 1  ;;  %v4216_v16 = vrot.slane %v4215_v59, 1  ;;  %v4316_v2 = vadd.f32 %v4315_v33, %v4314_v23  ;;  %v4775_v48 = vadd.f32 %v4774_v24, %v4773_v47 }
 0x8bd   : > { %v5035_v38 = vadd.f32 %v5034_v61, %v5033_v40  ;;  %v4945_v7 = vadd.f32 %v4944_v22, %v4943_v21  ;;  %v4487_v9 = vrot.slane %v4486_v20, 1  ;;  %v4867_v57 = vadd.f32 %v4866_v4, %v4865_v32 }
 0x8be   : > { %v4396_v44 = vadd.f32 %v4395_v41, %v4394_v10  ;;  %v4217_v13 = vadd.f32 %v4216_v16, %v4215_v59  ;;  %v5131_v36 = vstv %s5128_s1  ;;  %v5142_v27 = vstv %s5139_s2 }
 0x8bf   : > { %v5036_v55 = vrot.slane %v5035_v38, 2  ;;  %v4946_v53 = vrot.slane %v4945_v7, 1  ;;  %v4488_v11 = vadd.f32 %v4487_v9, %v4486_v20  ;;  %v5047_v60 = vsel %vm4496_vm10, %v4775_v48, %v4867_v57 }
 0x8c0   : > { %5600 = vmatmul.msk.f32.gmra.mxu3 %vm3854_vm15, %v5062_v50  ;;  %v4497_v18 = vsel %vm4496_vm10, %v4217_v13, %v4316_v2  ;;  %v5203_v23 = vstv %s5200_s24 }
 0x8c1   : > { %v5037_v43 = vadd.f32 %v5036_v55, %v5035_v38  ;;  %v4947_v3 = vadd.f32 %v4946_v53, %v4945_v7  ;;  %v4500_v28 = vsel %vm4499_vm8, %v4497_v18, %v4396_v44 }
 0x8c2   : > { %v4503_v37 = vsel %vm4502_vm13, %v4500_v28, %v4488_v11 }
 0x8c3   : > { %v5038_v31 = vrot.slane %v5037_v43, 1  ;;  %v5049_v0 = vsel %vm4499_vm8, %v5047_v60, %v4947_v3 }
 0x8c5   : > { %v5039_v54 = vadd.f32 %v5038_v31, %v5037_v43 }
 0x8c7   : > { %v5051_v45 = vsel %vm4502_vm13, %v5049_v0, %v5039_v54 }
 0x8c8   : > { %v5055_v15 = vrot.slane %v5051_v45, 4 }
 0x8ca   : > { %v5059_v26 = vsel %vm4044_vm3, %v4503_v37, %v5055_v15 }
 0x8cb   : > { %5096 = vmatpush.msra.mxu1 %v5059_v26 }
 0x8cc   : > { %5597 = vmatmul.msk.f32.vlgmr.msra.gmra.mxu1 %vm3854_vm15, %v5061_v8 }
 0x8d4   : > { %5598 = vmatmul.msk.f32.gmra.mxu1 %vm3854_vm15, %v5062_v50  ;;  %vm9641_vm15 = vcmask 195584  }
 0x8d5   : > { %vm9642_vm7 = vmmov %vm9641_vm15 }
 0x93b   : > { %v5121_v35 = vpop.f32.mrf.mxu3 }
 0x93c   : > { %v5122_v62 = vadd.f32 %v5121_v35, %v5068_v52 }
 0x93e   : > { %v5133_v25 = vmul.f32 %v5131_v36, %v5122_v62  ;;  %vm5130_vm3 = vcmp.gt.f32.partialorder %v5122_v62, 0.0 }
 0x940   : > { %v5135_v39 = vsel %vm5130_vm3, %v5122_v62, %v5133_v25 }
 0x941   : > { %v5137_v51 = vadd.f32 %v5135_v39, %v8518_v1 }
 0x943   : > { %v5124_v19 = vpop.f32.mrf.mxu3 }
 0x944   : > { %v5125_v14 = vadd.f32 %v5124_v19, %v5073_v29 }
 0x946   : > { %vm5141_vm12 = vcmp.gt.f32.partialorder %v5125_v14, 0.0  ;;  %v5144_v5 = vmul.f32 %v5142_v27, %v5125_v14 }
 0x948   : > { %v5146_v8 = vsel %vm5141_vm12, %v5125_v14, %v5144_v5 }
 0x949   : > { %v5098_v12 = vpop.f32.mrf.mxu1  ;;  %v5148_v58 = vadd.f32 %v5146_v8, %v8518_v1 }
 0x94a   : > { %v5099_v6 = vadd.f32 %v5098_v12, %v5068_v52 }
 0x94b   : > { %5192 = vmatpush.msrb.mxu0 %v5148_v58 }
 0x94c   : > { %v5132_v30 = vmul.f32 %v5131_v36, %v5099_v6  ;;  %vm5129_vm4 = vcmp.gt.f32.partialorder %v5099_v6, 0.0 }
 0x94d   : > { %5193 = vmatpush.msrb.mxu0 %v5137_v51 }
 0x94e   : > { %v5134_v63 = vsel %vm5129_vm4, %v5099_v6, %v5132_v30 }
 0x94f   : > { %5194 = vmatpush.msrb.mxu0 %v8518_v1  ;;  %v5136_v21 = vadd.f32 %v5134_v63, %v8501_v42  ;;  %v5154_v1 = vpop.permute.xlu0 %5153 }
 0x950   : > { %5602 = vmatmul.msk.f32.vlgmr.msrb.gmra.mxu0 %vm9641_vm15, %v5149_v56 }
 0x951   : > { %v5101_v46 = vpop.f32.mrf.mxu1 }
 0x952   : > { %v5102_v17 = vadd.f32 %v5101_v46, %v5073_v29 }
 0x954   : > { %vm5140_vm1 = vcmp.gt.f32.partialorder %v5102_v17, 0.0  ;;  %v5143_v49 = vmul.f32 %v5142_v27, %v5102_v17 }
 0x956   : > { %v5145_v34 = vsel %vm5140_vm1, %v5102_v17, %v5143_v49 }
 0x957   : > { %v5147_v32 = vadd.f32 %v5145_v34, %v8501_v42 }
 0x959   : > { %5172 = vmatpush.msrb.mxu2 %v5147_v32 }
 0x95b   : > { %5173 = vmatpush.msrb.mxu2 %v5136_v21 }
 0x95d   : > { %5174 = vmatpush.msrb.mxu2 %v8501_v42 }
 0x95e   : > { %5601 = vmatmul.msk.f32.vlgmr.msrb.gmra.mxu2 %vm9642_vm7, %v5149_v56 }
 0x9cd   : > { %v5196_v40 = vpop.f32.mrf.mxu0 }
 0x9ce   : > { %v5197_v47 = vadd.f32 %v5196_v40, %v5154_v1 }
 0x9d0   : > { %vm5202_vm2 = vcmp.gt.f32.partialorder %v5197_v47, 0.0  ;;  %v5205_v61 = vmul.f32 %v5203_v23, %v5197_v47 }
 0x9d2   : > { %v5207_v10 = vsel %vm5202_vm2, %v5197_v47, %v5205_v61 }
 0x9d3   : > { %5209 = vst [vmem:[%s689_s20 + $0x8] sm:$0xff] %v5207_v10 }
 0x9e1   : > { %v5176_v22 = vpop.f32.mrf.mxu2 }
 0x9e2   : > { %v5177_v59 = vadd.f32 %v5176_v22, %v5154_v1 }
 0x9e4   : > { %vm5201_vm5 = vcmp.gt.f32.partialorder %v5177_v59, 0.0  ;;  %v5204_v42 = vmul.f32 %v5203_v23, %v5177_v59 }
 0x9e6   : > { %v5206_v20 = vsel %vm5201_vm5, %v5177_v59, %v5204_v42 }
 0x9e7   : > { %5208 = vst [vmem:[%s689_s20] sm:$0xff] %v5206_v20 }
 0x9e8 PF: > { %s9644_s9 = sld [smem:[#allocation12_spill]] }
 0x9ee   : > { %s27_s29 = sadd.s32 1, %s9644_s9  }
 0x9ef   : > { %p24_p7 = scmp.ge.s32.totalorder %s27_s29, 4  }
 0x9f1   :  { %26 = sbr.rel (!%p24_p7) target bundleno = 19 (0x13), region = 187 }
 0x9f6   :  { %5231 = vsyncpa [#allocation4], 1 }
 0x9f7   :  { %5233 = vsyncpa [#allocation4 + $0x1], 1 }
 0x9f8   :  { %5234 = vsyncpa [#allocation8], 1 }
 0x9f9   :  { %5235 = vsyncpa [#allocation5], 1 }
 0x9fa   :  { %5237 = vsyncpa [#allocation5 + $0x1], 1 }

</bundles_post_ra>
